<compile_context>
chip_gen: v6e
topology: v6e:2x2x1
jax: 0.10.0
libtpu: 0.0.40
codegen_flags: <defaults>
</compile_context>

<pallas_src>
import jax
import jax.numpy as jnp
from jax import lax
from jax.experimental import pallas as pl
from jax.experimental.pallas import tpu as pltpu

CNN_W = 100              # CNNinput_width
POOL_W = CNN_W - 2       # width after MaxPool1d(kernel=3, stride=1) = 98
K = 5                    # conv kernel size
PAD = 2                  # conv padding
PAD_W = 128              # lane-padded conv width (one full vreg of lanes)
C_IN, C1, C2 = 2, 4, 8   # channel counts
F1, F2, F3 = 350, 80, 4  # fc widths
NEG_SLOPE = 0.01         # F.leaky_relu default
BN_EPS = 1e-5            # nn.BatchNorm1d default


def _leaky_relu(x):
    return jnp.where(x >= 0, x, NEG_SLOPE * x)


def net_kernel(x_ref,
               w1_ref, b1_ref, g1_ref, be1_ref,
               w2_ref, b2_ref, g2_ref, be2_ref,
               fw1_ref, fb1_ref, fw2_ref, fb2_ref, fw3_ref, fb3_ref,
               out_ref, pad1_ref, pad2_ref):
    batch = x_ref.shape[0]
    inv_n = 1.0 / float(batch * CNN_W)   # BN normalizer (biased variance)

    def bn_lrelu(h, gamma, beta):
        # training-mode BatchNorm1d for one channel (h: (B, W)): one pass of
        # sum / sum-of-squares, then affine + leaky_relu.
        s = jnp.sum(h, axis=(0, 1), keepdims=True)        # (1, 1)
        ss = jnp.sum(h * h, axis=(0, 1), keepdims=True)   # (1, 1)
        mean = s * inv_n
        var = ss * inv_n - mean * mean
        scale = gamma * lax.rsqrt(var + BN_EPS)
        shift = beta - mean * scale
        return _leaky_relu(h * scale + shift)

    # ---- in-kernel zero padding (conv1's padding=2) into VMEM scratch ----
    pad1_ref[...] = jnp.zeros_like(pad1_ref)
    pad2_ref[...] = jnp.zeros_like(pad2_ref)
    pad1_ref[:, :, PAD:PAD + CNN_W] = x_ref[...]
    xp = pad1_ref[...]                                    # (B, 2, 128)

    # shifted lane-slices, computed once and reused for every output channel
    sl1 = [[xp[:, ci, k:k + CNN_W] for k in range(K)] for ci in range(C_IN)]

    # ---- conv1 (2->4, K=5) + bn1 + leaky_relu; scalar taps from SMEM ----
    for co in range(C1):
        acc = jnp.full((batch, CNN_W), b1_ref[co], jnp.float32)
        for ci in range(C_IN):
            for k in range(K):
                acc = acc + w1_ref[(co * C_IN + ci) * K + k] * sl1[ci][k]
        h = bn_lrelu(acc, g1_ref[co], be1_ref[co])        # (B, 100)
        # channel co of conv2's zero-padded input (border lanes stay zero)
        pad2_ref[co, :, PAD:PAD + CNN_W] = h

    hp = pad2_ref[...]                                    # (4, B, 128)
    sl2 = [[hp[ci, :, k:k + CNN_W] for k in range(K)] for ci in range(C1)]

    # ---- conv2 (4->8) + bn2 + lrelu + maxpool(3,1) + fc1 contraction ----
    z = jnp.zeros((batch, F1), jnp.float32)
    for co in range(C2):
        acc = jnp.full((batch, CNN_W), b2_ref[co], jnp.float32)
        for ci in range(C1):
            for k in range(K):
                acc = acc + w2_ref[(co * C1 + ci) * K + k] * sl2[ci][k]
        h = bn_lrelu(acc, g2_ref[co], be2_ref[co])        # (B, 100)
        p = jnp.maximum(jnp.maximum(h[:, 0:POOL_W], h[:, 1:POOL_W + 1]),
                        h[:, 2:POOL_W + 2])               # (B, 98)
        # torch's channel-major .view folded into the contraction:
        # z += p_c @ fw1[c]   with fw1 pre-reshaped to (8, 98, 350) at init.
        z = z + jnp.dot(p, fw1_ref[co], preferred_element_type=jnp.float32)

    # ---- MLP tail (MXU) ----
    z = _leaky_relu(z + fb1_ref[...])
    z = _leaky_relu(jnp.dot(z, fw2_ref[...],
                            preferred_element_type=jnp.float32) + fb2_ref[...])
    z = _leaky_relu(jnp.dot(z, fw3_ref[...],
                            preferred_element_type=jnp.float32) + fb3_ref[...])
    out_ref[...] = z


@jax.jit
def net_forward(x, params):
    (w1, b1, g1, be1, w2, b2, g2, be2,
     fw1, fb1, fw2, fb2, fw3, fb3) = params
    batch = x.shape[0]

    vmem = pl.BlockSpec(memory_space=pltpu.MemorySpace.VMEM)
    smem = pl.BlockSpec(memory_space=pltpu.MemorySpace.SMEM)

    macs = batch * (C1 * CNN_W * C_IN * K + C2 * CNN_W * C1 * K
                    + C2 * POOL_W * F1 + F1 * F2 + F2 * F3)
    n_param = sum(int(p.size) for p in params)
    cost = pl.CostEstimate(flops=2 * macs,
                           transcendentals=C1 + C2,   # one rsqrt per BN channel
                           bytes_accessed=4 * (int(x.size) + n_param + batch * F3))

    # NOTE: at batch=4 a grid would be pure overhead; if batch is scaled up,
    # add a batch grid with dimension_semantics=("parallel",) (v7x has 2 TCs),
    # which then requires a cross-block pass for the BN batch statistics.
    return pl.pallas_call(
        net_kernel,
        out_shape=jax.ShapeDtypeStruct((batch, F3), jnp.float32),
        in_specs=[vmem] + [smem] * 8 + [vmem] * 6,
        out_specs=vmem,
        scratch_shapes=[pltpu.VMEM((batch, C_IN, PAD_W), jnp.float32),  # padded conv1 input
                        pltpu.VMEM((C1, batch, PAD_W), jnp.float32)],   # padded conv2 input
        compiler_params=pltpu.CompilerParams(vmem_limit_bytes=8 * 1024 * 1024),
        cost_estimate=cost,
    )(x, w1, b1, g1, be1, w2, b2, g2, be2, fw1, fb1, fw2, fb2, fw3, fb3)


def init_params(key):
    ks = jax.random.split(key, 10)

    def u(k, shape, fan_in):
        bound = 1.0 / (fan_in ** 0.5)
        return jax.random.uniform(k, shape, jnp.float32, -bound, bound)

    # conv weights/biases: PyTorch (Cout, Cin, K) layout, flattened for SMEM
    w1 = u(ks[0], (C1, C_IN, K), C_IN * K).reshape(-1)    # (40,)
    b1 = u(ks[1], (C1,), C_IN * K)
    w2 = u(ks[2], (C2, C1, K), C1 * K).reshape(-1)        # (160,)
    b2 = u(ks[3], (C2,), C1 * K)
    g1 = jnp.ones((C1,), jnp.float32)
    be1 = jnp.zeros((C1,), jnp.float32)
    g2 = jnp.ones((C2,), jnp.float32)
    be2 = jnp.zeros((C2,), jnp.float32)

    # fc weights pre-transposed to (in, out); fc1 additionally reshaped so the
    # kernel contracts per conv channel: fw1[c, w, n] == fc1.weight.T[c*98+w, n]
    fw1 = u(ks[4], (C2 * POOL_W, F1), C2 * POOL_W).reshape(C2, POOL_W, F1)
    fb1 = u(ks[5], (1, F1), C2 * POOL_W)
    fw2 = u(ks[6], (F1, F2), F1)
    fb2 = u(ks[7], (1, F2), F1)
    fw3 = u(ks[8], (F2, F3), F2)
    fb3 = u(ks[9], (1, F3), F2)

    return (w1, b1, g1, be1, w2, b2, g2, be2,
            fw1, fb1, fw2, fb2, fw3, fb3)


def reference_forward(x, params):
    """Pure-JAX (XLA) reference with identical math, for a sanity check."""
    (w1, b1, g1, be1, w2, b2, g2, be2,
     fw1, fb1, fw2, fb2, fw3, fb3) = params
    c1 = w1.reshape(C1, C_IN, K)
    c2 = w2.reshape(C2, C1, K)

    def conv(t, w, b):
        y = lax.conv_general_dilated(t, w, (1,), [(PAD, PAD)],
                                     dimension_numbers=('NCH', 'OIH', 'NCH'))
        return y + b.reshape(1, -1, 1)

    def bn(h, g, be):
        m = h.mean(axis=(0, 2), keepdims=True)
        v = ((h - m) ** 2).mean(axis=(0, 2), keepdims=True)
        return (h - m) / jnp.sqrt(v + BN_EPS) * g.reshape(1, -1, 1) + be.reshape(1, -1, 1)

    lr = lambda t: jnp.where(t >= 0, t, NEG_SLOPE * t)
    h = lr(bn(conv(x, c1, b1), g1, be1))
    h = lr(bn(conv(h, c2, b2), g2, be2))
    h = jnp.max(jnp.stack([h[:, :, i:i + POOL_W] for i in range(3)]), axis=0)
    z = h.reshape(x.shape[0], C2 * POOL_W)               # torch channel-major .view
    z = lr(z @ fw1.reshape(C2 * POOL_W, F1) + fb1)
    z = lr(z @ fw2 + fb2)
    z = lr(z @ fw3 + fb3)
    return z


if __name__ == "__main__":
    key = jax.random.PRNGKey(0)
    pkey, xkey = jax.random.split(key)
    params = init_params(pkey)

    batch = 4
    x = jax.random.normal(xkey, (batch, C_IN, CNN_W), jnp.float32)  # NCW, like PyTorch

    out = jax.block_until_ready(net_forward(x, params))
    assert out.shape == (batch, F3), out.shape

    ref = reference_forward(x, params)
    max_err = float(jnp.max(jnp.abs(out - ref)))
    assert jnp.allclose(out, ref, atol=2e-2, rtol=2e-2), f"max_err={max_err}"

    print("KERNEL_OK")
</pallas_src>

<mosaic_0001>
module attributes {stable_mosaic.version = 11 : i64} {
  func.func @net_kernel(%arg0: memref<4x2x100xf32, #tpu.memory_space<vmem>>, %arg1: memref<40xf32, #tpu.memory_space<smem>>, %arg2: memref<4xf32, #tpu.memory_space<smem>>, %arg3: memref<4xf32, #tpu.memory_space<smem>>, %arg4: memref<4xf32, #tpu.memory_space<smem>>, %arg5: memref<160xf32, #tpu.memory_space<smem>>, %arg6: memref<8xf32, #tpu.memory_space<smem>>, %arg7: memref<8xf32, #tpu.memory_space<smem>>, %arg8: memref<8xf32, #tpu.memory_space<smem>>, %arg9: memref<8x98x350xf32, #tpu.memory_space<vmem>>, %arg10: memref<1x350xf32, #tpu.memory_space<vmem>>, %arg11: memref<350x80xf32, #tpu.memory_space<vmem>>, %arg12: memref<1x80xf32, #tpu.memory_space<vmem>>, %arg13: memref<80x4xf32, #tpu.memory_space<vmem>>, %arg14: memref<1x4xf32, #tpu.memory_space<vmem>>, %arg15: memref<4x4xf32, #tpu.memory_space<vmem>>, %arg16: memref<4x2x128xf32, #tpu.memory_space<vmem>>, %arg17: memref<4x4x128xf32, #tpu.memory_space<vmem>>) attributes {dimension_semantics = [], scalar_prefetch = 0 : i64, scratch_operands = 2 : i64, tpu.core_type = #tpu.core_type<tc>} {
    %cst = arith.constant 0.000000e+00 : f32
    %0 = vector.broadcast %cst : f32 to vector<4x2x128xf32>
    %c0 = arith.constant 0 : index
    %c0_0 = arith.constant 0 : index
    %c0_1 = arith.constant 0 : index
    %1 = vector.load %arg16[%c0, %c0_0, %c0_1] : memref<4x2x128xf32, #tpu.memory_space<vmem>>, vector<4x2x128xf32>
    tpu.vector_store %arg16[%c0, %c0_0, %c0_1], %0 {strides = array<i32>} : memref<4x2x128xf32, #tpu.memory_space<vmem>>, vector<4x2x128xf32>,
    %cst_2 = arith.constant 0.000000e+00 : f32
    %2 = vector.broadcast %cst_2 : f32 to vector<4x4x128xf32>
    %c0_3 = arith.constant 0 : index
    %c0_4 = arith.constant 0 : index
    %c0_5 = arith.constant 0 : index
    %3 = vector.load %arg17[%c0_3, %c0_4, %c0_5] : memref<4x4x128xf32, #tpu.memory_space<vmem>>, vector<4x4x128xf32>
    tpu.vector_store %arg17[%c0_3, %c0_4, %c0_5], %2 {strides = array<i32>} : memref<4x4x128xf32, #tpu.memory_space<vmem>>, vector<4x4x128xf32>,
    %c0_6 = arith.constant 0 : index
    %c0_7 = arith.constant 0 : index
    %c0_8 = arith.constant 0 : index
    %4 = vector.load %arg0[%c0_6, %c0_7, %c0_8] : memref<4x2x100xf32, #tpu.memory_space<vmem>>, vector<4x2x100xf32>
    %c0_9 = arith.constant 0 : index
    %c0_10 = arith.constant 0 : index
    %c2 = arith.constant 2 : index
    %5 = vector.load %arg16[%c0_9, %c0_10, %c2] : memref<4x2x128xf32, #tpu.memory_space<vmem>>, vector<4x2x100xf32>
    tpu.vector_store %arg16[%c0_9, %c0_10, %c2], %4 {strides = array<i32>} : memref<4x2x128xf32, #tpu.memory_space<vmem>>, vector<4x2x100xf32>,
    %c0_11 = arith.constant 0 : index
    %c0_12 = arith.constant 0 : index
    %c0_13 = arith.constant 0 : index
    %6 = vector.load %arg16[%c0_11, %c0_12, %c0_13] : memref<4x2x128xf32, #tpu.memory_space<vmem>>, vector<4x2x128xf32>
    %7 = vector.extract_strided_slice %6 {offsets = [0, 0, 0], sizes = [4, 1, 100], strides = [1, 1, 1]} : vector<4x2x128xf32> to vector<4x1x100xf32>
    %8 = vector.shape_cast %7 : vector<4x1x100xf32> to vector<4x100xf32>
    %9 = vector.extract_strided_slice %6 {offsets = [0, 0, 1], sizes = [4, 1, 100], strides = [1, 1, 1]} : vector<4x2x128xf32> to vector<4x1x100xf32>
    %10 = vector.shape_cast %9 : vector<4x1x100xf32> to vector<4x100xf32>
    %11 = vector.extract_strided_slice %6 {offsets = [0, 0, 2], sizes = [4, 1, 100], strides = [1, 1, 1]} : vector<4x2x128xf32> to vector<4x1x100xf32>
    %12 = vector.shape_cast %11 : vector<4x1x100xf32> to vector<4x100xf32>
    %13 = vector.extract_strided_slice %6 {offsets = [0, 0, 3], sizes = [4, 1, 100], strides = [1, 1, 1]} : vector<4x2x128xf32> to vector<4x1x100xf32>
    %14 = vector.shape_cast %13 : vector<4x1x100xf32> to vector<4x100xf32>
    %15 = vector.extract_strided_slice %6 {offsets = [0, 0, 4], sizes = [4, 1, 100], strides = [1, 1, 1]} : vector<4x2x128xf32> to vector<4x1x100xf32>
    %16 = vector.shape_cast %15 : vector<4x1x100xf32> to vector<4x100xf32>
    %17 = vector.extract_strided_slice %6 {offsets = [0, 1, 0], sizes = [4, 1, 100], strides = [1, 1, 1]} : vector<4x2x128xf32> to vector<4x1x100xf32>
    %18 = vector.shape_cast %17 : vector<4x1x100xf32> to vector<4x100xf32>
    %19 = vector.extract_strided_slice %6 {offsets = [0, 1, 1], sizes = [4, 1, 100], strides = [1, 1, 1]} : vector<4x2x128xf32> to vector<4x1x100xf32>
    %20 = vector.shape_cast %19 : vector<4x1x100xf32> to vector<4x100xf32>
    %21 = vector.extract_strided_slice %6 {offsets = [0, 1, 2], sizes = [4, 1, 100], strides = [1, 1, 1]} : vector<4x2x128xf32> to vector<4x1x100xf32>
    %22 = vector.shape_cast %21 : vector<4x1x100xf32> to vector<4x100xf32>
    %23 = vector.extract_strided_slice %6 {offsets = [0, 1, 3], sizes = [4, 1, 100], strides = [1, 1, 1]} : vector<4x2x128xf32> to vector<4x1x100xf32>
    %24 = vector.shape_cast %23 : vector<4x1x100xf32> to vector<4x100xf32>
    %25 = vector.extract_strided_slice %6 {offsets = [0, 1, 4], sizes = [4, 1, 100], strides = [1, 1, 1]} : vector<4x2x128xf32> to vector<4x1x100xf32>
    %26 = vector.shape_cast %25 : vector<4x1x100xf32> to vector<4x100xf32>
    %c0_14 = arith.constant 0 : index
    %27 = memref.load %arg2[%c0_14] : memref<4xf32, #tpu.memory_space<smem>>
    %28 = vector.broadcast %27 : f32 to vector<4x100xf32>
    %c0_15 = arith.constant 0 : index
    %29 = memref.load %arg1[%c0_15] : memref<40xf32, #tpu.memory_space<smem>>
    %30 = vector.broadcast %29 : f32 to vector<4x100xf32>
    %31 = arith.mulf %30, %8 : vector<4x100xf32>
    %32 = arith.addf %28, %31 : vector<4x100xf32>
    %c1 = arith.constant 1 : index
    %33 = memref.load %arg1[%c1] : memref<40xf32, #tpu.memory_space<smem>>
    %34 = vector.broadcast %33 : f32 to vector<4x100xf32>
    %35 = arith.mulf %34, %10 : vector<4x100xf32>
    %36 = arith.addf %32, %35 : vector<4x100xf32>
    %c2_16 = arith.constant 2 : index
    %37 = memref.load %arg1[%c2_16] : memref<40xf32, #tpu.memory_space<smem>>
    %38 = vector.broadcast %37 : f32 to vector<4x100xf32>
    %39 = arith.mulf %38, %12 : vector<4x100xf32>
    %40 = arith.addf %36, %39 : vector<4x100xf32>
    %c3 = arith.constant 3 : index
    %41 = memref.load %arg1[%c3] : memref<40xf32, #tpu.memory_space<smem>>
    %42 = vector.broadcast %41 : f32 to vector<4x100xf32>
    %43 = arith.mulf %42, %14 : vector<4x100xf32>
    %44 = arith.addf %40, %43 : vector<4x100xf32>
    %c4 = arith.constant 4 : index
    %45 = memref.load %arg1[%c4] : memref<40xf32, #tpu.memory_space<smem>>
    %46 = vector.broadcast %45 : f32 to vector<4x100xf32>
    %47 = arith.mulf %46, %16 : vector<4x100xf32>
    %48 = arith.addf %44, %47 : vector<4x100xf32>
    %c5 = arith.constant 5 : index
    %49 = memref.load %arg1[%c5] : memref<40xf32, #tpu.memory_space<smem>>
    %50 = vector.broadcast %49 : f32 to vector<4x100xf32>
    %51 = arith.mulf %50, %18 : vector<4x100xf32>
    %52 = arith.addf %48, %51 : vector<4x100xf32>
    %c6 = arith.constant 6 : index
    %53 = memref.load %arg1[%c6] : memref<40xf32, #tpu.memory_space<smem>>
    %54 = vector.broadcast %53 : f32 to vector<4x100xf32>
    %55 = arith.mulf %54, %20 : vector<4x100xf32>
    %56 = arith.addf %52, %55 : vector<4x100xf32>
    %c7 = arith.constant 7 : index
    %57 = memref.load %arg1[%c7] : memref<40xf32, #tpu.memory_space<smem>>
    %58 = vector.broadcast %57 : f32 to vector<4x100xf32>
    %59 = arith.mulf %58, %22 : vector<4x100xf32>
    %60 = arith.addf %56, %59 : vector<4x100xf32>
    %c8 = arith.constant 8 : index
    %61 = memref.load %arg1[%c8] : memref<40xf32, #tpu.memory_space<smem>>
    %62 = vector.broadcast %61 : f32 to vector<4x100xf32>
    %63 = arith.mulf %62, %24 : vector<4x100xf32>
    %64 = arith.addf %60, %63 : vector<4x100xf32>
    %c9 = arith.constant 9 : index
    %65 = memref.load %arg1[%c9] : memref<40xf32, #tpu.memory_space<smem>>
    %66 = vector.broadcast %65 : f32 to vector<4x100xf32>
    %67 = arith.mulf %66, %26 : vector<4x100xf32>
    %68 = arith.addf %64, %67 : vector<4x100xf32>
    %c0_17 = arith.constant 0 : index
    %69 = memref.load %arg3[%c0_17] : memref<4xf32, #tpu.memory_space<smem>>
    %c0_18 = arith.constant 0 : index
    %70 = memref.load %arg4[%c0_18] : memref<4xf32, #tpu.memory_space<smem>>
    %71 = vector.shape_cast %68 : vector<4x100xf32> to vector<1x4x100xf32>
    %cst_19 = arith.constant dense<0.000000e+00> : vector<1xf32>
    %72 = vector.multi_reduction <add>, %71, %cst_19 [1, 2] : vector<1x4x100xf32> to vector<1xf32>
    %73 = vector.shape_cast %72 : vector<1xf32> to vector<1x1x1xf32>
    %74 = vector.extract %73[0, 0, 0] : f32 from vector<1x1x1xf32>
    %75 = vector.broadcast %74 : f32 to vector<1x1xf32>
    %76 = arith.mulf %68, %68 : vector<4x100xf32>
    %77 = vector.shape_cast %76 : vector<4x100xf32> to vector<1x4x100xf32>
    %cst_20 = arith.constant dense<0.000000e+00> : vector<1xf32>
    %78 = vector.multi_reduction <add>, %77, %cst_20 [1, 2] : vector<1x4x100xf32> to vector<1xf32>
    %79 = vector.shape_cast %78 : vector<1xf32> to vector<1x1x1xf32>
    %80 = vector.extract %79[0, 0, 0] : f32 from vector<1x1x1xf32>
    %81 = vector.broadcast %80 : f32 to vector<1x1xf32>
    %cst_21 = arith.constant 2.500000e-03 : f32
    %82 = vector.broadcast %cst_21 : f32 to vector<1x1xf32>
    %83 = arith.mulf %75, %82 : vector<1x1xf32>
    %cst_22 = arith.constant 2.500000e-03 : f32
    %84 = vector.broadcast %cst_22 : f32 to vector<1x1xf32>
    %85 = arith.mulf %81, %84 : vector<1x1xf32>
    %86 = arith.mulf %83, %83 : vector<1x1xf32>
    %87 = arith.subf %85, %86 : vector<1x1xf32>
    %cst_23 = arith.constant 9.99999974E-6 : f32
    %88 = vector.broadcast %cst_23 : f32 to vector<1x1xf32>
    %89 = arith.addf %87, %88 : vector<1x1xf32>
    %90 = math.rsqrt %89 : vector<1x1xf32>
    %91 = vector.broadcast %69 : f32 to vector<1x1xf32>
    %92 = arith.mulf %91, %90 : vector<1x1xf32>
    %93 = arith.mulf %83, %92 : vector<1x1xf32>
    %94 = vector.broadcast %70 : f32 to vector<1x1xf32>
    %95 = arith.subf %94, %93 : vector<1x1xf32>
    %96 = vector.broadcast %92 : vector<1x1xf32> to vector<4x100xf32>
    %97 = arith.mulf %68, %96 : vector<4x100xf32>
    %98 = vector.broadcast %95 : vector<1x1xf32> to vector<4x100xf32>
    %99 = arith.addf %97, %98 : vector<4x100xf32>
    %cst_24 = arith.constant 0.000000e+00 : f32
    %100 = vector.broadcast %cst_24 : f32 to vector<4x100xf32>
    %101 = arith.cmpf oge, %99, %100 : vector<4x100xf32>
    %cst_25 = arith.constant 0.00999999977 : f32
    %102 = vector.broadcast %cst_25 : f32 to vector<4x100xf32>
    %103 = arith.mulf %102, %99 : vector<4x100xf32>
    %104 = arith.select %101, %99, %103 : vector<4x100xi1>, vector<4x100xf32>
    %c0_26 = arith.constant 0 : index
    %c0_27 = arith.constant 0 : index
    %c2_28 = arith.constant 2 : index
    %105 = vector.load %arg17[%c0_26, %c0_27, %c2_28] : memref<4x4x128xf32, #tpu.memory_space<vmem>>, vector<1x4x100xf32>
    %106 = vector.shape_cast %105 : vector<1x4x100xf32> to vector<4x100xf32>
    %107 = vector.shape_cast %104 : vector<4x100xf32> to vector<1x4x100xf32>
    tpu.vector_store %arg17[%c0_26, %c0_27, %c2_28], %107 {strides = array<i32>} : memref<4x4x128xf32, #tpu.memory_space<vmem>>, vector<1x4x100xf32>,
    %c1_29 = arith.constant 1 : index
    %108 = memref.load %arg2[%c1_29] : memref<4xf32, #tpu.memory_space<smem>>
    %109 = vector.broadcast %108 : f32 to vector<4x100xf32>
    %c10 = arith.constant 10 : index
    %110 = memref.load %arg1[%c10] : memref<40xf32, #tpu.memory_space<smem>>
    %111 = vector.broadcast %110 : f32 to vector<4x100xf32>
    %112 = arith.mulf %111, %8 : vector<4x100xf32>
    %113 = arith.addf %109, %112 : vector<4x100xf32>
    %c11 = arith.constant 11 : index
    %114 = memref.load %arg1[%c11] : memref<40xf32, #tpu.memory_space<smem>>
    %115 = vector.broadcast %114 : f32 to vector<4x100xf32>
    %116 = arith.mulf %115, %10 : vector<4x100xf32>
    %117 = arith.addf %113, %116 : vector<4x100xf32>
    %c12 = arith.constant 12 : index
    %118 = memref.load %arg1[%c12] : memref<40xf32, #tpu.memory_space<smem>>
    %119 = vector.broadcast %118 : f32 to vector<4x100xf32>
    %120 = arith.mulf %119, %12 : vector<4x100xf32>
    %121 = arith.addf %117, %120 : vector<4x100xf32>
    %c13 = arith.constant 13 : index
    %122 = memref.load %arg1[%c13] : memref<40xf32, #tpu.memory_space<smem>>
    %123 = vector.broadcast %122 : f32 to vector<4x100xf32>
    %124 = arith.mulf %123, %14 : vector<4x100xf32>
    %125 = arith.addf %121, %124 : vector<4x100xf32>
    %c14 = arith.constant 14 : index
    %126 = memref.load %arg1[%c14] : memref<40xf32, #tpu.memory_space<smem>>
    %127 = vector.broadcast %126 : f32 to vector<4x100xf32>
    %128 = arith.mulf %127, %16 : vector<4x100xf32>
    %129 = arith.addf %125, %128 : vector<4x100xf32>
    %c15 = arith.constant 15 : index
    %130 = memref.load %arg1[%c15] : memref<40xf32, #tpu.memory_space<smem>>
    %131 = vector.broadcast %130 : f32 to vector<4x100xf32>
    %132 = arith.mulf %131, %18 : vector<4x100xf32>
    %133 = arith.addf %129, %132 : vector<4x100xf32>
    %c16 = arith.constant 16 : index
    %134 = memref.load %arg1[%c16] : memref<40xf32, #tpu.memory_space<smem>>
    %135 = vector.broadcast %134 : f32 to vector<4x100xf32>
    %136 = arith.mulf %135, %20 : vector<4x100xf32>
    %137 = arith.addf %133, %136 : vector<4x100xf32>
    %c17 = arith.constant 17 : index
    %138 = memref.load %arg1[%c17] : memref<40xf32, #tpu.memory_space<smem>>
    %139 = vector.broadcast %138 : f32 to vector<4x100xf32>
    %140 = arith.mulf %139, %22 : vector<4x100xf32>
    %141 = arith.addf %137, %140 : vector<4x100xf32>
    %c18 = arith.constant 18 : index
    %142 = memref.load %arg1[%c18] : memref<40xf32, #tpu.memory_space<smem>>
    %143 = vector.broadcast %142 : f32 to vector<4x100xf32>
    %144 = arith.mulf %143, %24 : vector<4x100xf32>
    %145 = arith.addf %141, %144 : vector<4x100xf32>
    %c19 = arith.constant 19 : index
    %146 = memref.load %arg1[%c19] : memref<40xf32, #tpu.memory_space<smem>>
    %147 = vector.broadcast %146 : f32 to vector<4x100xf32>
    %148 = arith.mulf %147, %26 : vector<4x100xf32>
    %149 = arith.addf %145, %148 : vector<4x100xf32>
    %c1_30 = arith.constant 1 : index
    %150 = memref.load %arg3[%c1_30] : memref<4xf32, #tpu.memory_space<smem>>
    %c1_31 = arith.constant 1 : index
    %151 = memref.load %arg4[%c1_31] : memref<4xf32, #tpu.memory_space<smem>>
    %152 = vector.shape_cast %149 : vector<4x100xf32> to vector<1x4x100xf32>
    %cst_32 = arith.constant dense<0.000000e+00> : vector<1xf32>
    %153 = vector.multi_reduction <add>, %152, %cst_32 [1, 2] : vector<1x4x100xf32> to vector<1xf32>
    %154 = vector.shape_cast %153 : vector<1xf32> to vector<1x1x1xf32>
    %155 = vector.extract %154[0, 0, 0] : f32 from vector<1x1x1xf32>
    %156 = vector.broadcast %155 : f32 to vector<1x1xf32>
    %157 = arith.mulf %149, %149 : vector<4x100xf32>
    %158 = vector.shape_cast %157 : vector<4x100xf32> to vector<1x4x100xf32>
    %cst_33 = arith.constant dense<0.000000e+00> : vector<1xf32>
    %159 = vector.multi_reduction <add>, %158, %cst_33 [1, 2] : vector<1x4x100xf32> to vector<1xf32>
    %160 = vector.shape_cast %159 : vector<1xf32> to vector<1x1x1xf32>
    %161 = vector.extract %160[0, 0, 0] : f32 from vector<1x1x1xf32>
    %162 = vector.broadcast %161 : f32 to vector<1x1xf32>
    %cst_34 = arith.constant 2.500000e-03 : f32
    %163 = vector.broadcast %cst_34 : f32 to vector<1x1xf32>
    %164 = arith.mulf %156, %163 : vector<1x1xf32>
    %cst_35 = arith.constant 2.500000e-03 : f32
    %165 = vector.broadcast %cst_35 : f32 to vector<1x1xf32>
    %166 = arith.mulf %162, %165 : vector<1x1xf32>
    %167 = arith.mulf %164, %164 : vector<1x1xf32>
    %168 = arith.subf %166, %167 : vector<1x1xf32>
    %cst_36 = arith.constant 9.99999974E-6 : f32
    %169 = vector.broadcast %cst_36 : f32 to vector<1x1xf32>
    %170 = arith.addf %168, %169 : vector<1x1xf32>
    %171 = math.rsqrt %170 : vector<1x1xf32>
    %172 = vector.broadcast %150 : f32 to vector<1x1xf32>
    %173 = arith.mulf %172, %171 : vector<1x1xf32>
    %174 = arith.mulf %164, %173 : vector<1x1xf32>
    %175 = vector.broadcast %151 : f32 to vector<1x1xf32>
    %176 = arith.subf %175, %174 : vector<1x1xf32>
    %177 = vector.broadcast %173 : vector<1x1xf32> to vector<4x100xf32>
    %178 = arith.mulf %149, %177 : vector<4x100xf32>
    %179 = vector.broadcast %176 : vector<1x1xf32> to vector<4x100xf32>
    %180 = arith.addf %178, %179 : vector<4x100xf32>
    %cst_37 = arith.constant 0.000000e+00 : f32
    %181 = vector.broadcast %cst_37 : f32 to vector<4x100xf32>
    %182 = arith.cmpf oge, %180, %181 : vector<4x100xf32>
    %cst_38 = arith.constant 0.00999999977 : f32
    %183 = vector.broadcast %cst_38 : f32 to vector<4x100xf32>
    %184 = arith.mulf %183, %180 : vector<4x100xf32>
    %185 = arith.select %182, %180, %184 : vector<4x100xi1>, vector<4x100xf32>
    %c1_39 = arith.constant 1 : index
    %c0_40 = arith.constant 0 : index
    %c2_41 = arith.constant 2 : index
    %186 = vector.load %arg17[%c1_39, %c0_40, %c2_41] : memref<4x4x128xf32, #tpu.memory_space<vmem>>, vector<1x4x100xf32>
    %187 = vector.shape_cast %186 : vector<1x4x100xf32> to vector<4x100xf32>
    %188 = vector.shape_cast %185 : vector<4x100xf32> to vector<1x4x100xf32>
    tpu.vector_store %arg17[%c1_39, %c0_40, %c2_41], %188 {strides = array<i32>} : memref<4x4x128xf32, #tpu.memory_space<vmem>>, vector<1x4x100xf32>,
    %c2_42 = arith.constant 2 : index
    %189 = memref.load %arg2[%c2_42] : memref<4xf32, #tpu.memory_space<smem>>
    %190 = vector.broadcast %189 : f32 to vector<4x100xf32>
    %c20 = arith.constant 20 : index
    %191 = memref.load %arg1[%c20] : memref<40xf32, #tpu.memory_space<smem>>
    %192 = vector.broadcast %191 : f32 to vector<4x100xf32>
    %193 = arith.mulf %192, %8 : vector<4x100xf32>
    %194 = arith.addf %190, %193 : vector<4x100xf32>
    %c21 = arith.constant 21 : index
    %195 = memref.load %arg1[%c21] : memref<40xf32, #tpu.memory_space<smem>>
    %196 = vector.broadcast %195 : f32 to vector<4x100xf32>
    %197 = arith.mulf %196, %10 : vector<4x100xf32>
    %198 = arith.addf %194, %197 : vector<4x100xf32>
    %c22 = arith.constant 22 : index
    %199 = memref.load %arg1[%c22] : memref<40xf32, #tpu.memory_space<smem>>
    %200 = vector.broadcast %199 : f32 to vector<4x100xf32>
    %201 = arith.mulf %200, %12 : vector<4x100xf32>
    %202 = arith.addf %198, %201 : vector<4x100xf32>
    %c23 = arith.constant 23 : index
    %203 = memref.load %arg1[%c23] : memref<40xf32, #tpu.memory_space<smem>>
    %204 = vector.broadcast %203 : f32 to vector<4x100xf32>
    %205 = arith.mulf %204, %14 : vector<4x100xf32>
    %206 = arith.addf %202, %205 : vector<4x100xf32>
    %c24 = arith.constant 24 : index
    %207 = memref.load %arg1[%c24] : memref<40xf32, #tpu.memory_space<smem>>
    %208 = vector.broadcast %207 : f32 to vector<4x100xf32>
    %209 = arith.mulf %208, %16 : vector<4x100xf32>
    %210 = arith.addf %206, %209 : vector<4x100xf32>
    %c25 = arith.constant 25 : index
    %211 = memref.load %arg1[%c25] : memref<40xf32, #tpu.memory_space<smem>>
    %212 = vector.broadcast %211 : f32 to vector<4x100xf32>
    %213 = arith.mulf %212, %18 : vector<4x100xf32>
    %214 = arith.addf %210, %213 : vector<4x100xf32>
    %c26 = arith.constant 26 : index
    %215 = memref.load %arg1[%c26] : memref<40xf32, #tpu.memory_space<smem>>
    %216 = vector.broadcast %215 : f32 to vector<4x100xf32>
    %217 = arith.mulf %216, %20 : vector<4x100xf32>
    %218 = arith.addf %214, %217 : vector<4x100xf32>
    %c27 = arith.constant 27 : index
    %219 = memref.load %arg1[%c27] : memref<40xf32, #tpu.memory_space<smem>>
    %220 = vector.broadcast %219 : f32 to vector<4x100xf32>
    %221 = arith.mulf %220, %22 : vector<4x100xf32>
    %222 = arith.addf %218, %221 : vector<4x100xf32>
    %c28 = arith.constant 28 : index
    %223 = memref.load %arg1[%c28] : memref<40xf32, #tpu.memory_space<smem>>
    %224 = vector.broadcast %223 : f32 to vector<4x100xf32>
    %225 = arith.mulf %224, %24 : vector<4x100xf32>
    %226 = arith.addf %222, %225 : vector<4x100xf32>
    %c29 = arith.constant 29 : index
    %227 = memref.load %arg1[%c29] : memref<40xf32, #tpu.memory_space<smem>>
    %228 = vector.broadcast %227 : f32 to vector<4x100xf32>
    %229 = arith.mulf %228, %26 : vector<4x100xf32>
    %230 = arith.addf %226, %229 : vector<4x100xf32>
    %c2_43 = arith.constant 2 : index
    %231 = memref.load %arg3[%c2_43] : memref<4xf32, #tpu.memory_space<smem>>
    %c2_44 = arith.constant 2 : index
    %232 = memref.load %arg4[%c2_44] : memref<4xf32, #tpu.memory_space<smem>>
    %233 = vector.shape_cast %230 : vector<4x100xf32> to vector<1x4x100xf32>
    %cst_45 = arith.constant dense<0.000000e+00> : vector<1xf32>
    %234 = vector.multi_reduction <add>, %233, %cst_45 [1, 2] : vector<1x4x100xf32> to vector<1xf32>
    %235 = vector.shape_cast %234 : vector<1xf32> to vector<1x1x1xf32>
    %236 = vector.extract %235[0, 0, 0] : f32 from vector<1x1x1xf32>
    %237 = vector.broadcast %236 : f32 to vector<1x1xf32>
    %238 = arith.mulf %230, %230 : vector<4x100xf32>
    %239 = vector.shape_cast %238 : vector<4x100xf32> to vector<1x4x100xf32>
    %cst_46 = arith.constant dense<0.000000e+00> : vector<1xf32>
    %240 = vector.multi_reduction <add>, %239, %cst_46 [1, 2] : vector<1x4x100xf32> to vector<1xf32>
    %241 = vector.shape_cast %240 : vector<1xf32> to vector<1x1x1xf32>
    %242 = vector.extract %241[0, 0, 0] : f32 from vector<1x1x1xf32>
    %243 = vector.broadcast %242 : f32 to vector<1x1xf32>
    %cst_47 = arith.constant 2.500000e-03 : f32
    %244 = vector.broadcast %cst_47 : f32 to vector<1x1xf32>
    %245 = arith.mulf %237, %244 : vector<1x1xf32>
    %cst_48 = arith.constant 2.500000e-03 : f32
    %246 = vector.broadcast %cst_48 : f32 to vector<1x1xf32>
    %247 = arith.mulf %243, %246 : vector<1x1xf32>
    %248 = arith.mulf %245, %245 : vector<1x1xf32>
    %249 = arith.subf %247, %248 : vector<1x1xf32>
    %cst_49 = arith.constant 9.99999974E-6 : f32
    %250 = vector.broadcast %cst_49 : f32 to vector<1x1xf32>
    %251 = arith.addf %249, %250 : vector<1x1xf32>
    %252 = math.rsqrt %251 : vector<1x1xf32>
    %253 = vector.broadcast %231 : f32 to vector<1x1xf32>
    %254 = arith.mulf %253, %252 : vector<1x1xf32>
    %255 = arith.mulf %245, %254 : vector<1x1xf32>
    %256 = vector.broadcast %232 : f32 to vector<1x1xf32>
    %257 = arith.subf %256, %255 : vector<1x1xf32>
    %258 = vector.broadcast %254 : vector<1x1xf32> to vector<4x100xf32>
    %259 = arith.mulf %230, %258 : vector<4x100xf32>
    %260 = vector.broadcast %257 : vector<1x1xf32> to vector<4x100xf32>
    %261 = arith.addf %259, %260 : vector<4x100xf32>
    %cst_50 = arith.constant 0.000000e+00 : f32
    %262 = vector.broadcast %cst_50 : f32 to vector<4x100xf32>
    %263 = arith.cmpf oge, %261, %262 : vector<4x100xf32>
    %cst_51 = arith.constant 0.00999999977 : f32
    %264 = vector.broadcast %cst_51 : f32 to vector<4x100xf32>
    %265 = arith.mulf %264, %261 : vector<4x100xf32>
    %266 = arith.select %263, %261, %265 : vector<4x100xi1>, vector<4x100xf32>
    %c2_52 = arith.constant 2 : index
    %c0_53 = arith.constant 0 : index
    %c2_54 = arith.constant 2 : index
    %267 = vector.load %arg17[%c2_52, %c0_53, %c2_54] : memref<4x4x128xf32, #tpu.memory_space<vmem>>, vector<1x4x100xf32>
    %268 = vector.shape_cast %267 : vector<1x4x100xf32> to vector<4x100xf32>
    %269 = vector.shape_cast %266 : vector<4x100xf32> to vector<1x4x100xf32>
    tpu.vector_store %arg17[%c2_52, %c0_53, %c2_54], %269 {strides = array<i32>} : memref<4x4x128xf32, #tpu.memory_space<vmem>>, vector<1x4x100xf32>,
    %c3_55 = arith.constant 3 : index
    %270 = memref.load %arg2[%c3_55] : memref<4xf32, #tpu.memory_space<smem>>
    %271 = vector.broadcast %270 : f32 to vector<4x100xf32>
    %c30 = arith.constant 30 : index
    %272 = memref.load %arg1[%c30] : memref<40xf32, #tpu.memory_space<smem>>
    %273 = vector.broadcast %272 : f32 to vector<4x100xf32>
    %274 = arith.mulf %273, %8 : vector<4x100xf32>
    %275 = arith.addf %271, %274 : vector<4x100xf32>
    %c31 = arith.constant 31 : index
    %276 = memref.load %arg1[%c31] : memref<40xf32, #tpu.memory_space<smem>>
    %277 = vector.broadcast %276 : f32 to vector<4x100xf32>
    %278 = arith.mulf %277, %10 : vector<4x100xf32>
    %279 = arith.addf %275, %278 : vector<4x100xf32>
    %c32 = arith.constant 32 : index
    %280 = memref.load %arg1[%c32] : memref<40xf32, #tpu.memory_space<smem>>
    %281 = vector.broadcast %280 : f32 to vector<4x100xf32>
    %282 = arith.mulf %281, %12 : vector<4x100xf32>
    %283 = arith.addf %279, %282 : vector<4x100xf32>
    %c33 = arith.constant 33 : index
    %284 = memref.load %arg1[%c33] : memref<40xf32, #tpu.memory_space<smem>>
    %285 = vector.broadcast %284 : f32 to vector<4x100xf32>
    %286 = arith.mulf %285, %14 : vector<4x100xf32>
    %287 = arith.addf %283, %286 : vector<4x100xf32>
    %c34 = arith.constant 34 : index
    %288 = memref.load %arg1[%c34] : memref<40xf32, #tpu.memory_space<smem>>
    %289 = vector.broadcast %288 : f32 to vector<4x100xf32>
    %290 = arith.mulf %289, %16 : vector<4x100xf32>
    %291 = arith.addf %287, %290 : vector<4x100xf32>
    %c35 = arith.constant 35 : index
    %292 = memref.load %arg1[%c35] : memref<40xf32, #tpu.memory_space<smem>>
    %293 = vector.broadcast %292 : f32 to vector<4x100xf32>
    %294 = arith.mulf %293, %18 : vector<4x100xf32>
    %295 = arith.addf %291, %294 : vector<4x100xf32>
    %c36 = arith.constant 36 : index
    %296 = memref.load %arg1[%c36] : memref<40xf32, #tpu.memory_space<smem>>
    %297 = vector.broadcast %296 : f32 to vector<4x100xf32>
    %298 = arith.mulf %297, %20 : vector<4x100xf32>
    %299 = arith.addf %295, %298 : vector<4x100xf32>
    %c37 = arith.constant 37 : index
    %300 = memref.load %arg1[%c37] : memref<40xf32, #tpu.memory_space<smem>>
    %301 = vector.broadcast %300 : f32 to vector<4x100xf32>
    %302 = arith.mulf %301, %22 : vector<4x100xf32>
    %303 = arith.addf %299, %302 : vector<4x100xf32>
    %c38 = arith.constant 38 : index
    %304 = memref.load %arg1[%c38] : memref<40xf32, #tpu.memory_space<smem>>
    %305 = vector.broadcast %304 : f32 to vector<4x100xf32>
    %306 = arith.mulf %305, %24 : vector<4x100xf32>
    %307 = arith.addf %303, %306 : vector<4x100xf32>
    %c39 = arith.constant 39 : index
    %308 = memref.load %arg1[%c39] : memref<40xf32, #tpu.memory_space<smem>>
    %309 = vector.broadcast %308 : f32 to vector<4x100xf32>
    %310 = arith.mulf %309, %26 : vector<4x100xf32>
    %311 = arith.addf %307, %310 : vector<4x100xf32>
    %c3_56 = arith.constant 3 : index
    %312 = memref.load %arg3[%c3_56] : memref<4xf32, #tpu.memory_space<smem>>
    %c3_57 = arith.constant 3 : index
    %313 = memref.load %arg4[%c3_57] : memref<4xf32, #tpu.memory_space<smem>>
    %314 = vector.shape_cast %311 : vector<4x100xf32> to vector<1x4x100xf32>
    %cst_58 = arith.constant dense<0.000000e+00> : vector<1xf32>
    %315 = vector.multi_reduction <add>, %314, %cst_58 [1, 2] : vector<1x4x100xf32> to vector<1xf32>
    %316 = vector.shape_cast %315 : vector<1xf32> to vector<1x1x1xf32>
    %317 = vector.extract %316[0, 0, 0] : f32 from vector<1x1x1xf32>
    %318 = vector.broadcast %317 : f32 to vector<1x1xf32>
    %319 = arith.mulf %311, %311 : vector<4x100xf32>
    %320 = vector.shape_cast %319 : vector<4x100xf32> to vector<1x4x100xf32>
    %cst_59 = arith.constant dense<0.000000e+00> : vector<1xf32>
    %321 = vector.multi_reduction <add>, %320, %cst_59 [1, 2] : vector<1x4x100xf32> to vector<1xf32>
    %322 = vector.shape_cast %321 : vector<1xf32> to vector<1x1x1xf32>
    %323 = vector.extract %322[0, 0, 0] : f32 from vector<1x1x1xf32>
    %324 = vector.broadcast %323 : f32 to vector<1x1xf32>
    %cst_60 = arith.constant 2.500000e-03 : f32
    %325 = vector.broadcast %cst_60 : f32 to vector<1x1xf32>
    %326 = arith.mulf %318, %325 : vector<1x1xf32>
    %cst_61 = arith.constant 2.500000e-03 : f32
    %327 = vector.broadcast %cst_61 : f32 to vector<1x1xf32>
    %328 = arith.mulf %324, %327 : vector<1x1xf32>
    %329 = arith.mulf %326, %326 : vector<1x1xf32>
    %330 = arith.subf %328, %329 : vector<1x1xf32>
    %cst_62 = arith.constant 9.99999974E-6 : f32
    %331 = vector.broadcast %cst_62 : f32 to vector<1x1xf32>
    %332 = arith.addf %330, %331 : vector<1x1xf32>
    %333 = math.rsqrt %332 : vector<1x1xf32>
    %334 = vector.broadcast %312 : f32 to vector<1x1xf32>
    %335 = arith.mulf %334, %333 : vector<1x1xf32>
    %336 = arith.mulf %326, %335 : vector<1x1xf32>
    %337 = vector.broadcast %313 : f32 to vector<1x1xf32>
    %338 = arith.subf %337, %336 : vector<1x1xf32>
    %339 = vector.broadcast %335 : vector<1x1xf32> to vector<4x100xf32>
    %340 = arith.mulf %311, %339 : vector<4x100xf32>
    %341 = vector.broadcast %338 : vector<1x1xf32> to vector<4x100xf32>
    %342 = arith.addf %340, %341 : vector<4x100xf32>
    %cst_63 = arith.constant 0.000000e+00 : f32
    %343 = vector.broadcast %cst_63 : f32 to vector<4x100xf32>
    %344 = arith.cmpf oge, %342, %343 : vector<4x100xf32>
    %cst_64 = arith.constant 0.00999999977 : f32
    %345 = vector.broadcast %cst_64 : f32 to vector<4x100xf32>
    %346 = arith.mulf %345, %342 : vector<4x100xf32>
    %347 = arith.select %344, %342, %346 : vector<4x100xi1>, vector<4x100xf32>
    %c3_65 = arith.constant 3 : index
    %c0_66 = arith.constant 0 : index
    %c2_67 = arith.constant 2 : index
    %348 = vector.load %arg17[%c3_65, %c0_66, %c2_67] : memref<4x4x128xf32, #tpu.memory_space<vmem>>, vector<1x4x100xf32>
    %349 = vector.shape_cast %348 : vector<1x4x100xf32> to vector<4x100xf32>
    %350 = vector.shape_cast %347 : vector<4x100xf32> to vector<1x4x100xf32>
    tpu.vector_store %arg17[%c3_65, %c0_66, %c2_67], %350 {strides = array<i32>} : memref<4x4x128xf32, #tpu.memory_space<vmem>>, vector<1x4x100xf32>,
    %c0_68 = arith.constant 0 : index
    %c0_69 = arith.constant 0 : index
    %c0_70 = arith.constant 0 : index
    %351 = vector.load %arg17[%c0_68, %c0_69, %c0_70] : memref<4x4x128xf32, #tpu.memory_space<vmem>>, vector<4x4x128xf32>
    %352 = vector.extract_strided_slice %351 {offsets = [0, 0, 0], sizes = [1, 4, 100], strides = [1, 1, 1]} : vector<4x4x128xf32> to vector<1x4x100xf32>
    %353 = vector.shape_cast %352 : vector<1x4x100xf32> to vector<4x100xf32>
    %354 = vector.extract_strided_slice %351 {offsets = [0, 0, 1], sizes = [1, 4, 100], strides = [1, 1, 1]} : vector<4x4x128xf32> to vector<1x4x100xf32>
    %355 = vector.shape_cast %354 : vector<1x4x100xf32> to vector<4x100xf32>
    %356 = vector.extract_strided_slice %351 {offsets = [0, 0, 2], sizes = [1, 4, 100], strides = [1, 1, 1]} : vector<4x4x128xf32> to vector<1x4x100xf32>
    %357 = vector.shape_cast %356 : vector<1x4x100xf32> to vector<4x100xf32>
    %358 = vector.extract_strided_slice %351 {offsets = [0, 0, 3], sizes = [1, 4, 100], strides = [1, 1, 1]} : vector<4x4x128xf32> to vector<1x4x100xf32>
    %359 = vector.shape_cast %358 : vector<1x4x100xf32> to vector<4x100xf32>
    %360 = vector.extract_strided_slice %351 {offsets = [0, 0, 4], sizes = [1, 4, 100], strides = [1, 1, 1]} : vector<4x4x128xf32> to vector<1x4x100xf32>
    %361 = vector.shape_cast %360 : vector<1x4x100xf32> to vector<4x100xf32>
    %362 = vector.extract_strided_slice %351 {offsets = [1, 0, 0], sizes = [1, 4, 100], strides = [1, 1, 1]} : vector<4x4x128xf32> to vector<1x4x100xf32>
    %363 = vector.shape_cast %362 : vector<1x4x100xf32> to vector<4x100xf32>
    %364 = vector.extract_strided_slice %351 {offsets = [1, 0, 1], sizes = [1, 4, 100], strides = [1, 1, 1]} : vector<4x4x128xf32> to vector<1x4x100xf32>
    %365 = vector.shape_cast %364 : vector<1x4x100xf32> to vector<4x100xf32>
    %366 = vector.extract_strided_slice %351 {offsets = [1, 0, 2], sizes = [1, 4, 100], strides = [1, 1, 1]} : vector<4x4x128xf32> to vector<1x4x100xf32>
    %367 = vector.shape_cast %366 : vector<1x4x100xf32> to vector<4x100xf32>
    %368 = vector.extract_strided_slice %351 {offsets = [1, 0, 3], sizes = [1, 4, 100], strides = [1, 1, 1]} : vector<4x4x128xf32> to vector<1x4x100xf32>
    %369 = vector.shape_cast %368 : vector<1x4x100xf32> to vector<4x100xf32>
    %370 = vector.extract_strided_slice %351 {offsets = [1, 0, 4], sizes = [1, 4, 100], strides = [1, 1, 1]} : vector<4x4x128xf32> to vector<1x4x100xf32>
    %371 = vector.shape_cast %370 : vector<1x4x100xf32> to vector<4x100xf32>
    %372 = vector.extract_strided_slice %351 {offsets = [2, 0, 0], sizes = [1, 4, 100], strides = [1, 1, 1]} : vector<4x4x128xf32> to vector<1x4x100xf32>
    %373 = vector.shape_cast %372 : vector<1x4x100xf32> to vector<4x100xf32>
    %374 = vector.extract_strided_slice %351 {offsets = [2, 0, 1], sizes = [1, 4, 100], strides = [1, 1, 1]} : vector<4x4x128xf32> to vector<1x4x100xf32>
    %375 = vector.shape_cast %374 : vector<1x4x100xf32> to vector<4x100xf32>
    %376 = vector.extract_strided_slice %351 {offsets = [2, 0, 2], sizes = [1, 4, 100], strides = [1, 1, 1]} : vector<4x4x128xf32> to vector<1x4x100xf32>
    %377 = vector.shape_cast %376 : vector<1x4x100xf32> to vector<4x100xf32>
    %378 = vector.extract_strided_slice %351 {offsets = [2, 0, 3], sizes = [1, 4, 100], strides = [1, 1, 1]} : vector<4x4x128xf32> to vector<1x4x100xf32>
    %379 = vector.shape_cast %378 : vector<1x4x100xf32> to vector<4x100xf32>
    %380 = vector.extract_strided_slice %351 {offsets = [2, 0, 4], sizes = [1, 4, 100], strides = [1, 1, 1]} : vector<4x4x128xf32> to vector<1x4x100xf32>
    %381 = vector.shape_cast %380 : vector<1x4x100xf32> to vector<4x100xf32>
    %382 = vector.extract_strided_slice %351 {offsets = [3, 0, 0], sizes = [1, 4, 100], strides = [1, 1, 1]} : vector<4x4x128xf32> to vector<1x4x100xf32>
    %383 = vector.shape_cast %382 : vector<1x4x100xf32> to vector<4x100xf32>
    %384 = vector.extract_strided_slice %351 {offsets = [3, 0, 1], sizes = [1, 4, 100], strides = [1, 1, 1]} : vector<4x4x128xf32> to vector<1x4x100xf32>
    %385 = vector.shape_cast %384 : vector<1x4x100xf32> to vector<4x100xf32>
    %386 = vector.extract_strided_slice %351 {offsets = [3, 0, 2], sizes = [1, 4, 100], strides = [1, 1, 1]} : vector<4x4x128xf32> to vector<1x4x100xf32>
    %387 = vector.shape_cast %386 : vector<1x4x100xf32> to vector<4x100xf32>
    %388 = vector.extract_strided_slice %351 {offsets = [3, 0, 3], sizes = [1, 4, 100], strides = [1, 1, 1]} : vector<4x4x128xf32> to vector<1x4x100xf32>
    %389 = vector.shape_cast %388 : vector<1x4x100xf32> to vector<4x100xf32>
    %390 = vector.extract_strided_slice %351 {offsets = [3, 0, 4], sizes = [1, 4, 100], strides = [1, 1, 1]} : vector<4x4x128xf32> to vector<1x4x100xf32>
    %391 = vector.shape_cast %390 : vector<1x4x100xf32> to vector<4x100xf32>
    %cst_71 = arith.constant 0.000000e+00 : f32
    %392 = vector.broadcast %cst_71 : f32 to vector<4x350xf32>
    %c0_72 = arith.constant 0 : index
    %393 = memref.load %arg6[%c0_72] : memref<8xf32, #tpu.memory_space<smem>>
    %394 = vector.broadcast %393 : f32 to vector<4x100xf32>
    %c0_73 = arith.constant 0 : index
    %395 = memref.load %arg5[%c0_73] : memref<160xf32, #tpu.memory_space<smem>>
    %396 = vector.broadcast %395 : f32 to vector<4x100xf32>
    %397 = arith.mulf %396, %353 : vector<4x100xf32>
    %398 = arith.addf %394, %397 : vector<4x100xf32>
    %c1_74 = arith.constant 1 : index
    %399 = memref.load %arg5[%c1_74] : memref<160xf32, #tpu.memory_space<smem>>
    %400 = vector.broadcast %399 : f32 to vector<4x100xf32>
    %401 = arith.mulf %400, %355 : vector<4x100xf32>
    %402 = arith.addf %398, %401 : vector<4x100xf32>
    %c2_75 = arith.constant 2 : index
    %403 = memref.load %arg5[%c2_75] : memref<160xf32, #tpu.memory_space<smem>>
    %404 = vector.broadcast %403 : f32 to vector<4x100xf32>
    %405 = arith.mulf %404, %357 : vector<4x100xf32>
    %406 = arith.addf %402, %405 : vector<4x100xf32>
    %c3_76 = arith.constant 3 : index
    %407 = memref.load %arg5[%c3_76] : memref<160xf32, #tpu.memory_space<smem>>
    %408 = vector.broadcast %407 : f32 to vector<4x100xf32>
    %409 = arith.mulf %408, %359 : vector<4x100xf32>
    %410 = arith.addf %406, %409 : vector<4x100xf32>
    %c4_77 = arith.constant 4 : index
    %411 = memref.load %arg5[%c4_77] : memref<160xf32, #tpu.memory_space<smem>>
    %412 = vector.broadcast %411 : f32 to vector<4x100xf32>
    %413 = arith.mulf %412, %361 : vector<4x100xf32>
    %414 = arith.addf %410, %413 : vector<4x100xf32>
    %c5_78 = arith.constant 5 : index
    %415 = memref.load %arg5[%c5_78] : memref<160xf32, #tpu.memory_space<smem>>
    %416 = vector.broadcast %415 : f32 to vector<4x100xf32>
    %417 = arith.mulf %416, %363 : vector<4x100xf32>
    %418 = arith.addf %414, %417 : vector<4x100xf32>
    %c6_79 = arith.constant 6 : index
    %419 = memref.load %arg5[%c6_79] : memref<160xf32, #tpu.memory_space<smem>>
    %420 = vector.broadcast %419 : f32 to vector<4x100xf32>
    %421 = arith.mulf %420, %365 : vector<4x100xf32>
    %422 = arith.addf %418, %421 : vector<4x100xf32>
    %c7_80 = arith.constant 7 : index
    %423 = memref.load %arg5[%c7_80] : memref<160xf32, #tpu.memory_space<smem>>
    %424 = vector.broadcast %423 : f32 to vector<4x100xf32>
    %425 = arith.mulf %424, %367 : vector<4x100xf32>
    %426 = arith.addf %422, %425 : vector<4x100xf32>
    %c8_81 = arith.constant 8 : index
    %427 = memref.load %arg5[%c8_81] : memref<160xf32, #tpu.memory_space<smem>>
    %428 = vector.broadcast %427 : f32 to vector<4x100xf32>
    %429 = arith.mulf %428, %369 : vector<4x100xf32>
    %430 = arith.addf %426, %429 : vector<4x100xf32>
    %c9_82 = arith.constant 9 : index
    %431 = memref.load %arg5[%c9_82] : memref<160xf32, #tpu.memory_space<smem>>
    %432 = vector.broadcast %431 : f32 to vector<4x100xf32>
    %433 = arith.mulf %432, %371 : vector<4x100xf32>
    %434 = arith.addf %430, %433 : vector<4x100xf32>
    %c10_83 = arith.constant 10 : index
    %435 = memref.load %arg5[%c10_83] : memref<160xf32, #tpu.memory_space<smem>>
    %436 = vector.broadcast %435 : f32 to vector<4x100xf32>
    %437 = arith.mulf %436, %373 : vector<4x100xf32>
    %438 = arith.addf %434, %437 : vector<4x100xf32>
    %c11_84 = arith.constant 11 : index
    %439 = memref.load %arg5[%c11_84] : memref<160xf32, #tpu.memory_space<smem>>
    %440 = vector.broadcast %439 : f32 to vector<4x100xf32>
    %441 = arith.mulf %440, %375 : vector<4x100xf32>
    %442 = arith.addf %438, %441 : vector<4x100xf32>
    %c12_85 = arith.constant 12 : index
    %443 = memref.load %arg5[%c12_85] : memref<160xf32, #tpu.memory_space<smem>>
    %444 = vector.broadcast %443 : f32 to vector<4x100xf32>
    %445 = arith.mulf %444, %377 : vector<4x100xf32>
    %446 = arith.addf %442, %445 : vector<4x100xf32>
    %c13_86 = arith.constant 13 : index
    %447 = memref.load %arg5[%c13_86] : memref<160xf32, #tpu.memory_space<smem>>
    %448 = vector.broadcast %447 : f32 to vector<4x100xf32>
    %449 = arith.mulf %448, %379 : vector<4x100xf32>
    %450 = arith.addf %446, %449 : vector<4x100xf32>
    %c14_87 = arith.constant 14 : index
    %451 = memref.load %arg5[%c14_87] : memref<160xf32, #tpu.memory_space<smem>>
    %452 = vector.broadcast %451 : f32 to vector<4x100xf32>
    %453 = arith.mulf %452, %381 : vector<4x100xf32>
    %454 = arith.addf %450, %453 : vector<4x100xf32>
    %c15_88 = arith.constant 15 : index
    %455 = memref.load %arg5[%c15_88] : memref<160xf32, #tpu.memory_space<smem>>
    %456 = vector.broadcast %455 : f32 to vector<4x100xf32>
    %457 = arith.mulf %456, %383 : vector<4x100xf32>
    %458 = arith.addf %454, %457 : vector<4x100xf32>
    %c16_89 = arith.constant 16 : index
    %459 = memref.load %arg5[%c16_89] : memref<160xf32, #tpu.memory_space<smem>>
    %460 = vector.broadcast %459 : f32 to vector<4x100xf32>
    %461 = arith.mulf %460, %385 : vector<4x100xf32>
    %462 = arith.addf %458, %461 : vector<4x100xf32>
    %c17_90 = arith.constant 17 : index
    %463 = memref.load %arg5[%c17_90] : memref<160xf32, #tpu.memory_space<smem>>
    %464 = vector.broadcast %463 : f32 to vector<4x100xf32>
    %465 = arith.mulf %464, %387 : vector<4x100xf32>
    %466 = arith.addf %462, %465 : vector<4x100xf32>
    %c18_91 = arith.constant 18 : index
    %467 = memref.load %arg5[%c18_91] : memref<160xf32, #tpu.memory_space<smem>>
    %468 = vector.broadcast %467 : f32 to vector<4x100xf32>
    %469 = arith.mulf %468, %389 : vector<4x100xf32>
    %470 = arith.addf %466, %469 : vector<4x100xf32>
    %c19_92 = arith.constant 19 : index
    %471 = memref.load %arg5[%c19_92] : memref<160xf32, #tpu.memory_space<smem>>
    %472 = vector.broadcast %471 : f32 to vector<4x100xf32>
    %473 = arith.mulf %472, %391 : vector<4x100xf32>
    %474 = arith.addf %470, %473 : vector<4x100xf32>
    %c0_93 = arith.constant 0 : index
    %475 = memref.load %arg7[%c0_93] : memref<8xf32, #tpu.memory_space<smem>>
    %c0_94 = arith.constant 0 : index
    %476 = memref.load %arg8[%c0_94] : memref<8xf32, #tpu.memory_space<smem>>
    %477 = vector.shape_cast %474 : vector<4x100xf32> to vector<1x4x100xf32>
    %cst_95 = arith.constant dense<0.000000e+00> : vector<1xf32>
    %478 = vector.multi_reduction <add>, %477, %cst_95 [1, 2] : vector<1x4x100xf32> to vector<1xf32>
    %479 = vector.shape_cast %478 : vector<1xf32> to vector<1x1x1xf32>
    %480 = vector.extract %479[0, 0, 0] : f32 from vector<1x1x1xf32>
    %481 = vector.broadcast %480 : f32 to vector<1x1xf32>
    %482 = arith.mulf %474, %474 : vector<4x100xf32>
    %483 = vector.shape_cast %482 : vector<4x100xf32> to vector<1x4x100xf32>
    %cst_96 = arith.constant dense<0.000000e+00> : vector<1xf32>
    %484 = vector.multi_reduction <add>, %483, %cst_96 [1, 2] : vector<1x4x100xf32> to vector<1xf32>
    %485 = vector.shape_cast %484 : vector<1xf32> to vector<1x1x1xf32>
    %486 = vector.extract %485[0, 0, 0] : f32 from vector<1x1x1xf32>
    %487 = vector.broadcast %486 : f32 to vector<1x1xf32>
    %cst_97 = arith.constant 2.500000e-03 : f32
    %488 = vector.broadcast %cst_97 : f32 to vector<1x1xf32>
    %489 = arith.mulf %481, %488 : vector<1x1xf32>
    %cst_98 = arith.constant 2.500000e-03 : f32
    %490 = vector.broadcast %cst_98 : f32 to vector<1x1xf32>
    %491 = arith.mulf %487, %490 : vector<1x1xf32>
    %492 = arith.mulf %489, %489 : vector<1x1xf32>
    %493 = arith.subf %491, %492 : vector<1x1xf32>
    %cst_99 = arith.constant 9.99999974E-6 : f32
    %494 = vector.broadcast %cst_99 : f32 to vector<1x1xf32>
    %495 = arith.addf %493, %494 : vector<1x1xf32>
    %496 = math.rsqrt %495 : vector<1x1xf32>
    %497 = vector.broadcast %475 : f32 to vector<1x1xf32>
    %498 = arith.mulf %497, %496 : vector<1x1xf32>
    %499 = arith.mulf %489, %498 : vector<1x1xf32>
    %500 = vector.broadcast %476 : f32 to vector<1x1xf32>
    %501 = arith.subf %500, %499 : vector<1x1xf32>
    %502 = vector.broadcast %498 : vector<1x1xf32> to vector<4x100xf32>
    %503 = arith.mulf %474, %502 : vector<4x100xf32>
    %504 = vector.broadcast %501 : vector<1x1xf32> to vector<4x100xf32>
    %505 = arith.addf %503, %504 : vector<4x100xf32>
    %cst_100 = arith.constant 0.000000e+00 : f32
    %506 = vector.broadcast %cst_100 : f32 to vector<4x100xf32>
    %507 = arith.cmpf oge, %505, %506 : vector<4x100xf32>
    %cst_101 = arith.constant 0.00999999977 : f32
    %508 = vector.broadcast %cst_101 : f32 to vector<4x100xf32>
    %509 = arith.mulf %508, %505 : vector<4x100xf32>
    %510 = arith.select %507, %505, %509 : vector<4x100xi1>, vector<4x100xf32>
    %511 = vector.extract_strided_slice %510 {offsets = [0, 0], sizes = [4, 98], strides = [1, 1]} : vector<4x100xf32> to vector<4x98xf32>
    %512 = vector.extract_strided_slice %510 {offsets = [0, 1], sizes = [4, 98], strides = [1, 1]} : vector<4x100xf32> to vector<4x98xf32>
    %513 = arith.maximumf %511, %512 : vector<4x98xf32>
    %514 = vector.extract_strided_slice %510 {offsets = [0, 2], sizes = [4, 98], strides = [1, 1]} : vector<4x100xf32> to vector<4x98xf32>
    %515 = arith.maximumf %513, %514 : vector<4x98xf32>
    %c0_102 = arith.constant 0 : index
    %c0_103 = arith.constant 0 : index
    %c0_104 = arith.constant 0 : index
    %516 = vector.load %arg9[%c0_102, %c0_103, %c0_104] : memref<8x98x350xf32, #tpu.memory_space<vmem>>, vector<1x98x350xf32>
    %517 = vector.shape_cast %516 : vector<1x98x350xf32> to vector<98x350xf32>
    %cst_105 = arith.constant dense<0.000000e+00> : vector<4x350xf32>
    %518 = tpu.matmul %515, %517, %cst_105 {dimension_numbers = #tpu.dot_dimension_numbers<[1], [0], [0], [1], [0, 0, 1, 1], [], []>} : vector<4x98xf32>, vector<98x350xf32>, vector<4x350xf32> -> vector<4x350xf32>
    %519 = arith.addf %392, %518 : vector<4x350xf32>
    %c1_106 = arith.constant 1 : index
    %520 = memref.load %arg6[%c1_106] : memref<8xf32, #tpu.memory_space<smem>>
    %521 = vector.broadcast %520 : f32 to vector<4x100xf32>
    %c20_107 = arith.constant 20 : index
    %522 = memref.load %arg5[%c20_107] : memref<160xf32, #tpu.memory_space<smem>>
    %523 = vector.broadcast %522 : f32 to vector<4x100xf32>
    %524 = arith.mulf %523, %353 : vector<4x100xf32>
    %525 = arith.addf %521, %524 : vector<4x100xf32>
    %c21_108 = arith.constant 21 : index
    %526 = memref.load %arg5[%c21_108] : memref<160xf32, #tpu.memory_space<smem>>
    %527 = vector.broadcast %526 : f32 to vector<4x100xf32>
    %528 = arith.mulf %527, %355 : vector<4x100xf32>
    %529 = arith.addf %525, %528 : vector<4x100xf32>
    %c22_109 = arith.constant 22 : index
    %530 = memref.load %arg5[%c22_109] : memref<160xf32, #tpu.memory_space<smem>>
    %531 = vector.broadcast %530 : f32 to vector<4x100xf32>
    %532 = arith.mulf %531, %357 : vector<4x100xf32>
    %533 = arith.addf %529, %532 : vector<4x100xf32>
    %c23_110 = arith.constant 23 : index
    %534 = memref.load %arg5[%c23_110] : memref<160xf32, #tpu.memory_space<smem>>
    %535 = vector.broadcast %534 : f32 to vector<4x100xf32>
    %536 = arith.mulf %535, %359 : vector<4x100xf32>
    %537 = arith.addf %533, %536 : vector<4x100xf32>
    %c24_111 = arith.constant 24 : index
    %538 = memref.load %arg5[%c24_111] : memref<160xf32, #tpu.memory_space<smem>>
    %539 = vector.broadcast %538 : f32 to vector<4x100xf32>
    %540 = arith.mulf %539, %361 : vector<4x100xf32>
    %541 = arith.addf %537, %540 : vector<4x100xf32>
    %c25_112 = arith.constant 25 : index
    %542 = memref.load %arg5[%c25_112] : memref<160xf32, #tpu.memory_space<smem>>
    %543 = vector.broadcast %542 : f32 to vector<4x100xf32>
    %544 = arith.mulf %543, %363 : vector<4x100xf32>
    %545 = arith.addf %541, %544 : vector<4x100xf32>
    %c26_113 = arith.constant 26 : index
    %546 = memref.load %arg5[%c26_113] : memref<160xf32, #tpu.memory_space<smem>>
    %547 = vector.broadcast %546 : f32 to vector<4x100xf32>
    %548 = arith.mulf %547, %365 : vector<4x100xf32>
    %549 = arith.addf %545, %548 : vector<4x100xf32>
    %c27_114 = arith.constant 27 : index
    %550 = memref.load %arg5[%c27_114] : memref<160xf32, #tpu.memory_space<smem>>
    %551 = vector.broadcast %550 : f32 to vector<4x100xf32>
    %552 = arith.mulf %551, %367 : vector<4x100xf32>
    %553 = arith.addf %549, %552 : vector<4x100xf32>
    %c28_115 = arith.constant 28 : index
    %554 = memref.load %arg5[%c28_115] : memref<160xf32, #tpu.memory_space<smem>>
    %555 = vector.broadcast %554 : f32 to vector<4x100xf32>
    %556 = arith.mulf %555, %369 : vector<4x100xf32>
    %557 = arith.addf %553, %556 : vector<4x100xf32>
    %c29_116 = arith.constant 29 : index
    %558 = memref.load %arg5[%c29_116] : memref<160xf32, #tpu.memory_space<smem>>
    %559 = vector.broadcast %558 : f32 to vector<4x100xf32>
    %560 = arith.mulf %559, %371 : vector<4x100xf32>
    %561 = arith.addf %557, %560 : vector<4x100xf32>
    %c30_117 = arith.constant 30 : index
    %562 = memref.load %arg5[%c30_117] : memref<160xf32, #tpu.memory_space<smem>>
    %563 = vector.broadcast %562 : f32 to vector<4x100xf32>
    %564 = arith.mulf %563, %373 : vector<4x100xf32>
    %565 = arith.addf %561, %564 : vector<4x100xf32>
    %c31_118 = arith.constant 31 : index
    %566 = memref.load %arg5[%c31_118] : memref<160xf32, #tpu.memory_space<smem>>
    %567 = vector.broadcast %566 : f32 to vector<4x100xf32>
    %568 = arith.mulf %567, %375 : vector<4x100xf32>
    %569 = arith.addf %565, %568 : vector<4x100xf32>
    %c32_119 = arith.constant 32 : index
    %570 = memref.load %arg5[%c32_119] : memref<160xf32, #tpu.memory_space<smem>>
    %571 = vector.broadcast %570 : f32 to vector<4x100xf32>
    %572 = arith.mulf %571, %377 : vector<4x100xf32>
    %573 = arith.addf %569, %572 : vector<4x100xf32>
    %c33_120 = arith.constant 33 : index
    %574 = memref.load %arg5[%c33_120] : memref<160xf32, #tpu.memory_space<smem>>
    %575 = vector.broadcast %574 : f32 to vector<4x100xf32>
    %576 = arith.mulf %575, %379 : vector<4x100xf32>
    %577 = arith.addf %573, %576 : vector<4x100xf32>
    %c34_121 = arith.constant 34 : index
    %578 = memref.load %arg5[%c34_121] : memref<160xf32, #tpu.memory_space<smem>>
    %579 = vector.broadcast %578 : f32 to vector<4x100xf32>
    %580 = arith.mulf %579, %381 : vector<4x100xf32>
    %581 = arith.addf %577, %580 : vector<4x100xf32>
    %c35_122 = arith.constant 35 : index
    %582 = memref.load %arg5[%c35_122] : memref<160xf32, #tpu.memory_space<smem>>
    %583 = vector.broadcast %582 : f32 to vector<4x100xf32>
    %584 = arith.mulf %583, %383 : vector<4x100xf32>
    %585 = arith.addf %581, %584 : vector<4x100xf32>
    %c36_123 = arith.constant 36 : index
    %586 = memref.load %arg5[%c36_123] : memref<160xf32, #tpu.memory_space<smem>>
    %587 = vector.broadcast %586 : f32 to vector<4x100xf32>
    %588 = arith.mulf %587, %385 : vector<4x100xf32>
    %589 = arith.addf %585, %588 : vector<4x100xf32>
    %c37_124 = arith.constant 37 : index
    %590 = memref.load %arg5[%c37_124] : memref<160xf32, #tpu.memory_space<smem>>
    %591 = vector.broadcast %590 : f32 to vector<4x100xf32>
    %592 = arith.mulf %591, %387 : vector<4x100xf32>
    %593 = arith.addf %589, %592 : vector<4x100xf32>
    %c38_125 = arith.constant 38 : index
    %594 = memref.load %arg5[%c38_125] : memref<160xf32, #tpu.memory_space<smem>>
    %595 = vector.broadcast %594 : f32 to vector<4x100xf32>
    %596 = arith.mulf %595, %389 : vector<4x100xf32>
    %597 = arith.addf %593, %596 : vector<4x100xf32>
    %c39_126 = arith.constant 39 : index
    %598 = memref.load %arg5[%c39_126] : memref<160xf32, #tpu.memory_space<smem>>
    %599 = vector.broadcast %598 : f32 to vector<4x100xf32>
    %600 = arith.mulf %599, %391 : vector<4x100xf32>
    %601 = arith.addf %597, %600 : vector<4x100xf32>
    %c1_127 = arith.constant 1 : index
    %602 = memref.load %arg7[%c1_127] : memref<8xf32, #tpu.memory_space<smem>>
    %c1_128 = arith.constant 1 : index
    %603 = memref.load %arg8[%c1_128] : memref<8xf32, #tpu.memory_space<smem>>
    %604 = vector.shape_cast %601 : vector<4x100xf32> to vector<1x4x100xf32>
    %cst_129 = arith.constant dense<0.000000e+00> : vector<1xf32>
    %605 = vector.multi_reduction <add>, %604, %cst_129 [1, 2] : vector<1x4x100xf32> to vector<1xf32>
    %606 = vector.shape_cast %605 : vector<1xf32> to vector<1x1x1xf32>
    %607 = vector.extract %606[0, 0, 0] : f32 from vector<1x1x1xf32>
    %608 = vector.broadcast %607 : f32 to vector<1x1xf32>
    %609 = arith.mulf %601, %601 : vector<4x100xf32>
    %610 = vector.shape_cast %609 : vector<4x100xf32> to vector<1x4x100xf32>
    %cst_130 = arith.constant dense<0.000000e+00> : vector<1xf32>
    %611 = vector.multi_reduction <add>, %610, %cst_130 [1, 2] : vector<1x4x100xf32> to vector<1xf32>
    %612 = vector.shape_cast %611 : vector<1xf32> to vector<1x1x1xf32>
    %613 = vector.extract %612[0, 0, 0] : f32 from vector<1x1x1xf32>
    %614 = vector.broadcast %613 : f32 to vector<1x1xf32>
    %cst_131 = arith.constant 2.500000e-03 : f32
    %615 = vector.broadcast %cst_131 : f32 to vector<1x1xf32>
    %616 = arith.mulf %608, %615 : vector<1x1xf32>
    %cst_132 = arith.constant 2.500000e-03 : f32
    %617 = vector.broadcast %cst_132 : f32 to vector<1x1xf32>
    %618 = arith.mulf %614, %617 : vector<1x1xf32>
    %619 = arith.mulf %616, %616 : vector<1x1xf32>
    %620 = arith.subf %618, %619 : vector<1x1xf32>
    %cst_133 = arith.constant 9.99999974E-6 : f32
    %621 = vector.broadcast %cst_133 : f32 to vector<1x1xf32>
    %622 = arith.addf %620, %621 : vector<1x1xf32>
    %623 = math.rsqrt %622 : vector<1x1xf32>
    %624 = vector.broadcast %602 : f32 to vector<1x1xf32>
    %625 = arith.mulf %624, %623 : vector<1x1xf32>
    %626 = arith.mulf %616, %625 : vector<1x1xf32>
    %627 = vector.broadcast %603 : f32 to vector<1x1xf32>
    %628 = arith.subf %627, %626 : vector<1x1xf32>
    %629 = vector.broadcast %625 : vector<1x1xf32> to vector<4x100xf32>
    %630 = arith.mulf %601, %629 : vector<4x100xf32>
    %631 = vector.broadcast %628 : vector<1x1xf32> to vector<4x100xf32>
    %632 = arith.addf %630, %631 : vector<4x100xf32>
    %cst_134 = arith.constant 0.000000e+00 : f32
    %633 = vector.broadcast %cst_134 : f32 to vector<4x100xf32>
    %634 = arith.cmpf oge, %632, %633 : vector<4x100xf32>
    %cst_135 = arith.constant 0.00999999977 : f32
    %635 = vector.broadcast %cst_135 : f32 to vector<4x100xf32>
    %636 = arith.mulf %635, %632 : vector<4x100xf32>
    %637 = arith.select %634, %632, %636 : vector<4x100xi1>, vector<4x100xf32>
    %638 = vector.extract_strided_slice %637 {offsets = [0, 0], sizes = [4, 98], strides = [1, 1]} : vector<4x100xf32> to vector<4x98xf32>
    %639 = vector.extract_strided_slice %637 {offsets = [0, 1], sizes = [4, 98], strides = [1, 1]} : vector<4x100xf32> to vector<4x98xf32>
    %640 = arith.maximumf %638, %639 : vector<4x98xf32>
    %641 = vector.extract_strided_slice %637 {offsets = [0, 2], sizes = [4, 98], strides = [1, 1]} : vector<4x100xf32> to vector<4x98xf32>
    %642 = arith.maximumf %640, %641 : vector<4x98xf32>
    %c1_136 = arith.constant 1 : index
    %c0_137 = arith.constant 0 : index
    %c0_138 = arith.constant 0 : index
    %643 = vector.load %arg9[%c1_136, %c0_137, %c0_138] : memref<8x98x350xf32, #tpu.memory_space<vmem>>, vector<1x98x350xf32>
    %644 = vector.shape_cast %643 : vector<1x98x350xf32> to vector<98x350xf32>
    %cst_139 = arith.constant dense<0.000000e+00> : vector<4x350xf32>
    %645 = tpu.matmul %642, %644, %cst_139 {dimension_numbers = #tpu.dot_dimension_numbers<[1], [0], [0], [1], [0, 0, 1, 1], [], []>} : vector<4x98xf32>, vector<98x350xf32>, vector<4x350xf32> -> vector<4x350xf32>
    %646 = arith.addf %519, %645 : vector<4x350xf32>
    %c2_140 = arith.constant 2 : index
    %647 = memref.load %arg6[%c2_140] : memref<8xf32, #tpu.memory_space<smem>>
    %648 = vector.broadcast %647 : f32 to vector<4x100xf32>
    %c40 = arith.constant 40 : index
    %649 = memref.load %arg5[%c40] : memref<160xf32, #tpu.memory_space<smem>>
    %650 = vector.broadcast %649 : f32 to vector<4x100xf32>
    %651 = arith.mulf %650, %353 : vector<4x100xf32>
    %652 = arith.addf %648, %651 : vector<4x100xf32>
    %c41 = arith.constant 41 : index
    %653 = memref.load %arg5[%c41] : memref<160xf32, #tpu.memory_space<smem>>
    %654 = vector.broadcast %653 : f32 to vector<4x100xf32>
    %655 = arith.mulf %654, %355 : vector<4x100xf32>
    %656 = arith.addf %652, %655 : vector<4x100xf32>
    %c42 = arith.constant 42 : index
    %657 = memref.load %arg5[%c42] : memref<160xf32, #tpu.memory_space<smem>>
    %658 = vector.broadcast %657 : f32 to vector<4x100xf32>
    %659 = arith.mulf %658, %357 : vector<4x100xf32>
    %660 = arith.addf %656, %659 : vector<4x100xf32>
    %c43 = arith.constant 43 : index
    %661 = memref.load %arg5[%c43] : memref<160xf32, #tpu.memory_space<smem>>
    %662 = vector.broadcast %661 : f32 to vector<4x100xf32>
    %663 = arith.mulf %662, %359 : vector<4x100xf32>
    %664 = arith.addf %660, %663 : vector<4x100xf32>
    %c44 = arith.constant 44 : index
    %665 = memref.load %arg5[%c44] : memref<160xf32, #tpu.memory_space<smem>>
    %666 = vector.broadcast %665 : f32 to vector<4x100xf32>
    %667 = arith.mulf %666, %361 : vector<4x100xf32>
    %668 = arith.addf %664, %667 : vector<4x100xf32>
    %c45 = arith.constant 45 : index
    %669 = memref.load %arg5[%c45] : memref<160xf32, #tpu.memory_space<smem>>
    %670 = vector.broadcast %669 : f32 to vector<4x100xf32>
    %671 = arith.mulf %670, %363 : vector<4x100xf32>
    %672 = arith.addf %668, %671 : vector<4x100xf32>
    %c46 = arith.constant 46 : index
    %673 = memref.load %arg5[%c46] : memref<160xf32, #tpu.memory_space<smem>>
    %674 = vector.broadcast %673 : f32 to vector<4x100xf32>
    %675 = arith.mulf %674, %365 : vector<4x100xf32>
    %676 = arith.addf %672, %675 : vector<4x100xf32>
    %c47 = arith.constant 47 : index
    %677 = memref.load %arg5[%c47] : memref<160xf32, #tpu.memory_space<smem>>
    %678 = vector.broadcast %677 : f32 to vector<4x100xf32>
    %679 = arith.mulf %678, %367 : vector<4x100xf32>
    %680 = arith.addf %676, %679 : vector<4x100xf32>
    %c48 = arith.constant 48 : index
    %681 = memref.load %arg5[%c48] : memref<160xf32, #tpu.memory_space<smem>>
    %682 = vector.broadcast %681 : f32 to vector<4x100xf32>
    %683 = arith.mulf %682, %369 : vector<4x100xf32>
    %684 = arith.addf %680, %683 : vector<4x100xf32>
    %c49 = arith.constant 49 : index
    %685 = memref.load %arg5[%c49] : memref<160xf32, #tpu.memory_space<smem>>
    %686 = vector.broadcast %685 : f32 to vector<4x100xf32>
    %687 = arith.mulf %686, %371 : vector<4x100xf32>
    %688 = arith.addf %684, %687 : vector<4x100xf32>
    %c50 = arith.constant 50 : index
    %689 = memref.load %arg5[%c50] : memref<160xf32, #tpu.memory_space<smem>>
    %690 = vector.broadcast %689 : f32 to vector<4x100xf32>
    %691 = arith.mulf %690, %373 : vector<4x100xf32>
    %692 = arith.addf %688, %691 : vector<4x100xf32>
    %c51 = arith.constant 51 : index
    %693 = memref.load %arg5[%c51] : memref<160xf32, #tpu.memory_space<smem>>
    %694 = vector.broadcast %693 : f32 to vector<4x100xf32>
    %695 = arith.mulf %694, %375 : vector<4x100xf32>
    %696 = arith.addf %692, %695 : vector<4x100xf32>
    %c52 = arith.constant 52 : index
    %697 = memref.load %arg5[%c52] : memref<160xf32, #tpu.memory_space<smem>>
    %698 = vector.broadcast %697 : f32 to vector<4x100xf32>
    %699 = arith.mulf %698, %377 : vector<4x100xf32>
    %700 = arith.addf %696, %699 : vector<4x100xf32>
    %c53 = arith.constant 53 : index
    %701 = memref.load %arg5[%c53] : memref<160xf32, #tpu.memory_space<smem>>
    %702 = vector.broadcast %701 : f32 to vector<4x100xf32>
    %703 = arith.mulf %702, %379 : vector<4x100xf32>
    %704 = arith.addf %700, %703 : vector<4x100xf32>
    %c54 = arith.constant 54 : index
    %705 = memref.load %arg5[%c54] : memref<160xf32, #tpu.memory_space<smem>>
    %706 = vector.broadcast %705 : f32 to vector<4x100xf32>
    %707 = arith.mulf %706, %381 : vector<4x100xf32>
    %708 = arith.addf %704, %707 : vector<4x100xf32>
    %c55 = arith.constant 55 : index
    %709 = memref.load %arg5[%c55] : memref<160xf32, #tpu.memory_space<smem>>
    %710 = vector.broadcast %709 : f32 to vector<4x100xf32>
    %711 = arith.mulf %710, %383 : vector<4x100xf32>
    %712 = arith.addf %708, %711 : vector<4x100xf32>
    %c56 = arith.constant 56 : index
    %713 = memref.load %arg5[%c56] : memref<160xf32, #tpu.memory_space<smem>>
    %714 = vector.broadcast %713 : f32 to vector<4x100xf32>
    %715 = arith.mulf %714, %385 : vector<4x100xf32>
    %716 = arith.addf %712, %715 : vector<4x100xf32>
    %c57 = arith.constant 57 : index
    %717 = memref.load %arg5[%c57] : memref<160xf32, #tpu.memory_space<smem>>
    %718 = vector.broadcast %717 : f32 to vector<4x100xf32>
    %719 = arith.mulf %718, %387 : vector<4x100xf32>
    %720 = arith.addf %716, %719 : vector<4x100xf32>
    %c58 = arith.constant 58 : index
    %721 = memref.load %arg5[%c58] : memref<160xf32, #tpu.memory_space<smem>>
    %722 = vector.broadcast %721 : f32 to vector<4x100xf32>
    %723 = arith.mulf %722, %389 : vector<4x100xf32>
    %724 = arith.addf %720, %723 : vector<4x100xf32>
    %c59 = arith.constant 59 : index
    %725 = memref.load %arg5[%c59] : memref<160xf32, #tpu.memory_space<smem>>
    %726 = vector.broadcast %725 : f32 to vector<4x100xf32>
    %727 = arith.mulf %726, %391 : vector<4x100xf32>
    %728 = arith.addf %724, %727 : vector<4x100xf32>
    %c2_141 = arith.constant 2 : index
    %729 = memref.load %arg7[%c2_141] : memref<8xf32, #tpu.memory_space<smem>>
    %c2_142 = arith.constant 2 : index
    %730 = memref.load %arg8[%c2_142] : memref<8xf32, #tpu.memory_space<smem>>
    %731 = vector.shape_cast %728 : vector<4x100xf32> to vector<1x4x100xf32>
    %cst_143 = arith.constant dense<0.000000e+00> : vector<1xf32>
    %732 = vector.multi_reduction <add>, %731, %cst_143 [1, 2] : vector<1x4x100xf32> to vector<1xf32>
    %733 = vector.shape_cast %732 : vector<1xf32> to vector<1x1x1xf32>
    %734 = vector.extract %733[0, 0, 0] : f32 from vector<1x1x1xf32>
    %735 = vector.broadcast %734 : f32 to vector<1x1xf32>
    %736 = arith.mulf %728, %728 : vector<4x100xf32>
    %737 = vector.shape_cast %736 : vector<4x100xf32> to vector<1x4x100xf32>
    %cst_144 = arith.constant dense<0.000000e+00> : vector<1xf32>
    %738 = vector.multi_reduction <add>, %737, %cst_144 [1, 2] : vector<1x4x100xf32> to vector<1xf32>
    %739 = vector.shape_cast %738 : vector<1xf32> to vector<1x1x1xf32>
    %740 = vector.extract %739[0, 0, 0] : f32 from vector<1x1x1xf32>
    %741 = vector.broadcast %740 : f32 to vector<1x1xf32>
    %cst_145 = arith.constant 2.500000e-03 : f32
    %742 = vector.broadcast %cst_145 : f32 to vector<1x1xf32>
    %743 = arith.mulf %735, %742 : vector<1x1xf32>
    %cst_146 = arith.constant 2.500000e-03 : f32
    %744 = vector.broadcast %cst_146 : f32 to vector<1x1xf32>
    %745 = arith.mulf %741, %744 : vector<1x1xf32>
    %746 = arith.mulf %743, %743 : vector<1x1xf32>
    %747 = arith.subf %745, %746 : vector<1x1xf32>
    %cst_147 = arith.constant 9.99999974E-6 : f32
    %748 = vector.broadcast %cst_147 : f32 to vector<1x1xf32>
    %749 = arith.addf %747, %748 : vector<1x1xf32>
    %750 = math.rsqrt %749 : vector<1x1xf32>
    %751 = vector.broadcast %729 : f32 to vector<1x1xf32>
    %752 = arith.mulf %751, %750 : vector<1x1xf32>
    %753 = arith.mulf %743, %752 : vector<1x1xf32>
    %754 = vector.broadcast %730 : f32 to vector<1x1xf32>
    %755 = arith.subf %754, %753 : vector<1x1xf32>
    %756 = vector.broadcast %752 : vector<1x1xf32> to vector<4x100xf32>
    %757 = arith.mulf %728, %756 : vector<4x100xf32>
    %758 = vector.broadcast %755 : vector<1x1xf32> to vector<4x100xf32>
    %759 = arith.addf %757, %758 : vector<4x100xf32>
    %cst_148 = arith.constant 0.000000e+00 : f32
    %760 = vector.broadcast %cst_148 : f32 to vector<4x100xf32>
    %761 = arith.cmpf oge, %759, %760 : vector<4x100xf32>
    %cst_149 = arith.constant 0.00999999977 : f32
    %762 = vector.broadcast %cst_149 : f32 to vector<4x100xf32>
    %763 = arith.mulf %762, %759 : vector<4x100xf32>
    %764 = arith.select %761, %759, %763 : vector<4x100xi1>, vector<4x100xf32>
    %765 = vector.extract_strided_slice %764 {offsets = [0, 0], sizes = [4, 98], strides = [1, 1]} : vector<4x100xf32> to vector<4x98xf32>
    %766 = vector.extract_strided_slice %764 {offsets = [0, 1], sizes = [4, 98], strides = [1, 1]} : vector<4x100xf32> to vector<4x98xf32>
    %767 = arith.maximumf %765, %766 : vector<4x98xf32>
    %768 = vector.extract_strided_slice %764 {offsets = [0, 2], sizes = [4, 98], strides = [1, 1]} : vector<4x100xf32> to vector<4x98xf32>
    %769 = arith.maximumf %767, %768 : vector<4x98xf32>
    %c2_150 = arith.constant 2 : index
    %c0_151 = arith.constant 0 : index
    %c0_152 = arith.constant 0 : index
    %770 = vector.load %arg9[%c2_150, %c0_151, %c0_152] : memref<8x98x350xf32, #tpu.memory_space<vmem>>, vector<1x98x350xf32>
    %771 = vector.shape_cast %770 : vector<1x98x350xf32> to vector<98x350xf32>
    %cst_153 = arith.constant dense<0.000000e+00> : vector<4x350xf32>
    %772 = tpu.matmul %769, %771, %cst_153 {dimension_numbers = #tpu.dot_dimension_numbers<[1], [0], [0], [1], [0, 0, 1, 1], [], []>} : vector<4x98xf32>, vector<98x350xf32>, vector<4x350xf32> -> vector<4x350xf32>
    %773 = arith.addf %646, %772 : vector<4x350xf32>
    %c3_154 = arith.constant 3 : index
    %774 = memref.load %arg6[%c3_154] : memref<8xf32, #tpu.memory_space<smem>>
    %775 = vector.broadcast %774 : f32 to vector<4x100xf32>
    %c60 = arith.constant 60 : index
    %776 = memref.load %arg5[%c60] : memref<160xf32, #tpu.memory_space<smem>>
    %777 = vector.broadcast %776 : f32 to vector<4x100xf32>
    %778 = arith.mulf %777, %353 : vector<4x100xf32>
    %779 = arith.addf %775, %778 : vector<4x100xf32>
    %c61 = arith.constant 61 : index
    %780 = memref.load %arg5[%c61] : memref<160xf32, #tpu.memory_space<smem>>
    %781 = vector.broadcast %780 : f32 to vector<4x100xf32>
    %782 = arith.mulf %781, %355 : vector<4x100xf32>
    %783 = arith.addf %779, %782 : vector<4x100xf32>
    %c62 = arith.constant 62 : index
    %784 = memref.load %arg5[%c62] : memref<160xf32, #tpu.memory_space<smem>>
    %785 = vector.broadcast %784 : f32 to vector<4x100xf32>
    %786 = arith.mulf %785, %357 : vector<4x100xf32>
    %787 = arith.addf %783, %786 : vector<4x100xf32>
    %c63 = arith.constant 63 : index
    %788 = memref.load %arg5[%c63] : memref<160xf32, #tpu.memory_space<smem>>
    %789 = vector.broadcast %788 : f32 to vector<4x100xf32>
    %790 = arith.mulf %789, %359 : vector<4x100xf32>
    %791 = arith.addf %787, %790 : vector<4x100xf32>
    %c64 = arith.constant 64 : index
    %792 = memref.load %arg5[%c64] : memref<160xf32, #tpu.memory_space<smem>>
    %793 = vector.broadcast %792 : f32 to vector<4x100xf32>
    %794 = arith.mulf %793, %361 : vector<4x100xf32>
    %795 = arith.addf %791, %794 : vector<4x100xf32>
    %c65 = arith.constant 65 : index
    %796 = memref.load %arg5[%c65] : memref<160xf32, #tpu.memory_space<smem>>
    %797 = vector.broadcast %796 : f32 to vector<4x100xf32>
    %798 = arith.mulf %797, %363 : vector<4x100xf32>
    %799 = arith.addf %795, %798 : vector<4x100xf32>
    %c66 = arith.constant 66 : index
    %800 = memref.load %arg5[%c66] : memref<160xf32, #tpu.memory_space<smem>>
    %801 = vector.broadcast %800 : f32 to vector<4x100xf32>
    %802 = arith.mulf %801, %365 : vector<4x100xf32>
    %803 = arith.addf %799, %802 : vector<4x100xf32>
    %c67 = arith.constant 67 : index
    %804 = memref.load %arg5[%c67] : memref<160xf32, #tpu.memory_space<smem>>
    %805 = vector.broadcast %804 : f32 to vector<4x100xf32>
    %806 = arith.mulf %805, %367 : vector<4x100xf32>
    %807 = arith.addf %803, %806 : vector<4x100xf32>
    %c68 = arith.constant 68 : index
    %808 = memref.load %arg5[%c68] : memref<160xf32, #tpu.memory_space<smem>>
    %809 = vector.broadcast %808 : f32 to vector<4x100xf32>
    %810 = arith.mulf %809, %369 : vector<4x100xf32>
    %811 = arith.addf %807, %810 : vector<4x100xf32>
    %c69 = arith.constant 69 : index
    %812 = memref.load %arg5[%c69] : memref<160xf32, #tpu.memory_space<smem>>
    %813 = vector.broadcast %812 : f32 to vector<4x100xf32>
    %814 = arith.mulf %813, %371 : vector<4x100xf32>
    %815 = arith.addf %811, %814 : vector<4x100xf32>
    %c70 = arith.constant 70 : index
    %816 = memref.load %arg5[%c70] : memref<160xf32, #tpu.memory_space<smem>>
    %817 = vector.broadcast %816 : f32 to vector<4x100xf32>
    %818 = arith.mulf %817, %373 : vector<4x100xf32>
    %819 = arith.addf %815, %818 : vector<4x100xf32>
    %c71 = arith.constant 71 : index
    %820 = memref.load %arg5[%c71] : memref<160xf32, #tpu.memory_space<smem>>
    %821 = vector.broadcast %820 : f32 to vector<4x100xf32>
    %822 = arith.mulf %821, %375 : vector<4x100xf32>
    %823 = arith.addf %819, %822 : vector<4x100xf32>
    %c72 = arith.constant 72 : index
    %824 = memref.load %arg5[%c72] : memref<160xf32, #tpu.memory_space<smem>>
    %825 = vector.broadcast %824 : f32 to vector<4x100xf32>
    %826 = arith.mulf %825, %377 : vector<4x100xf32>
    %827 = arith.addf %823, %826 : vector<4x100xf32>
    %c73 = arith.constant 73 : index
    %828 = memref.load %arg5[%c73] : memref<160xf32, #tpu.memory_space<smem>>
    %829 = vector.broadcast %828 : f32 to vector<4x100xf32>
    %830 = arith.mulf %829, %379 : vector<4x100xf32>
    %831 = arith.addf %827, %830 : vector<4x100xf32>
    %c74 = arith.constant 74 : index
    %832 = memref.load %arg5[%c74] : memref<160xf32, #tpu.memory_space<smem>>
    %833 = vector.broadcast %832 : f32 to vector<4x100xf32>
    %834 = arith.mulf %833, %381 : vector<4x100xf32>
    %835 = arith.addf %831, %834 : vector<4x100xf32>
    %c75 = arith.constant 75 : index
    %836 = memref.load %arg5[%c75] : memref<160xf32, #tpu.memory_space<smem>>
    %837 = vector.broadcast %836 : f32 to vector<4x100xf32>
    %838 = arith.mulf %837, %383 : vector<4x100xf32>
    %839 = arith.addf %835, %838 : vector<4x100xf32>
    %c76 = arith.constant 76 : index
    %840 = memref.load %arg5[%c76] : memref<160xf32, #tpu.memory_space<smem>>
    %841 = vector.broadcast %840 : f32 to vector<4x100xf32>
    %842 = arith.mulf %841, %385 : vector<4x100xf32>
    %843 = arith.addf %839, %842 : vector<4x100xf32>
    %c77 = arith.constant 77 : index
    %844 = memref.load %arg5[%c77] : memref<160xf32, #tpu.memory_space<smem>>
    %845 = vector.broadcast %844 : f32 to vector<4x100xf32>
    %846 = arith.mulf %845, %387 : vector<4x100xf32>
    %847 = arith.addf %843, %846 : vector<4x100xf32>
    %c78 = arith.constant 78 : index
    %848 = memref.load %arg5[%c78] : memref<160xf32, #tpu.memory_space<smem>>
    %849 = vector.broadcast %848 : f32 to vector<4x100xf32>
    %850 = arith.mulf %849, %389 : vector<4x100xf32>
    %851 = arith.addf %847, %850 : vector<4x100xf32>
    %c79 = arith.constant 79 : index
    %852 = memref.load %arg5[%c79] : memref<160xf32, #tpu.memory_space<smem>>
    %853 = vector.broadcast %852 : f32 to vector<4x100xf32>
    %854 = arith.mulf %853, %391 : vector<4x100xf32>
    %855 = arith.addf %851, %854 : vector<4x100xf32>
    %c3_155 = arith.constant 3 : index
    %856 = memref.load %arg7[%c3_155] : memref<8xf32, #tpu.memory_space<smem>>
    %c3_156 = arith.constant 3 : index
    %857 = memref.load %arg8[%c3_156] : memref<8xf32, #tpu.memory_space<smem>>
    %858 = vector.shape_cast %855 : vector<4x100xf32> to vector<1x4x100xf32>
    %cst_157 = arith.constant dense<0.000000e+00> : vector<1xf32>
    %859 = vector.multi_reduction <add>, %858, %cst_157 [1, 2] : vector<1x4x100xf32> to vector<1xf32>
    %860 = vector.shape_cast %859 : vector<1xf32> to vector<1x1x1xf32>
    %861 = vector.extract %860[0, 0, 0] : f32 from vector<1x1x1xf32>
    %862 = vector.broadcast %861 : f32 to vector<1x1xf32>
    %863 = arith.mulf %855, %855 : vector<4x100xf32>
    %864 = vector.shape_cast %863 : vector<4x100xf32> to vector<1x4x100xf32>
    %cst_158 = arith.constant dense<0.000000e+00> : vector<1xf32>
    %865 = vector.multi_reduction <add>, %864, %cst_158 [1, 2] : vector<1x4x100xf32> to vector<1xf32>
    %866 = vector.shape_cast %865 : vector<1xf32> to vector<1x1x1xf32>
    %867 = vector.extract %866[0, 0, 0] : f32 from vector<1x1x1xf32>
    %868 = vector.broadcast %867 : f32 to vector<1x1xf32>
    %cst_159 = arith.constant 2.500000e-03 : f32
    %869 = vector.broadcast %cst_159 : f32 to vector<1x1xf32>
    %870 = arith.mulf %862, %869 : vector<1x1xf32>
    %cst_160 = arith.constant 2.500000e-03 : f32
    %871 = vector.broadcast %cst_160 : f32 to vector<1x1xf32>
    %872 = arith.mulf %868, %871 : vector<1x1xf32>
    %873 = arith.mulf %870, %870 : vector<1x1xf32>
    %874 = arith.subf %872, %873 : vector<1x1xf32>
    %cst_161 = arith.constant 9.99999974E-6 : f32
    %875 = vector.broadcast %cst_161 : f32 to vector<1x1xf32>
    %876 = arith.addf %874, %875 : vector<1x1xf32>
    %877 = math.rsqrt %876 : vector<1x1xf32>
    %878 = vector.broadcast %856 : f32 to vector<1x1xf32>
    %879 = arith.mulf %878, %877 : vector<1x1xf32>
    %880 = arith.mulf %870, %879 : vector<1x1xf32>
    %881 = vector.broadcast %857 : f32 to vector<1x1xf32>
    %882 = arith.subf %881, %880 : vector<1x1xf32>
    %883 = vector.broadcast %879 : vector<1x1xf32> to vector<4x100xf32>
    %884 = arith.mulf %855, %883 : vector<4x100xf32>
    %885 = vector.broadcast %882 : vector<1x1xf32> to vector<4x100xf32>
    %886 = arith.addf %884, %885 : vector<4x100xf32>
    %cst_162 = arith.constant 0.000000e+00 : f32
    %887 = vector.broadcast %cst_162 : f32 to vector<4x100xf32>
    %888 = arith.cmpf oge, %886, %887 : vector<4x100xf32>
    %cst_163 = arith.constant 0.00999999977 : f32
    %889 = vector.broadcast %cst_163 : f32 to vector<4x100xf32>
    %890 = arith.mulf %889, %886 : vector<4x100xf32>
    %891 = arith.select %888, %886, %890 : vector<4x100xi1>, vector<4x100xf32>
    %892 = vector.extract_strided_slice %891 {offsets = [0, 0], sizes = [4, 98], strides = [1, 1]} : vector<4x100xf32> to vector<4x98xf32>
    %893 = vector.extract_strided_slice %891 {offsets = [0, 1], sizes = [4, 98], strides = [1, 1]} : vector<4x100xf32> to vector<4x98xf32>
    %894 = arith.maximumf %892, %893 : vector<4x98xf32>
    %895 = vector.extract_strided_slice %891 {offsets = [0, 2], sizes = [4, 98], strides = [1, 1]} : vector<4x100xf32> to vector<4x98xf32>
    %896 = arith.maximumf %894, %895 : vector<4x98xf32>
    %c3_164 = arith.constant 3 : index
    %c0_165 = arith.constant 0 : index
    %c0_166 = arith.constant 0 : index
    %897 = vector.load %arg9[%c3_164, %c0_165, %c0_166] : memref<8x98x350xf32, #tpu.memory_space<vmem>>, vector<1x98x350xf32>
    %898 = vector.shape_cast %897 : vector<1x98x350xf32> to vector<98x350xf32>
    %cst_167 = arith.constant dense<0.000000e+00> : vector<4x350xf32>
    %899 = tpu.matmul %896, %898, %cst_167 {dimension_numbers = #tpu.dot_dimension_numbers<[1], [0], [0], [1], [0, 0, 1, 1], [], []>} : vector<4x98xf32>, vector<98x350xf32>, vector<4x350xf32> -> vector<4x350xf32>
    %900 = arith.addf %773, %899 : vector<4x350xf32>
    %c4_168 = arith.constant 4 : index
    %901 = memref.load %arg6[%c4_168] : memref<8xf32, #tpu.memory_space<smem>>
    %902 = vector.broadcast %901 : f32 to vector<4x100xf32>
    %c80 = arith.constant 80 : index
    %903 = memref.load %arg5[%c80] : memref<160xf32, #tpu.memory_space<smem>>
    %904 = vector.broadcast %903 : f32 to vector<4x100xf32>
    %905 = arith.mulf %904, %353 : vector<4x100xf32>
    %906 = arith.addf %902, %905 : vector<4x100xf32>
    %c81 = arith.constant 81 : index
    %907 = memref.load %arg5[%c81] : memref<160xf32, #tpu.memory_space<smem>>
    %908 = vector.broadcast %907 : f32 to vector<4x100xf32>
    %909 = arith.mulf %908, %355 : vector<4x100xf32>
    %910 = arith.addf %906, %909 : vector<4x100xf32>
    %c82 = arith.constant 82 : index
    %911 = memref.load %arg5[%c82] : memref<160xf32, #tpu.memory_space<smem>>
    %912 = vector.broadcast %911 : f32 to vector<4x100xf32>
    %913 = arith.mulf %912, %357 : vector<4x100xf32>
    %914 = arith.addf %910, %913 : vector<4x100xf32>
    %c83 = arith.constant 83 : index
    %915 = memref.load %arg5[%c83] : memref<160xf32, #tpu.memory_space<smem>>
    %916 = vector.broadcast %915 : f32 to vector<4x100xf32>
    %917 = arith.mulf %916, %359 : vector<4x100xf32>
    %918 = arith.addf %914, %917 : vector<4x100xf32>
    %c84 = arith.constant 84 : index
    %919 = memref.load %arg5[%c84] : memref<160xf32, #tpu.memory_space<smem>>
    %920 = vector.broadcast %919 : f32 to vector<4x100xf32>
    %921 = arith.mulf %920, %361 : vector<4x100xf32>
    %922 = arith.addf %918, %921 : vector<4x100xf32>
    %c85 = arith.constant 85 : index
    %923 = memref.load %arg5[%c85] : memref<160xf32, #tpu.memory_space<smem>>
    %924 = vector.broadcast %923 : f32 to vector<4x100xf32>
    %925 = arith.mulf %924, %363 : vector<4x100xf32>
    %926 = arith.addf %922, %925 : vector<4x100xf32>
    %c86 = arith.constant 86 : index
    %927 = memref.load %arg5[%c86] : memref<160xf32, #tpu.memory_space<smem>>
    %928 = vector.broadcast %927 : f32 to vector<4x100xf32>
    %929 = arith.mulf %928, %365 : vector<4x100xf32>
    %930 = arith.addf %926, %929 : vector<4x100xf32>
    %c87 = arith.constant 87 : index
    %931 = memref.load %arg5[%c87] : memref<160xf32, #tpu.memory_space<smem>>
    %932 = vector.broadcast %931 : f32 to vector<4x100xf32>
    %933 = arith.mulf %932, %367 : vector<4x100xf32>
    %934 = arith.addf %930, %933 : vector<4x100xf32>
    %c88 = arith.constant 88 : index
    %935 = memref.load %arg5[%c88] : memref<160xf32, #tpu.memory_space<smem>>
    %936 = vector.broadcast %935 : f32 to vector<4x100xf32>
    %937 = arith.mulf %936, %369 : vector<4x100xf32>
    %938 = arith.addf %934, %937 : vector<4x100xf32>
    %c89 = arith.constant 89 : index
    %939 = memref.load %arg5[%c89] : memref<160xf32, #tpu.memory_space<smem>>
    %940 = vector.broadcast %939 : f32 to vector<4x100xf32>
    %941 = arith.mulf %940, %371 : vector<4x100xf32>
    %942 = arith.addf %938, %941 : vector<4x100xf32>
    %c90 = arith.constant 90 : index
    %943 = memref.load %arg5[%c90] : memref<160xf32, #tpu.memory_space<smem>>
    %944 = vector.broadcast %943 : f32 to vector<4x100xf32>
    %945 = arith.mulf %944, %373 : vector<4x100xf32>
    %946 = arith.addf %942, %945 : vector<4x100xf32>
    %c91 = arith.constant 91 : index
    %947 = memref.load %arg5[%c91] : memref<160xf32, #tpu.memory_space<smem>>
    %948 = vector.broadcast %947 : f32 to vector<4x100xf32>
    %949 = arith.mulf %948, %375 : vector<4x100xf32>
    %950 = arith.addf %946, %949 : vector<4x100xf32>
    %c92 = arith.constant 92 : index
    %951 = memref.load %arg5[%c92] : memref<160xf32, #tpu.memory_space<smem>>
    %952 = vector.broadcast %951 : f32 to vector<4x100xf32>
    %953 = arith.mulf %952, %377 : vector<4x100xf32>
    %954 = arith.addf %950, %953 : vector<4x100xf32>
    %c93 = arith.constant 93 : index
    %955 = memref.load %arg5[%c93] : memref<160xf32, #tpu.memory_space<smem>>
    %956 = vector.broadcast %955 : f32 to vector<4x100xf32>
    %957 = arith.mulf %956, %379 : vector<4x100xf32>
    %958 = arith.addf %954, %957 : vector<4x100xf32>
    %c94 = arith.constant 94 : index
    %959 = memref.load %arg5[%c94] : memref<160xf32, #tpu.memory_space<smem>>
    %960 = vector.broadcast %959 : f32 to vector<4x100xf32>
    %961 = arith.mulf %960, %381 : vector<4x100xf32>
    %962 = arith.addf %958, %961 : vector<4x100xf32>
    %c95 = arith.constant 95 : index
    %963 = memref.load %arg5[%c95] : memref<160xf32, #tpu.memory_space<smem>>
    %964 = vector.broadcast %963 : f32 to vector<4x100xf32>
    %965 = arith.mulf %964, %383 : vector<4x100xf32>
    %966 = arith.addf %962, %965 : vector<4x100xf32>
    %c96 = arith.constant 96 : index
    %967 = memref.load %arg5[%c96] : memref<160xf32, #tpu.memory_space<smem>>
    %968 = vector.broadcast %967 : f32 to vector<4x100xf32>
    %969 = arith.mulf %968, %385 : vector<4x100xf32>
    %970 = arith.addf %966, %969 : vector<4x100xf32>
    %c97 = arith.constant 97 : index
    %971 = memref.load %arg5[%c97] : memref<160xf32, #tpu.memory_space<smem>>
    %972 = vector.broadcast %971 : f32 to vector<4x100xf32>
    %973 = arith.mulf %972, %387 : vector<4x100xf32>
    %974 = arith.addf %970, %973 : vector<4x100xf32>
    %c98 = arith.constant 98 : index
    %975 = memref.load %arg5[%c98] : memref<160xf32, #tpu.memory_space<smem>>
    %976 = vector.broadcast %975 : f32 to vector<4x100xf32>
    %977 = arith.mulf %976, %389 : vector<4x100xf32>
    %978 = arith.addf %974, %977 : vector<4x100xf32>
    %c99 = arith.constant 99 : index
    %979 = memref.load %arg5[%c99] : memref<160xf32, #tpu.memory_space<smem>>
    %980 = vector.broadcast %979 : f32 to vector<4x100xf32>
    %981 = arith.mulf %980, %391 : vector<4x100xf32>
    %982 = arith.addf %978, %981 : vector<4x100xf32>
    %c4_169 = arith.constant 4 : index
    %983 = memref.load %arg7[%c4_169] : memref<8xf32, #tpu.memory_space<smem>>
    %c4_170 = arith.constant 4 : index
    %984 = memref.load %arg8[%c4_170] : memref<8xf32, #tpu.memory_space<smem>>
    %985 = vector.shape_cast %982 : vector<4x100xf32> to vector<1x4x100xf32>
    %cst_171 = arith.constant dense<0.000000e+00> : vector<1xf32>
    %986 = vector.multi_reduction <add>, %985, %cst_171 [1, 2] : vector<1x4x100xf32> to vector<1xf32>
    %987 = vector.shape_cast %986 : vector<1xf32> to vector<1x1x1xf32>
    %988 = vector.extract %987[0, 0, 0] : f32 from vector<1x1x1xf32>
    %989 = vector.broadcast %988 : f32 to vector<1x1xf32>
    %990 = arith.mulf %982, %982 : vector<4x100xf32>
    %991 = vector.shape_cast %990 : vector<4x100xf32> to vector<1x4x100xf32>
    %cst_172 = arith.constant dense<0.000000e+00> : vector<1xf32>
    %992 = vector.multi_reduction <add>, %991, %cst_172 [1, 2] : vector<1x4x100xf32> to vector<1xf32>
    %993 = vector.shape_cast %992 : vector<1xf32> to vector<1x1x1xf32>
    %994 = vector.extract %993[0, 0, 0] : f32 from vector<1x1x1xf32>
    %995 = vector.broadcast %994 : f32 to vector<1x1xf32>
    %cst_173 = arith.constant 2.500000e-03 : f32
    %996 = vector.broadcast %cst_173 : f32 to vector<1x1xf32>
    %997 = arith.mulf %989, %996 : vector<1x1xf32>
    %cst_174 = arith.constant 2.500000e-03 : f32
    %998 = vector.broadcast %cst_174 : f32 to vector<1x1xf32>
    %999 = arith.mulf %995, %998 : vector<1x1xf32>
    %1000 = arith.mulf %997, %997 : vector<1x1xf32>
    %1001 = arith.subf %999, %1000 : vector<1x1xf32>
    %cst_175 = arith.constant 9.99999974E-6 : f32
    %1002 = vector.broadcast %cst_175 : f32 to vector<1x1xf32>
    %1003 = arith.addf %1001, %1002 : vector<1x1xf32>
    %1004 = math.rsqrt %1003 : vector<1x1xf32>
    %1005 = vector.broadcast %983 : f32 to vector<1x1xf32>
    %1006 = arith.mulf %1005, %1004 : vector<1x1xf32>
    %1007 = arith.mulf %997, %1006 : vector<1x1xf32>
    %1008 = vector.broadcast %984 : f32 to vector<1x1xf32>
    %1009 = arith.subf %1008, %1007 : vector<1x1xf32>
    %1010 = vector.broadcast %1006 : vector<1x1xf32> to vector<4x100xf32>
    %1011 = arith.mulf %982, %1010 : vector<4x100xf32>
    %1012 = vector.broadcast %1009 : vector<1x1xf32> to vector<4x100xf32>
    %1013 = arith.addf %1011, %1012 : vector<4x100xf32>
    %cst_176 = arith.constant 0.000000e+00 : f32
    %1014 = vector.broadcast %cst_176 : f32 to vector<4x100xf32>
    %1015 = arith.cmpf oge, %1013, %1014 : vector<4x100xf32>
    %cst_177 = arith.constant 0.00999999977 : f32
    %1016 = vector.broadcast %cst_177 : f32 to vector<4x100xf32>
    %1017 = arith.mulf %1016, %1013 : vector<4x100xf32>
    %1018 = arith.select %1015, %1013, %1017 : vector<4x100xi1>, vector<4x100xf32>
    %1019 = vector.extract_strided_slice %1018 {offsets = [0, 0], sizes = [4, 98], strides = [1, 1]} : vector<4x100xf32> to vector<4x98xf32>
    %1020 = vector.extract_strided_slice %1018 {offsets = [0, 1], sizes = [4, 98], strides = [1, 1]} : vector<4x100xf32> to vector<4x98xf32>
    %1021 = arith.maximumf %1019, %1020 : vector<4x98xf32>
    %1022 = vector.extract_strided_slice %1018 {offsets = [0, 2], sizes = [4, 98], strides = [1, 1]} : vector<4x100xf32> to vector<4x98xf32>
    %1023 = arith.maximumf %1021, %1022 : vector<4x98xf32>
    %c4_178 = arith.constant 4 : index
    %c0_179 = arith.constant 0 : index
    %c0_180 = arith.constant 0 : index
    %1024 = vector.load %arg9[%c4_178, %c0_179, %c0_180] : memref<8x98x350xf32, #tpu.memory_space<vmem>>, vector<1x98x350xf32>
    %1025 = vector.shape_cast %1024 : vector<1x98x350xf32> to vector<98x350xf32>
    %cst_181 = arith.constant dense<0.000000e+00> : vector<4x350xf32>
    %1026 = tpu.matmul %1023, %1025, %cst_181 {dimension_numbers = #tpu.dot_dimension_numbers<[1], [0], [0], [1], [0, 0, 1, 1], [], []>} : vector<4x98xf32>, vector<98x350xf32>, vector<4x350xf32> -> vector<4x350xf32>
    %1027 = arith.addf %900, %1026 : vector<4x350xf32>
    %c5_182 = arith.constant 5 : index
    %1028 = memref.load %arg6[%c5_182] : memref<8xf32, #tpu.memory_space<smem>>
    %1029 = vector.broadcast %1028 : f32 to vector<4x100xf32>
    %c100 = arith.constant 100 : index
    %1030 = memref.load %arg5[%c100] : memref<160xf32, #tpu.memory_space<smem>>
    %1031 = vector.broadcast %1030 : f32 to vector<4x100xf32>
    %1032 = arith.mulf %1031, %353 : vector<4x100xf32>
    %1033 = arith.addf %1029, %1032 : vector<4x100xf32>
    %c101 = arith.constant 101 : index
    %1034 = memref.load %arg5[%c101] : memref<160xf32, #tpu.memory_space<smem>>
    %1035 = vector.broadcast %1034 : f32 to vector<4x100xf32>
    %1036 = arith.mulf %1035, %355 : vector<4x100xf32>
    %1037 = arith.addf %1033, %1036 : vector<4x100xf32>
    %c102 = arith.constant 102 : index
    %1038 = memref.load %arg5[%c102] : memref<160xf32, #tpu.memory_space<smem>>
    %1039 = vector.broadcast %1038 : f32 to vector<4x100xf32>
    %1040 = arith.mulf %1039, %357 : vector<4x100xf32>
    %1041 = arith.addf %1037, %1040 : vector<4x100xf32>
    %c103 = arith.constant 103 : index
    %1042 = memref.load %arg5[%c103] : memref<160xf32, #tpu.memory_space<smem>>
    %1043 = vector.broadcast %1042 : f32 to vector<4x100xf32>
    %1044 = arith.mulf %1043, %359 : vector<4x100xf32>
    %1045 = arith.addf %1041, %1044 : vector<4x100xf32>
    %c104 = arith.constant 104 : index
    %1046 = memref.load %arg5[%c104] : memref<160xf32, #tpu.memory_space<smem>>
    %1047 = vector.broadcast %1046 : f32 to vector<4x100xf32>
    %1048 = arith.mulf %1047, %361 : vector<4x100xf32>
    %1049 = arith.addf %1045, %1048 : vector<4x100xf32>
    %c105 = arith.constant 105 : index
    %1050 = memref.load %arg5[%c105] : memref<160xf32, #tpu.memory_space<smem>>
    %1051 = vector.broadcast %1050 : f32 to vector<4x100xf32>
    %1052 = arith.mulf %1051, %363 : vector<4x100xf32>
    %1053 = arith.addf %1049, %1052 : vector<4x100xf32>
    %c106 = arith.constant 106 : index
    %1054 = memref.load %arg5[%c106] : memref<160xf32, #tpu.memory_space<smem>>
    %1055 = vector.broadcast %1054 : f32 to vector<4x100xf32>
    %1056 = arith.mulf %1055, %365 : vector<4x100xf32>
    %1057 = arith.addf %1053, %1056 : vector<4x100xf32>
    %c107 = arith.constant 107 : index
    %1058 = memref.load %arg5[%c107] : memref<160xf32, #tpu.memory_space<smem>>
    %1059 = vector.broadcast %1058 : f32 to vector<4x100xf32>
    %1060 = arith.mulf %1059, %367 : vector<4x100xf32>
    %1061 = arith.addf %1057, %1060 : vector<4x100xf32>
    %c108 = arith.constant 108 : index
    %1062 = memref.load %arg5[%c108] : memref<160xf32, #tpu.memory_space<smem>>
    %1063 = vector.broadcast %1062 : f32 to vector<4x100xf32>
    %1064 = arith.mulf %1063, %369 : vector<4x100xf32>
    %1065 = arith.addf %1061, %1064 : vector<4x100xf32>
    %c109 = arith.constant 109 : index
    %1066 = memref.load %arg5[%c109] : memref<160xf32, #tpu.memory_space<smem>>
    %1067 = vector.broadcast %1066 : f32 to vector<4x100xf32>
    %1068 = arith.mulf %1067, %371 : vector<4x100xf32>
    %1069 = arith.addf %1065, %1068 : vector<4x100xf32>
    %c110 = arith.constant 110 : index
    %1070 = memref.load %arg5[%c110] : memref<160xf32, #tpu.memory_space<smem>>
    %1071 = vector.broadcast %1070 : f32 to vector<4x100xf32>
    %1072 = arith.mulf %1071, %373 : vector<4x100xf32>
    %1073 = arith.addf %1069, %1072 : vector<4x100xf32>
    %c111 = arith.constant 111 : index
    %1074 = memref.load %arg5[%c111] : memref<160xf32, #tpu.memory_space<smem>>
    %1075 = vector.broadcast %1074 : f32 to vector<4x100xf32>
    %1076 = arith.mulf %1075, %375 : vector<4x100xf32>
    %1077 = arith.addf %1073, %1076 : vector<4x100xf32>
    %c112 = arith.constant 112 : index
    %1078 = memref.load %arg5[%c112] : memref<160xf32, #tpu.memory_space<smem>>
    %1079 = vector.broadcast %1078 : f32 to vector<4x100xf32>
    %1080 = arith.mulf %1079, %377 : vector<4x100xf32>
    %1081 = arith.addf %1077, %1080 : vector<4x100xf32>
    %c113 = arith.constant 113 : index
    %1082 = memref.load %arg5[%c113] : memref<160xf32, #tpu.memory_space<smem>>
    %1083 = vector.broadcast %1082 : f32 to vector<4x100xf32>
    %1084 = arith.mulf %1083, %379 : vector<4x100xf32>
    %1085 = arith.addf %1081, %1084 : vector<4x100xf32>
    %c114 = arith.constant 114 : index
    %1086 = memref.load %arg5[%c114] : memref<160xf32, #tpu.memory_space<smem>>
    %1087 = vector.broadcast %1086 : f32 to vector<4x100xf32>
    %1088 = arith.mulf %1087, %381 : vector<4x100xf32>
    %1089 = arith.addf %1085, %1088 : vector<4x100xf32>
    %c115 = arith.constant 115 : index
    %1090 = memref.load %arg5[%c115] : memref<160xf32, #tpu.memory_space<smem>>
    %1091 = vector.broadcast %1090 : f32 to vector<4x100xf32>
    %1092 = arith.mulf %1091, %383 : vector<4x100xf32>
    %1093 = arith.addf %1089, %1092 : vector<4x100xf32>
    %c116 = arith.constant 116 : index
    %1094 = memref.load %arg5[%c116] : memref<160xf32, #tpu.memory_space<smem>>
    %1095 = vector.broadcast %1094 : f32 to vector<4x100xf32>
    %1096 = arith.mulf %1095, %385 : vector<4x100xf32>
    %1097 = arith.addf %1093, %1096 : vector<4x100xf32>
    %c117 = arith.constant 117 : index
    %1098 = memref.load %arg5[%c117] : memref<160xf32, #tpu.memory_space<smem>>
    %1099 = vector.broadcast %1098 : f32 to vector<4x100xf32>
    %1100 = arith.mulf %1099, %387 : vector<4x100xf32>
    %1101 = arith.addf %1097, %1100 : vector<4x100xf32>
    %c118 = arith.constant 118 : index
    %1102 = memref.load %arg5[%c118] : memref<160xf32, #tpu.memory_space<smem>>
    %1103 = vector.broadcast %1102 : f32 to vector<4x100xf32>
    %1104 = arith.mulf %1103, %389 : vector<4x100xf32>
    %1105 = arith.addf %1101, %1104 : vector<4x100xf32>
    %c119 = arith.constant 119 : index
    %1106 = memref.load %arg5[%c119] : memref<160xf32, #tpu.memory_space<smem>>
    %1107 = vector.broadcast %1106 : f32 to vector<4x100xf32>
    %1108 = arith.mulf %1107, %391 : vector<4x100xf32>
    %1109 = arith.addf %1105, %1108 : vector<4x100xf32>
    %c5_183 = arith.constant 5 : index
    %1110 = memref.load %arg7[%c5_183] : memref<8xf32, #tpu.memory_space<smem>>
    %c5_184 = arith.constant 5 : index
    %1111 = memref.load %arg8[%c5_184] : memref<8xf32, #tpu.memory_space<smem>>
    %1112 = vector.shape_cast %1109 : vector<4x100xf32> to vector<1x4x100xf32>
    %cst_185 = arith.constant dense<0.000000e+00> : vector<1xf32>
    %1113 = vector.multi_reduction <add>, %1112, %cst_185 [1, 2] : vector<1x4x100xf32> to vector<1xf32>
    %1114 = vector.shape_cast %1113 : vector<1xf32> to vector<1x1x1xf32>
    %1115 = vector.extract %1114[0, 0, 0] : f32 from vector<1x1x1xf32>
    %1116 = vector.broadcast %1115 : f32 to vector<1x1xf32>
    %1117 = arith.mulf %1109, %1109 : vector<4x100xf32>
    %1118 = vector.shape_cast %1117 : vector<4x100xf32> to vector<1x4x100xf32>
    %cst_186 = arith.constant dense<0.000000e+00> : vector<1xf32>
    %1119 = vector.multi_reduction <add>, %1118, %cst_186 [1, 2] : vector<1x4x100xf32> to vector<1xf32>
    %1120 = vector.shape_cast %1119 : vector<1xf32> to vector<1x1x1xf32>
    %1121 = vector.extract %1120[0, 0, 0] : f32 from vector<1x1x1xf32>
    %1122 = vector.broadcast %1121 : f32 to vector<1x1xf32>
    %cst_187 = arith.constant 2.500000e-03 : f32
    %1123 = vector.broadcast %cst_187 : f32 to vector<1x1xf32>
    %1124 = arith.mulf %1116, %1123 : vector<1x1xf32>
    %cst_188 = arith.constant 2.500000e-03 : f32
    %1125 = vector.broadcast %cst_188 : f32 to vector<1x1xf32>
    %1126 = arith.mulf %1122, %1125 : vector<1x1xf32>
    %1127 = arith.mulf %1124, %1124 : vector<1x1xf32>
    %1128 = arith.subf %1126, %1127 : vector<1x1xf32>
    %cst_189 = arith.constant 9.99999974E-6 : f32
    %1129 = vector.broadcast %cst_189 : f32 to vector<1x1xf32>
    %1130 = arith.addf %1128, %1129 : vector<1x1xf32>
    %1131 = math.rsqrt %1130 : vector<1x1xf32>
    %1132 = vector.broadcast %1110 : f32 to vector<1x1xf32>
    %1133 = arith.mulf %1132, %1131 : vector<1x1xf32>
    %1134 = arith.mulf %1124, %1133 : vector<1x1xf32>
    %1135 = vector.broadcast %1111 : f32 to vector<1x1xf32>
    %1136 = arith.subf %1135, %1134 : vector<1x1xf32>
    %1137 = vector.broadcast %1133 : vector<1x1xf32> to vector<4x100xf32>
    %1138 = arith.mulf %1109, %1137 : vector<4x100xf32>
    %1139 = vector.broadcast %1136 : vector<1x1xf32> to vector<4x100xf32>
    %1140 = arith.addf %1138, %1139 : vector<4x100xf32>
    %cst_190 = arith.constant 0.000000e+00 : f32
    %1141 = vector.broadcast %cst_190 : f32 to vector<4x100xf32>
    %1142 = arith.cmpf oge, %1140, %1141 : vector<4x100xf32>
    %cst_191 = arith.constant 0.00999999977 : f32
    %1143 = vector.broadcast %cst_191 : f32 to vector<4x100xf32>
    %1144 = arith.mulf %1143, %1140 : vector<4x100xf32>
    %1145 = arith.select %1142, %1140, %1144 : vector<4x100xi1>, vector<4x100xf32>
    %1146 = vector.extract_strided_slice %1145 {offsets = [0, 0], sizes = [4, 98], strides = [1, 1]} : vector<4x100xf32> to vector<4x98xf32>
    %1147 = vector.extract_strided_slice %1145 {offsets = [0, 1], sizes = [4, 98], strides = [1, 1]} : vector<4x100xf32> to vector<4x98xf32>
    %1148 = arith.maximumf %1146, %1147 : vector<4x98xf32>
    %1149 = vector.extract_strided_slice %1145 {offsets = [0, 2], sizes = [4, 98], strides = [1, 1]} : vector<4x100xf32> to vector<4x98xf32>
    %1150 = arith.maximumf %1148, %1149 : vector<4x98xf32>
    %c5_192 = arith.constant 5 : index
    %c0_193 = arith.constant 0 : index
    %c0_194 = arith.constant 0 : index
    %1151 = vector.load %arg9[%c5_192, %c0_193, %c0_194] : memref<8x98x350xf32, #tpu.memory_space<vmem>>, vector<1x98x350xf32>
    %1152 = vector.shape_cast %1151 : vector<1x98x350xf32> to vector<98x350xf32>
    %cst_195 = arith.constant dense<0.000000e+00> : vector<4x350xf32>
    %1153 = tpu.matmul %1150, %1152, %cst_195 {dimension_numbers = #tpu.dot_dimension_numbers<[1], [0], [0], [1], [0, 0, 1, 1], [], []>} : vector<4x98xf32>, vector<98x350xf32>, vector<4x350xf32> -> vector<4x350xf32>
    %1154 = arith.addf %1027, %1153 : vector<4x350xf32>
    %c6_196 = arith.constant 6 : index
    %1155 = memref.load %arg6[%c6_196] : memref<8xf32, #tpu.memory_space<smem>>
    %1156 = vector.broadcast %1155 : f32 to vector<4x100xf32>
    %c120 = arith.constant 120 : index
    %1157 = memref.load %arg5[%c120] : memref<160xf32, #tpu.memory_space<smem>>
    %1158 = vector.broadcast %1157 : f32 to vector<4x100xf32>
    %1159 = arith.mulf %1158, %353 : vector<4x100xf32>
    %1160 = arith.addf %1156, %1159 : vector<4x100xf32>
    %c121 = arith.constant 121 : index
    %1161 = memref.load %arg5[%c121] : memref<160xf32, #tpu.memory_space<smem>>
    %1162 = vector.broadcast %1161 : f32 to vector<4x100xf32>
    %1163 = arith.mulf %1162, %355 : vector<4x100xf32>
    %1164 = arith.addf %1160, %1163 : vector<4x100xf32>
    %c122 = arith.constant 122 : index
    %1165 = memref.load %arg5[%c122] : memref<160xf32, #tpu.memory_space<smem>>
    %1166 = vector.broadcast %1165 : f32 to vector<4x100xf32>
    %1167 = arith.mulf %1166, %357 : vector<4x100xf32>
    %1168 = arith.addf %1164, %1167 : vector<4x100xf32>
    %c123 = arith.constant 123 : index
    %1169 = memref.load %arg5[%c123] : memref<160xf32, #tpu.memory_space<smem>>
    %1170 = vector.broadcast %1169 : f32 to vector<4x100xf32>
    %1171 = arith.mulf %1170, %359 : vector<4x100xf32>
    %1172 = arith.addf %1168, %1171 : vector<4x100xf32>
    %c124 = arith.constant 124 : index
    %1173 = memref.load %arg5[%c124] : memref<160xf32, #tpu.memory_space<smem>>
    %1174 = vector.broadcast %1173 : f32 to vector<4x100xf32>
    %1175 = arith.mulf %1174, %361 : vector<4x100xf32>
    %1176 = arith.addf %1172, %1175 : vector<4x100xf32>
    %c125 = arith.constant 125 : index
    %1177 = memref.load %arg5[%c125] : memref<160xf32, #tpu.memory_space<smem>>
    %1178 = vector.broadcast %1177 : f32 to vector<4x100xf32>
    %1179 = arith.mulf %1178, %363 : vector<4x100xf32>
    %1180 = arith.addf %1176, %1179 : vector<4x100xf32>
    %c126 = arith.constant 126 : index
    %1181 = memref.load %arg5[%c126] : memref<160xf32, #tpu.memory_space<smem>>
    %1182 = vector.broadcast %1181 : f32 to vector<4x100xf32>
    %1183 = arith.mulf %1182, %365 : vector<4x100xf32>
    %1184 = arith.addf %1180, %1183 : vector<4x100xf32>
    %c127 = arith.constant 127 : index
    %1185 = memref.load %arg5[%c127] : memref<160xf32, #tpu.memory_space<smem>>
    %1186 = vector.broadcast %1185 : f32 to vector<4x100xf32>
    %1187 = arith.mulf %1186, %367 : vector<4x100xf32>
    %1188 = arith.addf %1184, %1187 : vector<4x100xf32>
    %c128 = arith.constant 128 : index
    %1189 = memref.load %arg5[%c128] : memref<160xf32, #tpu.memory_space<smem>>
    %1190 = vector.broadcast %1189 : f32 to vector<4x100xf32>
    %1191 = arith.mulf %1190, %369 : vector<4x100xf32>
    %1192 = arith.addf %1188, %1191 : vector<4x100xf32>
    %c129 = arith.constant 129 : index
    %1193 = memref.load %arg5[%c129] : memref<160xf32, #tpu.memory_space<smem>>
    %1194 = vector.broadcast %1193 : f32 to vector<4x100xf32>
    %1195 = arith.mulf %1194, %371 : vector<4x100xf32>
    %1196 = arith.addf %1192, %1195 : vector<4x100xf32>
    %c130 = arith.constant 130 : index
    %1197 = memref.load %arg5[%c130] : memref<160xf32, #tpu.memory_space<smem>>
    %1198 = vector.broadcast %1197 : f32 to vector<4x100xf32>
    %1199 = arith.mulf %1198, %373 : vector<4x100xf32>
    %1200 = arith.addf %1196, %1199 : vector<4x100xf32>
    %c131 = arith.constant 131 : index
    %1201 = memref.load %arg5[%c131] : memref<160xf32, #tpu.memory_space<smem>>
    %1202 = vector.broadcast %1201 : f32 to vector<4x100xf32>
    %1203 = arith.mulf %1202, %375 : vector<4x100xf32>
    %1204 = arith.addf %1200, %1203 : vector<4x100xf32>
    %c132 = arith.constant 132 : index
    %1205 = memref.load %arg5[%c132] : memref<160xf32, #tpu.memory_space<smem>>
    %1206 = vector.broadcast %1205 : f32 to vector<4x100xf32>
    %1207 = arith.mulf %1206, %377 : vector<4x100xf32>
    %1208 = arith.addf %1204, %1207 : vector<4x100xf32>
    %c133 = arith.constant 133 : index
    %1209 = memref.load %arg5[%c133] : memref<160xf32, #tpu.memory_space<smem>>
    %1210 = vector.broadcast %1209 : f32 to vector<4x100xf32>
    %1211 = arith.mulf %1210, %379 : vector<4x100xf32>
    %1212 = arith.addf %1208, %1211 : vector<4x100xf32>
    %c134 = arith.constant 134 : index
    %1213 = memref.load %arg5[%c134] : memref<160xf32, #tpu.memory_space<smem>>
    %1214 = vector.broadcast %1213 : f32 to vector<4x100xf32>
    %1215 = arith.mulf %1214, %381 : vector<4x100xf32>
    %1216 = arith.addf %1212, %1215 : vector<4x100xf32>
    %c135 = arith.constant 135 : index
    %1217 = memref.load %arg5[%c135] : memref<160xf32, #tpu.memory_space<smem>>
    %1218 = vector.broadcast %1217 : f32 to vector<4x100xf32>
    %1219 = arith.mulf %1218, %383 : vector<4x100xf32>
    %1220 = arith.addf %1216, %1219 : vector<4x100xf32>
    %c136 = arith.constant 136 : index
    %1221 = memref.load %arg5[%c136] : memref<160xf32, #tpu.memory_space<smem>>
    %1222 = vector.broadcast %1221 : f32 to vector<4x100xf32>
    %1223 = arith.mulf %1222, %385 : vector<4x100xf32>
    %1224 = arith.addf %1220, %1223 : vector<4x100xf32>
    %c137 = arith.constant 137 : index
    %1225 = memref.load %arg5[%c137] : memref<160xf32, #tpu.memory_space<smem>>
    %1226 = vector.broadcast %1225 : f32 to vector<4x100xf32>
    %1227 = arith.mulf %1226, %387 : vector<4x100xf32>
    %1228 = arith.addf %1224, %1227 : vector<4x100xf32>
    %c138 = arith.constant 138 : index
    %1229 = memref.load %arg5[%c138] : memref<160xf32, #tpu.memory_space<smem>>
    %1230 = vector.broadcast %1229 : f32 to vector<4x100xf32>
    %1231 = arith.mulf %1230, %389 : vector<4x100xf32>
    %1232 = arith.addf %1228, %1231 : vector<4x100xf32>
    %c139 = arith.constant 139 : index
    %1233 = memref.load %arg5[%c139] : memref<160xf32, #tpu.memory_space<smem>>
    %1234 = vector.broadcast %1233 : f32 to vector<4x100xf32>
    %1235 = arith.mulf %1234, %391 : vector<4x100xf32>
    %1236 = arith.addf %1232, %1235 : vector<4x100xf32>
    %c6_197 = arith.constant 6 : index
    %1237 = memref.load %arg7[%c6_197] : memref<8xf32, #tpu.memory_space<smem>>
    %c6_198 = arith.constant 6 : index
    %1238 = memref.load %arg8[%c6_198] : memref<8xf32, #tpu.memory_space<smem>>
    %1239 = vector.shape_cast %1236 : vector<4x100xf32> to vector<1x4x100xf32>
    %cst_199 = arith.constant dense<0.000000e+00> : vector<1xf32>
    %1240 = vector.multi_reduction <add>, %1239, %cst_199 [1, 2] : vector<1x4x100xf32> to vector<1xf32>
    %1241 = vector.shape_cast %1240 : vector<1xf32> to vector<1x1x1xf32>
    %1242 = vector.extract %1241[0, 0, 0] : f32 from vector<1x1x1xf32>
    %1243 = vector.broadcast %1242 : f32 to vector<1x1xf32>
    %1244 = arith.mulf %1236, %1236 : vector<4x100xf32>
    %1245 = vector.shape_cast %1244 : vector<4x100xf32> to vector<1x4x100xf32>
    %cst_200 = arith.constant dense<0.000000e+00> : vector<1xf32>
    %1246 = vector.multi_reduction <add>, %1245, %cst_200 [1, 2] : vector<1x4x100xf32> to vector<1xf32>
    %1247 = vector.shape_cast %1246 : vector<1xf32> to vector<1x1x1xf32>
    %1248 = vector.extract %1247[0, 0, 0] : f32 from vector<1x1x1xf32>
    %1249 = vector.broadcast %1248 : f32 to vector<1x1xf32>
    %cst_201 = arith.constant 2.500000e-03 : f32
    %1250 = vector.broadcast %cst_201 : f32 to vector<1x1xf32>
    %1251 = arith.mulf %1243, %1250 : vector<1x1xf32>
    %cst_202 = arith.constant 2.500000e-03 : f32
    %1252 = vector.broadcast %cst_202 : f32 to vector<1x1xf32>
    %1253 = arith.mulf %1249, %1252 : vector<1x1xf32>
    %1254 = arith.mulf %1251, %1251 : vector<1x1xf32>
    %1255 = arith.subf %1253, %1254 : vector<1x1xf32>
    %cst_203 = arith.constant 9.99999974E-6 : f32
    %1256 = vector.broadcast %cst_203 : f32 to vector<1x1xf32>
    %1257 = arith.addf %1255, %1256 : vector<1x1xf32>
    %1258 = math.rsqrt %1257 : vector<1x1xf32>
    %1259 = vector.broadcast %1237 : f32 to vector<1x1xf32>
    %1260 = arith.mulf %1259, %1258 : vector<1x1xf32>
    %1261 = arith.mulf %1251, %1260 : vector<1x1xf32>
    %1262 = vector.broadcast %1238 : f32 to vector<1x1xf32>
    %1263 = arith.subf %1262, %1261 : vector<1x1xf32>
    %1264 = vector.broadcast %1260 : vector<1x1xf32> to vector<4x100xf32>
    %1265 = arith.mulf %1236, %1264 : vector<4x100xf32>
    %1266 = vector.broadcast %1263 : vector<1x1xf32> to vector<4x100xf32>
    %1267 = arith.addf %1265, %1266 : vector<4x100xf32>
    %cst_204 = arith.constant 0.000000e+00 : f32
    %1268 = vector.broadcast %cst_204 : f32 to vector<4x100xf32>
    %1269 = arith.cmpf oge, %1267, %1268 : vector<4x100xf32>
    %cst_205 = arith.constant 0.00999999977 : f32
    %1270 = vector.broadcast %cst_205 : f32 to vector<4x100xf32>
    %1271 = arith.mulf %1270, %1267 : vector<4x100xf32>
    %1272 = arith.select %1269, %1267, %1271 : vector<4x100xi1>, vector<4x100xf32>
    %1273 = vector.extract_strided_slice %1272 {offsets = [0, 0], sizes = [4, 98], strides = [1, 1]} : vector<4x100xf32> to vector<4x98xf32>
    %1274 = vector.extract_strided_slice %1272 {offsets = [0, 1], sizes = [4, 98], strides = [1, 1]} : vector<4x100xf32> to vector<4x98xf32>
    %1275 = arith.maximumf %1273, %1274 : vector<4x98xf32>
    %1276 = vector.extract_strided_slice %1272 {offsets = [0, 2], sizes = [4, 98], strides = [1, 1]} : vector<4x100xf32> to vector<4x98xf32>
    %1277 = arith.maximumf %1275, %1276 : vector<4x98xf32>
    %c6_206 = arith.constant 6 : index
    %c0_207 = arith.constant 0 : index
    %c0_208 = arith.constant 0 : index
    %1278 = vector.load %arg9[%c6_206, %c0_207, %c0_208] : memref<8x98x350xf32, #tpu.memory_space<vmem>>, vector<1x98x350xf32>
    %1279 = vector.shape_cast %1278 : vector<1x98x350xf32> to vector<98x350xf32>
    %cst_209 = arith.constant dense<0.000000e+00> : vector<4x350xf32>
    %1280 = tpu.matmul %1277, %1279, %cst_209 {dimension_numbers = #tpu.dot_dimension_numbers<[1], [0], [0], [1], [0, 0, 1, 1], [], []>} : vector<4x98xf32>, vector<98x350xf32>, vector<4x350xf32> -> vector<4x350xf32>
    %1281 = arith.addf %1154, %1280 : vector<4x350xf32>
    %c7_210 = arith.constant 7 : index
    %1282 = memref.load %arg6[%c7_210] : memref<8xf32, #tpu.memory_space<smem>>
    %1283 = vector.broadcast %1282 : f32 to vector<4x100xf32>
    %c140 = arith.constant 140 : index
    %1284 = memref.load %arg5[%c140] : memref<160xf32, #tpu.memory_space<smem>>
    %1285 = vector.broadcast %1284 : f32 to vector<4x100xf32>
    %1286 = arith.mulf %1285, %353 : vector<4x100xf32>
    %1287 = arith.addf %1283, %1286 : vector<4x100xf32>
    %c141 = arith.constant 141 : index
    %1288 = memref.load %arg5[%c141] : memref<160xf32, #tpu.memory_space<smem>>
    %1289 = vector.broadcast %1288 : f32 to vector<4x100xf32>
    %1290 = arith.mulf %1289, %355 : vector<4x100xf32>
    %1291 = arith.addf %1287, %1290 : vector<4x100xf32>
    %c142 = arith.constant 142 : index
    %1292 = memref.load %arg5[%c142] : memref<160xf32, #tpu.memory_space<smem>>
    %1293 = vector.broadcast %1292 : f32 to vector<4x100xf32>
    %1294 = arith.mulf %1293, %357 : vector<4x100xf32>
    %1295 = arith.addf %1291, %1294 : vector<4x100xf32>
    %c143 = arith.constant 143 : index
    %1296 = memref.load %arg5[%c143] : memref<160xf32, #tpu.memory_space<smem>>
    %1297 = vector.broadcast %1296 : f32 to vector<4x100xf32>
    %1298 = arith.mulf %1297, %359 : vector<4x100xf32>
    %1299 = arith.addf %1295, %1298 : vector<4x100xf32>
    %c144 = arith.constant 144 : index
    %1300 = memref.load %arg5[%c144] : memref<160xf32, #tpu.memory_space<smem>>
    %1301 = vector.broadcast %1300 : f32 to vector<4x100xf32>
    %1302 = arith.mulf %1301, %361 : vector<4x100xf32>
    %1303 = arith.addf %1299, %1302 : vector<4x100xf32>
    %c145 = arith.constant 145 : index
    %1304 = memref.load %arg5[%c145] : memref<160xf32, #tpu.memory_space<smem>>
    %1305 = vector.broadcast %1304 : f32 to vector<4x100xf32>
    %1306 = arith.mulf %1305, %363 : vector<4x100xf32>
    %1307 = arith.addf %1303, %1306 : vector<4x100xf32>
    %c146 = arith.constant 146 : index
    %1308 = memref.load %arg5[%c146] : memref<160xf32, #tpu.memory_space<smem>>
    %1309 = vector.broadcast %1308 : f32 to vector<4x100xf32>
    %1310 = arith.mulf %1309, %365 : vector<4x100xf32>
    %1311 = arith.addf %1307, %1310 : vector<4x100xf32>
    %c147 = arith.constant 147 : index
    %1312 = memref.load %arg5[%c147] : memref<160xf32, #tpu.memory_space<smem>>
    %1313 = vector.broadcast %1312 : f32 to vector<4x100xf32>
    %1314 = arith.mulf %1313, %367 : vector<4x100xf32>
    %1315 = arith.addf %1311, %1314 : vector<4x100xf32>
    %c148 = arith.constant 148 : index
    %1316 = memref.load %arg5[%c148] : memref<160xf32, #tpu.memory_space<smem>>
    %1317 = vector.broadcast %1316 : f32 to vector<4x100xf32>
    %1318 = arith.mulf %1317, %369 : vector<4x100xf32>
    %1319 = arith.addf %1315, %1318 : vector<4x100xf32>
    %c149 = arith.constant 149 : index
    %1320 = memref.load %arg5[%c149] : memref<160xf32, #tpu.memory_space<smem>>
    %1321 = vector.broadcast %1320 : f32 to vector<4x100xf32>
    %1322 = arith.mulf %1321, %371 : vector<4x100xf32>
    %1323 = arith.addf %1319, %1322 : vector<4x100xf32>
    %c150 = arith.constant 150 : index
    %1324 = memref.load %arg5[%c150] : memref<160xf32, #tpu.memory_space<smem>>
    %1325 = vector.broadcast %1324 : f32 to vector<4x100xf32>
    %1326 = arith.mulf %1325, %373 : vector<4x100xf32>
    %1327 = arith.addf %1323, %1326 : vector<4x100xf32>
    %c151 = arith.constant 151 : index
    %1328 = memref.load %arg5[%c151] : memref<160xf32, #tpu.memory_space<smem>>
    %1329 = vector.broadcast %1328 : f32 to vector<4x100xf32>
    %1330 = arith.mulf %1329, %375 : vector<4x100xf32>
    %1331 = arith.addf %1327, %1330 : vector<4x100xf32>
    %c152 = arith.constant 152 : index
    %1332 = memref.load %arg5[%c152] : memref<160xf32, #tpu.memory_space<smem>>
    %1333 = vector.broadcast %1332 : f32 to vector<4x100xf32>
    %1334 = arith.mulf %1333, %377 : vector<4x100xf32>
    %1335 = arith.addf %1331, %1334 : vector<4x100xf32>
    %c153 = arith.constant 153 : index
    %1336 = memref.load %arg5[%c153] : memref<160xf32, #tpu.memory_space<smem>>
    %1337 = vector.broadcast %1336 : f32 to vector<4x100xf32>
    %1338 = arith.mulf %1337, %379 : vector<4x100xf32>
    %1339 = arith.addf %1335, %1338 : vector<4x100xf32>
    %c154 = arith.constant 154 : index
    %1340 = memref.load %arg5[%c154] : memref<160xf32, #tpu.memory_space<smem>>
    %1341 = vector.broadcast %1340 : f32 to vector<4x100xf32>
    %1342 = arith.mulf %1341, %381 : vector<4x100xf32>
    %1343 = arith.addf %1339, %1342 : vector<4x100xf32>
    %c155 = arith.constant 155 : index
    %1344 = memref.load %arg5[%c155] : memref<160xf32, #tpu.memory_space<smem>>
    %1345 = vector.broadcast %1344 : f32 to vector<4x100xf32>
    %1346 = arith.mulf %1345, %383 : vector<4x100xf32>
    %1347 = arith.addf %1343, %1346 : vector<4x100xf32>
    %c156 = arith.constant 156 : index
    %1348 = memref.load %arg5[%c156] : memref<160xf32, #tpu.memory_space<smem>>
    %1349 = vector.broadcast %1348 : f32 to vector<4x100xf32>
    %1350 = arith.mulf %1349, %385 : vector<4x100xf32>
    %1351 = arith.addf %1347, %1350 : vector<4x100xf32>
    %c157 = arith.constant 157 : index
    %1352 = memref.load %arg5[%c157] : memref<160xf32, #tpu.memory_space<smem>>
    %1353 = vector.broadcast %1352 : f32 to vector<4x100xf32>
    %1354 = arith.mulf %1353, %387 : vector<4x100xf32>
    %1355 = arith.addf %1351, %1354 : vector<4x100xf32>
    %c158 = arith.constant 158 : index
    %1356 = memref.load %arg5[%c158] : memref<160xf32, #tpu.memory_space<smem>>
    %1357 = vector.broadcast %1356 : f32 to vector<4x100xf32>
    %1358 = arith.mulf %1357, %389 : vector<4x100xf32>
    %1359 = arith.addf %1355, %1358 : vector<4x100xf32>
    %c159 = arith.constant 159 : index
    %1360 = memref.load %arg5[%c159] : memref<160xf32, #tpu.memory_space<smem>>
    %1361 = vector.broadcast %1360 : f32 to vector<4x100xf32>
    %1362 = arith.mulf %1361, %391 : vector<4x100xf32>
    %1363 = arith.addf %1359, %1362 : vector<4x100xf32>
    %c7_211 = arith.constant 7 : index
    %1364 = memref.load %arg7[%c7_211] : memref<8xf32, #tpu.memory_space<smem>>
    %c7_212 = arith.constant 7 : index
    %1365 = memref.load %arg8[%c7_212] : memref<8xf32, #tpu.memory_space<smem>>
    %1366 = vector.shape_cast %1363 : vector<4x100xf32> to vector<1x4x100xf32>
    %cst_213 = arith.constant dense<0.000000e+00> : vector<1xf32>
    %1367 = vector.multi_reduction <add>, %1366, %cst_213 [1, 2] : vector<1x4x100xf32> to vector<1xf32>
    %1368 = vector.shape_cast %1367 : vector<1xf32> to vector<1x1x1xf32>
    %1369 = vector.extract %1368[0, 0, 0] : f32 from vector<1x1x1xf32>
    %1370 = vector.broadcast %1369 : f32 to vector<1x1xf32>
    %1371 = arith.mulf %1363, %1363 : vector<4x100xf32>
    %1372 = vector.shape_cast %1371 : vector<4x100xf32> to vector<1x4x100xf32>
    %cst_214 = arith.constant dense<0.000000e+00> : vector<1xf32>
    %1373 = vector.multi_reduction <add>, %1372, %cst_214 [1, 2] : vector<1x4x100xf32> to vector<1xf32>
    %1374 = vector.shape_cast %1373 : vector<1xf32> to vector<1x1x1xf32>
    %1375 = vector.extract %1374[0, 0, 0] : f32 from vector<1x1x1xf32>
    %1376 = vector.broadcast %1375 : f32 to vector<1x1xf32>
    %cst_215 = arith.constant 2.500000e-03 : f32
    %1377 = vector.broadcast %cst_215 : f32 to vector<1x1xf32>
    %1378 = arith.mulf %1370, %1377 : vector<1x1xf32>
    %cst_216 = arith.constant 2.500000e-03 : f32
    %1379 = vector.broadcast %cst_216 : f32 to vector<1x1xf32>
    %1380 = arith.mulf %1376, %1379 : vector<1x1xf32>
    %1381 = arith.mulf %1378, %1378 : vector<1x1xf32>
    %1382 = arith.subf %1380, %1381 : vector<1x1xf32>
    %cst_217 = arith.constant 9.99999974E-6 : f32
    %1383 = vector.broadcast %cst_217 : f32 to vector<1x1xf32>
    %1384 = arith.addf %1382, %1383 : vector<1x1xf32>
    %1385 = math.rsqrt %1384 : vector<1x1xf32>
    %1386 = vector.broadcast %1364 : f32 to vector<1x1xf32>
    %1387 = arith.mulf %1386, %1385 : vector<1x1xf32>
    %1388 = arith.mulf %1378, %1387 : vector<1x1xf32>
    %1389 = vector.broadcast %1365 : f32 to vector<1x1xf32>
    %1390 = arith.subf %1389, %1388 : vector<1x1xf32>
    %1391 = vector.broadcast %1387 : vector<1x1xf32> to vector<4x100xf32>
    %1392 = arith.mulf %1363, %1391 : vector<4x100xf32>
    %1393 = vector.broadcast %1390 : vector<1x1xf32> to vector<4x100xf32>
    %1394 = arith.addf %1392, %1393 : vector<4x100xf32>
    %cst_218 = arith.constant 0.000000e+00 : f32
    %1395 = vector.broadcast %cst_218 : f32 to vector<4x100xf32>
    %1396 = arith.cmpf oge, %1394, %1395 : vector<4x100xf32>
    %cst_219 = arith.constant 0.00999999977 : f32
    %1397 = vector.broadcast %cst_219 : f32 to vector<4x100xf32>
    %1398 = arith.mulf %1397, %1394 : vector<4x100xf32>
    %1399 = arith.select %1396, %1394, %1398 : vector<4x100xi1>, vector<4x100xf32>
    %1400 = vector.extract_strided_slice %1399 {offsets = [0, 0], sizes = [4, 98], strides = [1, 1]} : vector<4x100xf32> to vector<4x98xf32>
    %1401 = vector.extract_strided_slice %1399 {offsets = [0, 1], sizes = [4, 98], strides = [1, 1]} : vector<4x100xf32> to vector<4x98xf32>
    %1402 = arith.maximumf %1400, %1401 : vector<4x98xf32>
    %1403 = vector.extract_strided_slice %1399 {offsets = [0, 2], sizes = [4, 98], strides = [1, 1]} : vector<4x100xf32> to vector<4x98xf32>
    %1404 = arith.maximumf %1402, %1403 : vector<4x98xf32>
    %c7_220 = arith.constant 7 : index
    %c0_221 = arith.constant 0 : index
    %c0_222 = arith.constant 0 : index
    %1405 = vector.load %arg9[%c7_220, %c0_221, %c0_222] : memref<8x98x350xf32, #tpu.memory_space<vmem>>, vector<1x98x350xf32>
    %1406 = vector.shape_cast %1405 : vector<1x98x350xf32> to vector<98x350xf32>
    %cst_223 = arith.constant dense<0.000000e+00> : vector<4x350xf32>
    %1407 = tpu.matmul %1404, %1406, %cst_223 {dimension_numbers = #tpu.dot_dimension_numbers<[1], [0], [0], [1], [0, 0, 1, 1], [], []>} : vector<4x98xf32>, vector<98x350xf32>, vector<4x350xf32> -> vector<4x350xf32>
    %1408 = arith.addf %1281, %1407 : vector<4x350xf32>
    %c0_224 = arith.constant 0 : index
    %c0_225 = arith.constant 0 : index
    %1409 = vector.load %arg10[%c0_224, %c0_225] : memref<1x350xf32, #tpu.memory_space<vmem>>, vector<1x350xf32>
    %1410 = vector.broadcast %1409 : vector<1x350xf32> to vector<4x350xf32>
    %1411 = arith.addf %1408, %1410 : vector<4x350xf32>
    %cst_226 = arith.constant 0.000000e+00 : f32
    %1412 = vector.broadcast %cst_226 : f32 to vector<4x350xf32>
    %1413 = arith.cmpf oge, %1411, %1412 : vector<4x350xf32>
    %cst_227 = arith.constant 0.00999999977 : f32
    %1414 = vector.broadcast %cst_227 : f32 to vector<4x350xf32>
    %1415 = arith.mulf %1414, %1411 : vector<4x350xf32>
    %1416 = arith.select %1413, %1411, %1415 : vector<4x350xi1>, vector<4x350xf32>
    %c0_228 = arith.constant 0 : index
    %c0_229 = arith.constant 0 : index
    %1417 = vector.load %arg11[%c0_228, %c0_229] : memref<350x80xf32, #tpu.memory_space<vmem>>, vector<350x80xf32>
    %cst_230 = arith.constant dense<0.000000e+00> : vector<4x80xf32>
    %1418 = tpu.matmul %1416, %1417, %cst_230 {dimension_numbers = #tpu.dot_dimension_numbers<[1], [0], [0], [1], [0, 0, 1, 1], [], []>} : vector<4x350xf32>, vector<350x80xf32>, vector<4x80xf32> -> vector<4x80xf32>
    %c0_231 = arith.constant 0 : index
    %c0_232 = arith.constant 0 : index
    %1419 = vector.load %arg12[%c0_231, %c0_232] : memref<1x80xf32, #tpu.memory_space<vmem>>, vector<1x80xf32>
    %1420 = vector.broadcast %1419 : vector<1x80xf32> to vector<4x80xf32>
    %1421 = arith.addf %1418, %1420 : vector<4x80xf32>
    %cst_233 = arith.constant 0.000000e+00 : f32
    %1422 = vector.broadcast %cst_233 : f32 to vector<4x80xf32>
    %1423 = arith.cmpf oge, %1421, %1422 : vector<4x80xf32>
    %cst_234 = arith.constant 0.00999999977 : f32
    %1424 = vector.broadcast %cst_234 : f32 to vector<4x80xf32>
    %1425 = arith.mulf %1424, %1421 : vector<4x80xf32>
    %1426 = arith.select %1423, %1421, %1425 : vector<4x80xi1>, vector<4x80xf32>
    %c0_235 = arith.constant 0 : index
    %c0_236 = arith.constant 0 : index
    %1427 = vector.load %arg13[%c0_235, %c0_236] : memref<80x4xf32, #tpu.memory_space<vmem>>, vector<80x4xf32>
    %cst_237 = arith.constant dense<0.000000e+00> : vector<4x4xf32>
    %1428 = tpu.matmul %1426, %1427, %cst_237 {dimension_numbers = #tpu.dot_dimension_numbers<[1], [0], [0], [1], [0, 0, 1, 1], [], []>} : vector<4x80xf32>, vector<80x4xf32>, vector<4x4xf32> -> vector<4x4xf32>
    %c0_238 = arith.constant 0 : index
    %c0_239 = arith.constant 0 : index
    %1429 = vector.load %arg14[%c0_238, %c0_239] : memref<1x4xf32, #tpu.memory_space<vmem>>, vector<1x4xf32>
    %1430 = vector.broadcast %1429 : vector<1x4xf32> to vector<4x4xf32>
    %1431 = arith.addf %1428, %1430 : vector<4x4xf32>
    %cst_240 = arith.constant 0.000000e+00 : f32
    %1432 = vector.broadcast %cst_240 : f32 to vector<4x4xf32>
    %1433 = arith.cmpf oge, %1431, %1432 : vector<4x4xf32>
    %cst_241 = arith.constant 0.00999999977 : f32
    %1434 = vector.broadcast %cst_241 : f32 to vector<4x4xf32>
    %1435 = arith.mulf %1434, %1431 : vector<4x4xf32>
    %1436 = arith.select %1433, %1431, %1435 : vector<4x4xi1>, vector<4x4xf32>
    %c0_242 = arith.constant 0 : index
    %c0_243 = arith.constant 0 : index
    %1437 = vector.load %arg15[%c0_242, %c0_243] : memref<4x4xf32, #tpu.memory_space<vmem>>, vector<4x4xf32>
    tpu.vector_store %arg15[%c0_242, %c0_243], %1436 {strides = array<i32>} : memref<4x4xf32, #tpu.memory_space<vmem>>, vector<4x4xf32>,
    return
  }
}

</mosaic_0001>

<bundles_post_ra>
// kernel: net_forward.1
= control target key start
LH: loop header
LB: loop body
LE: loop exit
PB: predicated region body
PF: predicated region fallthrough
CT: control target
= control target key end

     0   :  { %20 = vsyncpa [#allocation6], 0  ;;  %s9394_s0 = inlined_call_operand.vmem [shape: f32[4,2,100], index: 0, kind: input, shape index: {}]   ;;  %s9395_s1 = inlined_call_operand.vmem [shape: f32[40], index: 1, kind: input, shape index: {}]   ;;  %s9396_s2 = inlined_call_operand.vmem [shape: f32[4], index: 2, kind: input, shape index: {}]   ;;  %s9397_s3 = inlined_call_operand.vmem [shape: f32[4], index: 3, kind: input, shape index: {}]   ;;  %s9398_s4 = inlined_call_operand.vmem [shape: f32[4], index: 4, kind: input, shape index: {}]   ;;  %s9399_s5 = inlined_call_operand.vmem [shape: f32[160], index: 5, kind: input, shape index: {}]   ;;  %s9400_s6 = inlined_call_operand.vmem [shape: f32[8], index: 6, kind: input, shape index: {}]   ;;  %s9401_s7 = inlined_call_operand.vmem [shape: f32[8], index: 7, kind: input, shape index: {}]   ;;  %s9402_s8 = inlined_call_operand.vmem [shape: f32[8], index: 8, kind: input, shape index: {}]   ;;  %s9403_s9 = inlined_call_operand.vmem [shape: f32[8,98,350], index: 9, kind: input, shape index: {}]   ;;  %s9404_s10 = inlined_call_operand.vmem [shape: f32[1,350], index: 10, kind: input, shape index: {}]   ;;  %s9405_s11 = inlined_call_operand.vmem [shape: f32[350,80], index: 11, kind: input, shape index: {}]   ;;  %s9406_s12 = inlined_call_operand.vmem [shape: f32[1,80], index: 12, kind: input, shape index: {}]   ;;  %s9407_s13 = inlined_call_operand.vmem [shape: f32[80,4], index: 13, kind: input, shape index: {}]   ;;  %s9408_s14 = inlined_call_operand.vmem [shape: f32[1,4], index: 14, kind: input, shape index: {}]   ;;  %s9409_s15 = inlined_call_operand.hbm [shape: f32[4,4], index: 15, kind: output, shape index: {}]  }
   0x1   :  { %21 = vsyncpa [#allocation8], 0 }
   0x2   :  { %22 = vsyncpa [#allocation11], 0 }
   0x3   :  { %23 = vsyncpa [#allocation14], 0 }
   0x4   :  { %24 = vsyncpa [#allocation17], 0  ;;  %s44_s20 = sshll.u32 %s9396_s2, 4  ;;  %s45_s20 = int_to_ptr.vmem [resolvable:$true] %s44_s20 }
   0x5   :  { %25 = vsyncpa [#allocation5], 0  ;;  %s64_s23 = sshll.u32 %s9398_s4, 4  ;;  %s6178_s24 = scalar_lea.vmem %s45_s20, 16  ;;  %s65_s23 = int_to_ptr.vmem [resolvable:$true] %s64_s23 }
   0x6   :  { %p6179_p0 = scmp.ne.s32.totalorder %s45_s20, %s6178_s24  ;;  %p6183_p1 = scmp.lt.s32.totalorder %s45_s20, %s45_s20 }
   0x7   :  { %p6184_p2 = scmp.lt.s32.totalorder %s6178_s24, %s6178_s24 }
   0x9   :  { %p6185_p3 = por %p6184_p2, %p6183_p1 }
   0xb   :  { %p6186_p4 = pnand %p6185_p3, %p6179_p0 }
   0xd   :  { %6189 = shalt.err (!%p6186_p4)
}
   0xe   :  { %s6306_s25 = smov [#allocation7]   ;;  %s6190_s26 = scalar_lea.vmem %s65_s23, 16 }
   0xf   :  { %47 = dma.vmem_to_smem %s45_s20, 16, %s6306_s25, [#allocation8]  }
  0x10   :  { %p6191_p5 = scmp.ne.s32.totalorder %s65_s23, %s6190_s26  ;;  %p6195_p6 = scmp.lt.s32.totalorder %s65_s23, %s65_s23 }
  0x11   :  { %p6196_p7 = scmp.lt.s32.totalorder %s6190_s26, %s6190_s26 }
  0x13   :  { %p6197_p8 = por %p6196_p7, %p6195_p6 }
  0x15   :  { %p6198_p9 = pnand %p6197_p8, %p6191_p5 }
  0x17   :  { %6201 = shalt.err (!%p6198_p9)
}
  0x18   :  { %s6307_s2 = smov [#allocation10]   ;;  %s84_s28 = sshll.u32 %s9400_s6, 4  ;;  %s85_s28 = int_to_ptr.vmem [resolvable:$true] %s84_s28 }
  0x19   :  { %67 = dma.vmem_to_smem %s65_s23, 16, %s6307_s2, [#allocation11]  }
  0x1a   :  { %s34_s16 = sshll.u32 %s9395_s1, 4  ;;  %s6202_s17 = scalar_lea.vmem %s85_s28, 16  ;;  %s35_s16 = int_to_ptr.vmem [resolvable:$true] %s34_s16 }
  0x1b   :  { %p6203_p10 = scmp.ne.s32.totalorder %s85_s28, %s6202_s17  ;;  %p6207_p11 = scmp.lt.s32.totalorder %s85_s28, %s85_s28 }
  0x1c   :  { %p6208_p12 = scmp.lt.s32.totalorder %s6202_s17, %s6202_s17 }
  0x1e   :  { %p6209_p13 = por %p6208_p12, %p6207_p11 }
  0x20   :  { %p6210_p0 = pnand %p6209_p13, %p6203_p10 }
  0x22   :  { %6213 = shalt.err (!%p6210_p0)
}
  0x23   :  { %s6308_s18 = smov [#allocation13]   ;;  %s6214_s19 = scalar_lea.vmem %s35_s16, 16 }
  0x24   :  { %87 = dma.vmem_to_smem %s85_s28, 16, %s6308_s18, [#allocation14]  }
  0x25   :  { %p6215_p1 = scmp.ne.s32.totalorder %s35_s16, %s6214_s19  ;;  %p6219_p2 = scmp.lt.s32.totalorder %s35_s16, %s35_s16 }
  0x26   :  { %p6220_p3 = scmp.lt.s32.totalorder %s6214_s19, %s6214_s19 }
  0x28   :  { %p6221_p4 = por %p6220_p3, %p6219_p2 }
  0x2a   :  { %p6222_p5 = pnand %p6221_p4, %p6215_p1 }
  0x2c   :  { %6225 = shalt.err (!%p6222_p5)
}
  0x2d   :  { %s6309_s6 = smov [#allocation4]   ;;  %s54_s21 = sshll.u32 %s9397_s3, 4  ;;  %s55_s21 = int_to_ptr.vmem [resolvable:$true] %s54_s21 }
  0x2e   :  { %37 = dma.vmem_to_smem %s35_s16, 16, %s6309_s6, [#allocation6]  }
  0x2f   :  { %s74_s24 = sshll.u32 %s9399_s5, 4  ;;  %s6226_s25 = scalar_lea.vmem %s55_s21, 16  ;;  %s75_s24 = int_to_ptr.vmem [resolvable:$true] %s74_s24 }
  0x30   :  { %p6227_p6 = scmp.ne.s32.totalorder %s55_s21, %s6226_s25  ;;  %p6231_p7 = scmp.lt.s32.totalorder %s55_s21, %s55_s21 }
  0x31   :  { %p6232_p8 = scmp.lt.s32.totalorder %s6226_s25, %s6226_s25 }
  0x33   :  { %p6233_p9 = por %p6232_p8, %p6231_p7 }
  0x35   :  { %p6234_p10 = pnand %p6233_p9, %p6227_p6 }
  0x37   :  { %6237 = shalt.err (!%p6234_p10)
}
  0x38   :  { %s6310_s26 = smov [#allocation9]   ;;  %s6238_s2 = scalar_lea.vmem %s75_s24, 32 }
  0x39   :  { %57 = dma.vmem_to_smem %s55_s21, 16, %s6310_s26, [#allocation8]  }
  0x3a   :  { %p6239_p11 = scmp.ne.s32.totalorder %s75_s24, %s6238_s2  ;;  %p6243_p12 = scmp.lt.s32.totalorder %s75_s24, %s75_s24 }
  0x3b   :  { %p6244_p13 = scmp.lt.s32.totalorder %s6238_s2, %s6238_s2 }
  0x3d   :  { %p6245_p0 = por %p6244_p13, %p6243_p12 }
  0x3f   :  { %p6246_p1 = pnand %p6245_p0, %p6239_p11 }
  0x41   :  { %6249 = shalt.err (!%p6246_p1)
}
  0x42   :  { %s6311_s3 = smov [#allocation12]   ;;  %s94_s27 = sshll.u32 %s9401_s7, 4  ;;  %s95_s27 = int_to_ptr.vmem [resolvable:$true] %s94_s27 }
  0x43   :  { %77 = dma.vmem_to_smem %s75_s24, 32, %s6311_s3, [#allocation11]  }
  0x44   :  { %s104_s30 = sshll.u32 %s9402_s8, 4  ;;  %s6250_s16 = scalar_lea.vmem %s95_s27, 16  ;;  %s105_s30 = int_to_ptr.vmem [resolvable:$true] %s104_s30 }
  0x45   :  { %p6251_p2 = scmp.ne.s32.totalorder %s95_s27, %s6250_s16  ;;  %p6255_p3 = scmp.lt.s32.totalorder %s95_s27, %s95_s27 }
  0x46   :  { %p6256_p4 = scmp.lt.s32.totalorder %s6250_s16, %s6250_s16 }
  0x48   :  { %p6257_p5 = por %p6256_p4, %p6255_p3 }
  0x4a   :  { %p6258_p6 = pnand %p6257_p5, %p6251_p2 }
  0x4c   :  { %6261 = shalt.err (!%p6258_p6)
}
  0x4d   :  { %s6312_s17 = smov [#allocation15]   ;;  %s6262_s18 = scalar_lea.vmem %s105_s30, 16 }
  0x4e   :  { %97 = dma.vmem_to_smem %s95_s27, 16, %s6312_s17, [#allocation14]  }
  0x4f   :  { %p6263_p7 = scmp.ne.s32.totalorder %s105_s30, %s6262_s18  ;;  %p6267_p8 = scmp.lt.s32.totalorder %s105_s30, %s105_s30 }
  0x50   :  { %p6268_p9 = scmp.lt.s32.totalorder %s6262_s18, %s6262_s18 }
  0x52   :  { %p6269_p10 = por %p6268_p9, %p6267_p8 }
  0x54   :  { %p6270_p11 = pnand %p6269_p10, %p6263_p7 }
  0x56   :  { %6273 = shalt.err (!%p6270_p11)
}
  0x57   :  { %s6313_s7 = smov [#allocation16]  }
  0x58   :  { %107 = dma.vmem_to_smem %s105_s30, 16, %s6313_s7, [#allocation17]  }
  0x59   :  { %6294 = dma.done.wait [#allocation6], 16  }
  0x5a   :  { %6295 = vsyncadd [#allocation6], 4294967280 }
  0x5b   :  { %6296 = dma.done.wait [#allocation8], 32  }
  0x5c   :  { %6297 = vsyncadd [#allocation8], 4294967264 }
  0x5d   :  { %6298 = dma.done.wait [#allocation11], 48  }
  0x5e   :  { %6299 = vsyncadd [#allocation11], 4294967248 }
  0x5f   :  { %6300 = dma.done.wait [#allocation14], 32  }
  0x60   :  { %6301 = vsyncadd [#allocation14], 4294967264 }
  0x61   :  { %6302 = dma.done.wait [#allocation17], 16  }
  0x62   :  { %6303 = vsyncadd [#allocation17], 4294967280 }
  0x63   :  { %144 = sfence }
  0x64   :  { %v154_v0 = vld [vmem:[%s9394_s0 + $0x2] sm:$0x3]  ;;  %s6314_s6 = smov 2   ;;  %v153_v1 = vld [vmem:[%s9394_s0] sm:$0x3]  ;;  %v9410_v3 = vmov 0.0  }
  0x65   :  { %163 = vrot.lane.b32.xlu0 %v154_v0, %s6314_s6  ;;  %v155_v2 = vld [vmem:[%s9394_s0 + $0x4] sm:$0x3]  ;;  %161 = vrot.lane.b32.xlu1 %v153_v1, %s6314_s6  ;;  %146 = vst [vmem:[#allocation2 + $0x2] sm:$0x3] %v9410_v3  ;;  %145 = vst [vmem:[#allocation2] sm:$0x3] %v9410_v3 }
  0x66   :  { %147 = vst [vmem:[#allocation2 + $0x4] sm:$0x3] %v9410_v3  ;;  %148 = vst [vmem:[#allocation2 + $0x6] sm:$0x3] %v9410_v3  ;;  %5800 = vmatprep.subr.mxu1 %v9410_v3  ;;  %v156_v4 = vld [vmem:[%s9394_s0 + $0x6] sm:$0x3]  ;;  %2155 = vmatprep.mubr.f32.mxu0 %v9410_v3 }
  0x67   :  { %149 = vst [vmem:[#allocation3] sm:$0xf] %v9410_v3  ;;  %150 = vst [vmem:[#allocation3 + $0x4] sm:$0xf] %v9410_v3  ;;  %vm173_vm0 = vcmask 828432   ;;  %s5083_s25 = sld [smem:[#allocation4 + $0x1]] }
  0x68   :  { %151 = vst [vmem:[#allocation3 + $0x8] sm:$0xf] %v9410_v3  ;;  %152 = vst [vmem:[#allocation3 + $0xc] sm:$0xf] %v9410_v3  ;;  %s5084_s26 = sld [smem:[#allocation4 + $0x2]]  ;;  %s6316_s0 = smov 127  }
  0x69   :  { %165 = vrot.lane.b32.xlu0 %v155_v2, %s6314_s6  ;;  %167 = vrot.lane.b32.xlu1 %v156_v4, %s6314_s6  ;;  %s5085_s2 = sld [smem:[#allocation4 + $0x3]]  ;;  %s6317_s3 = smov 126   ;;  %vm447_vm1 = vcmask 1041409   ;;  %vm450_vm2 = vcmask 1042434   ;;  %vm453_vm3 = vcmask 1043459   ;;  %vm456_vm4 = vcmask 814080  }
  0x6a   :  { %s5086_s5 = sld [smem:[#allocation4 + $0x4]]  ;;  %s6318_s4 = smov 125  }
  0x6b   :  { %s5094_s27 = sld [smem:[#allocation4 + $0xb]]  ;;  %s6319_s28 = smov 124  }
  0x6c   :  { %s5095_s29 = sld [smem:[#allocation4 + $0xc]] }
  0x6d   :  { %v195_v9 = vstv %s5083_s25  ;;  %s5096_s30 = sld [smem:[#allocation4 + $0xd]] }
  0x6e   :  { %v221_v17 = vstv %s5084_s26  ;;  %s5097_s16 = sld [smem:[#allocation4 + $0xe]] }
  0x6f   :  { %v247_v22 = vstv %s5085_s2  ;;  %s5088_s17 = sld [smem:[#allocation4 + $0x6]] }
  0x70   :  { %v273_v27 = vstv %s5086_s5  ;;  %s5107_s18 = sld [smem:[#allocation4 + $0x15]] }
  0x71   :  { %v553_v32 = vstv %s5094_s27  ;;  %s5089_s7 = sld [smem:[#allocation4 + $0x7]] }
  0x72   :  { %v579_v35 = vstv %s5095_s29  ;;  %s5090_s8 = sld [smem:[#allocation4 + $0x8]] }
  0x73   :  { %v605_v38 = vstv %s5096_s30  ;;  %s5091_s19 = sld [smem:[#allocation4 + $0x9]] }
  0x74   :  { %v631_v41 = vstv %s5097_s16  ;;  %s5108_s1 = sld [smem:[#allocation4 + $0x16]] }
  0x75   :  { %v6504_v44 = vstv %s5088_s17  ;;  %s5099_s20 = sld [smem:[#allocation4 + $0x10]] }
  0x76   :  { %v6508_v45 = vstv %s5107_s18  ;;  %s5100_s21 = sld [smem:[#allocation4 + $0x11]] }
  0x77   :  { %v6525_v55 = vstv %s5089_s7  ;;  %s5101_s22 = sld [smem:[#allocation4 + $0x12]] }
  0x78   :  { %v381_v1 = vstv %s5090_s8  ;;  %s5109_s23 = sld [smem:[#allocation4 + $0x17]] }
  0x79   :  { %s5102_s24 = sld [smem:[#allocation4 + $0x13]] }
  0x7a   :  { %s5110_s25 = sld [smem:[#allocation4 + $0x18]] }
  0x7b   :  { %s5112_s26 = sld [smem:[#allocation4 + $0x1a]] }
  0x7c   :  { %s5120_s2 = sld [smem:[#allocation4 + $0x1f]] }
  0x7d   :  { %s5113_s5 = sld [smem:[#allocation4 + $0x1b]] }
  0x7e   :  { %s5121_s27 = sld [smem:[#allocation4 + $0x20]] }
  0x7f   :  { %s5114_s29 = sld [smem:[#allocation4 + $0x1c]] }
  0x80   :  { %s5122_s30 = sld [smem:[#allocation4 + $0x21]] }
  0x81   :  { %s5115_s16 = sld [smem:[#allocation4 + $0x1d]] }
  0x82   :  { %s5123_s17 = sld [smem:[#allocation4 + $0x22]] }
  0x83   :  { %s5125_s18 = sld [smem:[#allocation4 + $0x24]] }
  0x84   :  { %s5126_s7 = sld [smem:[#allocation4 + $0x25]] }
  0x85   :  { %s5127_s8 = sld [smem:[#allocation4 + $0x26]] }
  0xd7   :  { %v164_v5 = vpop.permute.xlu0 %163  ;;  %v162_v6 = vpop.permute.xlu1 %161 }
  0xd8   :  { %175 = vst.msk [vmem:[#allocation2 + $0x2] sm:$0x3] %vm173_vm0, %v164_v5  ;;  %174 = vst.msk [vmem:[#allocation2] sm:$0x3] %vm173_vm0, %v162_v6 }
  0xdb   :  { %v166_v7 = vpop.permute.xlu0 %165  ;;  %v168_v8 = vpop.permute.xlu1 %167 }
  0xdc   :  { %176 = vst.msk [vmem:[#allocation2 + $0x4] sm:$0x3] %vm173_vm0, %v166_v7  ;;  %177 = vst.msk [vmem:[#allocation2 + $0x6] sm:$0x3] %vm173_vm0, %v168_v8 }
  0xdf   :  { %v6452_v10 = vld [vmem:[#allocation2 + $0x2] sm:$0x3]  ;;  %v6454_v11 = vld [vmem:[#allocation2] sm:$0x3] }
  0xe0   :  { %v197_v12 = vmul.f32 %v195_v9, %v6452_v10  ;;  %v196_v13 = vmul.f32 %v195_v9, %v6454_v11  ;;  %v223_v19 = vmul.f32 %v221_v17, %v6452_v10  ;;  %v222_v21 = vmul.f32 %v221_v17, %v6454_v11 }
  0xe1   :  { %v249_v24 = vmul.f32 %v247_v22, %v6452_v10  ;;  %v248_v26 = vmul.f32 %v247_v22, %v6454_v11  ;;  %v275_v29 = vmul.f32 %v273_v27, %v6452_v10  ;;  %v274_v31 = vmul.f32 %v273_v27, %v6454_v11 }
  0xe2   :  { %206 = vrot.lane.b32.xlu0 %v197_v12, %s6316_s0  ;;  %v555_v36 = vmul.f32 %v553_v32, %v6452_v10  ;;  %v554_v42 = vmul.f32 %v553_v32, %v6454_v11  ;;  %v632_v43 = vmul.f32 %v631_v41, %v6454_v11  ;;  %v581_v46 = vmul.f32 %v579_v35, %v6452_v10 }
  0xe3   :  { %v6459_v14 = vld [vmem:[#allocation2 + $0x4] sm:$0x3]  ;;  %v6461_v15 = vld [vmem:[#allocation2 + $0x6] sm:$0x3]  ;;  %v323_v48 = vmul.f32 %v6504_v44, %v6452_v10  ;;  %v580_v52 = vmul.f32 %v579_v35, %v6454_v11  ;;  %v322_v54 = vmul.f32 %v6504_v44, %v6454_v11  ;;  %v607_v56 = vmul.f32 %v605_v38, %v6452_v10 }
  0xe4   :  { %v198_v16 = vmul.f32 %v195_v9, %v6459_v14  ;;  %v199_v18 = vmul.f32 %v195_v9, %v6461_v15  ;;  %v224_v20 = vmul.f32 %v221_v17, %v6459_v14  ;;  %v225_v23 = vmul.f32 %v221_v17, %v6461_v15 }
  0xe5   :  { %v250_v25 = vmul.f32 %v247_v22, %v6459_v14  ;;  %v251_v28 = vmul.f32 %v247_v22, %v6461_v15  ;;  %v276_v30 = vmul.f32 %v273_v27, %v6459_v14  ;;  %v277_v33 = vmul.f32 %v273_v27, %v6461_v15 }
  0xe6   :  { %208 = vrot.lane.b32.xlu1 %v198_v16, %s6316_s0  ;;  %204 = vrot.lane.b32.xlu0 %v196_v13, %s6316_s0  ;;  %v557_v34 = vmul.f32 %v553_v32, %v6461_v15  ;;  %v583_v37 = vmul.f32 %v579_v35, %v6461_v15  ;;  %v556_v39 = vmul.f32 %v553_v32, %v6459_v14  ;;  %v331_v50 = vrot.slane %v323_v48, 1 }
  0xe7   :  { %v609_v40 = vmul.f32 %v605_v38, %v6461_v15  ;;  %v911_v47 = vmul.f32 %v6508_v45, %v6461_v15  ;;  %v582_v49 = vmul.f32 %v579_v35, %v6459_v14  ;;  %v324_v51 = vmul.f32 %v6504_v44, %v6459_v14 }
  0xe8   :  { %v330_v57 = vrot.slane %v322_v54, 1  ;;  %v353_v58 = vmul.f32 %v6525_v55, %v6452_v10  ;;  %v608_v59 = vmul.f32 %v605_v38, %v6459_v14  ;;  %v354_v61 = vmul.f32 %v6525_v55, %v6459_v14 }
  0xe9   :  { %v332_v53 = vrot.slane %v324_v51, 1  ;;  %v606_v62 = vmul.f32 %v605_v38, %v6454_v11  ;;  %v352_v0 = vmul.f32 %v6525_v55, %v6454_v11  ;;  %v633_v2 = vmul.f32 %v631_v41, %v6452_v10 }
  0xea   :  { %210 = vrot.lane.b32.xlu1 %v199_v18, %s6316_s0  ;;  %232 = vrot.lane.b32.xlu0 %v223_v19, %s6317_s3  ;;  %v361_v60 = vrot.slane %v353_v58, 1  ;;  %v362_v63 = vrot.slane %v354_v61, 1  ;;  %v383_v5 = vmul.f32 %v381_v1, %v6452_v10  ;;  %v634_v6 = vmul.f32 %v631_v41, %v6459_v14 }
  0xeb   :  { %v360_v4 = vrot.slane %v352_v0, 1  ;;  %v384_v8 = vmul.f32 %v381_v1, %v6459_v14  ;;  %v635_v9 = vmul.f32 %v631_v41, %v6461_v15  ;;  %v382_v13 = vmul.f32 %v381_v1, %v6454_v11 }
  0xec   :  { %v391_v7 = vrot.slane %v383_v5, 1  ;;  %v411_v16 = vstv %s5091_s19  ;;  %v909_v17 = vmul.f32 %v6508_v45, %v6452_v10  ;;  %v679_v27 = vstv %s5099_s20  ;;  %s5128_s19 = sld [smem:[#allocation4 + $0x27]] }
  0xed   :  { %v392_v12 = vrot.slane %v384_v8, 1  ;;  %v390_v18 = vrot.slane %v382_v13, 1  ;;  %v413_v19 = vmul.f32 %v411_v16, %v6452_v10  ;;  %v414_v22 = vmul.f32 %v411_v16, %v6459_v14  ;;  %s182_s20 = sld [smem:[#allocation7]] }
  0xee   :  { %234 = vrot.lane.b32.xlu1 %v224_v20, %s6317_s3  ;;  %230 = vrot.lane.b32.xlu0 %v222_v21, %s6317_s3  ;;  %v910_v20 = vmul.f32 %v6508_v45, %v6459_v14  ;;  %v680_v38 = vmul.f32 %v679_v27, %v6454_v11  ;;  %v683_v51 = vmul.f32 %v679_v27, %v6461_v15 }
  0xef   :  { %v421_v21 = vrot.slane %v413_v19, 1 }
  0xf0   :  { %v688_v41 = vrot.slane %v680_v38, 1 }
  0xf2   :  { %236 = vrot.lane.b32.xlu1 %v225_v23, %s6317_s3  ;;  %258 = vrot.lane.b32.xlu0 %v249_v24, %s6318_s4  ;;  %v908_v23 = vmul.f32 %v6508_v45, %v6454_v11  ;;  %v422_v24 = vrot.slane %v414_v22, 1 }
  0xf6   :  { %260 = vrot.lane.b32.xlu1 %v250_v25, %s6318_s4  ;;  %256 = vrot.lane.b32.xlu0 %v248_v26, %s6318_s4  ;;  %v412_v25 = vmul.f32 %v411_v16, %v6454_v11  ;;  %v6569_v26 = vstv %s5108_s1  ;;  %s184_s1 = sld [smem:[#allocation4]] }
  0xfa   :  { %262 = vrot.lane.b32.xlu1 %v251_v28, %s6318_s4  ;;  %284 = vrot.lane.b32.xlu0 %v275_v29, %s6319_s28  ;;  %v935_v28 = vmul.f32 %v6569_v26, %v6452_v10  ;;  %v420_v29 = vrot.slane %v412_v25, 1 }
  0xfe   :  { %286 = vrot.lane.b32.xlu1 %v276_v30, %s6319_s28  ;;  %282 = vrot.lane.b32.xlu0 %v274_v31, %s6319_s28  ;;  %v681_v30 = vmul.f32 %v679_v27, %v6452_v10  ;;  %v936_v31 = vmul.f32 %v6569_v26, %v6459_v14 }
 0x100   :  { %v689_v32 = vrot.slane %v681_v30, 1 }
 0x102   :  { %288 = vrot.lane.b32.xlu1 %v277_v33, %s6319_s28  ;;  %568 = vrot.lane.b32.xlu0 %v557_v34, %s6316_s0  ;;  %v325_v33 = vmul.f32 %v6504_v44, %v6461_v15  ;;  %v682_v34 = vmul.f32 %v679_v27, %v6459_v14 }
 0x104   :  { %v333_v35 = vrot.slane %v325_v33, 1 }
 0x106   :  { %564 = vrot.lane.b32.xlu1 %v555_v36, %s6316_s0  ;;  %594 = vrot.lane.b32.xlu0 %v583_v37, %s6317_s3  ;;  %v690_v36 = vrot.slane %v682_v34, 1  ;;  %v355_v37 = vmul.f32 %v6525_v55, %v6461_v15 }
 0x10a   :  { %566 = vrot.lane.b32.xlu1 %v556_v39, %s6316_s0  ;;  %620 = vrot.lane.b32.xlu0 %v609_v40, %s6318_s4  ;;  %v709_v39 = vstv %s5100_s21  ;;  %v363_v40 = vrot.slane %v355_v37, 1  ;;  %s5093_s21 = sld [smem:[#allocation4 + $0xa]] }
 0x10b   :  { %v713_v58 = vmul.f32 %v709_v39, %v6461_v15 }
 0x10e   :  { %562 = vrot.lane.b32.xlu1 %v554_v42, %s6316_s0  ;;  %640 = vrot.lane.b32.xlu0 %v632_v43, %s6319_s28  ;;  %v385_v42 = vmul.f32 %v381_v1, %v6461_v15  ;;  %v711_v43 = vmul.f32 %v709_v39, %v6452_v10 }
 0x110   :  { %v393_v44 = vrot.slane %v385_v42, 1  ;;  %v719_v45 = vrot.slane %v711_v43, 1  ;;  %v1033_v43 = vstv %s5112_s26  ;;  %s5105_s26 = sld [smem:[#allocation7 + $0x2]] }
 0x112   :  { %590 = vrot.lane.b32.xlu1 %v581_v46, %s6317_s3  ;;  %922 = vrot.lane.b32.xlu0 %v911_v47, %s6316_s0  ;;  %v415_v46 = vmul.f32 %v411_v16, %v6461_v15  ;;  %v712_v47 = vmul.f32 %v709_v39, %v6459_v14  ;;  %v769_v16 = vstv %s5102_s24  ;;  %s6865_s24 = sld [smem:[#allocation4 + $0xf]] }
 0x113   :  { %v771_v22 = vmul.f32 %v769_v16, %v6452_v10  ;;  %v770_v37 = vmul.f32 %v769_v16, %v6454_v11  ;;  %v773_v42 = vmul.f32 %v769_v16, %v6461_v15 }
 0x116   :  { %592 = vrot.lane.b32.xlu1 %v582_v49, %s6317_s3  ;;  %336 = vrot.lane.b32.xlu0 %v331_v50, %s6316_s0  ;;  %v423_v49 = vrot.slane %v415_v46, 1  ;;  %v720_v50 = vrot.slane %v712_v47, 1  ;;  %v781_v46 = vrot.slane %v773_v42, 1  ;;  %v1093_v42 = vstv %s5114_s29  ;;  %s5124_s29 = sld [smem:[#allocation4 + $0x23]] }
 0x11a   :  { %588 = vrot.lane.b32.xlu1 %v580_v52, %s6317_s3  ;;  %338 = vrot.lane.b32.xlu0 %v332_v53, %s6316_s0  ;;  %v710_v52 = vmul.f32 %v709_v39, %v6454_v11  ;;  %v739_v53 = vstv %s5101_s22  ;;  %s5087_s22 = sld [smem:[#allocation4 + $0x5]] }
 0x11b   :  { %v742_v5 = vmul.f32 %v739_v53, %v6459_v14  ;;  %v740_v13 = vmul.f32 %v739_v53, %v6454_v11 }
 0x11e   :  { %616 = vrot.lane.b32.xlu1 %v607_v56, %s6318_s4  ;;  %334 = vrot.lane.b32.xlu0 %v330_v57, %s6316_s0  ;;  %v691_v56 = vrot.slane %v683_v51, 1  ;;  %v718_v57 = vrot.slane %v710_v52, 1 }
 0x122   :  { %618 = vrot.lane.b32.xlu1 %v608_v59, %s6318_s4  ;;  %366 = vrot.lane.b32.xlu0 %v361_v60, %s6317_s3  ;;  %v741_v59 = vmul.f32 %v739_v53, %v6452_v10 }
 0x126   :  { %614 = vrot.lane.b32.xlu1 %v606_v62, %s6318_s4  ;;  %368 = vrot.lane.b32.xlu0 %v362_v63, %s6317_s3  ;;  %v721_v62 = vrot.slane %v713_v58, 1  ;;  %v749_v63 = vrot.slane %v741_v59, 1 }
 0x12a   :  { %642 = vrot.lane.b32.xlu1 %v633_v2, %s6319_s28  ;;  %364 = vrot.lane.b32.xlu0 %v360_v4, %s6317_s3  ;;  %v934_v2 = vmul.f32 %v6569_v26, %v6454_v11  ;;  %v937_v4 = vmul.f32 %v6569_v26, %v6461_v15  ;;  %v779_v26 = vrot.slane %v771_v22, 1 }
 0x12e   :  { %644 = vrot.lane.b32.xlu1 %v634_v6, %s6319_s28  ;;  %396 = vrot.lane.b32.xlu0 %v391_v7, %s6318_s4  ;;  %v959_v6 = vstv %s5109_s23  ;;  %s6852_s23 = sld [smem:[#allocation7 + $0x1]] }
 0x12f   :  { %v962_v19 = vmul.f32 %v959_v6, %v6459_v14  ;;  %v963_v30 = vmul.f32 %v959_v6, %v6461_v15 }
 0x132   :  { %646 = vrot.lane.b32.xlu1 %v635_v9, %s6319_s28  ;;  %398 = vrot.lane.b32.xlu0 %v392_v12, %s6318_s4  ;;  %v961_v9 = vmul.f32 %v959_v6, %v6452_v10  ;;  %v750_v12 = vrot.slane %v742_v5, 1 }
 0x136   :  { %918 = vrot.lane.b32.xlu1 %v909_v17, %s6316_s0  ;;  %394 = vrot.lane.b32.xlu0 %v390_v18, %s6318_s4 }
 0x13a   :  { %920 = vrot.lane.b32.xlu1 %v910_v20, %s6316_s0  ;;  %426 = vrot.lane.b32.xlu0 %v421_v21, %s6319_s28  ;;  %v748_v20 = vrot.slane %v740_v13, 1  ;;  %v743_v21 = vmul.f32 %v739_v53, %v6461_v15  ;;  %v1037_v13 = vmul.f32 %v1033_v43, %v6461_v15 }
 0x13c   :  { %v751_v25 = vrot.slane %v743_v21, 1  ;;  %v1045_v21 = vrot.slane %v1037_v13, 1  ;;  %v1096_v13 = vmul.f32 %v1093_v42, %v6459_v14 }
 0x13e   :  { %916 = vrot.lane.b32.xlu1 %v908_v23, %s6316_s0  ;;  %428 = vrot.lane.b32.xlu0 %v422_v24, %s6319_s28 }
 0x142   :  { %944 = vrot.lane.b32.xlu1 %v935_v28, %s6317_s3  ;;  %424 = vrot.lane.b32.xlu0 %v420_v29, %s6319_s28  ;;  %v960_v29 = vmul.f32 %v959_v6, %v6454_v11 }
 0x146   :  { %946 = vrot.lane.b32.xlu1 %v936_v31, %s6317_s3  ;;  %694 = vrot.lane.b32.xlu0 %v689_v32, %s6316_s0  ;;  %v772_v31 = vmul.f32 %v769_v16, %v6459_v14  ;;  %v985_v32 = vstv %s5110_s25  ;;  %s5106_s25 = sld [smem:[#allocation4 + $0x14]] }
 0x147   :  { %v986_v47 = vmul.f32 %v985_v32, %v6454_v11  ;;  %v989_v52 = vmul.f32 %v985_v32, %v6461_v15 }
 0x14a   :  { %340 = vrot.lane.b32.xlu1 %v333_v35, %s6316_s0  ;;  %696 = vrot.lane.b32.xlu0 %v690_v36, %s6316_s0  ;;  %v987_v35 = vmul.f32 %v985_v32, %v6452_v10  ;;  %v780_v36 = vrot.slane %v772_v31, 1 }
 0x14e   :  { %370 = vrot.lane.b32.xlu1 %v363_v40, %s6317_s3  ;;  %692 = vrot.lane.b32.xlu0 %v688_v41, %s6316_s0  ;;  %v988_v40 = vmul.f32 %v985_v32, %v6459_v14  ;;  %v778_v41 = vrot.slane %v770_v37, 1  ;;  %v1287_v32 = vstv %s5121_s27  ;;  %s5118_s27 = sld [smem:[#allocation7 + $0x3]] }
 0x14f   :  { %v1289_v37 = vmul.f32 %v1287_v32, %v6452_v10 }
 0x152   :  { %400 = vrot.lane.b32.xlu1 %v393_v44, %s6318_s4  ;;  %724 = vrot.lane.b32.xlu0 %v719_v45, %s6317_s3 }
 0x154   :  { %v6598_v48 = vpop.permute.xlu0 %206 }
 0x156   :  { %430 = vrot.lane.b32.xlu1 %v423_v49, %s6319_s28  ;;  %726 = vrot.lane.b32.xlu0 %v720_v50, %s6317_s3  ;;  %v1035_v49 = vmul.f32 %v1033_v43, %v6452_v10 }
 0x158   :  { %v6604_v54 = vpop.permute.xlu1 %208  ;;  %v6606_v55 = vpop.permute.xlu0 %204  ;;  %v1043_v53 = vrot.slane %v1035_v49, 1 }
 0x15a   :  { %698 = vrot.lane.b32.xlu1 %v691_v56, %s6316_s0  ;;  %722 = vrot.lane.b32.xlu0 %v718_v57, %s6317_s3  ;;  %v1036_v56 = vmul.f32 %v1033_v43, %v6459_v14  ;;  %v1261_v57 = vstv %s5120_s2  ;;  %s5111_s2 = sld [smem:[#allocation4 + $0x19]] }
 0x15c   :  { %v6612_v60 = vpop.permute.xlu1 %210  ;;  %v6614_v61 = vpop.permute.xlu0 %232 }
 0x15e   :  { %728 = vrot.lane.b32.xlu1 %v721_v62, %s6317_s3  ;;  %754 = vrot.lane.b32.xlu0 %v749_v63, %s6318_s4  ;;  %v1263_v62 = vmul.f32 %v1261_v57, %v6452_v10  ;;  %v1044_v63 = vrot.slane %v1036_v56, 1 }
 0x160   :  { %v6618_v0 = vpop.permute.xlu1 %234  ;;  %v6620_v1 = vpop.permute.xlu0 %230 }
 0x162   :  { %942 = vrot.lane.b32.xlu1 %v934_v2, %s6317_s3  ;;  %948 = vrot.lane.b32.xlu0 %v937_v4, %s6317_s3  ;;  %v1034_v2 = vmul.f32 %v1033_v43, %v6454_v11  ;;  %v1063_v4 = vstv %s5113_s5  ;;  %s5119_s5 = sld [smem:[#allocation4 + $0x1e]] }
 0x163   :  { %v1065_v16 = vmul.f32 %v1063_v4, %v6452_v10  ;;  %v1066_v31 = vmul.f32 %v1063_v4, %v6459_v14 }
 0x164   :  { %v6629_v7 = vpop.permute.xlu1 %236  ;;  %v6631_v8 = vpop.permute.xlu0 %258 }
 0x165   :  { %v1073_v22 = vrot.slane %v1065_v16, 1  ;;  %v1313_v16 = vstv %s5122_s30 }
 0x166   :  { %970 = vrot.lane.b32.xlu1 %v961_v9, %s6318_s4  ;;  %756 = vrot.lane.b32.xlu0 %v750_v12, %s6318_s4  ;;  %v1264_v9 = vmul.f32 %v1261_v57, %v6459_v14  ;;  %v1042_v12 = vrot.slane %v1034_v2, 1 }
 0x168   :  { %v6637_v17 = vpop.permute.xlu1 %260  ;;  %v6639_v18 = vpop.permute.xlu0 %256 }
 0x16a   :  { %972 = vrot.lane.b32.xlu1 %v962_v19, %s6318_s4  ;;  %752 = vrot.lane.b32.xlu0 %v748_v20, %s6318_s4 }
 0x16c   :  { %v6646_v23 = vpop.permute.xlu1 %262  ;;  %v6648_v24 = vpop.permute.xlu0 %284 }
 0x16e   :  { %758 = vrot.lane.b32.xlu1 %v751_v25, %s6318_s4  ;;  %784 = vrot.lane.b32.xlu0 %v779_v26, %s6319_s28 }
 0x170   :  { %v6652_v27 = vpop.permute.xlu1 %286  ;;  %v6654_v28 = vpop.permute.xlu0 %282 }
 0x172   :  { %968 = vrot.lane.b32.xlu1 %v960_v29, %s6318_s4  ;;  %974 = vrot.lane.b32.xlu0 %v963_v30, %s6318_s4  ;;  %v1262_v29 = vmul.f32 %v1261_v57, %v6454_v11  ;;  %v1265_v30 = vmul.f32 %v1261_v57, %v6461_v15 }
 0x174   :  { %v6661_v33 = vpop.permute.xlu1 %288  ;;  %v6663_v34 = vpop.permute.xlu0 %568 }
 0x176   :  { %996 = vrot.lane.b32.xlu1 %v987_v35, %s6319_s28  ;;  %786 = vrot.lane.b32.xlu0 %v780_v36, %s6319_s28 }
 0x178   :  { %v6669_v38 = vpop.permute.xlu1 %564  ;;  %v6671_v39 = vpop.permute.xlu0 %594 }
 0x17a   :  { %998 = vrot.lane.b32.xlu1 %v988_v40, %s6319_s28  ;;  %782 = vrot.lane.b32.xlu0 %v778_v41, %s6319_s28  ;;  %v1074_v40 = vrot.slane %v1066_v31, 1  ;;  %v1064_v41 = vmul.f32 %v1063_v4, %v6454_v11  ;;  %v1094_v31 = vmul.f32 %v1093_v42, %v6454_v11 }
 0x17c   :  { %v6677_v44 = vpop.permute.xlu1 %566  ;;  %v6679_v45 = vpop.permute.xlu0 %620  ;;  %v1072_v49 = vrot.slane %v1064_v41, 1  ;;  %v1316_v41 = vmul.f32 %v1313_v16, %v6459_v14 }
 0x17e   :  { %788 = vrot.lane.b32.xlu1 %v781_v46, %s6319_s28  ;;  %994 = vrot.lane.b32.xlu0 %v986_v47, %s6319_s28  ;;  %v1290_v47 = vmul.f32 %v1287_v32, %v6459_v14 }
 0x180   :  { %v6685_v50 = vpop.permute.xlu1 %562  ;;  %v6687_v51 = vpop.permute.xlu0 %640 }
 0x182   :  { %1000 = vrot.lane.b32.xlu1 %v989_v52, %s6319_s28  ;;  %1048 = vrot.lane.b32.xlu0 %v1043_v53, %s6316_s0  ;;  %v1067_v52 = vmul.f32 %v1063_v4, %v6461_v15  ;;  %v1095_v53 = vmul.f32 %v1093_v42, %v6452_v10 }
 0x184   :  { %v6693_v58 = vpop.permute.xlu1 %590  ;;  %v6695_v59 = vpop.permute.xlu0 %922 }
 0x185   :  { %9412 = vst [vmem:[#allocation25_spill] sm:$0xff] %v6695_v59  ;;  %v1387_v59 = vstv %s5125_s18 }
 0x186   :  { %1272 = vrot.lane.b32.xlu1 %v1263_v62, %s6316_s0  ;;  %1050 = vrot.lane.b32.xlu0 %v1044_v63, %s6316_s0  ;;  %v1075_v62 = vrot.slane %v1067_v52, 1  ;;  %v1103_v63 = vrot.slane %v1095_v53, 1 }
 0x188   :  { %v6701_v5 = vpop.permute.xlu1 %592  ;;  %v6703_v6 = vpop.permute.xlu0 %336 }
 0x18a   :  { %1274 = vrot.lane.b32.xlu1 %v1264_v9, %s6316_s0  ;;  %1046 = vrot.lane.b32.xlu0 %v1042_v12, %s6316_s0  ;;  %v1288_v9 = vmul.f32 %v1287_v32, %v6454_v11  ;;  %v1291_v12 = vmul.f32 %v1287_v32, %v6461_v15 }
 0x18c   :  { %v6710_v19 = vpop.permute.xlu1 %588  ;;  %v6712_v20 = vpop.permute.xlu0 %338 }
 0x18d   :  { %9413 = vst [vmem:[#allocation26_spill] sm:$0xff] %v6712_v20 }
 0x18e   :  { %1052 = vrot.lane.b32.xlu1 %v1045_v21, %s6316_s0  ;;  %1078 = vrot.lane.b32.xlu0 %v1073_v22, %s6317_s3 }
 0x190   :  { %v6716_v25 = vpop.permute.xlu1 %616  ;;  %v6718_v26 = vpop.permute.xlu0 %334 }
 0x192   :  { %1270 = vrot.lane.b32.xlu1 %v1262_v29, %s6316_s0  ;;  %1276 = vrot.lane.b32.xlu0 %v1265_v30, %s6316_s0  ;;  %v1315_v29 = vmul.f32 %v1313_v16, %v6452_v10  ;;  %v1104_v30 = vrot.slane %v1096_v13, 1  ;;  %v1314_v13 = vmul.f32 %v1313_v16, %v6454_v11 }
 0x194   :  { %v6725_v35 = vpop.permute.xlu1 %618  ;;  %v6727_v36 = vpop.permute.xlu0 %366 }
 0x196   :  { %1298 = vrot.lane.b32.xlu1 %v1289_v37, %s6317_s3  ;;  %1080 = vrot.lane.b32.xlu0 %v1074_v40, %s6317_s3  ;;  %v1123_v37 = vstv %s5115_s16 }
 0x197   :  { %v1125_v52 = vmul.f32 %v1123_v37, %v6452_v10  ;;  %v1127_v3 = vmul.f32 %v1123_v37, %v6461_v15 }
 0x198   :  { %v6733_v43 = vpop.permute.xlu1 %614  ;;  %v6735_v46 = vpop.permute.xlu0 %368 }
 0x199   :  { %9414 = vst [vmem:[#allocation27_spill] sm:$0xff] %v6735_v46 }
 0x19a   :  { %1300 = vrot.lane.b32.xlu1 %v1290_v47, %s6317_s3  ;;  %1076 = vrot.lane.b32.xlu0 %v1072_v49, %s6317_s3  ;;  %v1102_v47 = vrot.slane %v1094_v31, 1  ;;  %v1097_v49 = vmul.f32 %v1093_v42, %v6461_v15  ;;  %v1339_v31 = vstv %s5123_s17 }
 0x19c   :  { %v6742_v56 = vpop.permute.xlu1 %642  ;;  %v6744_v57 = vpop.permute.xlu0 %364 }
 0x19d   :  { %9415 = vst [vmem:[#allocation28_spill] sm:$0xff] %v6744_v57  ;;  %v541_v57 = vstv %s6852_s23  ;;  %s5117_s23 = sld [smem:[#allocation10 + $0x2]] }
 0x19e   :  { %1082 = vrot.lane.b32.xlu1 %v1075_v62, %s6317_s3  ;;  %1108 = vrot.lane.b32.xlu0 %v1103_v63, %s6318_s4  ;;  %v1105_v63 = vrot.slane %v1097_v49, 1  ;;  %v1341_v49 = vmul.f32 %v1339_v31, %v6452_v10 }
 0x1a0   :  { %v6748_v2 = vpop.permute.xlu1 %644  ;;  %v6750_v4 = vpop.permute.xlu0 %396 }
 0x1a1   :  { %9416 = vst [vmem:[#allocation29_spill] sm:$0xff] %v6748_v2  ;;  %9417 = vst [vmem:[#allocation30_spill] sm:$0xff] %v6750_v4 }
 0x1a2   :  { %1296 = vrot.lane.b32.xlu1 %v1288_v9, %s6317_s3  ;;  %1302 = vrot.lane.b32.xlu0 %v1291_v12, %s6317_s3  ;;  %v1133_v9 = vrot.slane %v1125_v52, 1 }
 0x1a4   :  { %v6757_v21 = vpop.permute.xlu1 %646  ;;  %v6759_v22 = vpop.permute.xlu0 %398 }
 0x1a5   :  { %9418 = vst [vmem:[#allocation31_spill] sm:$0xff] %v6759_v22 }
 0x1a6   :  { %1324 = vrot.lane.b32.xlu1 %v1315_v29, %s6318_s4  ;;  %1110 = vrot.lane.b32.xlu0 %v1104_v30, %s6318_s4  ;;  %v1317_v29 = vmul.f32 %v1313_v16, %v6461_v15  ;;  %v1126_v30 = vmul.f32 %v1123_v37, %v6459_v14 }
 0x1a8   :  { %v6765_v32 = vpop.permute.xlu1 %918  ;;  %v6767_v40 = vpop.permute.xlu0 %394  ;;  %v1134_v52 = vrot.slane %v1126_v30, 1 }
 0x1a9   :  { %9419 = vst [vmem:[#allocation32_spill] sm:$0xff] %v6765_v32  ;;  %9420 = vst [vmem:[#allocation33_spill] sm:$0xff] %v6767_v40 }
 0x1aa   :  { %1326 = vrot.lane.b32.xlu1 %v1316_v41, %s6318_s4  ;;  %1106 = vrot.lane.b32.xlu0 %v1102_v47, %s6318_s4 }
 0x1ac   :  { %v6774_v53 = vpop.permute.xlu1 %920  ;;  %v6776_v62 = vpop.permute.xlu0 %426 }
 0x1ad   :  { %9421 = vst [vmem:[#allocation34_spill] sm:$0xff] %v6774_v53  ;;  %9422 = vst [vmem:[#allocation35_spill] sm:$0xff] %v6776_v62  ;;  %v1390_v53 = vmul.f32 %v1387_v59, %v6459_v14 }
 0x1ae   :  { %1112 = vrot.lane.b32.xlu1 %v1105_v63, %s6318_s4  ;;  %1138 = vrot.lane.b32.xlu0 %v1133_v9, %s6319_s28  ;;  %v1124_v63 = vmul.f32 %v1123_v37, %v6454_v11 }
 0x1af   :  { %v1398_v32 = vrot.slane %v1390_v53, 1  ;;  %v1447_v53 = vstv %s5127_s8  ;;  %s5103_s8 = sld [smem:[#allocation9 + $0x1]] }
 0x1b0   :  { %v6780_v12 = vpop.permute.xlu1 %916  ;;  %v6782_v42 = vpop.permute.xlu0 %428 }
 0x1b1   :  { %9423 = vst [vmem:[#allocation36_spill] sm:$0xff] %v6780_v12  ;;  %9424 = vst [vmem:[#allocation37_spill] sm:$0xff] %v6782_v42  ;;  %v1389_v12 = vmul.f32 %v1387_v59, %v6452_v10 }
 0x1b2   :  { %1322 = vrot.lane.b32.xlu1 %v1314_v13, %s6318_s4  ;;  %1328 = vrot.lane.b32.xlu0 %v1317_v29, %s6318_s4  ;;  %v1342_v13 = vmul.f32 %v1339_v31, %v6459_v14  ;;  %v1132_v29 = vrot.slane %v1124_v63, 1 }
 0x1b4   :  { %v6789_v41 = vpop.permute.xlu1 %944  ;;  %v6791_v47 = vpop.permute.xlu0 %424 }
 0x1b5   :  { %9425 = vst [vmem:[#allocation38_spill] sm:$0xff] %v6789_v41  ;;  %9426 = vst [vmem:[#allocation39_spill] sm:$0xff] %v6791_v47  ;;  %v1388_v41 = vmul.f32 %v1387_v59, %v6454_v11 }
 0x1b6   :  { %1350 = vrot.lane.b32.xlu1 %v1341_v49, %s6319_s28  ;;  %1140 = vrot.lane.b32.xlu0 %v1134_v52, %s6319_s28  ;;  %v1135_v52 = vrot.slane %v1127_v3, 1  ;;  %v1417_v3 = vstv %s5126_s7  ;;  %s440_s7 = sld [smem:[#allocation9]] }
 0x1b7   :  { %v1396_v42 = vrot.slane %v1388_v41, 1 }
 0x1b8   :  { %v6797_v16 = vpop.permute.xlu1 %946  ;;  %v6799_v9 = vpop.permute.xlu0 %694 }
 0x1b9   :  { %9427 = vst [vmem:[#allocation40_spill] sm:$0xff] %v6797_v16  ;;  %9428 = vst [vmem:[#allocation41_spill] sm:$0xff] %v6799_v9  ;;  %v1340_v16 = vmul.f32 %v1339_v31, %v6454_v11 }
 0x1ba   :  { %1352 = vrot.lane.b32.xlu1 %v1342_v13, %s6319_s28  ;;  %1136 = vrot.lane.b32.xlu0 %v1132_v29, %s6319_s28  ;;  %v1343_v13 = vmul.f32 %v1339_v31, %v6461_v15  ;;  %v1397_v29 = vrot.slane %v1389_v12, 1  ;;  %v1419_v12 = vmul.f32 %v1417_v3, %v6452_v10 }
 0x1bc   :  { %v6805_v30 = vpop.permute.xlu1 %340  ;;  %v6807_v49 = vpop.permute.xlu0 %696 }
 0x1bd   :  { %9429 = vst [vmem:[#allocation42_spill] sm:$0xff] %v6805_v30  ;;  %9430 = vst [vmem:[#allocation43_spill] sm:$0xff] %v6807_v49  ;;  %v1391_v49 = vmul.f32 %v1387_v59, %v6461_v15 }
 0x1be   :  { %1142 = vrot.lane.b32.xlu1 %v1135_v52, %s6319_s28  ;;  %1348 = vrot.lane.b32.xlu0 %v1340_v16, %s6319_s28 }
 0x1c0   :  { %v6813_v37 = vpop.permute.xlu1 %370  ;;  %v6815_v63 = vpop.permute.xlu0 %692 }
 0x1c1   :  { %9431 = vst [vmem:[#allocation44_spill] sm:$0xff] %v6813_v37  ;;  %9432 = vst [vmem:[#allocation45_spill] sm:$0xff] %v6815_v63  ;;  %v1420_v63 = vmul.f32 %v1417_v3, %v6459_v14 }
 0x1c2   :  { %1354 = vrot.lane.b32.xlu1 %v1343_v13, %s6319_s28  ;;  %1402 = vrot.lane.b32.xlu0 %v1397_v29, %s6316_s0  ;;  %v1399_v13 = vrot.slane %v1391_v49, 1  ;;  %v1427_v29 = vrot.slane %v1419_v12, 1  ;;  %v1421_v49 = vmul.f32 %v1417_v3, %v6461_v15  ;;  %v1449_v12 = vmul.f32 %v1447_v53, %v6452_v10 }
 0x1c4   :  { %v6822_v52 = vpop.permute.xlu1 %400  ;;  %v6824_v16 = vpop.permute.xlu0 %724 }
 0x1c5   :  { %9433 = vst [vmem:[#allocation46_spill] sm:$0xff] %v6822_v52  ;;  %9434 = vst [vmem:[#allocation47_spill] sm:$0xff] %v6824_v16  ;;  %v1418_v16 = vmul.f32 %v1417_v3, %v6454_v11  ;;  %v1477_v3 = vstv %s5128_s19  ;;  %s441_s19 = sld [smem:[#allocation10]] }
 0x1c6   :  { %1404 = vrot.lane.b32.xlu1 %v1398_v32, %s6316_s0  ;;  %1400 = vrot.lane.b32.xlu0 %v1396_v42, %s6316_s0  ;;  %v1428_v42 = vrot.slane %v1420_v63, 1  ;;  %v1450_v63 = vmul.f32 %v1447_v53, %v6459_v14  ;;  %v1480_v40 = vmul.f32 %v1477_v3, %v6459_v14  ;;  %v1478_v9 = vmul.f32 %v1477_v3, %v6454_v11 }
 0x1c7   :  { %v1426_v41 = vrot.slane %v1418_v16, 1  ;;  %v1448_v16 = vmul.f32 %v1447_v53, %v6454_v11 }
 0x1c8   :  { %v6830_v31 = vpop.permute.xlu1 %430  ;;  %v6832_v47 = vpop.permute.xlu0 %726 }
 0x1c9   :  { %9435 = vst [vmem:[#allocation48_spill] sm:$0xff] %v6830_v31  ;;  %9436 = vst [vmem:[#allocation49_spill] sm:$0xff] %v6832_v47  ;;  %v1429_v47 = vrot.slane %v1421_v49, 1  ;;  %v1457_v31 = vrot.slane %v1449_v12, 1  ;;  %v1451_v49 = vmul.f32 %v1447_v53, %v6461_v15  ;;  %v1479_v12 = vmul.f32 %v1477_v3, %v6452_v10 }
 0x1ca   :  { %1406 = vrot.lane.b32.xlu1 %v1399_v13, %s6316_s0  ;;  %1432 = vrot.lane.b32.xlu0 %v1427_v29, %s6317_s3  ;;  %v299_v53 = vstv %s5087_s22  ;;  %s5116_s22 = sld [smem:[#allocation9 + $0x2]] }
 0x1cb   :  { %v1487_v62 = vrot.slane %v1479_v12, 1 }
 0x1cc   :  { %v6838_v59 = vpop.permute.xlu1 %698  ;;  %v6840_v32 = vpop.permute.xlu0 %722 }
 0x1cd   :  { %9437 = vst [vmem:[#allocation50_spill] sm:$0xff] %v6838_v59  ;;  %9438 = vst [vmem:[#allocation51_spill] sm:$0xff] %v6840_v32 }
 0x1ce   :  { %1434 = vrot.lane.b32.xlu1 %v1428_v42, %s6317_s3  ;;  %1430 = vrot.lane.b32.xlu0 %v1426_v41, %s6317_s3  ;;  %v185_v42 = vstv %s184_s1  ;;  %s5104_s1 = sld [smem:[#allocation10 + $0x1]] }
 0x1cf   :  { %v187_v59 = vmul.f32 %v185_v42, %v6452_v10  ;;  %v188_v22 = vmul.f32 %v185_v42, %v6459_v14  ;;  %v186_v52 = vmul.f32 %v185_v42, %v6454_v11 }
 0x1d0   :  { %v6846_v13 = vpop.permute.xlu1 %728  ;;  %v6848_v29 = vpop.permute.xlu0 %754 }
 0x1d1   :  { %9439 = vst [vmem:[#allocation52_spill] sm:$0xff] %v6846_v13  ;;  %9440 = vst [vmem:[#allocation53_spill] sm:$0xff] %v6848_v29  ;;  %v1458_v13 = vrot.slane %v1450_v63, 1  ;;  %v1456_v29 = vrot.slane %v1448_v16, 1  ;;  %v189_v63 = vmul.f32 %v185_v42, %v6461_v15 }
 0x1d2   :  { %1436 = vrot.lane.b32.xlu1 %v1429_v47, %s6317_s3  ;;  %1462 = vrot.lane.b32.xlu0 %v1457_v31, %s6318_s4  ;;  %v543_v47 = vstv %s5093_s21  ;;  %v183_v31 = vstv %s182_s20 }
 0x1d3   :  { %v547_v46 = vmul.f32 %v543_v47, %v6461_v15  ;;  %v191_v37 = vadd.f32 %v187_v59, %v183_v31  ;;  %v192_v4 = vadd.f32 %v188_v22, %v183_v31  ;;  %v190_v42 = vadd.f32 %v186_v52, %v183_v31 }
 0x1d4   :  { %v6856_v41 = vpop.permute.xlu1 %942  ;;  %v6858_v32 = vpop.permute.xlu0 %948  ;;  %v544_v12 = vmul.f32 %v543_v47, %v6454_v11  ;;  %v1488_v52 = vrot.slane %v1480_v40, 1  ;;  %v1486_v59 = vrot.slane %v1478_v9, 1 }
 0x1d5   :  { %9441 = vst [vmem:[#allocation54_spill] sm:$0xff] %v6856_v41  ;;  %9442 = vst [vmem:[#allocation55_spill] sm:$0xff] %v6858_v32  ;;  %v1459_v41 = vrot.slane %v1451_v49, 1  ;;  %v193_v49 = vadd.f32 %v189_v63, %v183_v31  ;;  %v217_v20 = vadd.f32 %v6598_v48, %v191_v37  ;;  %v657_v48 = vstv %s6865_s24 }
 0x1d6   :  { %1464 = vrot.lane.b32.xlu1 %v1458_v13, %s6318_s4  ;;  %1460 = vrot.lane.b32.xlu0 %v1456_v29, %s6318_s4  ;;  %v545_v13 = vmul.f32 %v543_v47, %v6452_v10  ;;  %v546_v29 = vmul.f32 %v543_v47, %v6459_v14  ;;  %v300_v47 = vmul.f32 %v299_v53, %v6454_v11 }
 0x1d7   :  { %v243_v2 = vadd.f32 %v6614_v61, %v217_v20  ;;  %v218_v40 = vadd.f32 %v6604_v54, %v192_v4  ;;  %v548_v9 = vadd.f32 %v544_v12, %v541_v57 }
 0x1d8   :  { %v6870_v16 = vpop.permute.xlu1 %970  ;;  %v6872_v32 = vpop.permute.xlu0 %756  ;;  %v549_v31 = vadd.f32 %v545_v13, %v541_v57  ;;  %v550_v63 = vadd.f32 %v546_v29, %v541_v57 }
 0x1d9   :  { %9443 = vst [vmem:[#allocation56_spill] sm:$0xff] %v6870_v16  ;;  %9444 = vst [vmem:[#allocation57_spill] sm:$0xff] %v6872_v32  ;;  %v301_v16 = vmul.f32 %v299_v53, %v6452_v10  ;;  %v6885_v32 = vmul.f32 %v299_v53, %v6459_v14  ;;  %v216_v10 = vadd.f32 %v6606_v55, %v190_v42  ;;  %v6936_v42 = vld [vmem:[#allocation2 + $0x4] sm:$0x3] }
 0x1da   :  { %1466 = vrot.lane.b32.xlu1 %v1459_v41, %s6318_s4  ;;  %1492 = vrot.lane.b32.xlu0 %v1487_v62, %s6319_s28  ;;  %v1481_v41 = vmul.f32 %v1477_v3, %v6461_v15  ;;  %v551_v62 = vadd.f32 %v547_v46, %v541_v57  ;;  %v219_v14 = vadd.f32 %v6612_v60, %v193_v49  ;;  %v308_v57 = vrot.slane %v300_v47, 1 }
 0x1db   :  { %v309_v37 = vrot.slane %v301_v16, 1  ;;  %v310_v46 = vrot.slane %v6885_v32, 1  ;;  %v242_v3 = vadd.f32 %v6620_v1, %v216_v10  ;;  %v269_v55 = vadd.f32 %v6631_v8, %v243_v2  ;;  %v6924_v16 = vld [vmem:[#allocation2 + $0x2] sm:$0x3] }
 0x1dc   :  { %v6888_v30 = vpop.permute.xlu1 %972  ;;  %v6890_v22 = vpop.permute.xlu0 %752  ;;  %v245_v11 = vadd.f32 %v6629_v7, %v219_v14  ;;  %v1489_v20 = vrot.slane %v1481_v41, 1  ;;  %v244_v13 = vadd.f32 %v6618_v0, %v218_v40  ;;  %v575_v29 = vadd.f32 %v6669_v38, %v549_v31 }
 0x1dd   :  { %v574_v54 = vadd.f32 %v6685_v50, %v548_v9  ;;  %v268_v4 = vadd.f32 %v6639_v18, %v242_v3  ;;  %v295_v7 = vadd.f32 %v6648_v24, %v269_v55  ;;  %v303_v8 = vmul.f32 %v299_v53, %v6461_v15  ;;  %v9447_v3 = vld [vmem:[#allocation26_spill] sm:$0xff] }
 0x1de   :  { %1494 = vrot.lane.b32.xlu1 %v1488_v52, %s6319_s28  ;;  %1490 = vrot.lane.b32.xlu0 %v1486_v59, %s6319_s28  ;;  %v271_v1 = vadd.f32 %v6646_v23, %v245_v11  ;;  %v270_v2 = vadd.f32 %v6637_v17, %v244_v13  ;;  %v577_v32 = vadd.f32 %v6663_v34, %v551_v62  ;;  %v6941_v59 = vld [vmem:[#allocation2] sm:$0x3]  ;;  %v9448_v13 = vld [vmem:[#allocation28_spill] sm:$0xff] }
 0x1df   :  { %v601_v0 = vadd.f32 %v6693_v58, %v575_v29  ;;  %v600_v38 = vadd.f32 %v6710_v19, %v574_v54  ;;  %v294_v50 = vadd.f32 %v6654_v28, %v268_v4  ;;  %v576_v23 = vadd.f32 %v6677_v44, %v550_v63  ;;  %v9449_v29 = vld [vmem:[#allocation30_spill] sm:$0xff] }
 0x1e0   :  { %v6905_v60 = vpop.permute.xlu1 %758  ;;  %v6907_v61 = vpop.permute.xlu0 %784  ;;  %v297_v18 = vadd.f32 %v6661_v33, %v271_v1  ;;  %v659_v15 = vmul.f32 %v6924_v16, %v657_v48  ;;  %v296_v17 = vadd.f32 %v6652_v27, %v270_v2  ;;  %v603_v34 = vadd.f32 %v6671_v39, %v577_v32  ;;  %v6944_v39 = vld [vmem:[#allocation2 + $0x6] sm:$0x3] }
 0x1e1   :  { %v627_v58 = vadd.f32 %v6716_v25, %v601_v0  ;;  %v626_v28 = vadd.f32 %v6733_v43, %v600_v38  ;;  %v602_v33 = vadd.f32 %v6701_v5, %v576_v23  ;;  %v317_v19 = vadd.f32 %v309_v37, %v295_v7  ;;  %v9452_v7 = vld [vmem:[#allocation41_spill] sm:$0xff] }
 0x1e2   :  { %1496 = vrot.lane.b32.xlu1 %v1489_v20, %s6319_s28  ;;  %v311_v44 = vrot.slane %v303_v8, 1  ;;  %v660_v49 = vmul.f32 %v6936_v42, %v657_v48  ;;  %v629_v12 = vadd.f32 %v6679_v45, %v603_v34  ;;  %v658_v27 = vmul.f32 %v6941_v59, %v657_v48  ;;  %v9453_v0 = vld [vmem:[#allocation33_spill] sm:$0xff]  ;;  %v9456_v34 = vld [vmem:[#allocation31_spill] sm:$0xff] }
 0x1e3   :  { %v653_v52 = vadd.f32 %v6742_v56, %v627_v58  ;;  %v661_v25 = vmul.f32 %v6944_v39, %v657_v48  ;;  %v347_v5 = vadd.f32 %v6703_v6, %v317_v19  ;;  %v316_v43 = vadd.f32 %v308_v57, %v294_v50  ;;  %v9445_v48 = vld [vmem:[#allocation29_spill] sm:$0xff]  ;;  %v9446_v6 = vld [vmem:[#allocation42_spill] sm:$0xff]  ;;  %v9454_v50 = vld [vmem:[#allocation35_spill] sm:$0xff] }
 0x1e4   :  { %v6927_v24 = vpop.permute.xlu1 %968  ;;  %v6929_v53 = vpop.permute.xlu0 %974  ;;  %v628_v41 = vadd.f32 %v6725_v35, %v602_v33  ;;  %v319_v62 = vadd.f32 %v311_v44, %v297_v18  ;;  %v318_v45 = vadd.f32 %v310_v46, %v296_v17  ;;  %v652_v56 = vadd.f32 %v6687_v51, %v626_v28  ;;  %v9457_v28 = vld [vmem:[#allocation45_spill] sm:$0xff]  ;;  %v9458_v19 = vld [vmem:[#allocation47_spill] sm:$0xff] }
 0x1e5   :  { %v655_v47 = vadd.f32 %v6757_v21, %v629_v12  ;;  %v667_v10 = vrot.slane %v659_v15, 1  ;;  %v346_v14 = vadd.f32 %v6718_v26, %v316_v43  ;;  %v377_v40 = vadd.f32 %v6727_v36, %v347_v5  ;;  %v9450_v21 = vld [vmem:[#allocation44_spill] sm:$0xff]  ;;  %v9451_v36 = vld [vmem:[#allocation27_spill] sm:$0xff]  ;;  %v9455_v15 = vld [vmem:[#allocation46_spill] sm:$0xff] }
 0x1e6   :  { %v654_v9 = vadd.f32 %v9445_v48, %v628_v41  ;;  %v349_v37 = vadd.f32 %v9446_v6, %v319_v62  ;;  %v348_v35 = vadd.f32 %v9447_v3, %v318_v45  ;;  %v666_v55 = vrot.slane %v658_v27, 1  ;;  %v9462_v43 = vld [vmem:[#allocation48_spill] sm:$0xff]  ;;  %v9467_v3 = vld [vmem:[#allocation49_spill] sm:$0xff] }
 0x1e7   :  { %v675_v11 = vadd.f32 %v667_v10, %v653_v52  ;;  %v669_v20 = vrot.slane %v661_v25, 1  ;;  %v376_v46 = vadd.f32 %v9448_v13, %v346_v14  ;;  %v407_v51 = vadd.f32 %v9449_v29, %v377_v40  ;;  %v9460_v52 = vld [vmem:[#allocation39_spill] sm:$0xff]  ;;  %v9465_v40 = vld [vmem:[#allocation52_spill] sm:$0xff]  ;;  %v9468_v29 = vld [vmem:[#allocation57_spill] sm:$0xff] }
 0x1e8   :  { %v6949_v31 = vpop.permute.xlu1 %996  ;;  %v787_v63 = vpop.permute.xlu0 %786  ;;  %v668_v54 = vrot.slane %v660_v49, 1  ;;  %v379_v57 = vadd.f32 %v9450_v21, %v349_v37  ;;  %v378_v1 = vadd.f32 %v9451_v36, %v348_v35  ;;  %v674_v2 = vadd.f32 %v666_v55, %v652_v56  ;;  %v9459_v49 = vld [vmem:[#allocation50_spill] sm:$0xff]  ;;  %v9461_v25 = vld [vmem:[#allocation43_spill] sm:$0xff]  ;;  %v9463_v56 = vld [vmem:[#allocation37_spill] sm:$0xff] }
 0x1e9   :  { %v705_v8 = vadd.f32 %v9452_v7, %v675_v11  ;;  %v677_v32 = vadd.f32 %v669_v20, %v655_v47  ;;  %v406_v38 = vadd.f32 %v9453_v0, %v376_v46  ;;  %v6967_v18 = vadd.f32 %v9454_v50, %v407_v51  ;;  %v9464_v10 = vld [vmem:[#allocation51_spill] sm:$0xff] }
 0x1ea   :  { %v676_v23 = vadd.f32 %v668_v54, %v654_v9  ;;  %v409_v17 = vadd.f32 %v9455_v15, %v379_v57  ;;  %v408_v58 = vadd.f32 %v9456_v34, %v378_v1  ;;  %v704_v33 = vadd.f32 %v9457_v28, %v674_v2  ;;  %v9466_v9 = vld [vmem:[#allocation53_spill] sm:$0xff] }
 0x1eb   :  { %v735_v44 = vadd.f32 %v9458_v19, %v705_v8  ;;  %v707_v12 = vadd.f32 %v9459_v49, %v677_v32  ;;  %v6975_v27 = vadd.f32 %v9460_v52, %v406_v38  ;;  %v446_v37 = vrot.slane %v6967_v18, 7 }
 0x1ec   :  { %v6961_v4 = vpop.permute.xlu1 %998  ;;  %v783_v26 = vpop.permute.xlu0 %782  ;;  %v706_v5 = vadd.f32 %v9461_v25, %v676_v23  ;;  %v6979_v41 = vadd.f32 %v9462_v43, %v409_v17  ;;  %v6984_v47 = vadd.f32 %v9463_v56, %v408_v58  ;;  %v734_v14 = vadd.f32 %v9464_v10, %v704_v33 }
 0x1ed   :  { %v737_v48 = vadd.f32 %v9465_v40, %v707_v12  ;;  %v765_v6 = vadd.f32 %v9466_v9, %v735_v44  ;;  %v448_v13 = vsel %vm447_vm1, %v446_v37, %v6975_v27  ;;  %v469_v8 = vmul.f32 %v6967_v18, %v6967_v18 }
 0x1ee   :  { %v736_v35 = vadd.f32 %v9467_v3, %v706_v5  ;;  %v764_v11 = vadd.f32 %v6890_v22, %v734_v14  ;;  %v452_v46 = vrot.slane %v6979_v41, 5  ;;  %v449_v57 = vrot.slane %v6984_v47, 6 }
 0x1ef   :  { %v767_v55 = vadd.f32 %v6905_v60, %v737_v48  ;;  %v6994_v20 = vadd.f32 %v6907_v61, %v765_v6  ;;  %v468_v23 = vmul.f32 %v6975_v27, %v6975_v27  ;;  %v471_v15 = vmul.f32 %v6979_v41, %v6979_v41 }
 0x1f0   :  { %v789_v62 = vpop.permute.xlu1 %788  ;;  %v6981_v45 = vpop.permute.xlu0 %994  ;;  %v766_v51 = vadd.f32 %v9468_v29, %v736_v35  ;;  %v7005_v22 = vadd.f32 %v783_v26, %v764_v11  ;;  %v451_v7 = vsel %vm450_vm2, %v449_v57, %v448_v13  ;;  %v470_v58 = vmul.f32 %v6984_v47, %v6984_v47 }
 0x1f1   :  { %v7007_v60 = vadd.f32 %v789_v62, %v767_v55  ;;  %v804_v36 = vrot.slane %v6994_v20, 7  ;;  %v823_v1 = vmul.f32 %v6994_v20, %v6994_v20  ;;  %v454_v26 = vsel %vm453_vm3, %v452_v46, %v451_v7 }
 0x1f2   :  { %v7009_v61 = vadd.f32 %v787_v63, %v766_v51  ;;  %v822_v0 = vmul.f32 %v7005_v22, %v7005_v22  ;;  %v476_v33 = vrot.slane %v469_v8, 7  ;;  %v457_v49 = vsel %vm456_vm4, %v454_v26, 0.0 }
 0x1f3   :  { %v805_v63 = vsel %vm447_vm1, %v804_v36, %v7005_v22  ;;  %v808_v38 = vrot.slane %v7007_v60, 5  ;;  %v825_v50 = vmul.f32 %v7007_v60, %v7007_v60  ;;  %v830_v28 = vrot.slane %v823_v1, 7 }
 0x1f4   :  { %v7000_v54 = vpop.permute.xlu1 %1000  ;;  %v7002_v21 = vpop.permute.xlu0 %1048  ;;  %v806_v17 = vrot.slane %v7009_v61, 6  ;;  %v824_v34 = vmul.f32 %v7009_v61, %v7009_v61  ;;  %v480_v43 = vrot.slane %v471_v15, 5  ;;  %v477_v56 = vsel %vm447_vm1, %v476_v33, %v468_v23  ;;  %v9469_v15 = vld [vmem:[#allocation32_spill] sm:$0xff] }
 0x1f5   :  { %v834_v52 = vrot.slane %v825_v50, 5  ;;  %v831_v5 = vsel %vm447_vm1, %v830_v28, %v822_v0  ;;  %v478_v10 = vrot.slane %v470_v58, 6  ;;  %v897_v36 = vstv %s5106_s25 }
 0x1f6   :  { %v807_v12 = vsel %vm450_vm2, %v806_v17, %v805_v63  ;;  %v832_v62 = vrot.slane %v824_v34, 6  ;;  %v899_v8 = vmul.f32 %v6924_v16, %v897_v36  ;;  %v895_v26 = vstv %s5105_s26  ;;  %s5129_s26 = sld [smem:[#allocation9 + $0x3]] }
 0x1f7   :  { %v809_v25 = vsel %vm453_vm3, %v808_v38, %v807_v12  ;;  %v479_v37 = vsel %vm450_vm2, %v478_v10, %v477_v56  ;;  %v900_v63 = vmul.f32 %v6936_v42, %v897_v36  ;;  %v898_v23 = vmul.f32 %v6941_v59, %v897_v36  ;;  %v9473_v10 = vld [vmem:[#allocation56_spill] sm:$0xff] }
 0x1f8   :  { %v7017_v2 = vpop.permute.xlu1 %1272  ;;  %v7019_v32 = vpop.permute.xlu0 %1050  ;;  %v811_v48 = vsel %vm456_vm4, %v809_v25, 0.0  ;;  %v833_v9 = vsel %vm450_vm2, %v832_v62, %v831_v5  ;;  %v481_v3 = vsel %vm453_vm3, %v480_v43, %v479_v37  ;;  %v903_v50 = vadd.f32 %v899_v8, %v895_v26  ;;  %v9471_v5 = vld [vmem:[#allocation34_spill] sm:$0xff]  ;;  %v9472_v62 = vld [vmem:[#allocation36_spill] sm:$0xff] }
 0x1f9   :  { %v835_v6 = vsel %vm453_vm3, %v834_v52, %v833_v9  ;;  %v483_v13 = vsel %vm456_vm4, %v481_v3, 0.0  ;;  %v904_v34 = vadd.f32 %v900_v63, %v895_v26  ;;  %v1011_v58 = vstv %s5111_s2  ;;  %v9470_v52 = vld [vmem:[#allocation38_spill] sm:$0xff]  ;;  %s5130_s2 = sld [smem:[#allocation10 + $0x3]] }
 0x1fa   :  { %v837_v55 = vsel %vm456_vm4, %v835_v6, 0.0  ;;  %v929_v17 = vadd.f32 %v9469_v15, %v903_v50  ;;  %v902_v12 = vadd.f32 %v898_v23, %v895_v26  ;;  %v1013_v9 = vmul.f32 %v6924_v16, %v1011_v58  ;;  %v9474_v6 = vld [vmem:[#allocation40_spill] sm:$0xff]  ;;  %v9475_v8 = vld [vmem:[#allocation54_spill] sm:$0xff]  ;;  %v9476_v15 = vld [vmem:[#allocation25_spill] sm:$0xff] }
 0x1fb   :  { %v930_v43 = vadd.f32 %v9471_v5, %v904_v34  ;;  %v1014_v23 = vmul.f32 %v6936_v42, %v1011_v58 }
 0x1fc   :  { %v7038_v19 = vpop.permute.xlu1 %1274  ;;  %v7040_v44 = vpop.permute.xlu0 %1046  ;;  %v955_v25 = vadd.f32 %v9470_v52, %v929_v17  ;;  %v928_v56 = vadd.f32 %v9472_v62, %v902_v12  ;;  %v1021_v12 = vrot.slane %v1013_v9, 1  ;;  %v1012_v52 = vmul.f32 %v6941_v59, %v1011_v58 }
 0x1fd   :  { %458 = vadd.xlane.f32.xlu0 %v457_v49  ;;  %v901_v49 = vmul.f32 %v6944_v39, %v897_v36  ;;  %v956_v37 = vadd.f32 %v9474_v6, %v930_v43 }
 0x1fe   :  { %v954_v63 = vadd.f32 %v9475_v8, %v928_v56  ;;  %v1022_v56 = vrot.slane %v1014_v23, 1 }
 0x1ff   :  { %v982_v50 = vadd.f32 %v6888_v30, %v956_v37 }
 0x200   :  { %v7047_v14 = vpop.permute.xlu1 %1052  ;;  %v7049_v40 = vpop.permute.xlu0 %1078  ;;  %v980_v34 = vadd.f32 %v6927_v24, %v954_v63  ;;  %v1015_v24 = vmul.f32 %v6944_v39, %v1011_v58 }
 0x201   :  { %812 = vadd.xlane.f32.xlu0 %v811_v48  ;;  %v981_v48 = vadd.f32 %v9473_v10, %v955_v25  ;;  %v1008_v25 = vadd.f32 %v6961_v4, %v982_v50 }
 0x202   :  { %v1006_v62 = vadd.f32 %v6981_v45, %v980_v34 }
 0x203   :  { %v1007_v36 = vadd.f32 %v6949_v31, %v981_v48  ;;  %v1020_v48 = vrot.slane %v1012_v52, 1  ;;  %v1030_v9 = vadd.f32 %v1022_v56, %v1008_v25 }
 0x204   :  { %v7056_v35 = vpop.permute.xlu1 %1270  ;;  %v7058_v11 = vpop.permute.xlu0 %1276 }
 0x205   :  { %838 = vadd.xlane.f32.xlu0 %v837_v55  ;;  %v1029_v31 = vadd.f32 %v1021_v12, %v1007_v36  ;;  %v1060_v45 = vadd.f32 %v7019_v32, %v1030_v9 }
 0x206   :  { %484 = vadd.xlane.f32.xlu1 %v483_v13  ;;  %v905_v13 = vadd.f32 %v901_v49, %v895_v26  ;;  %v9477_v26 = vld [vmem:[#allocation55_spill] sm:$0xff] }
 0x207   :  { %v1059_v10 = vadd.f32 %v7002_v21, %v1029_v31 }
 0x208   :  { %v7062_v46 = vpop.permute.xlu1 %1298  ;;  %v1081_v29 = vpop.permute.xlu0 %1080  ;;  %v931_v17 = vadd.f32 %v9476_v15, %v905_v13  ;;  %v1028_v13 = vadd.f32 %v1020_v48, %v1006_v62  ;;  %v1251_v62 = vstv %s5119_s5  ;;  %s5131_s5 = sld [smem:[#allocation12 + $0x1]] }
 0x209   :  { %v1089_v8 = vadd.f32 %v7049_v40, %v1059_v10  ;;  %v1090_v21 = vadd.f32 %v1081_v29, %v1060_v45  ;;  %v1249_v45 = vstv %s5118_s27  ;;  %s5132_s27 = sld [smem:[#allocation12 + $0x2]] }
 0x20a   :  { %v957_v49 = vadd.f32 %v9477_v26, %v931_v17  ;;  %v1058_v63 = vadd.f32 %v7040_v44, %v1028_v13 }
 0x20c   :  { %v7064_v51 = vpop.permute.xlu1 %1300  ;;  %v1077_v57 = vpop.permute.xlu0 %1076  ;;  %v983_v30 = vadd.f32 %v6929_v53, %v957_v49  ;;  %v1023_v53 = vrot.slane %v1015_v24, 1 }
 0x20d   :  { %v1088_v15 = vadd.f32 %v1077_v57, %v1058_v63 }
 0x20e   :  { %v1009_v4 = vadd.f32 %v7000_v54, %v983_v30 }
 0x210   :  { %v7066_v1 = vpop.permute.xlu1 %1082  ;;  %v1109_v7 = vpop.permute.xlu0 %1108  ;;  %v1031_v23 = vadd.f32 %v1023_v53, %v1009_v4  ;;  %v1253_v4 = vmul.f32 %v6924_v16, %v1251_v62 }
 0x211   :  { %v1119_v36 = vadd.f32 %v1109_v7, %v1089_v8 }
 0x212   :  { %v1061_v54 = vadd.f32 %v7047_v14, %v1031_v23 }
 0x214   :  { %v7070_v0 = vpop.permute.xlu1 %1296  ;;  %v7072_v38 = vpop.permute.xlu0 %1302  ;;  %v1091_v7 = vadd.f32 %v7066_v1, %v1061_v54  ;;  %v1252_v54 = vmul.f32 %v6941_v59, %v1251_v62 }
 0x218   :  { %v7076_v28 = vpop.permute.xlu1 %1324  ;;  %v1111_v33 = vpop.permute.xlu0 %1110 }
 0x219   :  { %v1120_v34 = vadd.f32 %v1111_v33, %v1090_v21 }
 0x21c   :  { %v7085_v3 = vpop.permute.xlu1 %1326  ;;  %v1107_v55 = vpop.permute.xlu0 %1106 }
 0x21d   :  { %v1118_v12 = vadd.f32 %v1107_v55, %v1088_v15  ;;  %v1257_v15 = vadd.f32 %v1253_v4, %v1249_v45 }
 0x220   :  { %v1113_v5 = vpop.permute.xlu1 %1112  ;;  %v1139_v43 = vpop.permute.xlu0 %1138 }
 0x221   :  { %v7110_v17 = vadd.f32 %v1139_v43, %v1119_v36  ;;  %v1121_v57 = vadd.f32 %v1113_v5, %v1091_v7 }
 0x223   :  { %v1177_v29 = vmul.f32 %v7110_v17, %v7110_v17  ;;  %v1158_v25 = vrot.slane %v7110_v17, 7 }
 0x224   :  { %v7100_v6 = vpop.permute.xlu1 %1322  ;;  %v7102_v37 = vpop.permute.xlu0 %1328 }
 0x225   :  { %v1184_v26 = vrot.slane %v1177_v29, 7 }
 0x228   :  { %v7108_v50 = vpop.permute.xlu1 %1350  ;;  %v1141_v58 = vpop.permute.xlu0 %1140 }
 0x229   :  { %v7113_v40 = vadd.f32 %v1141_v58, %v1120_v34  ;;  %v1254_v34 = vmul.f32 %v6936_v42, %v1251_v62 }
 0x22b   :  { %v1178_v33 = vmul.f32 %v7113_v40, %v7113_v40  ;;  %v1160_v31 = vrot.slane %v7113_v40, 6 }
 0x22c   :  { %v7115_v32 = vpop.permute.xlu1 %1352  ;;  %v1137_v44 = vpop.permute.xlu0 %1136 }
 0x22d   :  { %v7120_v52 = vadd.f32 %v1137_v44, %v1118_v12  ;;  %v1186_v10 = vrot.slane %v1178_v33, 6  ;;  %v1283_v12 = vadd.f32 %v7017_v2, %v1257_v15  ;;  %v1365_v44 = vstv %s5124_s29  ;;  %s5152_s29 = sld [smem:[#allocation12 + $0x15]] }
 0x22f   :  { %v1176_v14 = vmul.f32 %v7120_v52, %v7120_v52  ;;  %v1159_v1 = vsel %vm447_vm1, %v1158_v25, %v7120_v52  ;;  %v1256_v25 = vadd.f32 %v1252_v54, %v1249_v45  ;;  %v1309_v33 = vadd.f32 %v7062_v46, %v1283_v12 }
 0x230   :  { %v1143_v55 = vpop.permute.xlu1 %1142  ;;  %v1349_v43 = vpop.permute.xlu0 %1348  ;;  %v1161_v9 = vsel %vm450_vm2, %v1160_v31, %v1159_v1  ;;  %v1367_v31 = vmul.f32 %v6924_v16, %v1365_v44  ;;  %v1366_v46 = vmul.f32 %v6941_v59, %v1365_v44 }
 0x231   :  { %v7129_v49 = vadd.f32 %v1143_v55, %v1121_v57  ;;  %v1185_v30 = vsel %vm447_vm1, %v1184_v26, %v1176_v14  ;;  %v1258_v57 = vadd.f32 %v1254_v34, %v1249_v45  ;;  %v1255_v14 = vmul.f32 %v6944_v39, %v1251_v62 }
 0x232   :  { %v1187_v53 = vsel %vm450_vm2, %v1186_v10, %v1185_v30  ;;  %v1282_v26 = vadd.f32 %v7056_v35, %v1256_v25  ;;  %v1335_v1 = vadd.f32 %v7076_v28, %v1309_v33  ;;  %v1368_v62 = vmul.f32 %v6936_v42, %v1365_v44 }
 0x233   :  { %v1162_v5 = vrot.slane %v7129_v49, 5  ;;  %v1179_v56 = vmul.f32 %v7129_v49, %v7129_v49  ;;  %v1284_v55 = vadd.f32 %v7038_v19, %v1258_v57  ;;  %v1259_v2 = vadd.f32 %v1255_v14, %v1249_v45 }
 0x234   :  { %v1355_v48 = vpop.permute.xlu1 %1354  ;;  %v1403_v24 = vpop.permute.xlu0 %1402  ;;  %v1308_v10 = vadd.f32 %v7070_v0, %v1282_v26  ;;  %v1375_v16 = vrot.slane %v1367_v31, 1 }
 0x235   :  { %v1188_v13 = vrot.slane %v1179_v56, 5  ;;  %v1163_v8 = vsel %vm453_vm3, %v1162_v5, %v1161_v9  ;;  %v1310_v30 = vadd.f32 %v7064_v51, %v1284_v55  ;;  %v1361_v9 = vadd.f32 %v7108_v50, %v1335_v1 }
 0x236   :  { %v1165_v63 = vsel %vm456_vm4, %v1163_v8, 0.0  ;;  %v1285_v19 = vadd.f32 %v7058_v11, %v1259_v2  ;;  %v1334_v28 = vadd.f32 %v7100_v6, %v1308_v10  ;;  %v1369_v50 = vmul.f32 %v6944_v39, %v1365_v44 }
 0x237   :  { %1166 = vadd.xlane.f32.xlu1 %v1165_v63  ;;  %v1189_v36 = vsel %vm453_vm3, %v1188_v13, %v1187_v53  ;;  %v1336_v35 = vadd.f32 %v7085_v3, %v1310_v30  ;;  %v1383_v45 = vadd.f32 %v1375_v16, %v1361_v9  ;;  %v1376_v63 = vrot.slane %v1368_v62, 1 }
 0x238   :  { %v1405_v21 = vpop.permute.xlu1 %1404  ;;  %v1401_v58 = vpop.permute.xlu0 %1400  ;;  %v1191_v23 = vsel %vm456_vm4, %v1189_v36, 0.0  ;;  %v1311_v8 = vadd.f32 %v7072_v38, %v1285_v19  ;;  %v1360_v0 = vadd.f32 %v1349_v43, %v1334_v28  ;;  %v1374_v11 = vrot.slane %v1366_v46, 1 }
 0x239   :  { %1192 = vadd.xlane.f32.xlu0 %v1191_v23  ;;  %v1362_v51 = vadd.f32 %v7115_v32, %v1336_v35  ;;  %v1413_v59 = vadd.f32 %v1403_v24, %v1383_v45  ;;  %v1377_v38 = vrot.slane %v1369_v50, 1 }
 0x23a   :  { %v1337_v42 = vadd.f32 %v7102_v37, %v1311_v8  ;;  %v1382_v23 = vadd.f32 %v1374_v11, %v1360_v0 }
 0x23b   :  { %v1384_v6 = vadd.f32 %v1376_v63, %v1362_v51 }
 0x23c   :  { %v1407_v7 = vpop.permute.xlu1 %1406  ;;  %v1433_v29 = vpop.permute.xlu0 %1432  ;;  %v1363_v36 = vadd.f32 %v1355_v48, %v1337_v42  ;;  %v1412_v54 = vadd.f32 %v1401_v58, %v1382_v23 }
 0x23d   :  { %v1443_v15 = vadd.f32 %v1433_v29, %v1413_v59  ;;  %v1414_v34 = vadd.f32 %v1405_v21, %v1384_v6 }
 0x23e   :  { %v1385_v57 = vadd.f32 %v1377_v38, %v1363_v36 }
 0x240   :  { %v1435_v5 = vpop.permute.xlu1 %1434  ;;  %v1431_v56 = vpop.permute.xlu0 %1430  ;;  %v1415_v37 = vadd.f32 %v1407_v7, %v1385_v57 }
 0x241   :  { %v1444_v25 = vadd.f32 %v1435_v5, %v1414_v34  ;;  %v1442_v39 = vadd.f32 %v1431_v56, %v1412_v54 }
 0x244   :  { %v1437_v4 = vpop.permute.xlu1 %1436  ;;  %v1463_v13 = vpop.permute.xlu0 %1462 }
 0x245   :  { %v1473_v12 = vadd.f32 %v1463_v13, %v1443_v15  ;;  %v1445_v48 = vadd.f32 %v1437_v4, %v1415_v37 }
 0x248   :  { %v1465_v53 = vpop.permute.xlu1 %1464  ;;  %v1461_v3 = vpop.permute.xlu0 %1460 }
 0x249   :  { %v1474_v24 = vadd.f32 %v1465_v53, %v1444_v25  ;;  %v1472_v14 = vadd.f32 %v1461_v3, %v1442_v39 }
 0x24c   :  { %v1467_v32 = vpop.permute.xlu1 %1466  ;;  %v1493_v43 = vpop.permute.xlu0 %1492 }
 0x24d   :  { %v7164_v44 = vadd.f32 %v1493_v43, %v1473_v12  ;;  %v1475_v26 = vadd.f32 %v1467_v32, %v1445_v48 }
 0x24f   :  { %v1531_v29 = vmul.f32 %v7164_v44, %v7164_v44  ;;  %v1512_v1 = vrot.slane %v7164_v44, 7 }
 0x250   :  { %v1495_v33 = vpop.permute.xlu1 %1494  ;;  %v1491_v55 = vpop.permute.xlu0 %1490 }
 0x251   :  { %v7168_v21 = vadd.f32 %v1495_v33, %v1474_v24  ;;  %v7170_v58 = vadd.f32 %v1491_v55, %v1472_v14  ;;  %v1538_v2 = vrot.slane %v1531_v29, 7 }
 0x253   :  { %v1532_v31 = vmul.f32 %v7168_v21, %v7168_v21  ;;  %v1530_v7 = vmul.f32 %v7170_v58, %v7170_v58  ;;  %v1514_v5 = vrot.slane %v7168_v21, 6  ;;  %v1513_v30 = vsel %vm447_vm1, %v1512_v1, %v7170_v58 }
 0x254   :  { %v1497_v56 = vpop.permute.xlu1 %1496 }
 0x255   :  { %v7180_v10 = vadd.f32 %v1497_v56, %v1475_v26  ;;  %v1540_v9 = vrot.slane %v1532_v31, 6  ;;  %v1539_v19 = vsel %vm447_vm1, %v1538_v2, %v1530_v7  ;;  %v1515_v35 = vsel %vm450_vm2, %v1514_v5, %v1513_v30 }
 0x257   :  { %v1516_v62 = vrot.slane %v7180_v10, 5  ;;  %v1533_v46 = vmul.f32 %v7180_v10, %v7180_v10  ;;  %v1541_v13 = vsel %vm450_vm2, %v1540_v9, %v1539_v19 }
 0x259   :  { %v1542_v28 = vrot.slane %v1533_v46, 5  ;;  %v1517_v16 = vsel %vm453_vm3, %v1516_v62, %v1515_v35 }
 0x25a   :  { %v1519_v4 = vsel %vm456_vm4, %v1517_v16, 0.0 }
 0x25b   :  { %1520 = vadd.xlane.f32.xlu1 %v1519_v4  ;;  %v1543_v8 = vsel %vm453_vm3, %v1542_v28, %v1541_v13 }
 0x25c   :  { %v1545_v51 = vsel %vm456_vm4, %v1543_v8, 0.0 }
 0x25d   :  { %1546 = vadd.xlane.f32.xlu0 %v1545_v51 }
 0x286   :  { %v459_v0 = vpop.xlane.xlu0 %458 }
 0x287   :  { %v460_v45 = vrot.slane %v459_v0, 4 }
 0x289   :  { %v461_v50 = vadd.f32 %v460_v45, %v459_v0 }
 0x28a   :  { %v813_v42 = vpop.xlane.xlu0 %812 }
 0x28b   :  { %v814_v59 = vrot.slane %v813_v42, 4  ;;  %v462_v63 = vrot.slane %v461_v50, 2 }
 0x28d   :  { %v815_v11 = vadd.f32 %v814_v59, %v813_v42  ;;  %v463_v53 = vadd.f32 %v462_v63, %v461_v50 }
 0x28e   :  { %v839_v3 = vpop.xlane.xlu0 %838 }
 0x28f   :  { %v840_v36 = vrot.slane %v839_v3, 4  ;;  %v485_v6 = vpop.xlane.xlu1 %484  ;;  %v464_v23 = vrot.slane %v463_v53, 1  ;;  %v816_v15 = vrot.slane %v815_v11, 2 }
 0x290   :  { %v486_v34 = vrot.slane %v485_v6, 4 }
 0x291   :  { %v841_v54 = vadd.f32 %v840_v36, %v839_v3  ;;  %v465_v38 = vadd.f32 %v464_v23, %v463_v53  ;;  %v817_v32 = vadd.f32 %v816_v15, %v815_v11  ;;  %v500_v3 = vstv %s440_s7  ;;  %s5224_s7 = sld [smem:[#allocation12 + $0x29]] }
 0x292   :  { %v487_v12 = vadd.f32 %v486_v34, %v485_v6  ;;  %v854_v23 = vstv %s5103_s8  ;;  %v503_v34 = vstv %s441_s19  ;;  %s5225_s8 = sld [smem:[#allocation12 + $0x2a]] }
 0x293   :  { %6082 = vpush %v465_v38  ;;  %v842_v43 = vrot.slane %v841_v54, 2  ;;  %v818_v37 = vrot.slane %v817_v32, 1  ;;  %s5226_s19 = sld [smem:[#allocation12 + $0x2b]] }
 0x294   :  { %v488_v57 = vrot.slane %v487_v12, 2 }
 0x295   :  { %v843_v25 = vadd.f32 %v842_v43, %v841_v54  ;;  %v819_v48 = vadd.f32 %v818_v37, %v817_v32 }
 0x296   :  { %v489_v39 = vadd.f32 %v488_v57, %v487_v12 }
 0x297   :  { %v844_v24 = vrot.slane %v843_v25, 1 }
 0x298   :  { %v490_v14 = vrot.slane %v489_v39, 1 }
 0x299   :  { %v845_v55 = vadd.f32 %v844_v24, %v843_v25 }
 0x29a   :  { %v491_v33 = vadd.f32 %v490_v14, %v489_v39  ;;  %v857_v39 = vstv %s5104_s1  ;;  %s5227_s1 = sld [smem:[#allocation12 + $0x2c]] }
 0x29c   :  { %6084 = vpush %v491_v33 }
 0x29d   :  { %6086 = vpush %v819_v48 }
 0x29e   :  { %6088 = vpush %v845_v55 }
 0x2c0   :  { %v1167_v29 = vpop.xlane.xlu1 %1166 }
 0x2c1   :  { %v1168_v26 = vrot.slane %v1167_v29, 4 }
 0x2c2   :  { %v1193_v1 = vpop.xlane.xlu0 %1192 }
 0x2c3   :  { %v1169_v31 = vadd.f32 %v1168_v26, %v1167_v29  ;;  %v1194_v7 = vrot.slane %v1193_v1, 4 }
 0x2c4   :  { %s6083_s30 = spop %6082 }
 0x2c5   :  { %v1195_v5 = vadd.f32 %v1194_v7, %v1193_v1  ;;  %v1170_v56 = vrot.slane %v1169_v31, 2  ;;  %v467_v9 = vstv %s6083_s30  ;;  %s5133_s30 = sld [smem:[#allocation12 + $0x3]] }
 0x2c6   :  { %v494_v19 = vmul.f32 0.0025, %v467_v9 }
 0x2c7   :  { %v1171_v2 = vadd.f32 %v1170_v56, %v1169_v31  ;;  %v1196_v30 = vrot.slane %v1195_v5, 2 }
 0x2c8   :  { %v496_v13 = vmul.f32 %v494_v19, %v494_v19 }
 0x2c9   :  { %v1172_v62 = vrot.slane %v1171_v2, 1  ;;  %v1197_v46 = vadd.f32 %v1196_v30, %v1195_v5 }
 0x2cb   :  { %v1173_v35 = vadd.f32 %v1172_v62, %v1171_v2  ;;  %v1198_v28 = vrot.slane %v1197_v46, 1 }
 0x2cd   :  { %s6085_s16 = spop %6084  ;;  %6090 = vpush %v1173_v35  ;;  %v1199_v16 = vadd.f32 %v1198_v28, %v1197_v46 }
 0x2ce   :  { %v493_v4 = vstv %s6085_s16  ;;  %s6087_s17 = spop %6086  ;;  %s5153_s16 = sld [smem:[#allocation12 + $0x16]] }
 0x2cf   :  { %v495_v8 = vmul.f32 0.0025, %v493_v4  ;;  %v821_v51 = vstv %s6087_s17  ;;  %s6089_s18 = spop %6088  ;;  %6092 = vpush %v1199_v16  ;;  %s5134_s17 = sld [smem:[#allocation12 + $0x4]] }
 0x2d0   :  { %v848_v0 = vmul.f32 0.0025, %v821_v51  ;;  %v847_v45 = vstv %s6089_s18  ;;  %s5155_s18 = sld [smem:[#allocation12 + $0x18]] }
 0x2d1   :  { %v497_v50 = vsub.f32 %v495_v8, %v496_v13  ;;  %v849_v59 = vmul.f32 0.0025, %v847_v45 }
 0x2d2   :  { %v850_v42 = vmul.f32 %v848_v0, %v848_v0 }
 0x2d3   :  { %v498_v63 = vadd.f32 1e-05, %v497_v50 }
 0x2d4   :  { %v851_v11 = vsub.f32 %v849_v59, %v850_v42 }
 0x2d5   :  { %6146 = vrsqrt.f32 %v498_v63 }
 0x2d6   :  { %v852_v53 = vadd.f32 1e-05, %v851_v11 }
 0x2d8   :  { %6148 = vrsqrt.f32 %v852_v53 }
 0x2e2   :  { %v6147_v36 = vpop.eup %6146 }
 0x2e3   :  { %v501_v6 = vmul.f32 %v6147_v36, %v500_v3 }
 0x2e4   :  { %v1521_v15 = vpop.xlane.xlu1 %1520 }
 0x2e5   :  { %v6149_v54 = vpop.eup %6148  ;;  %v1522_v38 = vrot.slane %v1521_v15, 4  ;;  %v502_v12 = vmul.f32 %v501_v6, %v494_v19  ;;  %v505_v57 = vmul.f32 %v501_v6, %v6975_v27  ;;  %v506_v25 = vmul.f32 %v501_v6, %v6967_v18 }
 0x2e6   :  { %v855_v32 = vmul.f32 %v6149_v54, %v854_v23  ;;  %v1547_v43 = vpop.xlane.xlu0 %1546  ;;  %v507_v33 = vmul.f32 %v501_v6, %v6984_v47  ;;  %v508_v55 = vmul.f32 %v501_v6, %v6979_v41 }
 0x2e7   :  { %v1523_v37 = vadd.f32 %v1522_v38, %v1521_v15  ;;  %v1548_v24 = vrot.slane %v1547_v43, 4  ;;  %v504_v14 = vsub.f32 %v503_v34, %v502_v12 }
 0x2e8   :  { %v856_v48 = vmul.f32 %v855_v32, %v848_v0  ;;  %v859_v29 = vmul.f32 %v855_v32, %v7005_v22  ;;  %v860_v26 = vmul.f32 %v855_v32, %v6994_v20  ;;  %v861_v2 = vmul.f32 %v855_v32, %v7009_v61 }
 0x2e9   :  { %v1549_v1 = vadd.f32 %v1548_v24, %v1547_v43  ;;  %v1524_v31 = vrot.slane %v1523_v37, 2  ;;  %v509_v7 = vadd.f32 %v505_v57, %v504_v14  ;;  %v510_v5 = vadd.f32 %v506_v25, %v504_v14 }
 0x2ea   :  { %v511_v27 = vadd.f32 %v507_v33, %v504_v14  ;;  %v512_v56 = vadd.f32 %v508_v55, %v504_v14  ;;  %v858_v18 = vsub.f32 %v857_v39, %v856_v48  ;;  %v862_v47 = vmul.f32 %v855_v32, %v7007_v60 }
 0x2eb   :  { %v1525_v30 = vadd.f32 %v1524_v31, %v1523_v37  ;;  %vm514_vm5 = vcmp.ge.f32.partialorder %v510_v5, 0.0  ;;  %v517_v9 = vmul.f32 0.01, %v509_v7  ;;  %v518_v41 = vmul.f32 0.01, %v510_v5 }
 0x2ec   :  { %vm515_vm6 = vcmp.ge.f32.partialorder %v511_v27, 0.0  ;;  %vm516_vm7 = vcmp.ge.f32.partialorder %v512_v56, 0.0  ;;  %v519_v22 = vmul.f32 0.01, %v511_v27  ;;  %vm513_vm8 = vcmp.ge.f32.partialorder %v509_v7, 0.0 }
 0x2ed   :  { %v1526_v62 = vrot.slane %v1525_v30, 1  ;;  %v520_v20 = vmul.f32 0.01, %v512_v56  ;;  %v1550_v46 = vrot.slane %v1549_v1, 2  ;;  %v522_v19 = vsel %vm514_vm5, %v510_v5, %v518_v41 }
 0x2ee   :  { %v523_v35 = vsel %vm515_vm6, %v511_v27, %v519_v22  ;;  %v863_v28 = vadd.f32 %v859_v29, %v858_v18  ;;  %v864_v16 = vadd.f32 %v860_v26, %v858_v18  ;;  %v529_v61 = vrot.slane %v522_v19, 7 }
 0x2ef   :  { %v1527_v4 = vadd.f32 %v1526_v62, %v1525_v30  ;;  %v524_v13 = vsel %vm516_vm7, %v512_v56, %v520_v20  ;;  %v531_v8 = vrot.slane %v523_v35, 6  ;;  %v521_v51 = vsel %vm513_vm8, %v509_v7, %v517_v9 }
 0x2f0   :  { %v1551_v0 = vadd.f32 %v1550_v46, %v1549_v1  ;;  %v865_v45 = vadd.f32 %v861_v2, %v858_v18  ;;  %v866_v60 = vadd.f32 %v862_v47, %v858_v18  ;;  %v530_v50 = vsel %vm447_vm1, %v529_v61, %v521_v51 }
 0x2f1   :  { %6094 = vpush %v1527_v4  ;;  %v533_v42 = vrot.slane %v524_v13, 5  ;;  %vm868_vm9 = vcmp.ge.f32.partialorder %v864_v16, 0.0  ;;  %v871_v59 = vmul.f32 0.01, %v863_v28  ;;  %v532_v63 = vsel %vm450_vm2, %v531_v8, %v530_v50 }
 0x2f2   :  { %v1552_v11 = vrot.slane %v1551_v0, 1  ;;  %vm869_vm10 = vcmp.ge.f32.partialorder %v865_v45, 0.0  ;;  %vm870_vm11 = vcmp.ge.f32.partialorder %v866_v60, 0.0  ;;  %v872_v3 = vmul.f32 0.01, %v864_v16 }
 0x2f3   :  { %v534_v53 = vsel %vm453_vm3, %v533_v42, %v532_v63  ;;  %v873_v36 = vmul.f32 0.01, %v865_v45  ;;  %v874_v6 = vmul.f32 0.01, %v866_v60  ;;  %vm867_vm12 = vcmp.ge.f32.partialorder %v863_v28, 0.0 }
 0x2f4   :  { %535 = vrot.lane.b32.xlu1 %v534_v53, %s6314_s6  ;;  %v1553_v23 = vadd.f32 %v1552_v11, %v1551_v0  ;;  %v876_v15 = vsel %vm868_vm9, %v864_v16, %v872_v3  ;;  %v875_v32 = vsel %vm867_vm12, %v863_v28, %v871_v59  ;;  %v1208_v26 = vstv %s5116_s22  ;;  %s5358_s22 = sld [smem:[#allocation12 + $0x51]] }
 0x2f5   :  { %v877_v34 = vsel %vm869_vm10, %v865_v45, %v873_v36  ;;  %v878_v54 = vsel %vm870_vm11, %v866_v60, %v874_v6  ;;  %v883_v38 = vrot.slane %v876_v15, 7  ;;  %v1211_v7 = vstv %s5117_s23  ;;  %s5293_s23 = sld [smem:[#allocation12 + $0x3f]] }
 0x2f6   :  { %6096 = vpush %v1553_v23  ;;  %v885_v12 = vrot.slane %v877_v34, 6  ;;  %v887_v57 = vrot.slane %v878_v54, 5  ;;  %v1562_v59 = vstv %s5129_s26  ;;  %v1565_v53 = vstv %s5130_s2  ;;  %s5492_s26 = sld [smem:[#allocation12 + $0x79]] }
 0x2f7   :  { %v884_v43 = vsel %vm447_vm1, %v883_v38, %v875_v32  ;;  %vm538_vm9 = vcmask 830480   ;;  %s5359_s2 = sld [smem:[#allocation12 + $0x52]] }
 0x2f8   :  { %v886_v25 = vsel %vm450_vm2, %v885_v12, %v884_v43 }
 0x2f9   :  { %v888_v39 = vsel %vm453_vm3, %v887_v57, %v886_v25 }
 0x2fa   :  { %889 = vrot.lane.b32.xlu0 %v888_v39, %s6314_s6 }
 0x2fe   :  { %s6091_s20 = spop %6090 }
 0x2ff   :  { %v1175_v37 = vstv %s6091_s20  ;;  %s5291_s20 = sld [smem:[#allocation12 + $0x3d]] }
 0x300   :  { %v1202_v24 = vmul.f32 0.0025, %v1175_v37  ;;  %s6093_s21 = spop %6092 }
 0x301   :  { %v1201_v14 = vstv %s6093_s21  ;;  %s5292_s21 = sld [smem:[#allocation12 + $0x3e]] }
 0x302   :  { %v1204_v33 = vmul.f32 %v1202_v24, %v1202_v24  ;;  %v1203_v55 = vmul.f32 0.0025, %v1201_v14 }
 0x304   :  { %v1205_v48 = vsub.f32 %v1203_v55, %v1204_v33 }
 0x306   :  { %v1206_v29 = vadd.f32 1e-05, %v1205_v48 }
 0x308   :  { %6150 = vrsqrt.f32 %v1206_v29 }
 0x315   :  { %v6151_v1 = vpop.eup %6150 }
 0x316   :  { %v1209_v31 = vmul.f32 %v6151_v1, %v1208_v26  ;;  %v1613_v26 = vstv %s5131_s5  ;;  %v1621_v1 = vstv %s5132_s27  ;;  %s5559_s5 = sld [smem:[#allocation12 + $0x8d]] }
 0x317   :  { %s5360_s27 = sld [smem:[#allocation12 + $0x53]] }
 0x318   :  { %v1210_v5 = vmul.f32 %v1209_v31, %v1202_v24  ;;  %v1213_v27 = vmul.f32 %v1209_v31, %v7120_v52  ;;  %v1214_v18 = vmul.f32 %v1209_v31, %v7110_v17  ;;  %v1215_v2 = vmul.f32 %v1209_v31, %v7113_v40 }
 0x319   :  { %v1216_v30 = vmul.f32 %v1209_v31, %v7129_v49 }
 0x31a   :  { %v1212_v56 = vsub.f32 %v1211_v7, %v1210_v5 }
 0x31c   :  { %v1217_v9 = vadd.f32 %v1213_v27, %v1212_v56  ;;  %v1218_v47 = vadd.f32 %v1214_v18, %v1212_v56  ;;  %v1219_v41 = vadd.f32 %v1215_v2, %v1212_v56  ;;  %v1220_v22 = vadd.f32 %v1216_v30, %v1212_v56 }
 0x31d   :  { %v1848_v56 = vstv %s5152_s29  ;;  %v1629_v18 = vstv %s5133_s30  ;;  %s5561_s29 = sld [smem:[#allocation12 + $0x8f]] }
 0x31e   :  { %vm1222_vm13 = vcmp.ge.f32.partialorder %v1218_v47, 0.0  ;;  %vm1223_vm14 = vcmp.ge.f32.partialorder %v1219_v41, 0.0  ;;  %vm1224_vm15 = vcmp.ge.f32.partialorder %v1220_v22, 0.0  ;;  %v1225_v62 = vmul.f32 0.01, %v1217_v9  ;;  %s5361_s30 = sld [smem:[#allocation12 + $0x54]] }
 0x31f   :  { %v1226_v20 = vmul.f32 0.01, %v1218_v47  ;;  %v1227_v46 = vmul.f32 0.01, %v1219_v41  ;;  %vm1221_vm0 = vcmp.ge.f32.partialorder %v1217_v9, 0.0 }
 0x320   :  { %v1228_v19 = vmul.f32 0.01, %v1220_v22  ;;  %v1229_v49 = vsel %vm1221_vm0, %v1217_v9, %v1225_v62  ;;  %v1856_v9 = vstv %s5153_s16  ;;  %s5562_s16 = sld [smem:[#allocation12 + $0x90]] }
 0x321   :  { %v1230_v52 = vsel %vm1222_vm13, %v1218_v47, %v1226_v20  ;;  %v1231_v35 = vsel %vm1223_vm14, %v1219_v41, %v1227_v46  ;;  %v1637_v47 = vstv %s5134_s17  ;;  %v1872_v20 = vstv %s5155_s18  ;;  %s5426_s17 = sld [smem:[#allocation12 + $0x66]] }
 0x322   :  { %s6095_s24 = spop %6094  ;;  %v1232_v17 = vsel %vm1224_vm15, %v1220_v22, %v1228_v19  ;;  %v1237_v28 = vrot.slane %v1230_v52, 7  ;;  %v1239_v40 = vrot.slane %v1231_v35, 6  ;;  %v2392_v52 = vstv %s5224_s7  ;;  %s5136_s18 = sld [smem:[#allocation12 + $0x6]] }
 0x323   :  { %v1529_v16 = vstv %s6095_s24  ;;  %v1241_v61 = vrot.slane %v1232_v17, 5  ;;  %v2400_v35 = vstv %s5225_s8  ;;  %s5425_s24 = sld [smem:[#allocation12 + $0x65]]  ;;  %vm2077_vm14 = vcmask 801792  }
 0x324   :  { %v1556_v4 = vmul.f32 0.0025, %v1529_v16  ;;  %v1238_v13 = vsel %vm447_vm1, %v1237_v28, %v1229_v49  ;;  %v2416_v16 = vstv %s5227_s1  ;;  %s5428_s7 = sld [smem:[#allocation12 + $0x68]] }
 0x325   :  { %v1240_v8 = vsel %vm450_vm2, %v1239_v40, %v1238_v13  ;;  %v2408_v40 = vstv %s5226_s19  ;;  %v2784_v13 = vstv %s5291_s20  ;;  %s5157_s8 = sld [smem:[#allocation12 + $0x1a]] }
 0x326   :  { %v1242_v51 = vsel %vm453_vm3, %v1241_v61, %v1240_v8  ;;  %v1558_v0 = vmul.f32 %v1556_v4, %v1556_v4  ;;  %v2792_v61 = vstv %s5292_s21  ;;  %s5493_s19 = sld [smem:[#allocation12 + $0x7a]] }
 0x327   :  { %s6097_s25 = spop %6096  ;;  %1243 = vrot.lane.b32.xlu1 %v1242_v51, %s6314_s6  ;;  %s5158_s1 = sld [smem:[#allocation12 + $0x1b]] }
 0x328   :  { %v1555_v45 = vstv %s6097_s25  ;;  %s5294_s25 = sld [smem:[#allocation12 + $0x40]] }
 0x329   :  { %v1557_v60 = vmul.f32 0.0025, %v1555_v45  ;;  %v2800_v45 = vstv %s5293_s23  ;;  %s5494_s20 = sld [smem:[#allocation12 + $0x7b]] }
 0x32a   :  { %s5159_s21 = sld [smem:[#allocation12 + $0x1c]] }
 0x32b   :  { %v1559_v50 = vsub.f32 %v1557_v60, %v1558_v0  ;;  %v3176_v0 = vstv %s5358_s22  ;;  %s5495_s22 = sld [smem:[#allocation12 + $0x7c]] }
 0x32c   :  { %s5141_s23 = sld [smem:[#allocation12 + $0xb]] }
 0x32d   :  { %v1560_v42 = vadd.f32 1e-05, %v1559_v50 }
 0x32f   :  { %6152 = vrsqrt.f32 %v1560_v42  ;;  %v3568_v42 = vstv %s5425_s24  ;;  %s5560_s24 = sld [smem:[#allocation12 + $0x8e]] }
 0x33c   :  { %v6153_v63 = vpop.eup %6152 }
 0x33d   :  { %v1563_v11 = vmul.f32 %v6153_v63, %v1562_v59  ;;  %v2808_v59 = vstv %s5294_s25  ;;  %s5162_s25 = sld [smem:[#allocation12 + $0x1f]] }
 0x33f   :  { %v1564_v3 = vmul.f32 %v1563_v11, %v1556_v4  ;;  %v1567_v36 = vmul.f32 %v1563_v11, %v7170_v58  ;;  %v1568_v23 = vmul.f32 %v1563_v11, %v7164_v44  ;;  %v1569_v15 = vmul.f32 %v1563_v11, %v7168_v21 }
 0x340   :  { %v1570_v34 = vmul.f32 %v1563_v11, %v7180_v10 }
 0x341   :  { %v1566_v6 = vsub.f32 %v1565_v53, %v1564_v3  ;;  %v3960_v53 = vstv %s5492_s26  ;;  %v3184_v3 = vstv %s5359_s2  ;;  %s5137_s26 = sld [smem:[#allocation12 + $0x7]] }
 0x342   :  { %s5163_s2 = sld [smem:[#allocation12 + $0x20]] }
 0x343   :  { %v1571_v54 = vadd.f32 %v1567_v36, %v1566_v6  ;;  %v1572_v38 = vadd.f32 %v1568_v23, %v1566_v6  ;;  %v1573_v12 = vadd.f32 %v1569_v15, %v1566_v6  ;;  %v1574_v32 = vadd.f32 %v1570_v34, %v1566_v6 }
 0x344   :  { %v4352_v23 = vstv %s5559_s5  ;;  %v3192_v15 = vstv %s5360_s27  ;;  %s5138_s5 = sld [smem:[#allocation12 + $0x8]] }
 0x345   :  { %vm1576_vm5 = vcmp.ge.f32.partialorder %v1572_v38, 0.0  ;;  %vm1577_vm6 = vcmp.ge.f32.partialorder %v1573_v12, 0.0  ;;  %vm1578_vm7 = vcmp.ge.f32.partialorder %v1574_v32, 0.0  ;;  %v1579_v43 = vmul.f32 0.01, %v1571_v54  ;;  %s5164_s27 = sld [smem:[#allocation12 + $0x21]] }
 0x346   :  { %v1580_v57 = vmul.f32 0.01, %v1572_v38  ;;  %v1581_v25 = vmul.f32 0.01, %v1573_v12  ;;  %vm1575_vm8 = vcmp.ge.f32.partialorder %v1571_v54, 0.0 }
 0x347   :  { %v1582_v39 = vmul.f32 0.01, %v1574_v32  ;;  %v1583_v21 = vsel %vm1575_vm8, %v1571_v54, %v1579_v43 }
 0x348   :  { %v1584_v58 = vsel %vm1576_vm5, %v1572_v38, %v1580_v57  ;;  %v1585_v37 = vsel %vm1577_vm6, %v1573_v12, %v1581_v25  ;;  %v4368_v38 = vstv %s5561_s29  ;;  %v3200_v12 = vstv %s5361_s30  ;;  %s5139_s29 = sld [smem:[#allocation12 + $0x9]] }
 0x349   :  { %v1586_v24 = vsel %vm1578_vm7, %v1574_v32, %v1582_v39  ;;  %v1591_v44 = vrot.slane %v1584_v58, 7  ;;  %v1593_v14 = vrot.slane %v1585_v37, 6  ;;  %v4376_v25 = vstv %s5562_s16  ;;  %s5160_s30 = sld [smem:[#allocation12 + $0x1d]] }
 0x34a   :  { %v1595_v33 = vrot.slane %v1586_v24, 5  ;;  %v3576_v39 = vstv %s5426_s17  ;;  %s5146_s16 = sld [smem:[#allocation12 + $0x10]]  ;;  %vm4821_vm5 = vcmask 1045504   ;;  %vm4817_vm7 = vcmask 769024  }
 0x34b   :  { %v1592_v10 = vsel %vm447_vm1, %v1591_v44, %v1583_v21  ;;  %s5142_s17 = sld [smem:[#allocation12 + $0xc]]  ;;  %vm2081_vm1 = vcmask 1041408  }
 0x34c   :  { %v1594_v55 = vsel %vm450_vm2, %v1593_v14, %v1592_v10  ;;  %v1649_v14 = vstv %s5136_s18  ;;  %s5143_s18 = sld [smem:[#allocation12 + $0xd]] }
 0x34d   :  { %v1596_v48 = vsel %vm453_vm3, %v1595_v33, %v1594_v55  ;;  %v3592_v33 = vstv %s5428_s7  ;;  %v1884_v55 = vstv %s5157_s8  ;;  %s5168_s7 = sld [smem:[#allocation12 + $0x25]]  ;;  %vm6320_vm3 = vmmov 0  }
 0x34e   :  { %1597 = vrot.lane.b32.xlu1 %v1596_v48, %s6314_s6  ;;  %s5154_s6 = sld [smem:[#allocation12 + $0x17]] }
 0x34f   :  { %s5144_s8 = sld [smem:[#allocation12 + $0xe]] }
 0x354   :  { %v1864_v62 = vstv %s5154_s6  ;;  %s5427_s6 = sld [smem:[#allocation12 + $0x67]] }
 0x35a   :  { %v3584_v44 = vstv %s5427_s6  ;;  %s5167_s6 = sld [smem:[#allocation12 + $0x24]] }
 0x366   :  { %v536_v29 = vpop.permute.xlu1 %535 }
 0x367   :  { %539 = vst.msk [vmem:[#allocation3] sm:$0xf] %vm538_vm9, %v536_v29 }
 0x36c   :  { %v890_v31 = vpop.permute.xlu0 %889 }
 0x36d   :  { %893 = vst.msk [vmem:[#allocation3 + $0x4] sm:$0xf] %vm538_vm9, %v890_v31 }
 0x36e   :  { %v7225_v7 = vld [vmem:[#allocation3] sm:$0xf] }
 0x36f   :  { %v1614_v5 = vmul.f32 %v1613_v26, %v7225_v7  ;;  %v1622_v27 = vmul.f32 %v1621_v1, %v7225_v7  ;;  %v1849_v2 = vmul.f32 %v1848_v56, %v7225_v7  ;;  %v1630_v30 = vmul.f32 %v1629_v18, %v7225_v7 }
 0x370   :  { %v1857_v41 = vmul.f32 %v1856_v9, %v7225_v7  ;;  %v1638_v22 = vmul.f32 %v1637_v47, %v7225_v7  ;;  %v1865_v46 = vmul.f32 %v1864_v62, %v7225_v7  ;;  %v1873_v19 = vmul.f32 %v1872_v20, %v7225_v7 }
 0x371   :  { %1616 = vrot.lane.b32.xlu0 %v1614_v5, %s6316_s0  ;;  %1624 = vrot.lane.b32.xlu1 %v1622_v27, %s6317_s3  ;;  %v2393_v17 = vmul.f32 %v2392_v52, %v7225_v7  ;;  %v2401_v28 = vmul.f32 %v2400_v35, %v7225_v7  ;;  %v2409_v49 = vmul.f32 %v2408_v40, %v7225_v7  ;;  %v3968_v26 = vstv %s5493_s19  ;;  %s5169_s19 = sld [smem:[#allocation12 + $0x26]] }
 0x372   :  { %v2417_v4 = vmul.f32 %v2416_v16, %v7225_v7  ;;  %v2785_v8 = vmul.f32 %v2784_v13, %v7225_v7  ;;  %v2793_v51 = vmul.f32 %v2792_v61, %v7225_v7  ;;  %v3177_v60 = vmul.f32 %v3176_v0, %v7225_v7 }
 0x373   :  { %v2801_v50 = vmul.f32 %v2800_v45, %v7225_v7  ;;  %v3569_v63 = vmul.f32 %v3568_v42, %v7225_v7  ;;  %v2809_v11 = vmul.f32 %v2808_v59, %v7225_v7  ;;  %v3961_v36 = vmul.f32 %v3960_v53, %v7225_v7 }
 0x374   :  { %v3185_v6 = vmul.f32 %v3184_v3, %v7225_v7  ;;  %v4353_v34 = vmul.f32 %v4352_v23, %v7225_v7  ;;  %v3193_v54 = vmul.f32 %v3192_v15, %v7225_v7  ;;  %v4369_v43 = vmul.f32 %v4368_v38, %v7225_v7  ;;  %v7279_v24 = vld [vmem:[#allocation3 + $0x4] sm:$0xf] }
 0x375   :  { %1851 = vrot.lane.b32.xlu0 %v1849_v2, %s6316_s0  ;;  %1632 = vrot.lane.b32.xlu1 %v1630_v30, %s6318_s4  ;;  %v3201_v57 = vmul.f32 %v3200_v12, %v7225_v7  ;;  %v4377_v58 = vmul.f32 %v4376_v25, %v7225_v7  ;;  %v3577_v37 = vmul.f32 %v3576_v39, %v7225_v7  ;;  %v1892_v1 = vstv %s5158_s1  ;;  %s5165_s1 = sld [smem:[#allocation12 + $0x22]] }
 0x376   :  { %v3585_v21 = vmul.f32 %v3584_v44, %v7225_v7  ;;  %v1650_v10 = vmul.f32 %v1649_v14, %v7279_v24  ;;  %v3593_v48 = vmul.f32 %v3592_v33, %v7225_v7  ;;  %v1885_v29 = vmul.f32 %v1884_v55, %v7279_v24 }
 0x377   :  { %v3969_v31 = vmul.f32 %v3968_v26, %v7225_v7  ;;  %v1893_v5 = vmul.f32 %v1892_v1, %v7279_v24  ;;  %v3976_v27 = vstv %s5494_s20  ;;  %v1900_v56 = vstv %s5159_s21  ;;  %s5229_s20 = sld [smem:[#allocation12 + $0x2e]] }
 0x378   :  { %v3977_v18 = vmul.f32 %v3976_v27, %v7225_v7  ;;  %v1901_v2 = vmul.f32 %v1900_v56, %v7279_v24  ;;  %v3984_v9 = vstv %s5495_s22  ;;  %v1685_v47 = vstv %s5141_s23  ;;  %s5147_s21 = sld [smem:[#allocation12 + $0x11]] }
 0x379   :  { %1859 = vrot.lane.b32.xlu0 %v1857_v41, %s6317_s3  ;;  %1640 = vrot.lane.b32.xlu1 %v1638_v22, %s6319_s28  ;;  %v3985_v41 = vmul.f32 %v3984_v9, %v7225_v7  ;;  %v4360_v62 = vstv %s5560_s24  ;;  %v1920_v20 = vstv %s5162_s25  ;;  %s5231_s22 = sld [smem:[#allocation12 + $0x30]] }
 0x37a   :  { %v1657_v52 = vstv %s5137_s26  ;;  %v1928_v35 = vstv %s5163_s2  ;;  %v1665_v40 = vstv %s5138_s5  ;;  %v1936_v16 = vstv %s5164_s27  ;;  %s5148_s23 = sld [smem:[#allocation12 + $0x12]] }
 0x37b   :  { %v1673_v61 = vstv %s5139_s29  ;;  %v1721_v0 = vstv %s5146_s16  ;;  %v1956_v59 = vstv %s5167_s6  ;;  %v1964_v3 = vstv %s5168_s7  ;;  %s5234_s24 = sld [smem:[#allocation12 + $0x33]] }
 0x37c   :  { %v1972_v15 = vstv %s5169_s19  ;;  %s5149_s25 = sld [smem:[#allocation12 + $0x13]] }
 0x37d   :  { %1867 = vrot.lane.b32.xlu0 %v1865_v46, %s6318_s4  ;;  %1875 = vrot.lane.b32.xlu1 %v1873_v19, %s6319_s28  ;;  %v4361_v46 = vmul.f32 %v4360_v62, %v7225_v7  ;;  %v2428_v12 = vstv %s5229_s20  ;;  %s5236_s26 = sld [smem:[#allocation12 + $0x35]] }
 0x37e   :  { %s5170_s2 = sld [smem:[#allocation12 + $0x27]] }
 0x37f   :  { %v2444_v25 = vstv %s5231_s22  ;;  %s5239_s5 = sld [smem:[#allocation12 + $0x38]] }
 0x380   :  { %s5230_s27 = sld [smem:[#allocation12 + $0x2f]] }
 0x381   :  { %2395 = vrot.lane.b32.xlu0 %v2393_v17, %s6316_s0  ;;  %2403 = vrot.lane.b32.xlu1 %v2401_v28, %s6317_s3  ;;  %v1658_v17 = vmul.f32 %v1657_v52, %v7279_v24  ;;  %v2464_v44 = vstv %s5234_s24  ;;  %s5240_s29 = sld [smem:[#allocation12 + $0x39]] }
 0x382   :  { %s5241_s16 = sld [smem:[#allocation12 + $0x3a]] }
 0x383   :  { %v2480_v33 = vstv %s5236_s26  ;;  %s5296_s6 = sld [smem:[#allocation12 + $0x42]] }
 0x384   :  { %v1980_v26 = vstv %s5170_s2  ;;  %s5298_s7 = sld [smem:[#allocation12 + $0x44]] }
 0x385   :  { %2411 = vrot.lane.b32.xlu0 %v2409_v49, %s6318_s4  ;;  %2419 = vrot.lane.b32.xlu1 %v2417_v4, %s6319_s28  ;;  %v1666_v49 = vmul.f32 %v1665_v40, %v7279_v24  ;;  %s5301_s19 = sld [smem:[#allocation12 + $0x47]] }
 0x386   :  { %s5303_s20 = sld [smem:[#allocation12 + $0x49]] }
 0x387   :  { %v2508_v9 = vstv %s5240_s29  ;;  %s5306_s22 = sld [smem:[#allocation12 + $0x4c]] }
 0x388   :  { %s5307_s24 = sld [smem:[#allocation12 + $0x4d]] }
 0x389   :  { %2787 = vrot.lane.b32.xlu0 %v2785_v8, %s6316_s0  ;;  %2795 = vrot.lane.b32.xlu1 %v2793_v51, %s6317_s3  ;;  %v1674_v8 = vmul.f32 %v1673_v61, %v7279_v24  ;;  %v1908_v51 = vstv %s5160_s30  ;;  %s5232_s30 = sld [smem:[#allocation12 + $0x31]]  ;;  %v2820_v40 = vstv %s5296_s6 }
 0x38a   :  { %v1909_v45 = vmul.f32 %v1908_v51, %v7279_v24  ;;  %v2821_v61 = vmul.f32 %v2820_v40, %v7279_v24  ;;  %s5308_s26 = sld [smem:[#allocation12 + $0x4e]] }
 0x38b   :  { %s5309_s2 = sld [smem:[#allocation12 + $0x4f]] }
 0x38c   :  { %s5365_s29 = sld [smem:[#allocation12 + $0x58]] }
 0x38d   :  { %3179 = vrot.lane.b32.xlu0 %v3177_v60, %s6316_s0  ;;  %2803 = vrot.lane.b32.xlu1 %v2801_v50, %s6318_s4  ;;  %v1693_v50 = vstv %s5142_s17  ;;  %s5235_s17 = sld [smem:[#allocation12 + $0x34]] }
 0x38e   :  { %s7449_s6 = sld [smem:[#allocation12]] }
 0x38f   :  { %v2452_v62 = vstv %s5232_s30  ;;  %s7435_s30 = sld [smem:[#allocation12 + $0x59]] }
 0x391   :  { %3571 = vrot.lane.b32.xlu0 %v3569_v63, %s6316_s0  ;;  %2811 = vrot.lane.b32.xlu1 %v2809_v11, %s6319_s28  ;;  %v1701_v11 = vstv %s5143_s18  ;;  %s5237_s18 = sld [smem:[#allocation12 + $0x36]] }
 0x395   :  { %3963 = vrot.lane.b32.xlu0 %v3961_v36, %s6316_s0  ;;  %3187 = vrot.lane.b32.xlu1 %v3185_v6, %s6317_s3  ;;  %v1709_v6 = vstv %s5144_s8  ;;  %s5242_s8 = sld [smem:[#allocation12 + $0x3b]]  ;;  %v3236_v40 = vstv %s7435_s30 }
 0x396   :  { %s7551_s30 = sld [smem:[#allocation12 + $0x71]] }
 0x399   :  { %4355 = vrot.lane.b32.xlu0 %v4353_v34, %s6316_s0  ;;  %v1244_v32 = vpop.permute.xlu1 %1243  ;;  %3195 = vrot.lane.b32.xlu1 %v3193_v54, %s6318_s4  ;;  %v1944_v54 = vstv %s5165_s1  ;;  %s5297_s1 = sld [smem:[#allocation12 + $0x43]] }
 0x39a   :  { %1247 = vst.msk [vmem:[#allocation3 + $0x8] sm:$0xf] %vm538_vm9, %v1244_v32 }
 0x39d   :  { %4371 = vrot.lane.b32.xlu0 %v4369_v43, %s6318_s4  ;;  %3203 = vrot.lane.b32.xlu1 %v3201_v57, %s6319_s28  ;;  %v1729_v43 = vstv %s5147_s21  ;;  %v2429_v57 = vmul.f32 %v2428_v12, %v7279_v24  ;;  %s5299_s21 = sld [smem:[#allocation12 + $0x45]]  ;;  %v2892_v12 = vstv %s5306_s22 }
 0x39e   :  { %s7488_s22 = sld [smem:[#allocation13 + $0x1]] }
 0x3a1   :  { %4379 = vrot.lane.b32.xlu0 %v4377_v58, %s6319_s28  ;;  %3579 = vrot.lane.b32.xlu1 %v3577_v37, %s6317_s3  ;;  %v7297_v30 = vld [vmem:[#allocation3 + $0x8] sm:$0xf]  ;;  %v1737_v58 = vstv %s5148_s23  ;;  %v2445_v37 = vmul.f32 %v2444_v25, %v7279_v24  ;;  %s5302_s23 = sld [smem:[#allocation12 + $0x48]] }
 0x3a2   :  { %v1686_v22 = vmul.f32 %v1685_v47, %v7297_v30  ;;  %v1921_v19 = vmul.f32 %v1920_v20, %v7297_v30  ;;  %v1929_v28 = vmul.f32 %v1928_v35, %v7297_v30  ;;  %v1937_v4 = vmul.f32 %v1936_v16, %v7297_v30 }
 0x3a3   :  { %v1694_v63 = vmul.f32 %v1693_v50, %v7297_v30  ;;  %v1702_v36 = vmul.f32 %v1701_v11, %v7297_v30  ;;  %v1710_v34 = vmul.f32 %v1709_v6, %v7297_v30  ;;  %v1945_v32 = vmul.f32 %v1944_v54, %v7297_v30 }
 0x3a4   :  { %v2481_v1 = vmul.f32 %v2480_v33, %v7297_v30  ;;  %v2453_v35 = vmul.f32 %v2452_v62, %v7279_v24  ;;  %v2524_v50 = vstv %s5242_s8  ;;  %v2872_v6 = vstv %s5303_s20  ;;  %s7464_s8 = sld [smem:[#allocation13]] }
 0x3a5   :  { %3587 = vrot.lane.b32.xlu1 %v3585_v21, %s6318_s4  ;;  %1652 = vrot.lane.b32.xlu0 %v1650_v10, %s6316_s0  ;;  %v1745_v21 = vstv %s5149_s25  ;;  %v2465_v10 = vmul.f32 %v2464_v44, %v7297_v30  ;;  %v2844_v54 = vstv %s5299_s21  ;;  %s5304_s25 = sld [smem:[#allocation12 + $0x4a]] }
 0x3a6   :  { %v2908_v33 = vstv %s5308_s26  ;;  %s7480_s20 = sld [smem:[#allocation12 + $0x63]] }
 0x3a7   :  { %v2864_v25 = vstv %s5302_s23  ;;  %s7486_s21 = sld [smem:[#allocation12 + $0x61]] }
 0x3a8   :  { %s7498_s23 = sld [smem:[#allocation12 + $0x6b]] }
 0x3a9   :  { %3595 = vrot.lane.b32.xlu1 %v3593_v48, %s6319_s28  ;;  %1887 = vrot.lane.b32.xlu0 %v1885_v29, %s6316_s0  ;;  %s7521_s26 = sld [smem:[#allocation12 + $0x6a]] }
 0x3ad   :  { %3971 = vrot.lane.b32.xlu1 %v3969_v31, %s6317_s3  ;;  %1895 = vrot.lane.b32.xlu0 %v1893_v5, %s6317_s3  ;;  %v2500_v31 = vstv %s5239_s5  ;;  %s5363_s5 = sld [smem:[#allocation12 + $0x56]] }
 0x3b1   :  { %3979 = vrot.lane.b32.xlu1 %v3977_v18, %s6318_s4  ;;  %1903 = vrot.lane.b32.xlu0 %v1901_v2, %s6318_s4  ;;  %v2436_v18 = vstv %s5230_s27  ;;  %s5364_s27 = sld [smem:[#allocation12 + $0x57]] }
 0x3b5   :  { %3987 = vrot.lane.b32.xlu1 %v3985_v41, %s6319_s28  ;;  %1688 = vrot.lane.b32.xlu0 %v1686_v22, %s6316_s0  ;;  %v2437_v22 = vmul.f32 %v2436_v18, %v7279_v24  ;;  %v3212_v18 = vstv %s5363_s5  ;;  %s7533_s5 = sld [smem:[#allocation12 + $0x6f]] }
 0x3b7   :  { %v3220_v62 = vstv %s5364_s27  ;;  %s7539_s27 = sld [smem:[#allocation12 + $0x6c]] }
 0x3b9   :  { %4363 = vrot.lane.b32.xlu1 %v4361_v46, %s6317_s3  ;;  %1923 = vrot.lane.b32.xlu0 %v1921_v19, %s6316_s0  ;;  %v2516_v46 = vstv %s5241_s16  ;;  %s7439_s16 = sld [smem:[#allocation12 + $0x5b]] }
 0x3bd   :  { %1660 = vrot.lane.b32.xlu1 %v1658_v17, %s6317_s3  ;;  %1931 = vrot.lane.b32.xlu0 %v1929_v28, %s6317_s3  ;;  %v2472_v17 = vstv %s5235_s17  ;;  %s7447_s17 = sld [smem:[#allocation12 + $0x5c]] }
 0x3c0   :  { %v1598_v13 = vpop.permute.xlu1 %1597 }
 0x3c1   :  { %1601 = vst.msk [vmem:[#allocation3 + $0xc] sm:$0xf] %vm538_vm9, %v1598_v13  ;;  %1668 = vrot.lane.b32.xlu1 %v1666_v49, %s6318_s4  ;;  %1939 = vrot.lane.b32.xlu0 %v1937_v4, %s6318_s4  ;;  %v2473_v4 = vmul.f32 %v2472_v17, %v7297_v30  ;;  %v2488_v13 = vstv %s5237_s18  ;;  %s7453_s18 = sld [smem:[#allocation12 + $0x5d]] }
 0x3c5   :  { %1676 = vrot.lane.b32.xlu1 %v1674_v8, %s6319_s28  ;;  %v2836_v8 = vstv %s5298_s7  ;;  %s7462_s7 = sld [smem:[#allocation12 + $0x5e]] }
 0x3c8   :  { %v7321_v60 = vld [vmem:[#allocation3 + $0xc] sm:$0xf] }
 0x3c9   :  { %v1722_v42 = vmul.f32 %v1721_v0, %v7321_v60  ;;  %1911 = vrot.lane.b32.xlu1 %v1909_v45, %s6319_s28  ;;  %v1957_v53 = vmul.f32 %v1956_v59, %v7321_v60  ;;  %v1965_v23 = vmul.f32 %v1964_v3, %v7321_v60  ;;  %v1973_v38 = vmul.f32 %v1972_v15, %v7321_v60 }
 0x3ca   :  { %v1730_v39 = vmul.f32 %v1729_v43, %v7321_v60  ;;  %v1738_v14 = vmul.f32 %v1737_v58, %v7321_v60  ;;  %v1746_v29 = vmul.f32 %v1745_v21, %v7321_v60  ;;  %v1981_v56 = vmul.f32 %v1980_v26, %v7321_v60 }
 0x3cb   :  { %1724 = vrot.lane.b32.xlu0 %v1722_v42, %s6316_s0  ;;  %v2501_v2 = vmul.f32 %v2500_v31, %v7321_v60  ;;  %v2509_v20 = vmul.f32 %v2508_v9, %v7321_v60  ;;  %v2517_v28 = vmul.f32 %v2516_v46, %v7321_v60  ;;  %v2489_v45 = vmul.f32 %v2488_v13, %v7297_v30 }
 0x3cc   :  { %v2837_v42 = vmul.f32 %v2836_v8, %v7279_v24  ;;  %v2856_v59 = vstv %s5301_s19  ;;  %v2828_v3 = vstv %s5297_s1  ;;  %v2900_v58 = vstv %s5307_s24  ;;  %s7469_s19 = sld [smem:[#allocation12 + $0x60]] }
 0x3cd   :  { %1696 = vrot.lane.b32.xlu1 %v1694_v63, %s6317_s3  ;;  %v2880_v21 = vstv %s5304_s25  ;;  %v2916_v31 = vstv %s5309_s2  ;;  %v3228_v46 = vstv %s5365_s29  ;;  %s7471_s1 = sld [smem:[#allocation12 + $0x14]] }
 0x3ce   :  { %v3248_v13 = vstv %s7439_s16  ;;  %s7504_s24 = sld [smem:[#allocation12 + $0x62]] }
 0x3cf   :  { %1959 = vrot.lane.b32.xlu0 %v1957_v53, %s6316_s0  ;;  %v2525_v53 = vmul.f32 %v2524_v50, %v7321_v60  ;;  %v3256_v50 = vstv %s7447_s17  ;;  %s7514_s25 = sld [smem:[#allocation12 + $0x6d]] }
 0x3d0   :  { %s7524_s2 = sld [smem:[#allocation12 + $0x5]] }
 0x3d1   :  { %1704 = vrot.lane.b32.xlu1 %v1702_v36, %s6318_s4  ;;  %v2857_v36 = vmul.f32 %v2856_v59, %v7297_v30  ;;  %v3249_v59 = vmul.f32 %v3248_v13, %v7297_v30  ;;  %s7541_s29 = sld [smem:[#allocation12 + $0x19]] }
 0x3d2   :  { %s7558_s16 = sld [smem:[#allocation12 + $0x70]] }
 0x3d3   :  { %1967 = vrot.lane.b32.xlu0 %v1965_v23, %s6317_s3  ;;  %s7568_s17 = sld [smem:[#allocation12 + $0x77]] }
 0x3d5   :  { %1712 = vrot.lane.b32.xlu1 %v1710_v34, %s6319_s28  ;;  %v2829_v34 = vmul.f32 %v2828_v3, %v7279_v24 }
 0x3d7   :  { %1975 = vrot.lane.b32.xlu0 %v1973_v38, %s6318_s4  ;;  %v2873_v38 = vmul.f32 %v2872_v6, %v7297_v30  ;;  %v3257_v6 = vmul.f32 %v3256_v50, %v7297_v30 }
 0x3d9   :  { %1947 = vrot.lane.b32.xlu1 %v1945_v32, %s6319_s28 }
 0x3db   :  { %2431 = vrot.lane.b32.xlu0 %v2429_v57, %s6316_s0  ;;  %v2845_v57 = vmul.f32 %v2844_v54, %v7279_v24  ;;  %v3272_v54 = vstv %s7462_s7  ;;  %s7585_s7 = sld [smem:[#allocation12 + $0x7f]] }
 0x3dd   :  { %1732 = vrot.lane.b32.xlu1 %v1730_v39, %s6317_s3  ;;  %v2893_v39 = vmul.f32 %v2892_v12, %v7321_v60 }
 0x3df   :  { %2447 = vrot.lane.b32.xlu0 %v2445_v37, %s6318_s4 }
 0x3e1   :  { %1740 = vrot.lane.b32.xlu1 %v1738_v14, %s6318_s4  ;;  %v2865_v14 = vmul.f32 %v2864_v25, %v7297_v30  ;;  %v1844_v25 = vstv %s7471_s1  ;;  %s7601_s1 = sld [smem:[#allocation12 + $0x81]] }
 0x3e3   :  { %2467 = vrot.lane.b32.xlu0 %v2465_v10, %s6316_s0  ;;  %v7350_v55 = vpop.permute.xlu1 %1624  ;;  %v7352_v48 = vpop.permute.xlu0 %1616  ;;  %v2901_v10 = vmul.f32 %v2900_v58, %v7321_v60 }
 0x3e5   :  { %1748 = vrot.lane.b32.xlu1 %v1746_v29, %s6319_s28 }
 0x3e7   :  { %2483 = vrot.lane.b32.xlu0 %v2481_v1, %s6318_s4  ;;  %v7358_v5 = vpop.permute.xlu1 %1632  ;;  %v7360_v27 = vpop.permute.xlu0 %1851  ;;  %v2881_v1 = vmul.f32 %v2880_v21, %v7297_v30 }
 0x3e9   :  { %1983 = vrot.lane.b32.xlu1 %v1981_v56, %s6319_s28  ;;  %v2909_v56 = vmul.f32 %v2908_v33, %v7321_v60 }
 0x3eb   :  { %2503 = vrot.lane.b32.xlu0 %v2501_v2, %s6316_s0  ;;  %v7366_v47 = vpop.permute.xlu1 %1640  ;;  %v7368_v41 = vpop.permute.xlu0 %1859 }
 0x3ed   :  { %2439 = vrot.lane.b32.xlu1 %v2437_v22, %s6317_s3  ;;  %v2917_v22 = vmul.f32 %v2916_v31, %v7321_v60  ;;  %v1845_v31 = vmul.f32 %v1844_v25, %v7225_v7 }
 0x3ef   :  { %2511 = vrot.lane.b32.xlu0 %v2509_v20, %s6317_s3  ;;  %v7374_v19 = vpop.permute.xlu1 %1875  ;;  %v7376_v52 = vpop.permute.xlu0 %1867  ;;  %v3213_v20 = vmul.f32 %v3212_v18, %v7279_v24  ;;  %v1842_v18 = vstv %s7488_s22  ;;  %s7624_s22 = sld [smem:[#allocation12 + $0x76]] }
 0x3f1   :  { %2455 = vrot.lane.b32.xlu1 %v2453_v35, %s6319_s28 }
 0x3f3   :  { %2519 = vrot.lane.b32.xlu0 %v2517_v28, %s6318_s4  ;;  %v7382_v16 = vpop.permute.xlu1 %2403  ;;  %v7384_v49 = vpop.permute.xlu0 %2395  ;;  %v3221_v28 = vmul.f32 %v3220_v62, %v7279_v24 }
 0x3f5   :  { %2475 = vrot.lane.b32.xlu1 %v2473_v4, %s6317_s3  ;;  %v3229_v4 = vmul.f32 %v3228_v46, %v7279_v24  ;;  %v3612_v46 = vstv %s7498_s23  ;;  %s7626_s23 = sld [smem:[#allocation12 + $0x28]] }
 0x3f7   :  { %2823 = vrot.lane.b32.xlu0 %v2821_v61, %s6316_s0  ;;  %v7390_v51 = vpop.permute.xlu1 %2419  ;;  %v7392_v0 = vpop.permute.xlu0 %2411 }
 0x3f9   :  { %2491 = vrot.lane.b32.xlu1 %v2489_v45, %s6319_s28  ;;  %v3237_v45 = vmul.f32 %v3236_v40, %v7279_v24  ;;  %v3300_v40 = vstv %s7504_s24  ;;  %s7632_s24 = sld [smem:[#allocation12 + $0x85]] }
 0x3fb   :  { %2839 = vrot.lane.b32.xlu0 %v2837_v42, %s6318_s4  ;;  %v7398_v63 = vpop.permute.xlu1 %2795  ;;  %v7400_v11 = vpop.permute.xlu0 %2787  ;;  %v1609_v42 = vstv %s7449_s6  ;;  %s7574_s6 = sld [smem:[#allocation12 + $0xa]] }
 0x3fd   :  { %2527 = vrot.lane.b32.xlu1 %v2525_v53, %s6319_s28  ;;  %v3264_v53 = vstv %s7453_s18  ;;  %s7578_s18 = sld [smem:[#allocation12 + $0x72]] }
 0x3fe   :  { %v3265_v12 = vmul.f32 %v3264_v53, %v7297_v30 }
 0x3ff   :  { %2859 = vrot.lane.b32.xlu0 %v2857_v36, %s6316_s0  ;;  %v7406_v23 = vpop.permute.xlu1 %2803  ;;  %v7408_v15 = vpop.permute.xlu0 %3179 }
 0x401   :  { %2831 = vrot.lane.b32.xlu1 %v2829_v34, %s6317_s3  ;;  %v1610_v34 = vmul.f32 %v1609_v42, %v7225_v7  ;;  %v3301_v42 = vmul.f32 %v3300_v40, %v7321_v60  ;;  %v3700_v40 = vstv %s7568_s17  ;;  %s7684_s17 = sld [smem:[#allocation12 + $0x92]] }
 0x403   :  { %2875 = vrot.lane.b32.xlu0 %v2873_v38, %s6318_s4  ;;  %v7414_v32 = vpop.permute.xlu1 %2811  ;;  %v7416_v43 = vpop.permute.xlu0 %3571  ;;  %v1607_v38 = vstv %s7464_s8  ;;  %s7589_s8 = sld [smem:[#allocation12 + $0x1e]] }
 0x404   :  { %v1611_v21 = vadd.f32 %v1610_v34, %v1607_v38  ;;  %v1645_v34 = vstv %s7524_s2  ;;  %s7643_s2 = sld [smem:[#allocation13 + $0x2]] }
 0x405   :  { %2847 = vrot.lane.b32.xlu1 %v2845_v57, %s6319_s28  ;;  %v3284_v57 = vstv %s7469_s19  ;;  %v1646_v25 = vmul.f32 %v1645_v34, %v7279_v24  ;;  %s7594_s19 = sld [smem:[#allocation12 + $0x74]] }
 0x406   :  { %v3285_v33 = vmul.f32 %v3284_v57, %v7321_v60 }
 0x407   :  { %2895 = vrot.lane.b32.xlu0 %v2893_v39, %s6316_s0  ;;  %v7422_v37 = vpop.permute.xlu1 %3187  ;;  %v7424_v44 = vpop.permute.xlu0 %3963 }
 0x409   :  { %2867 = vrot.lane.b32.xlu1 %v2865_v14, %s6317_s3  ;;  %v3273_v14 = vmul.f32 %v3272_v54, %v7297_v30 }
 0x40b   :  { %2903 = vrot.lane.b32.xlu0 %v2901_v10, %s6317_s3  ;;  %v7430_v29 = vpop.permute.xlu1 %3195  ;;  %v7432_v26 = vpop.permute.xlu0 %4355  ;;  %v3308_v10 = vstv %s7480_s20  ;;  %s7608_s20 = sld [smem:[#allocation12 + $0x75]] }
 0x40d   :  { %2883 = vrot.lane.b32.xlu1 %v2881_v1, %s6319_s28  ;;  %v1619_v1 = vadd.f32 %v7352_v48, %v1611_v21 }
 0x40f   :  { %2911 = vrot.lane.b32.xlu0 %v2909_v56, %s6318_s4  ;;  %v7442_v2 = vpop.permute.xlu1 %3203  ;;  %v7444_v9 = vpop.permute.xlu0 %4371  ;;  %v3292_v56 = vstv %s7486_s21  ;;  %v1627_v48 = vadd.f32 %v7350_v55, %v1619_v1  ;;  %v3628_v55 = vstv %s7514_s25  ;;  %v3656_v1 = vstv %s7551_s30  ;;  %s7615_s21 = sld [smem:[#allocation12 + $0x83]] }
 0x410   :  { %v3293_v7 = vmul.f32 %v3292_v56, %v7321_v60  ;;  %v3629_v54 = vmul.f32 %v3628_v55, %v7279_v24  ;;  %s7638_s25 = sld [smem:[#allocation12 + $0xf]] }
 0x411   :  { %2919 = vrot.lane.b32.xlu1 %v2917_v22, %s6319_s28  ;;  %s7665_s30 = sld [smem:[#allocation12 + $0x89]] }
 0x413   :  { %3215 = vrot.lane.b32.xlu0 %v3213_v20, %s6316_s0  ;;  %v7456_v35 = vpop.permute.xlu1 %3579  ;;  %v7458_v17 = vpop.permute.xlu0 %4379  ;;  %v3309_v20 = vmul.f32 %v3308_v10, %v7321_v60 }
 0x415   :  { %3223 = vrot.lane.b32.xlu1 %v3221_v28, %s6317_s3  ;;  %v1846_v28 = vadd.f32 %v1845_v31, %v1842_v18 }
 0x417   :  { %3231 = vrot.lane.b32.xlu0 %v3229_v4, %s6318_s4  ;;  %v7474_v61 = vpop.permute.xlu1 %3587  ;;  %v7476_v8 = vpop.permute.xlu0 %1652  ;;  %v1854_v50 = vadd.f32 %v7360_v27, %v1846_v28 }
 0x419   :  { %3239 = vrot.lane.b32.xlu1 %v3237_v45, %s6319_s28  ;;  %v3613_v45 = vmul.f32 %v3612_v46, %v7279_v24  ;;  %v1862_v53 = vadd.f32 %v7368_v41, %v1854_v50 }
 0x41b   :  { %3251 = vrot.lane.b32.xlu0 %v3249_v59, %s6316_s0  ;;  %v7491_v3 = vpop.permute.xlu1 %3595  ;;  %v7493_v36 = vpop.permute.xlu0 %1887  ;;  %v1635_v59 = vadd.f32 %v7358_v5, %v1627_v48  ;;  %v3640_v5 = vstv %s7533_s5  ;;  %s7648_s5 = sld [smem:[#allocation12 + $0x88]] }
 0x41c   :  { %v3641_v21 = vmul.f32 %v3640_v5, %v7297_v30  ;;  %v1916_v5 = vstv %s7589_s8  ;;  %s7711_s8 = sld [smem:[#allocation12 + $0x2d]] }
 0x41d   :  { %3259 = vrot.lane.b32.xlu1 %v3257_v6, %s6317_s3  ;;  %v3604_v6 = vstv %s7521_s26  ;;  %v1643_v38 = vadd.f32 %v7366_v47, %v1635_v59  ;;  %v1880_v47 = vstv %s7541_s29  ;;  %s7641_s26 = sld [smem:[#allocation12 + $0x7e]] }
 0x41e   :  { %v3605_v57 = vmul.f32 %v3604_v6, %v7279_v24  ;;  %v1881_v18 = vmul.f32 %v1880_v47, %v7279_v24  ;;  %s7659_s29 = sld [smem:[#allocation12 + $0x80]] }
 0x41f   :  { %3267 = vrot.lane.b32.xlu0 %v3265_v12, %s6318_s4  ;;  %v7508_v39 = vpop.permute.xlu1 %3971  ;;  %v7510_v58 = vpop.permute.xlu0 %1895  ;;  %v1870_v12 = vadd.f32 %v7376_v52, %v1862_v53  ;;  %v3701_v53 = vmul.f32 %v3700_v40, %v7321_v60  ;;  %v3692_v40 = vstv %s7624_s22  ;;  %s7736_s22 = sld [smem:[#allocation13 + $0x3]] }
 0x421   :  { %3275 = vrot.lane.b32.xlu1 %v3273_v14, %s6319_s28  ;;  %v3620_v14 = vstv %s7539_s27  ;;  %v1878_v10 = vadd.f32 %v7374_v19, %v1870_v12  ;;  %s7654_s27 = sld [smem:[#allocation12 + $0x23]] }
 0x422   :  { %v3621_v31 = vmul.f32 %v3620_v14, %v7279_v24  ;;  %v3676_v14 = vstv %s7594_s19  ;;  %s7719_s19 = sld [smem:[#allocation12 + $0x95]] }
 0x423   :  { %3287 = vrot.lane.b32.xlu0 %v3285_v33, %s6316_s0  ;;  %v7527_v22 = vpop.permute.xlu1 %3979  ;;  %v7529_v62 = vpop.permute.xlu0 %1903  ;;  %v1647_v33 = vadd.f32 %v1646_v25, %v1643_v38  ;;  %v1882_v48 = vadd.f32 %v1881_v18, %v1878_v10  ;;  %v4004_v38 = vstv %s7585_s7  ;;  %v4020_v10 = vstv %s7601_s1  ;;  %s7709_s7 = sld [smem:[#allocation12 + $0x8a]] }
 0x424   :  { %v4005_v47 = vmul.f32 %v4004_v38, %v7279_v24  ;;  %v4021_v18 = vmul.f32 %v4020_v10, %v7279_v24  ;;  %s7721_s1 = sld [smem:[#allocation12 + $0x3c]] }
 0x425   :  { %3311 = vrot.lane.b32.xlu1 %v3309_v20, %s6319_s28  ;;  %v1655_v56 = vadd.f32 %v7476_v8, %v1647_v33  ;;  %v3648_v20 = vstv %s7558_s16  ;;  %v1890_v50 = vadd.f32 %v7493_v36, %v1882_v48  ;;  %v3677_v33 = vmul.f32 %v3676_v14, %v7321_v60  ;;  %s7677_s16 = sld [smem:[#allocation12 + $0x84]] }
 0x426   :  { %v3649_v8 = vmul.f32 %v3648_v20, %v7297_v30  ;;  %v4032_v20 = vstv %s7615_s21  ;;  %s7734_s21 = sld [smem:[#allocation12 + $0x97]] }
 0x427   :  { %3295 = vrot.lane.b32.xlu0 %v3293_v7, %s6317_s3  ;;  %v7544_v4 = vpop.permute.xlu1 %3987  ;;  %v7546_v13 = vpop.permute.xlu0 %1688  ;;  %v3657_v7 = vmul.f32 %v3656_v1, %v7297_v30  ;;  %v1898_v6 = vadd.f32 %v7510_v58, %v1890_v50  ;;  %v4033_v50 = vmul.f32 %v4032_v20, %v7297_v30 }
 0x429   :  { %3615 = vrot.lane.b32.xlu1 %v3613_v45, %s6317_s3  ;;  %v1681_v45 = vstv %s7574_s6  ;;  %s7695_s6 = sld [smem:[#allocation12 + $0x86]] }
 0x42a   :  { %v1682_v34 = vmul.f32 %v1681_v45, %v7297_v30 }
 0x42b   :  { %3303 = vrot.lane.b32.xlu0 %v3301_v42, %s6318_s4  ;;  %v7562_v27 = vpop.permute.xlu1 %4363  ;;  %v7570_v41 = vpop.permute.xlu0 %1923  ;;  %v3664_v42 = vstv %s7578_s18  ;;  %s7702_s18 = sld [smem:[#allocation12 + $0x93]] }
 0x42c   :  { %v3665_v12 = vmul.f32 %v3664_v42, %v7297_v30  ;;  %v4048_v42 = vstv %s7632_s24  ;;  %s7750_s24 = sld [smem:[#allocation12 + $0x99]] }
 0x42d   :  { %3631 = vrot.lane.b32.xlu1 %v3629_v54, %s6319_s28 }
 0x42f   :  { %3607 = vrot.lane.b32.xlu0 %v3605_v57, %s6316_s0  ;;  %v1661_v52 = vpop.permute.xlu1 %1660  ;;  %v7596_v19 = vpop.permute.xlu0 %1931  ;;  %v1906_v57 = vadd.f32 %v7529_v62, %v1898_v6 }
 0x430   :  { %v1663_v28 = vadd.f32 %v1661_v52, %v1655_v56  ;;  %v1917_v52 = vmul.f32 %v1916_v5, %v7297_v30 }
 0x431   :  { %3643 = vrot.lane.b32.xlu1 %v3641_v21, %s6316_s0 }
 0x433   :  { %3623 = vrot.lane.b32.xlu0 %v3621_v31, %s6318_s4  ;;  %v1669_v46 = vpop.permute.xlu1 %1668  ;;  %v7617_v36 = vpop.permute.xlu0 %1939  ;;  %v3684_v31 = vstv %s7608_s20  ;;  %s7726_s20 = sld [smem:[#allocation12 + $0x8b]] }
 0x434   :  { %v1671_v55 = vadd.f32 %v1669_v46, %v1663_v28 }
 0x435   :  { %3659 = vrot.lane.b32.xlu1 %v3657_v7, %s6318_s4  ;;  %v3685_v7 = vmul.f32 %v3684_v31, %v7321_v60 }
 0x437   :  { %3651 = vrot.lane.b32.xlu0 %v3649_v8, %s6317_s3  ;;  %v1677_v59 = vpop.permute.xlu1 %1676  ;;  %v2388_v8 = vstv %s7626_s23  ;;  %s7741_s23 = sld [smem:[#allocation12 + $0x94]] }
 0x438   :  { %v1679_v54 = vadd.f32 %v1677_v59, %v1671_v55 }
 0x439   :  { %3703 = vrot.lane.b32.xlu1 %v3701_v53, %s6319_s28  ;;  %v7672_v53 = vld [vmem:[#allocation3] sm:$0xf] }
 0x43a   :  { %v1683_v25 = vadd.f32 %v1682_v34, %v1679_v54  ;;  %v2389_v6 = vmul.f32 %v7672_v53, %v2388_v8  ;;  %v3996_v54 = vstv %s7641_s26  ;;  %v4040_v8 = vstv %s7677_s16  ;;  %s7759_s26 = sld [smem:[#allocation12 + $0x98]] }
 0x43b   :  { %3667 = vrot.lane.b32.xlu0 %v3665_v12, %s6319_s28  ;;  %v1912_v58 = vpop.permute.xlu1 %1911  ;;  %v2386_v12 = vstv %s7643_s2  ;;  %s7773_s2 = sld [smem:[#allocation12 + $0x9a]] }
 0x43c   :  { %v1914_v21 = vadd.f32 %v1912_v58, %v1906_v57  ;;  %v1691_v28 = vadd.f32 %v7546_v13, %v1683_v25  ;;  %v3693_v13 = vmul.f32 %v3692_v40, %v7321_v60  ;;  %v4049_v57 = vmul.f32 %v4048_v42, %v7297_v30  ;;  %s5300_s16 = sld [smem:[#allocation12 + $0x46]] }
 0x43d   :  { %v7634_v62 = vpop.permute.xlu0 %1724  ;;  %4007 = vrot.lane.b32.xlu1 %v4005_v47, %s6317_s3  ;;  %v4068_v58 = vstv %s7648_s5  ;;  %s7787_s5 = sld [smem:[#allocation12 + $0x41]] }
 0x43e   :  { %v1918_v1 = vadd.f32 %v1917_v52, %v1914_v21  ;;  %v1952_v52 = vstv %s7654_s27  ;;  %v2390_v21 = vadd.f32 %v2389_v6, %v2386_v12  ;;  %s5238_s27 = sld [smem:[#allocation12 + $0x37]] }
 0x43f   :  { %3679 = vrot.lane.b32.xlu0 %v3677_v33, %s6316_s0  ;;  %v1697_v56 = vpop.permute.xlu1 %1696  ;;  %v1953_v20 = vmul.f32 %v1952_v52, %v7321_v60 }
 0x440   :  { %v1926_v48 = vadd.f32 %v7570_v41, %v1918_v1  ;;  %v1699_v55 = vadd.f32 %v1697_v56, %v1691_v28  ;;  %v1717_v41 = vstv %s7638_s25  ;;  %v4012_v1 = vstv %s7659_s29  ;;  %s7755_s25 = sld [smem:[#allocation12 + $0x32]] }
 0x441   :  { %v7650_v46 = vpop.permute.xlu0 %1959  ;;  %4023 = vrot.lane.b32.xlu1 %v4021_v18, %s6319_s28  ;;  %v1718_v25 = vmul.f32 %v1717_v41, %v7321_v60  ;;  %v4069_v56 = vmul.f32 %v4068_v58, %v7321_v60  ;;  %v2398_v18 = vadd.f32 %v7384_v49, %v2390_v21  ;;  %v4056_v41 = vstv %s7695_s6  ;;  %s5357_s29 = sld [smem:[#allocation12 + $0x50]] }
 0x442   :  { %v1934_v38 = vadd.f32 %v7596_v19, %v1926_v48  ;;  %v3997_v19 = vmul.f32 %v3996_v54, %v7279_v24  ;;  %v4076_v48 = vstv %s7665_s30  ;;  %v4396_v54 = vstv %s7702_s18  ;;  %s5356_s30 = sld [smem:[#allocation13 + $0x4]] }
 0x443   :  { %3687 = vrot.lane.b32.xlu0 %v3685_v7, %s6317_s3  ;;  %v1705_v45 = vpop.permute.xlu1 %1704  ;;  %v4057_v12 = vmul.f32 %v4056_v41, %v7297_v30  ;;  %v4412_v58 = vstv %s7719_s19  ;;  %v4440_v41 = vstv %s7750_s24  ;;  %s5362_s6 = sld [smem:[#allocation12 + $0x55]] }
 0x444   :  { %v1707_v34 = vadd.f32 %v1705_v45, %v1699_v55  ;;  %v1942_v33 = vadd.f32 %v7617_v36, %v1934_v38  ;;  %v4013_v36 = vmul.f32 %v4012_v1, %v7279_v24  ;;  %v4077_v45 = vmul.f32 %v4076_v48, %v7321_v60  ;;  %s5367_s18 = sld [smem:[#allocation12 + $0x5a]] }
 0x445   :  { %v7667_v59 = vpop.permute.xlu0 %1967  ;;  %4035 = vrot.lane.b32.xlu1 %v4033_v50, %s6316_s0  ;;  %v2406_v50 = vadd.f32 %v7382_v16, %v2398_v18  ;;  %v4388_v55 = vstv %s7684_s17  ;;  %v4092_v1 = vstv %s7726_s20  ;;  %s5305_s17 = sld [smem:[#allocation12 + $0x4b]] }
 0x446   :  { %v4389_v16 = vmul.f32 %v4388_v55, %v7279_v24  ;;  %s5372_s19 = sld [smem:[#allocation12 + $0x5f]] }
 0x447   :  { %3695 = vrot.lane.b32.xlu0 %v3693_v13, %s6318_s4  ;;  %v1713_v5 = vpop.permute.xlu1 %1712  ;;  %v4041_v13 = vmul.f32 %v4040_v8, %v7297_v30  ;;  %s5429_s20 = sld [smem:[#allocation12 + $0x69]] }
 0x448   :  { %v1715_v14 = vadd.f32 %v1713_v5, %v1707_v34  ;;  %v2414_v34 = vadd.f32 %v7392_v0, %v2406_v50  ;;  %v4084_v5 = vstv %s7709_s7  ;;  %v4397_v0 = vmul.f32 %v4396_v54, %v7279_v24  ;;  %s5424_s7 = sld [smem:[#allocation12 + $0x64]] }
 0x449   :  { %v7686_v47 = vpop.permute.xlu0 %1975  ;;  %4051 = vrot.lane.b32.xlu1 %v4049_v57, %s6318_s4  ;;  %v2424_v57 = vstv %s7711_s8  ;;  %v4085_v21 = vmul.f32 %v4084_v5, %v7321_v60  ;;  %s5423_s8 = sld [smem:[#allocation13 + $0x5]] }
 0x44a   :  { %v7691_v10 = vadd.f32 %v1718_v25, %v1715_v14  ;;  %v2422_v14 = vadd.f32 %v7390_v51, %v2414_v34  ;;  %v7780_v34 = vld [vmem:[#allocation3 + $0x4] sm:$0xf]  ;;  %s5490_s24 = sld [smem:[#allocation13 + $0x6]] }
 0x44b   :  { %3999 = vrot.lane.b32.xlu0 %v3997_v19, %s6316_s0  ;;  %v1948_v31 = vpop.permute.xlu1 %1947  ;;  %v2780_v19 = vstv %s7721_s1  ;;  %s5575_s1 = sld [smem:[#allocation12 + $0x9d]] }
 0x44c   :  { %v1950_v7 = vadd.f32 %v1948_v31, %v1942_v33  ;;  %v2425_v33 = vmul.f32 %v2424_v57, %v7279_v24  ;;  %v4413_v31 = vmul.f32 %v4412_v58, %v7279_v24  ;;  %v4432_v57 = vstv %s7759_s26  ;;  %s5439_s26 = sld [smem:[#allocation12 + $0x73]] }
 0x44d   :  { %v2432_v28 = vpop.permute.xlu0 %2431  ;;  %4071 = vrot.lane.b32.xlu1 %v4069_v56, %s6316_s0  ;;  %v2781_v56 = vmul.f32 %v7672_v53, %v2780_v19 }
 0x44e   :  { %v7706_v40 = vadd.f32 %v1953_v20, %v1950_v7  ;;  %v2426_v18 = vadd.f32 %v2425_v33, %v2422_v14  ;;  %v4424_v20 = vstv %s7734_s21  ;;  %v2778_v7 = vstv %s7736_s22  ;;  %s5574_s21 = sld [smem:[#allocation12 + $0x9c]] }
 0x44f   :  { %4015 = vrot.lane.b32.xlu0 %v4013_v36, %s6318_s4  ;;  %v7714_v49 = vpop.permute.xlu1 %1732  ;;  %v4093_v36 = vmul.f32 %v4092_v1, %v7321_v60  ;;  %v4425_v50 = vmul.f32 %v4424_v20, %v7297_v30  ;;  %v2782_v55 = vadd.f32 %v2781_v56, %v2778_v7  ;;  %v4441_v14 = vmul.f32 %v4440_v41, %v7297_v30  ;;  %v7799_v20 = vld [vmem:[#allocation3 + $0x8] sm:$0xf]  ;;  %s5434_s22 = sld [smem:[#allocation12 + $0x6e]] }
 0x450   :  { %v2434_v8 = vadd.f32 %v2432_v28, %v2426_v18  ;;  %v2460_v28 = vstv %s7755_s25  ;;  %v4433_v33 = vmul.f32 %v4432_v57, %v7297_v30  ;;  %v4448_v1 = vstv %s7773_s2  ;;  %s5558_s25 = sld [smem:[#allocation12 + $0x8c]] }
 0x451   :  { %v2448_v42 = vpop.permute.xlu0 %2447  ;;  %4079 = vrot.lane.b32.xlu1 %v4077_v45, %s6317_s3  ;;  %v4404_v45 = vstv %s7741_s23  ;;  %v2461_v58 = vmul.f32 %v2460_v28, %v7297_v30  ;;  %v4449_v7 = vmul.f32 %v7799_v20, %v4448_v1  ;;  %v2816_v30 = vstv %s7787_s5  ;;  %s5491_s23 = sld [smem:[#allocation12 + $0x78]] }
 0x452   :  { %v4405_v54 = vmul.f32 %v7780_v34, %v4404_v45  ;;  %v2496_v45 = vstv %s5238_s27  ;;  %s5557_s2 = sld [smem:[#allocation13 + $0x7]] }
 0x453   :  { %4043 = vrot.lane.b32.xlu0 %v4041_v13, %s6317_s3  ;;  %v7729_v6 = vpop.permute.xlu1 %1740  ;;  %s5496_s5 = sld [smem:[#allocation12 + $0x7d]] }
 0x454   :  { %s7902_s27 = sld [smem:[#allocation12 + $0x82]] }
 0x455   :  { %v2468_v38 = vpop.permute.xlu0 %2467  ;;  %4391 = vrot.lane.b32.xlu1 %v4389_v16, %s6316_s0 }
 0x457   :  { %4059 = vrot.lane.b32.xlu0 %v4057_v12, %s6319_s28  ;;  %v7745_v25 = vpop.permute.xlu1 %1748  ;;  %v2790_v12 = vadd.f32 %v7400_v11, %v2782_v55 }
 0x459   :  { %v2484_v52 = vpop.permute.xlu0 %2483  ;;  %4399 = vrot.lane.b32.xlu1 %v4397_v0, %s6317_s3  ;;  %v2798_v11 = vadd.f32 %v7398_v63, %v2790_v12  ;;  %v3172_v12 = vstv %s5357_s29  ;;  %s5563_s29 = sld [smem:[#allocation12 + $0x91]] }
 0x45b   :  { %4087 = vrot.lane.b32.xlu0 %v4085_v21, %s6318_s4  ;;  %v7762_v51 = vpop.permute.xlu1 %1983 }
 0x45d   :  { %v7768_v48 = vpop.permute.xlu0 %2503  ;;  %4415 = vrot.lane.b32.xlu1 %v4413_v31, %s6319_s28 }
 0x45f   :  { %4095 = vrot.lane.b32.xlu0 %v4093_v36, %s6319_s28  ;;  %v2440_v24 = vpop.permute.xlu1 %2439  ;;  %v2806_v36 = vadd.f32 %v7406_v23, %v2798_v11 }
 0x460   :  { %v2442_v13 = vadd.f32 %v2440_v24, %v2434_v8 }
 0x461   :  { %v7778_v16 = vpop.permute.xlu0 %2511  ;;  %4427 = vrot.lane.b32.xlu1 %v4425_v50, %s6316_s0  ;;  %v2814_v24 = vadd.f32 %v7414_v32, %v2806_v36 }
 0x462   :  { %v2450_v5 = vadd.f32 %v2448_v42, %v2442_v13  ;;  %v2497_v13 = vmul.f32 %v2496_v45, %v7321_v60 }
 0x463   :  { %4407 = vrot.lane.b32.xlu0 %v4405_v54, %s6318_s4  ;;  %v2456_v0 = vpop.permute.xlu1 %2455 }
 0x464   :  { %v2458_v19 = vadd.f32 %v2456_v0, %v2450_v5 }
 0x465   :  { %v7792_v21 = vpop.permute.xlu0 %2519  ;;  %4443 = vrot.lane.b32.xlu1 %v4441_v14, %s6318_s4  ;;  %v3173_v14 = vmul.f32 %v7672_v53, %v3172_v12 }
 0x466   :  { %v2462_v42 = vadd.f32 %v2461_v58, %v2458_v19  ;;  %v2852_v19 = vstv %s5300_s16  ;;  %s5577_s16 = sld [smem:[#allocation12 + $0x9f]] }
 0x467   :  { %4435 = vrot.lane.b32.xlu0 %v4433_v33, %s6317_s3  ;;  %v2476_v31 = vpop.permute.xlu1 %2475 }
 0x468   :  { %v2470_v56 = vadd.f32 %v2468_v38, %v2462_v42  ;;  %v2817_v38 = vmul.f32 %v7780_v34, %v2816_v30  ;;  %v2853_v42 = vmul.f32 %v7799_v20, %v2852_v19 }
 0x469   :  { %v2824_v18 = vpop.permute.xlu0 %2823 }
 0x46a   :  { %v2478_v8 = vadd.f32 %v2476_v31, %v2470_v56  ;;  %v2818_v23 = vadd.f32 %v2817_v38, %v2814_v24 }
 0x46b   :  { %4451 = vrot.lane.b32.xlu0 %v4449_v7, %s6319_s28  ;;  %v2492_v63 = vpop.permute.xlu1 %2491  ;;  %v1727_v7 = vadd.f32 %v7634_v62, %v7691_v10 }
 0x46c   :  { %v2486_v50 = vadd.f32 %v2484_v52, %v2478_v8  ;;  %v2826_v57 = vadd.f32 %v2824_v18, %v2818_v23  ;;  %v3170_v52 = vstv %s5356_s30  ;;  %v1962_v18 = vadd.f32 %v7650_v46, %v7706_v40  ;;  %s5506_s30 = sld [smem:[#allocation12 + $0x87]] }
 0x46d   :  { %v2840_v55 = vpop.permute.xlu0 %2839  ;;  %v3174_v60 = vadd.f32 %v3173_v14, %v3170_v52  ;;  %v1735_v45 = vadd.f32 %v7714_v49, %v1727_v7  ;;  %v2888_v46 = vstv %s5305_s17  ;;  %s5568_s17 = sld [smem:[#allocation12 + $0x96]] }
 0x46e   :  { %v2494_v41 = vadd.f32 %v2492_v63, %v2486_v50 }
 0x46f   :  { %v7808_v54 = vpop.permute.xlu1 %2527  ;;  %v3182_v56 = vadd.f32 %v7408_v15, %v3174_v60  ;;  %v1970_v15 = vadd.f32 %v7667_v59, %v1962_v18  ;;  %v3564_v18 = vstv %s5424_s7 }
 0x470   :  { %v7810_v28 = vadd.f32 %v2497_v13, %v2494_v41  ;;  %v3208_v13 = vstv %s5362_s6  ;;  %s5576_s6 = sld [smem:[#allocation12 + $0x9e]] }
 0x471   :  { %v2860_v5 = vpop.permute.xlu0 %2859  ;;  %v3190_v30 = vadd.f32 %v7422_v37, %v3182_v56  ;;  %v1978_v41 = vadd.f32 %v7686_v47, %v1970_v15  ;;  %v3209_v23 = vmul.f32 %v7780_v34, %v3208_v13 }
 0x473   :  { %v2832_v0 = vpop.permute.xlu1 %2831  ;;  %v3198_v50 = vadd.f32 %v7430_v29, %v3190_v30  ;;  %v7835_v29 = vld [vmem:[#allocation3 + $0xc] sm:$0xf] }
 0x474   :  { %v2834_v32 = vadd.f32 %v2832_v0, %v2826_v57 }
 0x475   :  { %v2876_v58 = vpop.permute.xlu0 %2875  ;;  %v3206_v62 = vadd.f32 %v7442_v2, %v3198_v50  ;;  %v7842_v2 = vadd.f32 %v7762_v51, %v1978_v41  ;;  %v3562_v50 = vstv %s5423_s8 }
 0x476   :  { %v2842_v33 = vadd.f32 %v2840_v55, %v2834_v32  ;;  %v1743_v55 = vadd.f32 %v7729_v6, %v1735_v45  ;;  %v2889_v6 = vmul.f32 %v7835_v29, %v2888_v46  ;;  %v3565_v45 = vmul.f32 %v7672_v53, %v3564_v18 }
 0x477   :  { %v2848_v11 = vpop.permute.xlu1 %2847 }
 0x478   :  { %v2850_v1 = vadd.f32 %v2848_v11, %v2842_v33  ;;  %v7830_v10 = vadd.f32 %v7745_v25, %v1743_v55  ;;  %v3244_v33 = vstv %s5367_s18  ;;  %s5573_s18 = sld [smem:[#allocation12 + $0x9b]] }
 0x479   :  { %v7814_v31 = vpop.permute.xlu0 %2895 }
 0x47a   :  { %v2854_v36 = vadd.f32 %v2853_v42, %v2850_v1  ;;  %v1765_v57 = vmul.f32 %v7830_v10, %v7830_v10  ;;  %v1754_v51 = vsel %vm456_vm4, %v7830_v10, 0.0  ;;  %v3245_v42 = vmul.f32 %v7799_v20, %v3244_v33 }
 0x47b   :  { %v2868_v8 = vpop.permute.xlu1 %2867 }
 0x47c   :  { %v2862_v63 = vadd.f32 %v2860_v5, %v2854_v36  ;;  %v3210_v5 = vadd.f32 %v3209_v23, %v3206_v62  ;;  %v1766_v52 = vsel %vm456_vm4, %v1765_v57, 0.0  ;;  %v1989_v36 = vsel %vm456_vm4, %v7842_v2, 0.0 }
 0x47d   :  { %v7823_v24 = vpop.permute.xlu0 %2903 }
 0x47e   :  { %v2870_v38 = vadd.f32 %v2868_v8, %v2862_v63 }
 0x47f   :  { %v2884_v40 = vpop.permute.xlu1 %2883 }
 0x480   :  { %v2878_v37 = vadd.f32 %v2876_v58, %v2870_v38  ;;  %v2000_v58 = vmul.f32 %v7842_v2, %v7842_v2  ;;  %v3280_v38 = vstv %s5372_s19  ;;  %s5445_s19 = sld [smem:[#allocation16 + $0x5]] }
 0x481   :  { %v7832_v49 = vpop.permute.xlu0 %2911  ;;  %v3281_v41 = vmul.f32 %v7835_v29, %v3280_v38  ;;  %v3954_v38 = vstv %s5490_s24  ;;  %s1753_s24 = sld [smem:[#allocation16]] }
 0x482   :  { %v2886_v59 = vadd.f32 %v2884_v40, %v2878_v37  ;;  %v2001_v56 = vsel %vm456_vm4, %v2000_v58, 0.0  ;;  %v3566_v40 = vadd.f32 %v3565_v45, %v3562_v50 }
 0x483   :  { %v7839_v12 = vpop.permute.xlu1 %2919 }
 0x484   :  { %v7844_v25 = vadd.f32 %v2889_v6, %v2886_v59  ;;  %v3574_v37 = vadd.f32 %v7416_v43, %v3566_v40 }
 0x485   :  { %v3216_v47 = vpop.permute.xlu0 %3215 }
 0x486   :  { %v3218_v0 = vadd.f32 %v3216_v47, %v3210_v5  ;;  %v3582_v23 = vadd.f32 %v7456_v35, %v3574_v37  ;;  %v4468_v47 = vstv %s5575_s1  ;;  %v4348_v37 = vstv %s5558_s25  ;;  %s5243_s25 = sld [smem:[#allocation15 + $0x2]] }
 0x487   :  { %v3224_v14 = vpop.permute.xlu1 %3223  ;;  %v4469_v43 = vmul.f32 %v7835_v29, %v4468_v47  ;;  %s5511_s1 = sld [smem:[#allocation15 + $0x6]] }
 0x488   :  { %v3226_v32 = vadd.f32 %v3224_v14, %v3218_v0  ;;  %v3590_v0 = vadd.f32 %v7474_v61, %v3582_v23 }
 0x489   :  { %v3232_v19 = vpop.permute.xlu0 %3231  ;;  %1767 = vadd.xlane.f32.xlu1 %v1766_v52 }
 0x48a   :  { %1755 = vadd.xlane.f32.xlu0 %v1754_v51  ;;  %v3234_v11 = vadd.f32 %v3232_v19, %v3226_v32  ;;  %v3600_v32 = vstv %s5429_s20  ;;  %v3598_v52 = vadd.f32 %v7491_v3, %v3590_v0  ;;  %v4460_v51 = vstv %s5574_s21  ;;  %s8057_s21 = sld [smem:[#allocation16 + $0x1]] }
 0x48b   :  { %v3240_v60 = vpop.permute.xlu1 %3239  ;;  %v3601_v35 = vmul.f32 %v7780_v34, %v3600_v32  ;;  %v4461_v61 = vmul.f32 %v7835_v29, %v4460_v51  ;;  %s5512_s20 = sld [smem:[#allocation16 + $0x6]] }
 0x48c   :  { %v3242_v1 = vadd.f32 %v3240_v60, %v3234_v11 }
 0x48d   :  { %v3252_v7 = vpop.permute.xlu0 %3251  ;;  %2002 = vadd.xlane.f32.xlu1 %v2001_v56  ;;  %v3602_v33 = vadd.f32 %v3601_v35, %v3598_v52  ;;  %v3636_v56 = vstv %s5434_s22  ;;  %v4346_v35 = vstv %s5557_s2  ;;  %s5244_s2 = sld [smem:[#allocation16 + $0x2]] }
 0x48e   :  { %v3246_v8 = vadd.f32 %v3245_v42, %v3242_v1  ;;  %1990 = vadd.xlane.f32.xlu0 %v1989_v36 }
 0x48f   :  { %v3260_v30 = vpop.permute.xlu1 %3259 }
 0x490   :  { %v3254_v63 = vadd.f32 %v3252_v7, %v3246_v8  ;;  %v3637_v8 = vmul.f32 %v7799_v20, %v3636_v56 }
 0x491   :  { %v3268_v55 = vpop.permute.xlu0 %3267 }
 0x492   :  { %v3262_v15 = vadd.f32 %v3260_v30, %v3254_v63  ;;  %v3956_v30 = vstv %s5491_s23 }
 0x493   :  { %v3276_v46 = vpop.permute.xlu1 %3275 }
 0x494   :  { %v3270_v13 = vadd.f32 %v3268_v55, %v3262_v15  ;;  %v3957_v55 = vmul.f32 %v7672_v53, %v3956_v30  ;;  %v4028_v30 = vstv %s7902_s27  ;;  %s5311_s27 = sld [smem:[#allocation16 + $0x3]] }
 0x495   :  { %v7858_v62 = vpop.permute.xlu0 %3287 }
 0x496   :  { %v3278_v6 = vadd.f32 %v3276_v46, %v3270_v13  ;;  %v2506_v46 = vadd.f32 %v7768_v48, %v7810_v28  ;;  %v3958_v23 = vadd.f32 %v3957_v55, %v3954_v38 }
 0x497   :  { %v7862_v59 = vpop.permute.xlu1 %3311 }
 0x498   :  { %v7865_v5 = vadd.f32 %v3281_v41, %v3278_v6  ;;  %v3672_v41 = vstv %s5439_s26  ;;  %v2514_v0 = vadd.f32 %v7778_v16, %v2506_v46  ;;  %v3966_v52 = vadd.f32 %v7424_v44, %v3958_v23  ;;  %s5310_s26 = sld [smem:[#allocation15 + $0x3]] }
 0x499   :  { %v7867_v57 = vpop.permute.xlu0 %3295  ;;  %v3673_v28 = vmul.f32 %v7835_v29, %v3672_v41  ;;  %v4029_v46 = vmul.f32 %v7799_v20, %v4028_v30 }
 0x49a   :  { %v3974_v51 = vadd.f32 %v7508_v39, %v3966_v52  ;;  %v2522_v16 = vadd.f32 %v7792_v21, %v2514_v0 }
 0x49b   :  { %v3616_v14 = vpop.permute.xlu1 %3615 }
 0x49c   :  { %v3982_v44 = vadd.f32 %v7527_v22, %v3974_v51  ;;  %v7905_v39 = vadd.f32 %v7808_v54, %v2522_v16  ;;  %v3290_v22 = vadd.f32 %v7858_v62, %v7865_v5 }
 0x49d   :  { %v7872_v58 = vpop.permute.xlu0 %3303 }
 0x49e   :  { %4471 = vrot.lane.b32.xlu1 %v4469_v43, %s6317_s3  ;;  %v4349_v43 = vmul.f32 %v7672_v53, %v4348_v37  ;;  %v3992_v53 = vstv %s5496_s5  ;;  %s8035_s5 = sld [smem:[#allocation15 + $0x1]] }
 0x49f   :  { %v3632_v19 = vpop.permute.xlu1 %3631 }
 0x4a1   :  { %v3608_v11 = vpop.permute.xlu0 %3607 }
 0x4a2   :  { %v3610_v60 = vadd.f32 %v3608_v11, %v3602_v33 }
 0x4a3   :  { %v3644_v42 = vpop.permute.xlu1 %3643 }
 0x4a4   :  { %4463 = vrot.lane.b32.xlu0 %v4461_v61, %s6316_s0  ;;  %v3618_v3 = vadd.f32 %v3616_v14, %v3610_v60  ;;  %v2898_v14 = vadd.f32 %v7814_v31, %v7844_v25  ;;  %v4350_v25 = vadd.f32 %v4349_v43, %v4346_v35  ;;  %v4064_v43 = vstv %s5506_s30 }
 0x4a5   :  { %v3624_v1 = vpop.permute.xlu0 %3623 }
 0x4a6   :  { %v3626_v18 = vadd.f32 %v3624_v1, %v3618_v3  ;;  %v2906_v11 = vadd.f32 %v7823_v24, %v2898_v14  ;;  %v4358_v61 = vadd.f32 %v7432_v26, %v4350_v25  ;;  %v3993_v26 = vmul.f32 %v7780_v34, %v3992_v53 }
 0x4a7   :  { %v3660_v7 = vpop.permute.xlu1 %3659  ;;  %v4484_v25 = vstv %s5577_s16  ;;  %v4420_v53 = vstv %s5568_s17 }
 0x4a8   :  { %v3634_v36 = vadd.f32 %v3632_v19, %v3626_v18  ;;  %v2914_v21 = vadd.f32 %v7832_v49, %v2906_v11  ;;  %v4366_v24 = vadd.f32 %v7562_v27, %v4358_v61  ;;  %v2544_v49 = vmul.f32 %v7905_v39, %v7905_v39 }
 0x4a9   :  { %v3652_v45 = vpop.permute.xlu0 %3651  ;;  %v4485_v61 = vmul.f32 %v7835_v29, %v4484_v25 }
 0x4aa   :  { %v3638_v63 = vadd.f32 %v3637_v8, %v3634_v36  ;;  %v7915_v56 = vadd.f32 %v7839_v12, %v2914_v21  ;;  %v4374_v18 = vadd.f32 %v7444_v9, %v4366_v24  ;;  %v2545_v5 = vsel %vm456_vm4, %v2544_v49, 0.0 }
 0x4ab   :  { %v7879_v50 = vpop.permute.xlu1 %3703  ;;  %v2533_v9 = vsel %vm456_vm4, %v7905_v39, 0.0  ;;  %v4421_v24 = vmul.f32 %v7799_v20, %v4420_v53 }
 0x4ac   :  { %v3646_v15 = vadd.f32 %v3644_v42, %v3638_v63  ;;  %v3990_v42 = vadd.f32 %v7544_v4, %v3982_v44  ;;  %v2936_v12 = vmul.f32 %v7915_v56, %v7915_v56 }
 0x4ad   :  { %v3668_v40 = vpop.permute.xlu0 %3667 }
 0x4ae   :  { %v3654_v13 = vadd.f32 %v3652_v45, %v3646_v15  ;;  %v3994_v4 = vadd.f32 %v3993_v26, %v3990_v42  ;;  %v4384_v45 = vstv %s5563_s29  ;;  %v2937_v37 = vsel %vm456_vm4, %v2936_v12, 0.0 }
 0x4af   :  { %v4008_v6 = vpop.permute.xlu1 %4007 }
 0x4b0   :  { %v3662_v47 = vadd.f32 %v3660_v7, %v3654_v13  ;;  %v3298_v7 = vadd.f32 %v7867_v57, %v3290_v22  ;;  %v4382_v57 = vadd.f32 %v7458_v17, %v4374_v18 }
 0x4b1   :  { %v7887_v32 = vpop.permute.xlu0 %3679 }
 0x4b2   :  { %v3670_v48 = vadd.f32 %v3668_v40, %v3662_v47  ;;  %v3306_v63 = vadd.f32 %v7872_v58, %v3298_v7  ;;  %v4385_v40 = vmul.f32 %v7780_v34, %v4384_v45 }
 0x4b3   :  { %v4024_v19 = vpop.permute.xlu1 %4023 }
 0x4b4   :  { %v7893_v33 = vadd.f32 %v3673_v28, %v3670_v48  ;;  %v7937_v58 = vadd.f32 %v7862_v59, %v3306_v63  ;;  %v4386_v17 = vadd.f32 %v4385_v40, %v4382_v57 }
 0x4b5   :  { %v7897_v31 = vpop.permute.xlu0 %3687 }
 0x4b6   :  { %v3317_v34 = vsel %vm456_vm4, %v7937_v58, 0.0  ;;  %v3682_v20 = vadd.f32 %v7887_v32, %v7893_v33  ;;  %v3328_v57 = vmul.f32 %v7937_v58, %v7937_v58 }
 0x4b7   :  { %v4036_v60 = vpop.permute.xlu1 %4035 }
 0x4b8   :  { %v3690_v45 = vadd.f32 %v7897_v31, %v3682_v20 }
 0x4b9   :  { %v7908_v3 = vpop.permute.xlu0 %3695 }
 0x4ba   :  { %v3698_v63 = vadd.f32 %v7908_v3, %v3690_v45 }
 0x4bb   :  { %v4052_v1 = vpop.permute.xlu1 %4051 }
 0x4bd   :  { %v4000_v54 = vpop.permute.xlu0 %3999 }
 0x4be   :  { %v4002_v36 = vadd.f32 %v4000_v54, %v3994_v4  ;;  %v4476_v54 = vstv %s5576_s6  ;;  %s5377_s6 = sld [smem:[#allocation15 + $0x4]] }
 0x4bf   :  { %v7921_v27 = vpop.permute.xlu1 %4071  ;;  %v4477_v7 = vmul.f32 %v7835_v29, %v4476_v54 }
 0x4c0   :  { %v4010_v8 = vadd.f32 %v4008_v6, %v4002_v36  ;;  %v2925_v6 = vsel %vm456_vm4, %v7915_v56, 0.0  ;;  %v4456_v36 = vstv %s5573_s18 }
 0x4c1   :  { %v4016_v62 = vpop.permute.xlu0 %4015  ;;  %v4457_v30 = vmul.f32 %v7835_v29, %v4456_v36 }
 0x4c2   :  { %v4018_v55 = vadd.f32 %v4016_v62, %v4010_v8  ;;  %2546 = vadd.xlane.f32.xlu1 %v2545_v5 }
 0x4c3   :  { %2534 = vadd.xlane.f32.xlu0 %v2533_v9  ;;  %v7931_v15 = vpop.permute.xlu1 %4079  ;;  %v7956_v9 = vadd.f32 %v7879_v50, %v3698_v63 }
 0x4c4   :  { %v4026_v38 = vadd.f32 %v4024_v19, %v4018_v55  ;;  %v4065_v19 = vmul.f32 %v7835_v29, %v4064_v43  ;;  %v3329_v29 = vsel %vm456_vm4, %v3328_v57, 0.0 }
 0x4c5   :  { %v4044_v13 = vpop.permute.xlu0 %4043  ;;  %v3709_v50 = vsel %vm456_vm4, %v7956_v9, 0.0 }
 0x4c6   :  { %v4030_v41 = vadd.f32 %v4029_v46, %v4026_v38  ;;  %2938 = vadd.xlane.f32.xlu1 %v2937_v37  ;;  %v3720_v46 = vmul.f32 %v7956_v9, %v7956_v9 }
 0x4c7   :  { %2926 = vadd.xlane.f32.xlu0 %v2925_v6  ;;  %v4392_v23 = vpop.permute.xlu1 %4391 }
 0x4c8   :  { %v4038_v47 = vadd.f32 %v4036_v60, %v4030_v41  ;;  %v4394_v0 = vadd.f32 %v4392_v23, %v4386_v17  ;;  %v3721_v33 = vsel %vm456_vm4, %v3720_v46, 0.0 }
 0x4c9   :  { %v4060_v14 = vpop.permute.xlu0 %4059 }
 0x4ca   :  { %v4046_v52 = vadd.f32 %v4044_v13, %v4038_v47 }
 0x4cb   :  { %3318 = vadd.xlane.f32.xlu0 %v3317_v34  ;;  %v4400_v59 = vpop.permute.xlu1 %4399 }
 0x4cc   :  { %v4054_v48 = vadd.f32 %v4052_v1, %v4046_v52  ;;  %v4402_v28 = vadd.f32 %v4400_v59, %v4394_v0 }
 0x4cd   :  { %v4088_v35 = vpop.permute.xlu0 %4087 }
 0x4ce   :  { %v4062_v51 = vadd.f32 %v4060_v14, %v4054_v48 }
 0x4cf   :  { %v4416_v44 = vpop.permute.xlu1 %4415 }
 0x4d0   :  { %v4066_v16 = vadd.f32 %v4065_v19, %v4062_v51 }
 0x4d1   :  { %v4096_v11 = vpop.permute.xlu0 %4095 }
 0x4d2   :  { %v4074_v55 = vadd.f32 %v7921_v27, %v4066_v16 }
 0x4d3   :  { %v4428_v22 = vpop.permute.xlu1 %4427 }
 0x4d4   :  { %v4082_v38 = vadd.f32 %v7931_v15, %v4074_v55 }
 0x4d5   :  { %v4408_v60 = vpop.permute.xlu0 %4407 }
 0x4d6   :  { %v4410_v42 = vadd.f32 %v4408_v60, %v4402_v28  ;;  %v4090_v32 = vadd.f32 %v4088_v35, %v4082_v38 }
 0x4d7   :  { %4487 = vrot.lane.b32.xlu1 %v4485_v61, %s6319_s28  ;;  %v4444_v18 = vpop.permute.xlu1 %4443 }
 0x4d8   :  { %v4418_v21 = vadd.f32 %v4416_v44, %v4410_v42  ;;  %v7965_v31 = vadd.f32 %v4096_v11, %v4090_v32 }
 0x4d9   :  { %v4436_v1 = vpop.permute.xlu0 %4435 }
 0x4da   :  { %v4422_v26 = vadd.f32 %v4421_v24, %v4418_v21  ;;  %v4101_v3 = vsel %vm456_vm4, %v7965_v31, 0.0  ;;  %v4112_v27 = vmul.f32 %v7965_v31, %v7965_v31 }
 0x4dc   :  { %v4430_v4 = vadd.f32 %v4428_v22, %v4422_v26  ;;  %v4113_v15 = vsel %vm456_vm4, %v4112_v27, 0.0 }
 0x4dd   :  { %v4452_v62 = vpop.permute.xlu0 %4451 }
 0x4de   :  { %v4438_v49 = vadd.f32 %v4436_v1, %v4430_v4 }
 0x4e0   :  { %v4446_v8 = vadd.f32 %v4444_v18, %v4438_v49 }
 0x4e1   :  { %4479 = vrot.lane.b32.xlu0 %v4477_v7, %s6318_s4 }
 0x4e2   :  { %v4454_v5 = vadd.f32 %v4452_v62, %v4446_v8 }
 0x4e4   :  { %v4458_v12 = vadd.f32 %v4457_v30, %v4454_v5 }
 0x4fb   :  { %3330 = vadd.xlane.f32.xlu1 %v3329_v29 }
 0x4ff   :  { %3722 = vadd.xlane.f32.xlu1 %v3721_v33 }
 0x500   :  { %3710 = vadd.xlane.f32.xlu0 %v3709_v50 }
 0x504   :  { %4102 = vadd.xlane.f32.xlu0 %v4101_v3 }
 0x508   :  { %4114 = vadd.xlane.f32.xlu0 %v4113_v15 }
 0x512   :  { %v1768_v40 = vpop.xlane.xlu1 %1767 }
 0x513   :  { %v1756_v13 = vpop.xlane.xlu0 %1755  ;;  %v1769_v37 = vrot.slane %v1768_v40, 4 }
 0x514   :  { %v1757_v41 = vrot.slane %v1756_v13, 4 }
 0x515   :  { %v1770_v6 = vadd.f32 %v1769_v37, %v1768_v40 }
 0x516   :  { %v1758_v17 = vadd.f32 %v1757_v41, %v1756_v13  ;;  %v2003_v23 = vpop.xlane.xlu1 %2002 }
 0x517   :  { %v1771_v47 = vrot.slane %v1770_v6, 2  ;;  %v1991_v0 = vpop.xlane.xlu0 %1990  ;;  %v2004_v14 = vrot.slane %v2003_v23, 4 }
 0x518   :  { %v1759_v52 = vrot.slane %v1758_v17, 2  ;;  %v1992_v34 = vrot.slane %v1991_v0, 4 }
 0x519   :  { %v2005_v43 = vadd.f32 %v2004_v14, %v2003_v23  ;;  %v1772_v59 = vadd.f32 %v1771_v47, %v1770_v6  ;;  %v5210_v47 = vld [vmem:[%s9403_s9 + $0x260] sm:$0x3] }
 0x51a   :  { %v1993_v48 = vadd.f32 %v1992_v34, %v1991_v0  ;;  %v1760_v28 = vadd.f32 %v1759_v52, %v1758_v17  ;;  %v4472_v51 = vpop.permute.xlu1 %4471  ;;  %v5209_v52 = vld [vmem:[%s9403_s9 + $0x258] sm:$0x3]  ;;  %v5211_v34 = vld [vmem:[%s9403_s9 + $0x268] sm:$0x3]  ;;  %5212 = vmatprep.subr.msk.mxu0 %vm2081_vm1, %v5210_v47 }
 0x51b   :  { %v2006_v35 = vrot.slane %v2005_v43, 2  ;;  %v4464_v19 = vpop.permute.xlu0 %4463  ;;  %v1773_v16 = vrot.slane %v1772_v59, 1  ;;  %5213 = vmatpush1.msk.msra.mxu0 %vm2081_vm1, %v5209_v52  ;;  %5801 = vmatpush3.msk.msra.mxu1 %vm2081_vm1, %v5211_v34  ;;  %v5175_v47 = vld [vmem:[%s9403_s9 + $0x148] sm:$0xff] }
 0x51c   :  { %v1994_v11 = vrot.slane %v1993_v48, 2  ;;  %v4466_v25 = vadd.f32 %v4464_v19, %v4458_v12  ;;  %v1761_v44 = vrot.slane %v1760_v28, 1  ;;  %v5206_v19 = vld [vmem:[%s9403_s9 + $0x240] sm:$0xff] }
 0x51d   :  { %v1774_v60 = vadd.f32 %v1773_v16, %v1772_v59  ;;  %v2007_v53 = vadd.f32 %v2006_v35, %v2005_v43  ;;  %v5207_v59 = vld [vmem:[%s9403_s9 + $0x248] sm:$0xff] }
 0x51e   :  { %v7974_v61 = vadd.f32 %v4472_v51, %v4466_v25  ;;  %v1762_v42 = vadd.f32 %v1761_v44, %v1760_v28  ;;  %v1995_v21 = vadd.f32 %v1994_v11, %v1993_v48  ;;  %v5208_v51 = vld [vmem:[%s9403_s9 + $0x250] sm:$0xff]  ;;  %2099 = vmatprep.subr.mxu0 %v5207_v59 }
 0x51f   :  { %v2008_v24 = vrot.slane %v2007_v53, 1  ;;  %v5204_v11 = vld [vmem:[%s9403_s9 + $0x230] sm:$0xff]  ;;  %2100 = vmatpush1.msra.mxu0 %v5206_v19 }
 0x520   :  { %6098 = vpush %v1762_v42  ;;  %v1996_v22 = vrot.slane %v1995_v21, 1  ;;  %v5205_v42 = vld [vmem:[%s9403_s9 + $0x238] sm:$0xff]  ;;  %2101 = vmatprep.subr.mxu0 %v5204_v11 }
 0x521   :  { %6100 = vpush %v1774_v60  ;;  %v2009_v26 = vadd.f32 %v2008_v24, %v2007_v53  ;;  %v9478_v60 = vmov 0.0   ;;  %v5203_v53 = vld [vmem:[%s9403_s9 + $0x228] sm:$0xff] }
 0x522   :  { %v1997_v1 = vadd.f32 %v1996_v22, %v1995_v21  ;;  %5802 = vmatprep.subr.mxu1 %v9478_v60  ;;  %v5201_v21 = vld [vmem:[%s9403_s9 + $0x218] sm:$0xff]  ;;  %v5200_v22 = vld [vmem:[%s9403_s9 + $0x210] sm:$0xff]  ;;  %2102 = vmatpush1.msra.mxu0 %v5203_v53 }
 0x523   :  { %5803 = vmatpush3.msra.mxu1 %v5208_v51  ;;  %2103 = vmatprep.subr.mxu0 %v5201_v21 }
 0x524   :  { %6102 = vpush %v1997_v1  ;;  %5804 = vmatprep.subr.mxu1 %v9478_v60  ;;  %v5198_v1 = vld [vmem:[%s9403_s9 + $0x200] sm:$0xff]  ;;  %2104 = vmatpush1.msra.mxu0 %v5200_v22 }
 0x525   :  { %6104 = vpush %v2009_v26  ;;  %v5202_v26 = vld [vmem:[%s9403_s9 + $0x220] sm:$0xff]  ;;  %5805 = vmatpush3.msra.mxu1 %v5205_v42  ;;  %2105 = vmatprep.subr.mxu0 %v5198_v1 }
 0x526   :  { %5806 = vmatprep.subr.mxu1 %v9478_v60  ;;  %5826 = vmatprep.mubr.msk.f32.mxu1 %vm6320_vm3, %v9478_v60 }
 0x527   :  { %5807 = vmatpush3.msra.mxu1 %v5202_v26 }
 0x528   :  { %5808 = vmatprep.subr.mxu1 %v9478_v60 }
 0x54b   :  { %v2547_v4 = vpop.xlane.xlu1 %2546 }
 0x54c   :  { %v2535_v54 = vpop.xlane.xlu0 %2534  ;;  %v2548_v49 = vrot.slane %v2547_v4, 4 }
 0x54d   :  { %v2536_v18 = vrot.slane %v2535_v54, 4 }
 0x54e   :  { %v2549_v7 = vadd.f32 %v2548_v49, %v2547_v4  ;;  %v5197_v4 = vld [vmem:[%s9403_s9 + $0x1f8] sm:$0xff]  ;;  %v5195_v49 = vld [vmem:[%s9403_s9 + $0x1e8] sm:$0xff] }
 0x54f   :  { %v2537_v36 = vadd.f32 %v2536_v18, %v2535_v54  ;;  %v2939_v8 = vpop.xlane.xlu1 %2938  ;;  %v5199_v54 = vld [vmem:[%s9403_s9 + $0x208] sm:$0xff]  ;;  %v5194_v18 = vld [vmem:[%s9403_s9 + $0x1e0] sm:$0xff]  ;;  %2106 = vmatpush1.msra.mxu0 %v5197_v4 }
 0x550   :  { %v2550_v62 = vrot.slane %v2549_v7, 2  ;;  %v2927_v5 = vpop.xlane.xlu0 %2926  ;;  %v2940_v30 = vrot.slane %v2939_v8, 4  ;;  %5809 = vmatpush3.msra.mxu1 %v5199_v54  ;;  %2107 = vmatprep.subr.mxu0 %v5195_v49 }
 0x551   :  { %v2538_v12 = vrot.slane %v2537_v36, 2  ;;  %v2928_v20 = vrot.slane %v2927_v5, 4  ;;  %s7976_s4 = spop %6098  ;;  %5810 = vmatprep.subr.mxu1 %v9478_v60  ;;  %2108 = vmatpush1.msra.mxu0 %v5194_v18 }
 0x552   :  { %v2941_v45 = vadd.f32 %v2940_v30, %v2939_v8  ;;  %v2551_v63 = vadd.f32 %v2550_v62, %v2549_v7  ;;  %s7978_s28 = spop %6100  ;;  %v5196_v7 = vld [vmem:[%s9403_s9 + $0x1f0] sm:$0xff]  ;;  %v5191_v8 = vld [vmem:[%s9403_s9 + $0x1c8] sm:$0xff]  ;;  %v5193_v62 = vld [vmem:[%s9403_s9 + $0x1d8] sm:$0xff] }
 0x553   :  { %v2929_v55 = vadd.f32 %v2928_v20, %v2927_v5  ;;  %v2539_v57 = vadd.f32 %v2538_v12, %v2537_v36  ;;  %v5192_v36 = vld [vmem:[%s9403_s9 + $0x1d0] sm:$0xff]  ;;  %5811 = vmatpush3.msra.mxu1 %v5196_v7  ;;  %v5189_v5 = vld [vmem:[%s9403_s9 + $0x1b8] sm:$0xff]  ;;  %v5190_v12 = vld [vmem:[%s9403_s9 + $0x1c0] sm:$0xff]  ;;  %v1776_v59 = vstv %s7978_s28  ;;  %v4488_v19 = vpop.permute.xlu1 %4487 }
 0x554   :  { %v2942_v38 = vrot.slane %v2941_v45, 2  ;;  %v3319_v29 = vpop.xlane.xlu0 %3318  ;;  %v2552_v46 = vrot.slane %v2551_v63, 1  ;;  %2109 = vmatprep.subr.mxu0 %v5192_v36  ;;  %5812 = vmatprep.subr.mxu1 %v9478_v60  ;;  %v5188_v30 = vld [vmem:[%s9403_s9 + $0x1b0] sm:$0xff]  ;;  %v5186_v20 = vld [vmem:[%s9403_s9 + $0x1a0] sm:$0xff] }
 0x555   :  { %v2930_v32 = vrot.slane %v2929_v55, 2  ;;  %v3320_v33 = vrot.slane %v3319_v29, 4  ;;  %s6103_s7 = spop %6102  ;;  %v2540_v50 = vrot.slane %v2539_v57, 1  ;;  %2110 = vmatpush1.msra.mxu0 %v5191_v8  ;;  %5813 = vmatpush3.msra.mxu1 %v5193_v62 }
 0x556   :  { %v1999_v3 = vstv %s6103_s7  ;;  %s6105_s8 = spop %6104  ;;  %v2943_v27 = vadd.f32 %v2942_v38, %v2941_v45  ;;  %v2553_v37 = vadd.f32 %v2552_v46, %v2551_v63  ;;  %2111 = vmatprep.subr.mxu0 %v5189_v5  ;;  %5814 = vmatprep.subr.mxu1 %v9478_v60  ;;  %v5185_v45 = vld [vmem:[%s9403_s9 + $0x198] sm:$0xff]  ;;  %v5187_v63 = vld [vmem:[%s9403_s9 + $0x1a8] sm:$0xff]  ;;  %v5182_v38 = vld [vmem:[%s9403_s9 + $0x180] sm:$0xff]  ;;  %s5378_s7 = sld [smem:[#allocation16 + $0x4]] }
 0x557   :  { %v3321_v15 = vadd.f32 %v3320_v33, %v3319_v29  ;;  %v7980_v40 = vmul.f32 0.0025, %v1999_v3  ;;  %v2011_v13 = vstv %s6105_s8  ;;  %v2541_v6 = vadd.f32 %v2540_v50, %v2539_v57  ;;  %2112 = vmatpush1.msra.mxu0 %v5188_v30  ;;  %5815 = vmatpush3.msra.mxu1 %v5190_v12  ;;  %v5183_v57 = vld [vmem:[%s9403_s9 + $0x188] sm:$0xff]  ;;  %v5184_v29 = vld [vmem:[%s9403_s9 + $0x190] sm:$0xff]  ;;  %v5181_v3 = vld [vmem:[%s9403_s9 + $0x178] sm:$0xff]  ;;  %s5444_s8 = sld [smem:[#allocation15 + $0x5]] }
 0x558   :  { %v2013_v41 = vmul.f32 0.0025, %v2011_v13  ;;  %v2931_v17 = vadd.f32 %v2930_v32, %v2929_v55  ;;  %v2944_v23 = vrot.slane %v2943_v27, 1  ;;  %v2018_v55 = vstv %s8035_s5  ;;  %2113 = vmatprep.subr.mxu0 %v5186_v20  ;;  %5816 = vmatprep.subr.mxu1 %v9478_v60  ;;  %v5180_v32 = vld [vmem:[%s9403_s9 + $0x170] sm:$0xff]  ;;  %v5179_v50 = vld [vmem:[%s9403_s9 + $0x168] sm:$0xff]  ;;  %v4480_v11 = vpop.permute.xlu0 %4479  ;;  %s8148_s5 = sld [smem:[#allocation15]] }
 0x559   :  { %v3322_v0 = vrot.slane %v3321_v15, 2  ;;  %v2014_v14 = vmul.f32 %v7980_v40, %v7980_v40  ;;  %6106 = vpush %v2541_v6  ;;  %2114 = vmatpush1.msra.mxu0 %v5185_v45  ;;  %5817 = vmatpush3.msra.mxu1 %v5187_v63  ;;  %v5174_v6 = vld [vmem:[%s9403_s9 + $0x140] sm:$0xff]  ;;  %v4482_v53 = vadd.f32 %v4480_v11, %v7974_v61 }
 0x55a   :  { %v2932_v43 = vrot.slane %v2931_v17, 1  ;;  %6108 = vpush %v2553_v37  ;;  %v2945_v28 = vadd.f32 %v2944_v23, %v2943_v27  ;;  %2115 = vmatprep.subr.mxu0 %v5183_v57  ;;  %5818 = vmatprep.subr.mxu1 %v9478_v60  ;;  %v2021_v27 = vstv %s8057_s21  ;;  %v5176_v37 = vld [vmem:[%s9403_s9 + $0x150] sm:$0xff]  ;;  %v5173_v23 = vld [vmem:[%s9403_s9 + $0x138] sm:$0xff] }
 0x55b   :  { %v2015_v48 = vsub.f32 %v2013_v41, %v2014_v14  ;;  %v3323_v35 = vadd.f32 %v3322_v0, %v3321_v15  ;;  %2116 = vmatpush1.msra.mxu0 %v5182_v38  ;;  %5819 = vmatpush3.msra.mxu1 %v5184_v29  ;;  %v5177_v15 = vld [vmem:[%s9403_s9 + $0x158] sm:$0xff]  ;;  %v5178_v41 = vld [vmem:[%s9403_s9 + $0x160] sm:$0xff]  ;;  %v1839_v0 = vld [vmem:[%s9403_s9 + $0x128] sm:$0x3]  ;;  %v8144_v54 = vadd.f32 %v4488_v19, %v4482_v53  ;;  %v1786_v53 = vstv %s1753_s24 }
 0x55c   :  { %v2933_v16 = vadd.f32 %v2932_v43, %v2931_v17  ;;  %2117 = vmatprep.subr.mxu0 %v5180_v32  ;;  %5820 = vmatprep.subr.mxu1 %v9478_v60 }
 0x55d   :  { %v2016_v25 = vadd.f32 1e-05, %v2015_v48  ;;  %v3324_v44 = vrot.slane %v3323_v35, 1  ;;  %2118 = vmatpush1.msra.mxu0 %v5179_v50  ;;  %5821 = vmatpush3.msra.mxu1 %v5181_v3  ;;  %v4504_v29 = vmul.f32 %v8144_v54, %v8144_v54  ;;  %v4493_v11 = vsel %vm456_vm4, %v8144_v54, 0.0 }
 0x55e   :  { %6110 = vpush %v2933_v16  ;;  %2119 = vmatprep.subr.mxu0 %v5177_v15  ;;  %5822 = vmatprep.subr.mxu1 %v9478_v60 }
 0x55f   :  { %6154 = vrsqrt.f32 %v2016_v25  ;;  %6112 = vpush %v2945_v28  ;;  %v3325_v24 = vadd.f32 %v3324_v44, %v3323_v35  ;;  %2120 = vmatpush1.msra.mxu0 %v5176_v37  ;;  %5823 = vmatpush3.msra.mxu1 %v5178_v41  ;;  %v1778_v28 = vmul.f32 0.0025, %v1776_v59  ;;  %v4505_v59 = vsel %vm456_vm4, %v4504_v29, 0.0 }
 0x560   :  { %2121 = vmatprep.subr.mxu0 %v5174_v6  ;;  %5824 = vmatprep.subr.mxu1 %v9478_v60 }
 0x561   :  { %6114 = vpush %v3325_v24  ;;  %2122 = vmatpush1.msra.mxu0 %v5173_v23  ;;  %5825 = vmatpush3.msra.mxu1 %v5175_v47 }
 0x562   :  { %5217 = vmatprep.subr.msk.mxu0 %vm2081_vm1, %v1839_v0  ;;  %5829 = vmatprep.subr.mxu1 %v9478_v60 }
 0x56c   :  { %v6155_v46 = vpop.eup %6154 }
 0x56d   :  { %v2019_v33 = vmul.f32 %v6155_v46, %v2018_v55 }
 0x56f   :  { %v2020_v13 = vmul.f32 %v2019_v33, %v7980_v40  ;;  %v2023_v40 = vmul.f32 %v2019_v33, %v7842_v2  ;;  %v1764_v2 = vstv %s7976_s4 }
 0x570   :  { %v8134_v43 = vmul.f32 0.0025, %v1764_v2  ;;  %v1783_v2 = vstv %s8148_s5 }
 0x571   :  { %v2022_v17 = vsub.f32 %v2021_v27, %v2020_v13 }
 0x572   :  { %v1779_v48 = vmul.f32 %v8134_v43, %v8134_v43 }
 0x573   :  { %v2024_v14 = vadd.f32 %v2023_v40, %v2022_v17 }
 0x574   :  { %v1780_v35 = vsub.f32 %v1778_v28, %v1779_v48 }
 0x575   :  { %vm2025_vm2 = vcmp.ge.f32.partialorder %v2024_v14, 0.0  ;;  %v2026_v52 = vmul.f32 0.01, %v2024_v14 }
 0x576   :  { %v1781_v51 = vadd.f32 1e-05, %v1780_v35 }
 0x577   :  { %v8132_v34 = vsel %vm2025_vm2, %v2024_v14, %v2026_v52  ;;  %vm4985_vm2 = vcmask 654336  }
 0x578   :  { %2033 = vrot.lane.b32.xlu0 %v8132_v34, %s6317_s3  ;;  %2029 = vrot.lane.b32.xlu1 %v8132_v34, %s6316_s0  ;;  %6156 = vrsqrt.f32 %v1781_v51 }
 0x584   :  { %v3331_v16 = vpop.xlane.xlu1 %3330 }
 0x585   :  { %v3332_v25 = vrot.slane %v3331_v16, 4  ;;  %v6157_v0 = vpop.eup %6156 }
 0x586   :  { %v1784_v51 = vmul.f32 %v6157_v0, %v1783_v2 }
 0x587   :  { %v3333_v44 = vadd.f32 %v3332_v25, %v3331_v16 }
 0x588   :  { %v3723_v42 = vpop.xlane.xlu1 %3722 }
 0x589   :  { %v3334_v21 = vrot.slane %v3333_v44, 2  ;;  %v3711_v24 = vpop.xlane.xlu0 %3710  ;;  %v3724_v22 = vrot.slane %v3723_v42, 4 }
 0x58a   :  { %v3712_v26 = vrot.slane %v3711_v24, 4  ;;  %s6107_s4 = spop %6106 }
 0x58b   :  { %v3725_v1 = vadd.f32 %v3724_v22, %v3723_v42  ;;  %v3335_v4 = vadd.f32 %v3334_v21, %v3333_v44  ;;  %v2543_v18 = vstv %s6107_s4  ;;  %s6109_s28 = spop %6108  ;;  %v1785_v44 = vmul.f32 %v1784_v51, %v8134_v43 }
 0x58c   :  { %v3713_v49 = vadd.f32 %v3712_v26, %v3711_v24  ;;  %v8146_v7 = vmul.f32 0.0025, %v2543_v18  ;;  %v2555_v8 = vstv %s6109_s28  ;;  %v2562_v21 = vstv %s5243_s25 }
 0x58d   :  { %v3726_v36 = vrot.slane %v3725_v1, 2  ;;  %v4103_v62 = vpop.xlane.xlu0 %4102  ;;  %v3336_v5 = vrot.slane %v3335_v4, 1  ;;  %v2557_v30 = vmul.f32 0.0025, %v2555_v8  ;;  %v1787_v42 = vsub.f32 %v1786_v53, %v1785_v44 }
 0x58e   :  { %v3714_v61 = vrot.slane %v3713_v49, 2  ;;  %v4104_v12 = vrot.slane %v4103_v62, 4  ;;  %v2558_v20 = vmul.f32 %v8146_v7, %v8146_v7  ;;  %v1788_v22 = vmul.f32 %v1784_v51, %v7830_v10 }
 0x58f   :  { %s6111_s22 = spop %6110  ;;  %v3337_v45 = vadd.f32 %v3336_v5, %v3335_v4  ;;  %v3727_v63 = vadd.f32 %v3726_v36, %v3725_v1  ;;  %v2954_v4 = vstv %s5310_s26 }
 0x590   :  { %v4105_v55 = vadd.f32 %v4104_v12, %v4103_v62  ;;  %v2935_v57 = vstv %s6111_s22  ;;  %s6113_s23 = spop %6112  ;;  %v3715_v38 = vadd.f32 %v3714_v61, %v3713_v49  ;;  %v2559_v46 = vsub.f32 %v2557_v30, %v2558_v20  ;;  %s8715_s22 = sld [smem:[#allocation16 + $0x7]] }
 0x591   :  { %v2948_v32 = vmul.f32 0.0025, %v2935_v57  ;;  %v2947_v33 = vstv %s6113_s23  ;;  %v4115_v50 = vpop.xlane.xlu0 %4114  ;;  %6116 = vpush %v3337_v45  ;;  %v3728_v3 = vrot.slane %v3727_v63, 1  ;;  %v1789_v1 = vadd.f32 %v1788_v22, %v1787_v42 }
 0x592   :  { %v4106_v27 = vrot.slane %v4105_v55, 2  ;;  %v2949_v15 = vmul.f32 0.0025, %v2947_v33  ;;  %v4116_v13 = vrot.slane %v4115_v50, 4  ;;  %v3716_v37 = vrot.slane %v3715_v38, 1  ;;  %s6115_s29 = spop %6114 }
 0x593   :  { %v2560_v41 = vadd.f32 1e-05, %v2559_v46  ;;  %v2950_v6 = vmul.f32 %v2948_v32, %v2948_v32  ;;  %v3729_v17 = vadd.f32 %v3728_v3, %v3727_v63  ;;  %v2565_v49 = vstv %s5244_s2 }
 0x594   :  { %v4117_v40 = vadd.f32 %v4116_v13, %v4115_v50  ;;  %v3717_v23 = vadd.f32 %v3716_v37, %v3715_v38  ;;  %v4107_v47 = vadd.f32 %v4106_v27, %v4105_v55  ;;  %v1791_v5 = vmul.f32 0.01, %v1789_v1 }
 0x595   :  { %6158 = vrsqrt.f32 %v2560_v41  ;;  %v2951_v14 = vsub.f32 %v2949_v15, %v2950_v6  ;;  %v2957_v61 = vstv %s5311_s27  ;;  %vm1790_vm4 = vcmp.ge.f32.partialorder %v1789_v1, 0.0 }
 0x596   :  { %v4118_v52 = vrot.slane %v4117_v40, 2  ;;  %6118 = vpush %v3717_v23  ;;  %v4108_v48 = vrot.slane %v4107_v47, 1  ;;  %v8163_v10 = vsel %vm1790_vm4, %v1789_v1, %v1791_v5  ;;  %v3741_v42 = vstv %s5445_s19 }
 0x597   :  { %v2952_v28 = vadd.f32 1e-05, %v2951_v14  ;;  %4506 = vadd.xlane.f32.xlu0 %v4505_v59  ;;  %6120 = vpush %v3729_v17  ;;  %v4130_v22 = vstv %s5511_s1  ;;  %vm5062_vm4 = vcmask 27648  }
 0x598   :  { %v4109_v35 = vadd.f32 %v4108_v48, %v4107_v47  ;;  %v4119_v19 = vadd.f32 %v4118_v52, %v4117_v40  ;;  %v3346_v52 = vstv %s5377_s6 }
 0x599   :  { %6160 = vrsqrt.f32 %v2952_v28  ;;  %v3349_v28 = vstv %s5378_s7 }
 0x59a   :  { %6122 = vpush %v4109_v35  ;;  %v4120_v16 = vrot.slane %v4119_v19, 1 }
 0x59c   :  { %4494 = vadd.xlane.f32.xlu1 %v4493_v11  ;;  %v4121_v25 = vadd.f32 %v4120_v16, %v4119_v19  ;;  %v3738_v16 = vstv %s5444_s8 }
 0x59e   :  { %6124 = vpush %v4121_v25 }
 0x5a2   :  { %v6159_v24 = vpop.eup %6158 }
 0x5a3   :  { %v2563_v26 = vmul.f32 %v6159_v24, %v2562_v21 }
 0x5a5   :  { %v2564_v18 = vmul.f32 %v2563_v26, %v8146_v7  ;;  %v2567_v43 = vmul.f32 %v2563_v26, %v7905_v39 }
 0x5a6   :  { %v6161_v36 = vpop.eup %6160 }
 0x5a7   :  { %v2955_v8 = vmul.f32 %v6161_v36, %v2954_v4  ;;  %v2566_v62 = vsub.f32 %v2565_v49, %v2564_v18  ;;  %v4133_v18 = vstv %s5512_s20 }
 0x5a9   :  { %v2956_v30 = vmul.f32 %v2955_v8, %v2948_v32  ;;  %v2568_v12 = vadd.f32 %v2567_v43, %v2566_v62  ;;  %v2959_v45 = vmul.f32 %v2955_v8, %v7915_v56  ;;  %v3327_v56 = vstv %s6115_s29 }
 0x5aa   :  { %v3340_v38 = vmul.f32 0.0025, %v3327_v56  ;;  %v1837_v56 = vld [vmem:[%s9403_s9 + $0x118] sm:$0xff] }
 0x5ab   :  { %v2958_v20 = vsub.f32 %v2957_v61, %v2956_v30  ;;  %v2570_v63 = vmul.f32 0.01, %v2568_v12  ;;  %vm2569_vm10 = vcmp.ge.f32.partialorder %v2568_v12, 0.0 }
 0x5ac   :  { %v3342_v46 = vmul.f32 %v3340_v38, %v3340_v38 }
 0x5ad   :  { %1798 = vrot.lane.b32.xlu0 %v8163_v10, %s6317_s3  ;;  %1794 = vrot.lane.b32.xlu1 %v8163_v10, %s6316_s0  ;;  %v2960_v7 = vadd.f32 %v2959_v45, %v2958_v20  ;;  %v8169_v55 = vsel %vm2569_vm10, %v2568_v12, %v2570_v63  ;;  %v1838_v63 = vld [vmem:[%s9403_s9 + $0x120] sm:$0x3] }
 0x5af   :  { %vm2961_vm11 = vcmp.ge.f32.partialorder %v2960_v7, 0.0  ;;  %v2962_v39 = vmul.f32 0.01, %v2960_v7 }
 0x5b1   :  { %v8171_v57 = vsel %vm2961_vm11, %v2960_v7, %v2962_v39  ;;  %2573 = vrot.lane.b32.xlu1 %v8169_v55, %s6316_s0  ;;  %v1835_v39 = vld [vmem:[%s9403_s9 + $0x108] sm:$0xff] }
 0x5b2   :  { %2965 = vrot.lane.b32.xlu0 %v8171_v57, %s6316_s0 }
 0x5b5   :  { %2577 = vrot.lane.b32.xlu1 %v8169_v55, %s6317_s3 }
 0x5b9   :  { %2969 = vrot.lane.b32.xlu1 %v8171_v57, %s6317_s3 }
 0x5c2   :  { %s6117_s30 = spop %6116 }
 0x5c3   :  { %v3339_v29 = vstv %s6117_s30 }
 0x5c4   :  { %v3341_v32 = vmul.f32 0.0025, %v3339_v29  ;;  %v1832_v29 = vld [vmem:[%s9403_s9 + $0xf0] sm:$0xff] }
 0x5c6   :  { %v3343_v33 = vsub.f32 %v3341_v32, %v3342_v46  ;;  %v1834_v46 = vld [vmem:[%s9403_s9 + $0x100] sm:$0xff] }
 0x5c7   :  { %s6119_s16 = spop %6118  ;;  %v1830_v32 = vld [vmem:[%s9403_s9 + $0xe0] sm:$0xff] }
 0x5c8   :  { %v3344_v50 = vadd.f32 1e-05, %v3343_v33  ;;  %v3719_v3 = vstv %s6119_s16  ;;  %s6121_s17 = spop %6120  ;;  %v1829_v33 = vld [vmem:[%s9403_s9 + $0xd8] sm:$0xff]  ;;  %s8693_s16 = sld [smem:[#allocation15 + $0x7]] }
 0x5c9   :  { %v3732_v27 = vmul.f32 0.0025, %v3719_v3  ;;  %v3731_v15 = vstv %s6121_s17  ;;  %v1827_v3 = vld [vmem:[%s9403_s9 + $0xc8] sm:$0xff]  ;;  %s6321_s17 = smov [#allocation18]  }
 0x5ca   :  { %6162 = vrsqrt.f32 %v3344_v50  ;;  %v3733_v13 = vmul.f32 0.0025, %v3731_v15  ;;  %v1831_v50 = vld [vmem:[%s9403_s9 + $0xe8] sm:$0xff]  ;;  %v1828_v15 = vld [vmem:[%s9403_s9 + $0xd0] sm:$0xff] }
 0x5cb   :  { %v3734_v37 = vmul.f32 %v3732_v27, %v3732_v27  ;;  %s6123_s21 = spop %6122 }
 0x5cc   :  { %v4111_v41 = vstv %s6123_s21 }
 0x5cd   :  { %v3735_v6 = vsub.f32 %v3733_v13, %v3734_v37  ;;  %v4124_v17 = vmul.f32 0.0025, %v4111_v41  ;;  %v1824_v13 = vld [vmem:[%s9403_s9 + $0xb0] sm:$0xff]  ;;  %v1823_v37 = vld [vmem:[%s9403_s9 + $0xa8] sm:$0xff]  ;;  %v1825_v41 = vld [vmem:[%s9403_s9 + $0xb8] sm:$0xff] }
 0x5cf   :  { %v3736_v40 = vadd.f32 1e-05, %v3735_v6  ;;  %s6125_s18 = spop %6124  ;;  %v4126_v47 = vmul.f32 %v4124_v17, %v4124_v17  ;;  %v1821_v6 = vld [vmem:[%s9403_s9 + $0x98] sm:$0xff] }
 0x5d0   :  { %v4123_v23 = vstv %s6125_s18 }
 0x5d1   :  { %6164 = vrsqrt.f32 %v3736_v40  ;;  %v4125_v0 = vmul.f32 0.0025, %v4123_v23  ;;  %v1822_v40 = vld [vmem:[%s9403_s9 + $0xa0] sm:$0xff] }
 0x5d2   :  { %v1818_v23 = vld [vmem:[%s9403_s9 + $0x80] sm:$0xff] }
 0x5d3   :  { %v4127_v14 = vsub.f32 %v4125_v0, %v4126_v47  ;;  %v1817_v47 = vld [vmem:[%s9403_s9 + $0x78] sm:$0xff]  ;;  %v1819_v0 = vld [vmem:[%s9403_s9 + $0x88] sm:$0xff] }
 0x5d5   :  { %v4128_v2 = vadd.f32 1e-05, %v4127_v14  ;;  %v1815_v14 = vld [vmem:[%s9403_s9 + $0x68] sm:$0xff] }
 0x5d7   :  { %v6163_v59 = vpop.eup %6162  ;;  %6166 = vrsqrt.f32 %v4128_v2  ;;  %v1814_v2 = vld [vmem:[%s9403_s9 + $0x60] sm:$0xff] }
 0x5d8   :  { %v3347_v48 = vmul.f32 %v6163_v59, %v3346_v52  ;;  %v1816_v52 = vld [vmem:[%s9403_s9 + $0x70] sm:$0xff] }
 0x5d9   :  { %v1812_v59 = vld [vmem:[%s9403_s9 + $0x50] sm:$0xff] }
 0x5da   :  { %v3348_v35 = vmul.f32 %v3347_v48, %v3340_v38  ;;  %v3351_v51 = vmul.f32 %v3347_v48, %v7937_v58  ;;  %v1833_v38 = vld [vmem:[%s9403_s9 + $0xf8] sm:$0xff]  ;;  %v1811_v48 = vld [vmem:[%s9403_s9 + $0x48] sm:$0xff] }
 0x5dc   :  { %v3350_v19 = vsub.f32 %v3349_v28, %v3348_v35  ;;  %v1813_v28 = vld [vmem:[%s9403_s9 + $0x58] sm:$0xff] }
 0x5dd   :  { %v1809_v35 = vld [vmem:[%s9403_s9 + $0x38] sm:$0xff] }
 0x5de   :  { %v6165_v11 = vpop.eup %6164  ;;  %v3352_v25 = vadd.f32 %v3351_v51, %v3350_v19  ;;  %v1808_v19 = vld [vmem:[%s9403_s9 + $0x30] sm:$0xff]  ;;  %v1810_v51 = vld [vmem:[%s9403_s9 + $0x40] sm:$0xff] }
 0x5df   :  { %v3739_v44 = vmul.f32 %v6165_v11, %v3738_v16  ;;  %v1806_v16 = vld [vmem:[%s9403_s9 + $0x20] sm:$0xff]  ;;  %v1805_v11 = vld [vmem:[%s9403_s9 + $0x18] sm:$0xff] }
 0x5e0   :  { %vm3353_vm12 = vcmp.ge.f32.partialorder %v3352_v25, 0.0  ;;  %v3354_v53 = vmul.f32 0.01, %v3352_v25 }
 0x5e1   :  { %v3740_v21 = vmul.f32 %v3739_v44, %v3732_v27  ;;  %v3743_v58 = vmul.f32 %v3739_v44, %v7956_v9  ;;  %v1826_v27 = vld [vmem:[%s9403_s9 + $0xc0] sm:$0xff]  ;;  %v1803_v44 = vld [vmem:[%s9403_s9 + $0x8] sm:$0xff] }
 0x5e2   :  { %v8182_v24 = vsel %vm3353_vm12, %v3352_v25, %v3354_v53  ;;  %v1807_v25 = vld [vmem:[%s9403_s9 + $0x28] sm:$0xff]  ;;  %v1802_v53 = vld [vmem:[%s9403_s9] sm:$0xff] }
 0x5e3   :  { %3357 = vrot.lane.b32.xlu0 %v8182_v24, %s6316_s0  ;;  %3361 = vrot.lane.b32.xlu1 %v8182_v24, %s6317_s3  ;;  %v3742_v26 = vsub.f32 %v3741_v42, %v3740_v21  ;;  %v1804_v42 = vld [vmem:[%s9403_s9 + $0x10] sm:$0xff]  ;;  %v5282_v21 = vld [vmem:[%s9403_s9 + $0x398] sm:$0x3] }
 0x5e4   :  { %v6167_v1 = vpop.eup %6166 }
 0x5e5   :  { %v3744_v4 = vadd.f32 %v3743_v58, %v3742_v26  ;;  %v4131_v49 = vmul.f32 %v6167_v1, %v4130_v22 }
 0x5e7   :  { %vm3745_vm13 = vcmp.ge.f32.partialorder %v3744_v4, 0.0  ;;  %v3746_v36 = vmul.f32 0.01, %v3744_v4  ;;  %v4132_v8 = vmul.f32 %v4131_v49, %v4124_v17  ;;  %v4135_v5 = vmul.f32 %v4131_v49, %v7965_v31  ;;  %v1840_v31 = vld [vmem:[%s9403_s9 + $0x130] sm:$0x3] }
 0x5e8   :  { %v1820_v17 = vld [vmem:[%s9403_s9 + $0x90] sm:$0xff] }
 0x5e9   :  { %v8189_v62 = vsel %vm3745_vm13, %v3744_v4, %v3746_v36  ;;  %v4134_v43 = vsub.f32 %v4133_v18, %v4132_v8 }
 0x5ea   :  { %v2030_v61 = vpop.permute.xlu1 %2029  ;;  %3753 = vrot.lane.b32.xlu1 %v8189_v62, %s6317_s3  ;;  %3749 = vrot.lane.b32.xlu0 %v8189_v62, %s6316_s0  ;;  %v2034_v12 = vpop.permute.xlu0 %2033 }
 0x5eb   :  { %v2032_v9 = vmax.f32 %v8132_v34, %v2030_v61  ;;  %v4136_v30 = vadd.f32 %v4135_v5, %v4134_v43  ;;  %v1836_v34 = vld [vmem:[%s9403_s9 + $0x110] sm:$0xff] }
 0x5ed   :  { %v2036_v20 = vmax.f32 %v2032_v9, %v2034_v12  ;;  %vm4137_vm15 = vcmp.ge.f32.partialorder %v4136_v30, 0.0  ;;  %v4138_v45 = vmul.f32 0.01, %v4136_v30  ;;  %v5283_v12 = vld [vmem:[%s9403_s9 + $0x3a0] sm:$0x3] }
 0x5ef   :  { %5214 = vmatmul.mubr.msk.f32.vlgmr.msra.gmra.mxu0 %vm2077_vm14, %v2036_v20  ;;  %5827 = vmatmul.mubr.msk.f32.vlgmr.msra.gmra.mxu1 %vm2077_vm14, %v2036_v20  ;;  %v8205_v7 = vsel %vm4137_vm15, %v4136_v30, %v4138_v45  ;;  %v5281_v30 = vld [vmem:[%s9403_s9 + $0x390] sm:$0x3]  ;;  %v5279_v45 = vld [vmem:[%s9403_s9 + $0x380] sm:$0xff] }
 0x5f0   :  { %4145 = vrot.lane.b32.xlu1 %v8205_v7, %s6317_s3  ;;  %4141 = vrot.lane.b32.xlu0 %v8205_v7, %s6316_s0 }
 0x5f1   :  { %5218 = vmatpush1.msk.msra.mxu0 %vm2081_vm1, %v1838_v63  ;;  %5830 = vmatpush3.msk.msra.mxu1 %vm2081_vm1, %v1840_v31  ;;  %v5280_v31 = vld [vmem:[%s9403_s9 + $0x388] sm:$0xff] }
 0x5f2   :  { %2252 = vmatprep.subr.mxu0 %v1836_v34  ;;  %5831 = vmatprep.subr.mxu1 %v9478_v60 }
 0x5f3   :  { %2253 = vmatpush1.msra.mxu0 %v1835_v39  ;;  %5832 = vmatpush3.msra.mxu1 %v1837_v56  ;;  %v5276_v39 = vld [vmem:[%s9403_s9 + $0x368] sm:$0xff]  ;;  %v5275_v56 = vld [vmem:[%s9403_s9 + $0x360] sm:$0xff] }
 0x5f4   :  { %2254 = vmatprep.subr.mxu0 %v1833_v38  ;;  %5833 = vmatprep.subr.mxu1 %v9478_v60  ;;  %v5277_v38 = vld [vmem:[%s9403_s9 + $0x370] sm:$0xff] }
 0x5f5   :  { %2255 = vmatpush1.msra.mxu0 %v1832_v29  ;;  %5834 = vmatpush3.msra.mxu1 %v1834_v46 }
 0x5f6   :  { %2256 = vmatprep.subr.mxu0 %v1830_v32  ;;  %5835 = vmatprep.subr.mxu1 %v9478_v60  ;;  %v5273_v32 = vld [vmem:[%s9403_s9 + $0x350] sm:$0xff] }
 0x5f7   :  { %2257 = vmatpush1.msra.mxu0 %v1829_v33  ;;  %5836 = vmatpush3.msra.mxu1 %v1831_v50  ;;  %v5272_v33 = vld [vmem:[%s9403_s9 + $0x348] sm:$0xff]  ;;  %v5274_v50 = vld [vmem:[%s9403_s9 + $0x358] sm:$0xff] }
 0x5f8   :  { %2258 = vmatprep.subr.mxu0 %v1827_v3  ;;  %5837 = vmatprep.subr.mxu1 %v9478_v60  ;;  %v5270_v3 = vld [vmem:[%s9403_s9 + $0x338] sm:$0xff] }
 0x5f9   :  { %2259 = vmatpush1.msra.mxu0 %v1826_v27  ;;  %5838 = vmatpush3.msra.mxu1 %v1828_v15  ;;  %v5269_v27 = vld [vmem:[%s9403_s9 + $0x330] sm:$0xff]  ;;  %v5271_v15 = vld [vmem:[%s9403_s9 + $0x340] sm:$0xff] }
 0x5fa   :  { %2260 = vmatprep.subr.mxu0 %v1824_v13  ;;  %5839 = vmatprep.subr.mxu1 %v9478_v60  ;;  %v5267_v13 = vld [vmem:[%s9403_s9 + $0x320] sm:$0xff] }
 0x5fb   :  { %2261 = vmatpush1.msra.mxu0 %v1823_v37  ;;  %5840 = vmatpush3.msra.mxu1 %v1825_v41  ;;  %v5266_v37 = vld [vmem:[%s9403_s9 + $0x318] sm:$0xff]  ;;  %v5268_v41 = vld [vmem:[%s9403_s9 + $0x328] sm:$0xff] }
 0x5fc   :  { %2262 = vmatprep.subr.mxu0 %v1821_v6  ;;  %5841 = vmatprep.subr.mxu1 %v9478_v60  ;;  %v5264_v6 = vld [vmem:[%s9403_s9 + $0x308] sm:$0xff] }
 0x5fd   :  { %2263 = vmatpush1.msra.mxu0 %v1820_v17  ;;  %5842 = vmatpush3.msra.mxu1 %v1822_v40  ;;  %v5263_v17 = vld [vmem:[%s9403_s9 + $0x300] sm:$0xff]  ;;  %v5265_v40 = vld [vmem:[%s9403_s9 + $0x310] sm:$0xff] }
 0x5fe   :  { %2264 = vmatprep.subr.mxu0 %v1818_v23  ;;  %5843 = vmatprep.subr.mxu1 %v9478_v60  ;;  %v5261_v23 = vld [vmem:[%s9403_s9 + $0x2f0] sm:$0xff] }
 0x5ff   :  { %2265 = vmatpush1.msra.mxu0 %v1817_v47  ;;  %5844 = vmatpush3.msra.mxu1 %v1819_v0  ;;  %v5260_v47 = vld [vmem:[%s9403_s9 + $0x2e8] sm:$0xff]  ;;  %v5262_v0 = vld [vmem:[%s9403_s9 + $0x2f8] sm:$0xff] }
 0x600   :  { %2266 = vmatprep.subr.mxu0 %v1815_v14  ;;  %5845 = vmatprep.subr.mxu1 %v9478_v60  ;;  %v5258_v14 = vld [vmem:[%s9403_s9 + $0x2d8] sm:$0xff] }
 0x601   :  { %2267 = vmatpush1.msra.mxu0 %v1814_v2  ;;  %5846 = vmatpush3.msra.mxu1 %v1816_v52  ;;  %v5257_v2 = vld [vmem:[%s9403_s9 + $0x2d0] sm:$0xff]  ;;  %v5259_v52 = vld [vmem:[%s9403_s9 + $0x2e0] sm:$0xff] }
 0x602   :  { %2268 = vmatprep.subr.mxu0 %v1812_v59  ;;  %5847 = vmatprep.subr.mxu1 %v9478_v60  ;;  %v5255_v59 = vld [vmem:[%s9403_s9 + $0x2c0] sm:$0xff] }
 0x603   :  { %2269 = vmatpush1.msra.mxu0 %v1811_v48  ;;  %5848 = vmatpush3.msra.mxu1 %v1813_v28  ;;  %v5254_v28 = vld [vmem:[%s9403_s9 + $0x2b8] sm:$0xff] }
 0x604   :  { %2270 = vmatprep.subr.mxu0 %v1809_v35  ;;  %5849 = vmatprep.subr.mxu1 %v9478_v60  ;;  %v5256_v35 = vld [vmem:[%s9403_s9 + $0x2c8] sm:$0xff] }
 0x605   :  { %2271 = vmatpush1.msra.mxu0 %v1808_v19  ;;  %5850 = vmatpush3.msra.mxu1 %v1810_v51  ;;  %v5252_v19 = vld [vmem:[%s9403_s9 + $0x2a8] sm:$0xff]  ;;  %v5251_v51 = vld [vmem:[%s9403_s9 + $0x2a0] sm:$0xff] }
 0x606   :  { %2272 = vmatprep.subr.mxu0 %v1806_v16  ;;  %5851 = vmatprep.subr.mxu1 %v9478_v60  ;;  %v5253_v16 = vld [vmem:[%s9403_s9 + $0x2b0] sm:$0xff] }
 0x607   :  { %2273 = vmatpush1.msra.mxu0 %v1805_v11  ;;  %5852 = vmatpush3.msra.mxu1 %v1807_v25  ;;  %v5249_v11 = vld [vmem:[%s9403_s9 + $0x290] sm:$0xff]  ;;  %v5248_v25 = vld [vmem:[%s9403_s9 + $0x288] sm:$0xff] }
 0x608   :  { %2274 = vmatprep.subr.mxu0 %v1803_v44  ;;  %5853 = vmatprep.subr.mxu1 %v9478_v60  ;;  %v5250_v44 = vld [vmem:[%s9403_s9 + $0x298] sm:$0xff] }
 0x609   :  { %2275 = vmatpush1.msra.mxu0 %v1802_v53  ;;  %5854 = vmatpush3.msra.mxu1 %v1804_v42  ;;  %v5246_v53 = vld [vmem:[%s9403_s9 + $0x278] sm:$0xff] }
 0x60a   :  { %2308 = vmatprep.mubr.f32.mxu0 %v9478_v60  ;;  %5855 = vmatprep.mubr.msk.f32.mxu1 %vm6320_vm3, %v9478_v60 }
 0x60b   :  { %5284 = vmatprep.subr.msk.mxu0 %vm2081_vm1, %v5282_v21  ;;  %5858 = vmatprep.subr.mxu1 %v9478_v60  ;;  %v5245_v21 = vld [vmem:[%s9403_s9 + $0x270] sm:$0xff] }
 0x620   :  { %v4507_v22 = vpop.xlane.xlu0 %4506 }
 0x621   :  { %v4508_v26 = vrot.slane %v4507_v22, 4 }
 0x623   :  { %v4509_v58 = vadd.f32 %v4508_v26, %v4507_v22  ;;  %v5247_v26 = vld [vmem:[%s9403_s9 + $0x280] sm:$0xff] }
 0x624   :  { %v1799_v61 = vpop.permute.xlu0 %1798 }
 0x625   :  { %v4510_v1 = vrot.slane %v4509_v58, 2  ;;  %v4495_v4 = vpop.xlane.xlu1 %4494 }
 0x626   :  { %v4496_v49 = vrot.slane %v4495_v4, 4 }
 0x627   :  { %v4511_v8 = vadd.f32 %v4510_v1, %v4509_v58  ;;  %v5349_v1 = vld [vmem:[%s9403_s9 + $0x4d0] sm:$0x3] }
 0x628   :  { %v4497_v18 = vadd.f32 %v4496_v49, %v4495_v4  ;;  %v5350_v4 = vld [vmem:[%s9403_s9 + $0x4d8] sm:$0x3] }
 0x629   :  { %v1795_v36 = vpop.permute.xlu1 %1794  ;;  %v4512_v63 = vrot.slane %v4511_v8, 1  ;;  %v5346_v49 = vld [vmem:[%s9403_s9 + $0x4b8] sm:$0xff] }
 0x62a   :  { %v4498_v43 = vrot.slane %v4497_v18, 2  ;;  %v1797_v5 = vmax.f32 %v8163_v10, %v1795_v36  ;;  %v5278_v10 = vld [vmem:[%s9403_s9 + $0x378] sm:$0xff]  ;;  %v5347_v36 = vld [vmem:[%s9403_s9 + $0x4c0] sm:$0xff] }
 0x62b   :  { %v4513_v46 = vadd.f32 %v4512_v63, %v4511_v8  ;;  %v5343_v8 = vld [vmem:[%s9403_s9 + $0x4a0] sm:$0xff]  ;;  %v5334_v63 = vld [vmem:[%s9403_s9 + $0x458] sm:$0xff] }
 0x62c   :  { %v1801_v9 = vmax.f32 %v1797_v5, %v1799_v61  ;;  %v4499_v20 = vadd.f32 %v4498_v43, %v4497_v18  ;;  %v5345_v18 = vld [vmem:[%s9403_s9 + $0x4b0] sm:$0xff]  ;;  %v5342_v43 = vld [vmem:[%s9403_s9 + $0x498] sm:$0xff]  ;;  %v5344_v5 = vld [vmem:[%s9403_s9 + $0x4a8] sm:$0xff] }
 0x62d   :  { %v2574_v48 = vpop.permute.xlu1 %2573  ;;  %v5340_v61 = vld [vmem:[%s9403_s9 + $0x488] sm:$0xff] }
 0x62e   :  { %5219 = vmatmul.mubr.msk.f32.vlgmr.msra.gmra.mxu0 %vm2077_vm14, %v1801_v9  ;;  %5856 = vmatmul.mubr.msk.f32.vlgmr.msra.gmra.mxu1 %vm2077_vm14, %v1801_v9  ;;  %v4500_v34 = vrot.slane %v4499_v20, 1  ;;  %v2576_v22 = vmax.f32 %v8169_v55, %v2574_v48  ;;  %v5348_v55 = vld [vmem:[%s9403_s9 + $0x4c8] sm:$0x3]  ;;  %v5339_v9 = vld [vmem:[%s9403_s9 + $0x480] sm:$0xff] }
 0x62f   :  { %5285 = vmatpush1.msk.msra.mxu0 %vm2081_vm1, %v5281_v30  ;;  %5859 = vmatpush3.msk.msra.mxu1 %vm2081_vm1, %v5283_v12  ;;  %v5341_v30 = vld [vmem:[%s9403_s9 + $0x490] sm:$0xff]  ;;  %v5416_v48 = vld [vmem:[%s9403_s9 + $0x608] sm:$0x3] }
 0x630   :  { %2641 = vmatprep.subr.mxu0 %v5279_v45  ;;  %5860 = vmatprep.subr.mxu1 %v9478_v60  ;;  %v4501_v29 = vadd.f32 %v4500_v34, %v4499_v20  ;;  %v5337_v12 = vld [vmem:[%s9403_s9 + $0x470] sm:$0xff]  ;;  %v5336_v20 = vld [vmem:[%s9403_s9 + $0x468] sm:$0xff]  ;;  %v5338_v45 = vld [vmem:[%s9403_s9 + $0x478] sm:$0xff] }
 0x631   :  { %2642 = vmatpush1.msra.mxu0 %v5278_v10  ;;  %5861 = vmatpush3.msra.mxu1 %v5280_v31  ;;  %v2578_v42 = vpop.permute.xlu1 %2577  ;;  %v5333_v10 = vld [vmem:[%s9403_s9 + $0x450] sm:$0xff]  ;;  %v5335_v31 = vld [vmem:[%s9403_s9 + $0x460] sm:$0xff] }
 0x632   :  { %2643 = vmatprep.subr.mxu0 %v5276_v39  ;;  %5862 = vmatprep.subr.mxu1 %v9478_v60  ;;  %6126 = vpush %v4501_v29  ;;  %v2580_v58 = vmax.f32 %v2576_v22, %v2578_v42  ;;  %v5331_v34 = vld [vmem:[%s9403_s9 + $0x440] sm:$0xff]  ;;  %v5330_v39 = vld [vmem:[%s9403_s9 + $0x438] sm:$0xff] }
 0x633   :  { %2644 = vmatpush1.msra.mxu0 %v5275_v56  ;;  %5863 = vmatpush3.msra.mxu1 %v5277_v38  ;;  %6128 = vpush %v4513_v46  ;;  %v5332_v56 = vld [vmem:[%s9403_s9 + $0x448] sm:$0xff]  ;;  %v5327_v29 = vld [vmem:[%s9403_s9 + $0x420] sm:$0xff]  ;;  %v5329_v46 = vld [vmem:[%s9403_s9 + $0x430] sm:$0xff] }
 0x634   :  { %2645 = vmatprep.subr.mxu0 %v5273_v32  ;;  %5864 = vmatprep.subr.mxu1 %v9478_v60  ;;  %v5328_v38 = vld [vmem:[%s9403_s9 + $0x428] sm:$0xff]  ;;  %v5325_v32 = vld [vmem:[%s9403_s9 + $0x410] sm:$0xff]  ;;  %v5410_v42 = vld [vmem:[%s9403_s9 + $0x5d8] sm:$0xff] }
 0x635   :  { %2646 = vmatpush1.msra.mxu0 %v5272_v33  ;;  %5865 = vmatpush3.msra.mxu1 %v5274_v50  ;;  %v5324_v33 = vld [vmem:[%s9403_s9 + $0x408] sm:$0xff]  ;;  %v5326_v50 = vld [vmem:[%s9403_s9 + $0x418] sm:$0xff]  ;;  %v5411_v22 = vld [vmem:[%s9403_s9 + $0x5e0] sm:$0xff] }
 0x636   :  { %2647 = vmatprep.subr.mxu0 %v5270_v3  ;;  %5866 = vmatprep.subr.mxu1 %v9478_v60  ;;  %v5322_v3 = vld [vmem:[%s9403_s9 + $0x3f8] sm:$0xff] }
 0x637   :  { %2648 = vmatpush1.msra.mxu0 %v5269_v27  ;;  %5867 = vmatpush3.msra.mxu1 %v5271_v15  ;;  %v5321_v27 = vld [vmem:[%s9403_s9 + $0x3f0] sm:$0xff]  ;;  %v5323_v15 = vld [vmem:[%s9403_s9 + $0x400] sm:$0xff] }
 0x638   :  { %2649 = vmatprep.subr.mxu0 %v5267_v13  ;;  %5868 = vmatprep.subr.mxu1 %v9478_v60  ;;  %v5319_v13 = vld [vmem:[%s9403_s9 + $0x3e0] sm:$0xff] }
 0x639   :  { %2650 = vmatpush1.msra.mxu0 %v5266_v37  ;;  %5869 = vmatpush3.msra.mxu1 %v5268_v41  ;;  %v5318_v37 = vld [vmem:[%s9403_s9 + $0x3d8] sm:$0xff]  ;;  %v5320_v41 = vld [vmem:[%s9403_s9 + $0x3e8] sm:$0xff] }
 0x63a   :  { %2651 = vmatprep.subr.mxu0 %v5264_v6  ;;  %5870 = vmatprep.subr.mxu1 %v9478_v60  ;;  %v5316_v6 = vld [vmem:[%s9403_s9 + $0x3c8] sm:$0xff] }
 0x63b   :  { %2652 = vmatpush1.msra.mxu0 %v5263_v17  ;;  %5871 = vmatpush3.msra.mxu1 %v5265_v40  ;;  %v2966_v17 = vpop.permute.xlu0 %2965  ;;  %v5315_v40 = vld [vmem:[%s9403_s9 + $0x3c0] sm:$0xff] }
 0x63c   :  { %2653 = vmatprep.subr.mxu0 %v5261_v23  ;;  %5872 = vmatprep.subr.mxu1 %v9478_v60  ;;  %v5317_v23 = vld [vmem:[%s9403_s9 + $0x3d0] sm:$0xff] }
 0x63d   :  { %2654 = vmatpush1.msra.mxu0 %v5260_v47  ;;  %5873 = vmatpush3.msra.mxu1 %v5262_v0  ;;  %v5313_v47 = vld [vmem:[%s9403_s9 + $0x3b0] sm:$0xff]  ;;  %v2970_v0 = vpop.permute.xlu1 %2969 }
 0x63e   :  { %2655 = vmatprep.subr.mxu0 %v5258_v14  ;;  %5874 = vmatprep.subr.mxu1 %v9478_v60  ;;  %v5312_v14 = vld [vmem:[%s9403_s9 + $0x3a8] sm:$0xff] }
 0x63f   :  { %2656 = vmatpush1.msra.mxu0 %v5257_v2  ;;  %5875 = vmatpush3.msra.mxu1 %v5259_v52  ;;  %v2968_v2 = vmax.f32 %v8171_v57, %v2966_v17  ;;  %v5314_v52 = vld [vmem:[%s9403_s9 + $0x3b8] sm:$0xff]  ;;  %v5415_v57 = vld [vmem:[%s9403_s9 + $0x600] sm:$0x3]  ;;  %v4525_v17 = vstv %s8715_s22 }
 0x640   :  { %2657 = vmatprep.subr.mxu0 %v5255_v59  ;;  %5876 = vmatprep.subr.mxu1 %v9478_v60 }
 0x641   :  { %2658 = vmatpush1.msra.mxu0 %v5254_v28  ;;  %5877 = vmatpush3.msra.mxu1 %v5256_v35  ;;  %v2972_v59 = vmax.f32 %v2968_v2, %v2970_v0  ;;  %v5417_v28 = vld [vmem:[%s9403_s9 + $0x610] sm:$0x3]  ;;  %v5483_v0 = vld [vmem:[%s9403_s9 + $0x740] sm:$0x3]  ;;  %v5482_v2 = vld [vmem:[%s9403_s9 + $0x738] sm:$0x3] }
 0x642   :  { %2659 = vmatprep.subr.mxu0 %v5252_v19  ;;  %5878 = vmatprep.subr.mxu1 %v9478_v60  ;;  %v5413_v19 = vld [vmem:[%s9403_s9 + $0x5f0] sm:$0xff] }
 0x643   :  { %2660 = vmatpush1.msra.mxu0 %v5251_v51  ;;  %5879 = vmatpush3.msra.mxu1 %v5253_v16 }
 0x644   :  { %2661 = vmatprep.subr.mxu0 %v5249_v11  ;;  %5880 = vmatprep.subr.mxu1 %v9478_v60  ;;  %v5412_v11 = vld [vmem:[%s9403_s9 + $0x5e8] sm:$0xff] }
 0x645   :  { %2662 = vmatpush1.msra.mxu0 %v5248_v25  ;;  %5881 = vmatpush3.msra.mxu1 %v5250_v44  ;;  %v5414_v25 = vld [vmem:[%s9403_s9 + $0x5f8] sm:$0xff] }
 0x646   :  { %2663 = vmatprep.subr.mxu0 %v5246_v53  ;;  %5882 = vmatprep.subr.mxu1 %v9478_v60 }
 0x647   :  { %2664 = vmatpush1.msra.mxu0 %v5245_v21  ;;  %2697 = vmatprep.mubr.f32.mxu0 %v9478_v60  ;;  %v5409_v21 = vld [vmem:[%s9403_s9 + $0x5d0] sm:$0xff] }
 0x648   :  { %5883 = vmatpush3.msra.mxu1 %v5247_v26  ;;  %5884 = vmatprep.mubr.msk.f32.mxu1 %vm6320_vm3, %v9478_v60 }
 0x649   :  { %5286 = vmatmul.mubr.msk.f32.vlgmr.msra.gmra.mxu0 %vm2077_vm14, %v2580_v58  ;;  %5885 = vmatmul.mubr.msk.f32.vlgmr.msra.gmra.mxu1 %vm2077_vm14, %v2580_v58  ;;  %v5407_v58 = vld [vmem:[%s9403_s9 + $0x5c0] sm:$0xff] }
 0x64a   :  { %5351 = vmatprep.subr.msk.mxu0 %vm2081_vm1, %v5349_v1  ;;  %5887 = vmatprep.subr.mxu1 %v9478_v60  ;;  %v5406_v1 = vld [vmem:[%s9403_s9 + $0x5b8] sm:$0xff] }
 0x64b   :  { %5352 = vmatpush1.msk.msra.mxu0 %vm2081_vm1, %v5348_v55  ;;  %5888 = vmatpush3.msk.msra.mxu1 %vm2081_vm1, %v5350_v4  ;;  %v5408_v55 = vld [vmem:[%s9403_s9 + $0x5c8] sm:$0xff] }
 0x64c   :  { %3033 = vmatprep.subr.mxu0 %v5346_v49  ;;  %5889 = vmatprep.subr.mxu1 %v9478_v60  ;;  %v5404_v49 = vld [vmem:[%s9403_s9 + $0x5a8] sm:$0xff] }
 0x64d   :  { %3034 = vmatpush1.msra.mxu0 %v5345_v18  ;;  %5890 = vmatpush3.msra.mxu1 %v5347_v36  ;;  %v5403_v18 = vld [vmem:[%s9403_s9 + $0x5a0] sm:$0xff]  ;;  %v5405_v36 = vld [vmem:[%s9403_s9 + $0x5b0] sm:$0xff] }
 0x64e   :  { %3035 = vmatprep.subr.mxu0 %v5343_v8  ;;  %5891 = vmatprep.subr.mxu1 %v9478_v60  ;;  %v5401_v8 = vld [vmem:[%s9403_s9 + $0x590] sm:$0xff] }
 0x64f   :  { %3036 = vmatpush1.msra.mxu0 %v5342_v43  ;;  %5892 = vmatpush3.msra.mxu1 %v5344_v5  ;;  %v5400_v43 = vld [vmem:[%s9403_s9 + $0x588] sm:$0xff]  ;;  %v5402_v5 = vld [vmem:[%s9403_s9 + $0x598] sm:$0xff] }
 0x650   :  { %3037 = vmatprep.subr.mxu0 %v5340_v61  ;;  %5893 = vmatprep.subr.mxu1 %v9478_v60  ;;  %v5398_v61 = vld [vmem:[%s9403_s9 + $0x578] sm:$0xff] }
 0x651   :  { %3038 = vmatpush1.msra.mxu0 %v5339_v9  ;;  %5894 = vmatpush3.msra.mxu1 %v5341_v30  ;;  %v5397_v9 = vld [vmem:[%s9403_s9 + $0x570] sm:$0xff]  ;;  %v5399_v30 = vld [vmem:[%s9403_s9 + $0x580] sm:$0xff] }
 0x652   :  { %3039 = vmatprep.subr.mxu0 %v5337_v12  ;;  %5895 = vmatprep.subr.mxu1 %v9478_v60  ;;  %v5395_v12 = vld [vmem:[%s9403_s9 + $0x560] sm:$0xff] }
 0x653   :  { %3040 = vmatpush1.msra.mxu0 %v5336_v20  ;;  %5896 = vmatpush3.msra.mxu1 %v5338_v45  ;;  %v5394_v20 = vld [vmem:[%s9403_s9 + $0x558] sm:$0xff]  ;;  %v5396_v45 = vld [vmem:[%s9403_s9 + $0x568] sm:$0xff] }
 0x654   :  { %3041 = vmatprep.subr.mxu0 %v5334_v63  ;;  %5897 = vmatprep.subr.mxu1 %v9478_v60  ;;  %v5392_v63 = vld [vmem:[%s9403_s9 + $0x548] sm:$0xff] }
 0x655   :  { %3042 = vmatpush1.msra.mxu0 %v5333_v10  ;;  %5898 = vmatpush3.msra.mxu1 %v5335_v31  ;;  %v5391_v10 = vld [vmem:[%s9403_s9 + $0x540] sm:$0xff]  ;;  %v5393_v31 = vld [vmem:[%s9403_s9 + $0x550] sm:$0xff] }
 0x656   :  { %3043 = vmatprep.subr.mxu0 %v5331_v34  ;;  %5899 = vmatprep.subr.mxu1 %v9478_v60  ;;  %v5389_v34 = vld [vmem:[%s9403_s9 + $0x530] sm:$0xff] }
 0x657   :  { %3044 = vmatpush1.msra.mxu0 %v5330_v39  ;;  %5900 = vmatpush3.msra.mxu1 %v5332_v56  ;;  %v5388_v39 = vld [vmem:[%s9403_s9 + $0x528] sm:$0xff]  ;;  %v5390_v56 = vld [vmem:[%s9403_s9 + $0x538] sm:$0xff] }
 0x658   :  { %3045 = vmatprep.subr.mxu0 %v5328_v38  ;;  %5901 = vmatprep.subr.mxu1 %v9478_v60  ;;  %v5386_v38 = vld [vmem:[%s9403_s9 + $0x518] sm:$0xff] }
 0x659   :  { %3046 = vmatpush1.msra.mxu0 %v5327_v29  ;;  %5902 = vmatpush3.msra.mxu1 %v5329_v46  ;;  %v3358_v29 = vpop.permute.xlu0 %3357  ;;  %v5385_v46 = vld [vmem:[%s9403_s9 + $0x510] sm:$0xff] }
 0x65a   :  { %3047 = vmatprep.subr.mxu0 %v5325_v32  ;;  %5903 = vmatprep.subr.mxu1 %v9478_v60  ;;  %v5387_v32 = vld [vmem:[%s9403_s9 + $0x520] sm:$0xff] }
 0x65b   :  { %3048 = vmatpush1.msra.mxu0 %v5324_v33  ;;  %5904 = vmatpush3.msra.mxu1 %v5326_v50  ;;  %v4522_v33 = vstv %s8693_s16  ;;  %v5383_v50 = vld [vmem:[%s9403_s9 + $0x500] sm:$0xff] }
 0x65c   :  { %3049 = vmatprep.subr.mxu0 %v5322_v3  ;;  %5905 = vmatprep.subr.mxu1 %v9478_v60 }
 0x65d   :  { %3050 = vmatpush1.msra.mxu0 %v5321_v27  ;;  %5906 = vmatpush3.msra.mxu1 %v5323_v15  ;;  %v5382_v27 = vld [vmem:[%s9403_s9 + $0x4f8] sm:$0xff]  ;;  %v5384_v15 = vld [vmem:[%s9403_s9 + $0x508] sm:$0xff] }
 0x65e   :  { %3051 = vmatprep.subr.mxu0 %v5319_v13  ;;  %5907 = vmatprep.subr.mxu1 %v9478_v60  ;;  %v3360_v13 = vmax.f32 %v8182_v24, %v3358_v29  ;;  %v5381_v24 = vld [vmem:[%s9403_s9 + $0x4f0] sm:$0xff]  ;;  %v5446_v29 = vld [vmem:[%s9403_s9 + $0x618] sm:$0xff] }
 0x65f   :  { %3052 = vmatpush1.msra.mxu0 %v5318_v37  ;;  %5908 = vmatpush3.msra.mxu1 %v5320_v41  ;;  %v5380_v37 = vld [vmem:[%s9403_s9 + $0x4e8] sm:$0xff] }
 0x660   :  { %3053 = vmatprep.subr.mxu0 %v5316_v6  ;;  %5909 = vmatprep.subr.mxu1 %v9478_v60  ;;  %v5379_v6 = vld [vmem:[%s9403_s9 + $0x4e0] sm:$0xff] }
 0x661   :  { %3054 = vmatpush1.msra.mxu0 %v5315_v40  ;;  %5910 = vmatpush3.msra.mxu1 %v5317_v23  ;;  %v3362_v23 = vpop.permute.xlu1 %3361 }
 0x662   :  { %3055 = vmatprep.subr.mxu0 %v5313_v47  ;;  %5911 = vmatprep.subr.mxu1 %v9478_v60  ;;  %v3364_v47 = vmax.f32 %v3360_v13, %v3362_v23  ;;  %v5548_v13 = vld [vmem:[%s9403_s9 + $0x868] sm:$0xff]  ;;  %v5538_v23 = vld [vmem:[%s9403_s9 + $0x818] sm:$0xff] }
 0x663   :  { %3056 = vmatpush1.msra.mxu0 %v5312_v14  ;;  %3089 = vmatprep.mubr.f32.mxu0 %v9478_v60  ;;  %s6127_s21 = spop %6126 }
 0x664   :  { %5912 = vmatpush3.msra.mxu1 %v5314_v52  ;;  %5913 = vmatprep.mubr.msk.f32.mxu1 %vm6320_vm3, %v9478_v60  ;;  %v4503_v35 = vstv %s6127_s21  ;;  %s6129_s19 = spop %6128  ;;  %v5484_v52 = vld [vmem:[%s9403_s9 + $0x748] sm:$0x3]  ;;  %s5070_s21 = sshll.u32 %s6321_s17, 4  ;;  %s5071_s21 = int_to_ptr.vmem [resolvable:$true] %s5070_s21 }
 0x665   :  { %5353 = vmatmul.mubr.msk.f32.vlgmr.msra.gmra.mxu0 %vm2077_vm14, %v2972_v59  ;;  %5914 = vmatmul.mubr.msk.f32.vlgmr.msra.gmra.mxu1 %vm2077_vm14, %v2972_v59  ;;  %v8629_v51 = vmul.f32 0.0025, %v4503_v35  ;;  %v4515_v16 = vstv %s6129_s19  ;;  %v5477_v35 = vld [vmem:[%s9403_s9 + $0x710] sm:$0xff]  ;;  %p6279_p13 = scmp.lt.s32.totalorder %s5071_s21, %s5071_s21 }
 0x666   :  { %5418 = vmatprep.subr.msk.mxu0 %vm2081_vm1, %v5416_v48  ;;  %5916 = vmatprep.subr.mxu1 %v9478_v60  ;;  %v4517_v53 = vmul.f32 0.0025, %v4515_v16  ;;  %v5480_v48 = vld [vmem:[%s9403_s9 + $0x728] sm:$0xff]  ;;  %v5474_v16 = vld [vmem:[%s9403_s9 + $0x6f8] sm:$0xff] }
 0x667   :  { %5419 = vmatpush1.msk.msra.mxu0 %vm2081_vm1, %v5415_v57  ;;  %5917 = vmatpush3.msk.msra.mxu1 %vm2081_vm1, %v5417_v28  ;;  %v4518_v44 = vmul.f32 %v8629_v51, %v8629_v51  ;;  %v5479_v57 = vld [vmem:[%s9403_s9 + $0x720] sm:$0xff] }
 0x668   :  { %3425 = vmatprep.subr.mxu0 %v5413_v19  ;;  %5918 = vmatprep.subr.mxu1 %v9478_v60  ;;  %v5476_v19 = vld [vmem:[%s9403_s9 + $0x708] sm:$0xff] }
 0x669   :  { %v4519_v26 = vsub.f32 %v4517_v53, %v4518_v44  ;;  %3426 = vmatpush1.msra.mxu0 %v5412_v11  ;;  %5919 = vmatpush3.msra.mxu1 %v5414_v25  ;;  %v5473_v11 = vld [vmem:[%s9403_s9 + $0x6f0] sm:$0xff]  ;;  %v5475_v25 = vld [vmem:[%s9403_s9 + $0x700] sm:$0xff] }
 0x66a   :  { %3427 = vmatprep.subr.mxu0 %v5410_v42  ;;  %5920 = vmatprep.subr.mxu1 %v9478_v60  ;;  %v5471_v53 = vld [vmem:[%s9403_s9 + $0x6e0] sm:$0xff]  ;;  %v5470_v42 = vld [vmem:[%s9403_s9 + $0x6d8] sm:$0xff] }
 0x66b   :  { %v4520_v4 = vadd.f32 1e-05, %v4519_v26  ;;  %3428 = vmatpush1.msra.mxu0 %v5409_v21  ;;  %5921 = vmatpush3.msra.mxu1 %v5411_v22  ;;  %v5472_v21 = vld [vmem:[%s9403_s9 + $0x6e8] sm:$0xff] }
 0x66c   :  { %3429 = vmatprep.subr.mxu0 %v5407_v58  ;;  %5922 = vmatprep.subr.mxu1 %v9478_v60  ;;  %v5468_v22 = vld [vmem:[%s9403_s9 + $0x6c8] sm:$0xff]  ;;  %v5467_v58 = vld [vmem:[%s9403_s9 + $0x6c0] sm:$0xff] }
 0x66d   :  { %6168 = vrsqrt.f32 %v4520_v4  ;;  %3430 = vmatpush1.msra.mxu0 %v5406_v1  ;;  %5923 = vmatpush3.msra.mxu1 %v5408_v55  ;;  %v5469_v1 = vld [vmem:[%s9403_s9 + $0x6d0] sm:$0xff]  ;;  %v5464_v4 = vld [vmem:[%s9403_s9 + $0x6a8] sm:$0xff] }
 0x66e   :  { %3431 = vmatprep.subr.mxu0 %v5404_v49  ;;  %5924 = vmatprep.subr.mxu1 %v9478_v60  ;;  %v5465_v55 = vld [vmem:[%s9403_s9 + $0x6b0] sm:$0xff]  ;;  %v5466_v49 = vld [vmem:[%s9403_s9 + $0x6b8] sm:$0xff] }
 0x66f   :  { %3432 = vmatpush1.msra.mxu0 %v5403_v18  ;;  %5925 = vmatpush3.msra.mxu1 %v5405_v36  ;;  %v5462_v18 = vld [vmem:[%s9403_s9 + $0x698] sm:$0xff]  ;;  %v5461_v36 = vld [vmem:[%s9403_s9 + $0x690] sm:$0xff] }
 0x670   :  { %3433 = vmatprep.subr.mxu0 %v5401_v8  ;;  %5926 = vmatprep.subr.mxu1 %v9478_v60  ;;  %v5463_v8 = vld [vmem:[%s9403_s9 + $0x6a0] sm:$0xff] }
 0x671   :  { %3434 = vmatpush1.msra.mxu0 %v5400_v43  ;;  %5927 = vmatpush3.msra.mxu1 %v5402_v5  ;;  %v5459_v43 = vld [vmem:[%s9403_s9 + $0x680] sm:$0xff]  ;;  %v5458_v5 = vld [vmem:[%s9403_s9 + $0x678] sm:$0xff] }
 0x672   :  { %3435 = vmatprep.subr.mxu0 %v5398_v61  ;;  %5928 = vmatprep.subr.mxu1 %v9478_v60  ;;  %v5460_v61 = vld [vmem:[%s9403_s9 + $0x688] sm:$0xff] }
 0x673   :  { %3436 = vmatpush1.msra.mxu0 %v5397_v9  ;;  %5929 = vmatpush3.msra.mxu1 %v5399_v30  ;;  %v5456_v9 = vld [vmem:[%s9403_s9 + $0x668] sm:$0xff]  ;;  %v5455_v30 = vld [vmem:[%s9403_s9 + $0x660] sm:$0xff] }
 0x674   :  { %3437 = vmatprep.subr.mxu0 %v5395_v12  ;;  %5930 = vmatprep.subr.mxu1 %v9478_v60  ;;  %v5457_v12 = vld [vmem:[%s9403_s9 + $0x670] sm:$0xff] }
 0x675   :  { %3438 = vmatpush1.msra.mxu0 %v5394_v20  ;;  %5931 = vmatpush3.msra.mxu1 %v5396_v45  ;;  %v5453_v20 = vld [vmem:[%s9403_s9 + $0x650] sm:$0xff]  ;;  %v3750_v45 = vpop.permute.xlu0 %3749 }
 0x676   :  { %3439 = vmatprep.subr.mxu0 %v5392_v63  ;;  %5932 = vmatprep.subr.mxu1 %v9478_v60  ;;  %v5452_v63 = vld [vmem:[%s9403_s9 + $0x648] sm:$0xff] }
 0x677   :  { %3440 = vmatpush1.msra.mxu0 %v5391_v10  ;;  %5933 = vmatpush3.msra.mxu1 %v5393_v31  ;;  %v5454_v10 = vld [vmem:[%s9403_s9 + $0x658] sm:$0xff] }
 0x678   :  { %3441 = vmatprep.subr.mxu0 %v5389_v34  ;;  %5934 = vmatprep.subr.mxu1 %v9478_v60  ;;  %v5450_v31 = vld [vmem:[%s9403_s9 + $0x638] sm:$0xff]  ;;  %v5449_v34 = vld [vmem:[%s9403_s9 + $0x630] sm:$0xff] }
 0x679   :  { %3442 = vmatpush1.msra.mxu0 %v5388_v39  ;;  %5935 = vmatpush3.msra.mxu1 %v5390_v56  ;;  %v5451_v39 = vld [vmem:[%s9403_s9 + $0x640] sm:$0xff]  ;;  %v3752_v56 = vmax.f32 %v8189_v62, %v3750_v45  ;;  %v3754_v62 = vpop.permute.xlu1 %3753 }
 0x67a   :  { %v6169_v3 = vpop.eup %6168  ;;  %3443 = vmatprep.subr.mxu0 %v5386_v38  ;;  %5936 = vmatprep.subr.mxu1 %v9478_v60  ;;  %v5447_v38 = vld [vmem:[%s9403_s9 + $0x620] sm:$0xff] }
 0x67b   :  { %3444 = vmatpush1.msra.mxu0 %v5385_v46  ;;  %5937 = vmatpush3.msra.mxu1 %v5387_v32  ;;  %v4523_v41 = vmul.f32 %v6169_v3, %v4522_v33  ;;  %v5448_v46 = vld [vmem:[%s9403_s9 + $0x628] sm:$0xff]  ;;  %v3756_v32 = vmax.f32 %v3752_v56, %v3754_v62  ;;  %v5550_v33 = vld [vmem:[%s9403_s9 + $0x878] sm:$0x3]  ;;  %v5551_v3 = vld [vmem:[%s9403_s9 + $0x880] sm:$0x3] }
 0x67c   :  { %3445 = vmatprep.subr.mxu0 %v5383_v50  ;;  %5938 = vmatprep.subr.mxu1 %v9478_v60  ;;  %v5549_v50 = vld [vmem:[%s9403_s9 + $0x870] sm:$0x3]  ;;  %v5615_v45 = vld [vmem:[%s9403_s9 + $0x9a0] sm:$0xff]  ;;  %v5602_v62 = vld [vmem:[%s9403_s9 + $0x938] sm:$0xff] }
 0x67d   :  { %3446 = vmatpush1.msra.mxu0 %v5382_v27  ;;  %5939 = vmatpush3.msra.mxu1 %v5384_v15  ;;  %v4524_v40 = vmul.f32 %v4523_v41, %v8629_v51  ;;  %v4527_v59 = vmul.f32 %v4523_v41, %v8144_v54  ;;  %v5481_v54 = vld [vmem:[%s9403_s9 + $0x730] sm:$0xff]  ;;  %v5478_v51 = vld [vmem:[%s9403_s9 + $0x718] sm:$0xff]  ;;  %v5547_v27 = vld [vmem:[%s9403_s9 + $0x860] sm:$0xff] }
 0x67e   :  { %3447 = vmatprep.subr.mxu0 %v5380_v37  ;;  %5940 = vmatprep.subr.mxu1 %v9478_v60  ;;  %v5546_v15 = vld [vmem:[%s9403_s9 + $0x858] sm:$0xff]  ;;  %v5544_v37 = vld [vmem:[%s9403_s9 + $0x848] sm:$0xff]  ;;  %v5543_v41 = vld [vmem:[%s9403_s9 + $0x840] sm:$0xff] }
 0x67f   :  { %3448 = vmatpush1.msra.mxu0 %v5379_v6  ;;  %3481 = vmatprep.mubr.f32.mxu0 %v9478_v60  ;;  %v4526_v14 = vsub.f32 %v4525_v17, %v4524_v40  ;;  %v5545_v6 = vld [vmem:[%s9403_s9 + $0x850] sm:$0xff]  ;;  %v5542_v40 = vld [vmem:[%s9403_s9 + $0x838] sm:$0xff] }
 0x680   :  { %5941 = vmatpush3.msra.mxu1 %v5381_v24  ;;  %5942 = vmatprep.mubr.msk.f32.mxu1 %vm6320_vm3, %v9478_v60  ;;  %v5541_v17 = vld [vmem:[%s9403_s9 + $0x830] sm:$0xff]  ;;  %v5540_v24 = vld [vmem:[%s9403_s9 + $0x828] sm:$0xff] }
 0x681   :  { %5420 = vmatmul.mubr.msk.f32.vlgmr.msra.gmra.mxu0 %vm2077_vm14, %v3364_v47  ;;  %5943 = vmatmul.mubr.msk.f32.vlgmr.msra.gmra.mxu1 %vm2077_vm14, %v3364_v47  ;;  %v4528_v28 = vadd.f32 %v4527_v59, %v4526_v14  ;;  %v5537_v47 = vld [vmem:[%s9403_s9 + $0x810] sm:$0xff]  ;;  %v5535_v14 = vld [vmem:[%s9403_s9 + $0x800] sm:$0xff]  ;;  %v5532_v59 = vld [vmem:[%s9403_s9 + $0x7e8] sm:$0xff] }
 0x682   :  { %5485 = vmatprep.subr.msk.mxu0 %vm2081_vm1, %v5483_v0  ;;  %5945 = vmatprep.subr.mxu1 %v9478_v60  ;;  %v5539_v0 = vld [vmem:[%s9403_s9 + $0x820] sm:$0xff]  ;;  %v5609_v56 = vld [vmem:[%s9403_s9 + $0x970] sm:$0xff] }
 0x683   :  { %5486 = vmatpush1.msk.msra.mxu0 %vm2081_vm1, %v5482_v2  ;;  %5946 = vmatpush3.msk.msra.mxu1 %vm2081_vm1, %v5484_v52  ;;  %v4530_v44 = vmul.f32 0.01, %v4528_v28  ;;  %vm4529_vm0 = vcmp.ge.f32.partialorder %v4528_v28, 0.0  ;;  %v5534_v2 = vld [vmem:[%s9403_s9 + $0x7f8] sm:$0xff]  ;;  %v5536_v52 = vld [vmem:[%s9403_s9 + $0x808] sm:$0xff] }
 0x684   :  { %3817 = vmatprep.subr.mxu0 %v5480_v48  ;;  %5947 = vmatprep.subr.mxu1 %v9478_v60  ;;  %v5531_v48 = vld [vmem:[%s9403_s9 + $0x7e0] sm:$0xff] }
 0x685   :  { %3818 = vmatpush1.msra.mxu0 %v5479_v57  ;;  %5948 = vmatpush3.msra.mxu1 %v5481_v54  ;;  %v8824_v26 = vsel %vm4529_vm0, %v4528_v28, %v4530_v44  ;;  %v5533_v57 = vld [vmem:[%s9403_s9 + $0x7f0] sm:$0xff]  ;;  %v5528_v28 = vld [vmem:[%s9403_s9 + $0x7c8] sm:$0xff] }
 0x686   :  { %3819 = vmatprep.subr.mxu0 %v5477_v35  ;;  %5949 = vmatprep.subr.mxu1 %v9478_v60  ;;  %v5529_v54 = vld [vmem:[%s9403_s9 + $0x7d0] sm:$0xff]  ;;  %v5530_v35 = vld [vmem:[%s9403_s9 + $0x7d8] sm:$0xff]  ;;  %v5524_v44 = vld [vmem:[%s9403_s9 + $0x7a8] sm:$0xff] }
 0x687   :  { %3820 = vmatpush1.msra.mxu0 %v5476_v19  ;;  %5950 = vmatpush3.msra.mxu1 %v5478_v51  ;;  %v5526_v19 = vld [vmem:[%s9403_s9 + $0x7b8] sm:$0xff]  ;;  %v5525_v51 = vld [vmem:[%s9403_s9 + $0x7b0] sm:$0xff] }
 0x688   :  { %3821 = vmatprep.subr.mxu0 %v5474_v16  ;;  %5951 = vmatprep.subr.mxu1 %v9478_v60  ;;  %v5527_v16 = vld [vmem:[%s9403_s9 + $0x7c0] sm:$0xff] }
 0x689   :  { %3822 = vmatpush1.msra.mxu0 %v5473_v11  ;;  %5952 = vmatpush3.msra.mxu1 %v5475_v25  ;;  %v5523_v11 = vld [vmem:[%s9403_s9 + $0x7a0] sm:$0xff]  ;;  %v5522_v25 = vld [vmem:[%s9403_s9 + $0x798] sm:$0xff] }
 0x68a   :  { %3823 = vmatprep.subr.mxu0 %v5471_v53  ;;  %5953 = vmatprep.subr.mxu1 %v9478_v60 }
 0x68b   :  { %3824 = vmatpush1.msra.mxu0 %v5470_v42  ;;  %5954 = vmatpush3.msra.mxu1 %v5472_v21  ;;  %v5520_v42 = vld [vmem:[%s9403_s9 + $0x788] sm:$0xff]  ;;  %v4142_v21 = vpop.permute.xlu0 %4141 }
 0x68c   :  { %3825 = vmatprep.subr.mxu0 %v5468_v22  ;;  %5955 = vmatprep.subr.mxu1 %v9478_v60  ;;  %v5519_v22 = vld [vmem:[%s9403_s9 + $0x780] sm:$0xff] }
 0x68d   :  { %4537 = vrot.lane.b32.xlu1 %v8824_v26, %s6317_s3  ;;  %4533 = vrot.lane.b32.xlu0 %v8824_v26, %s6316_s0 }
 0x68e   :  { %3826 = vmatpush1.msra.mxu0 %v5467_v58  ;;  %5956 = vmatpush3.msra.mxu1 %v5469_v1  ;;  %v5521_v58 = vld [vmem:[%s9403_s9 + $0x790] sm:$0xff] }
 0x68f   :  { %3827 = vmatprep.subr.mxu0 %v5465_v55  ;;  %5957 = vmatprep.subr.mxu1 %v9478_v60  ;;  %v5517_v55 = vld [vmem:[%s9403_s9 + $0x770] sm:$0xff] }
 0x690   :  { %3828 = vmatpush1.msra.mxu0 %v5464_v4  ;;  %5958 = vmatpush3.msra.mxu1 %v5466_v49  ;;  %v5516_v4 = vld [vmem:[%s9403_s9 + $0x768] sm:$0xff]  ;;  %v5518_v49 = vld [vmem:[%s9403_s9 + $0x778] sm:$0xff] }
 0x691   :  { %3829 = vmatprep.subr.mxu0 %v5462_v18  ;;  %5959 = vmatprep.subr.mxu1 %v9478_v60  ;;  %v4144_v18 = vmax.f32 %v8205_v7, %v4142_v21  ;;  %v4146_v7 = vpop.permute.xlu1 %4145  ;;  %v4809_v21 = vld [vmem:[%s9405_s11 + $0x158] sm:$0x3f] }
 0x692   :  { %3830 = vmatpush1.msra.mxu0 %v5461_v36  ;;  %5960 = vmatpush3.msra.mxu1 %v5463_v8  ;;  %v5514_v36 = vld [vmem:[%s9403_s9 + $0x758] sm:$0xff]  ;;  %v5513_v8 = vld [vmem:[%s9403_s9 + $0x750] sm:$0xff] }
 0x693   :  { %3831 = vmatprep.subr.mxu0 %v5459_v43  ;;  %5961 = vmatprep.subr.mxu1 %v9478_v60  ;;  %v5515_v43 = vld [vmem:[%s9403_s9 + $0x760] sm:$0xff] }
 0x694   :  { %3832 = vmatpush1.msra.mxu0 %v5458_v5  ;;  %5962 = vmatpush3.msra.mxu1 %v5460_v61  ;;  %v4148_v5 = vmax.f32 %v4144_v18, %v4146_v7  ;;  %v5617_v61 = vld [vmem:[%s9403_s9 + $0x9b0] sm:$0x3]  ;;  %v4806_v18 = vld [vmem:[%s9405_s11 + $0x140] sm:$0xff]  ;;  %v4777_v7 = vld [vmem:[%s9405_s11 + $0x58] sm:$0xff] }
 0x695   :  { %3833 = vmatprep.subr.mxu0 %v5456_v9  ;;  %5963 = vmatprep.subr.mxu1 %v9478_v60  ;;  %v5616_v9 = vld [vmem:[%s9403_s9 + $0x9a8] sm:$0x3] }
 0x696   :  { %3834 = vmatpush1.msra.mxu0 %v5455_v30  ;;  %5964 = vmatpush3.msra.mxu1 %v5457_v12  ;;  %v5618_v30 = vld [vmem:[%s9403_s9 + $0x9b8] sm:$0x3] }
 0x697   :  { %3835 = vmatprep.subr.mxu0 %v5453_v20  ;;  %5965 = vmatprep.subr.mxu1 %v9478_v60  ;;  %v5614_v12 = vld [vmem:[%s9403_s9 + $0x998] sm:$0xff]  ;;  %v5613_v20 = vld [vmem:[%s9403_s9 + $0x990] sm:$0xff] }
 0x698   :  { %3836 = vmatpush1.msra.mxu0 %v5452_v63  ;;  %5966 = vmatpush3.msra.mxu1 %v5454_v10  ;;  %v5611_v63 = vld [vmem:[%s9403_s9 + $0x980] sm:$0xff]  ;;  %v5610_v10 = vld [vmem:[%s9403_s9 + $0x978] sm:$0xff] }
 0x699   :  { %3837 = vmatprep.subr.mxu0 %v5450_v31  ;;  %5967 = vmatprep.subr.mxu1 %v9478_v60  ;;  %v5612_v31 = vld [vmem:[%s9403_s9 + $0x988] sm:$0xff] }
 0x69a   :  { %3838 = vmatpush1.msra.mxu0 %v5449_v34  ;;  %5968 = vmatpush3.msra.mxu1 %v5451_v39  ;;  %v5608_v34 = vld [vmem:[%s9403_s9 + $0x968] sm:$0xff]  ;;  %v5607_v39 = vld [vmem:[%s9403_s9 + $0x960] sm:$0xff] }
 0x69b   :  { %3839 = vmatprep.subr.mxu0 %v5447_v38  ;;  %5969 = vmatprep.subr.mxu1 %v9478_v60  ;;  %v5605_v38 = vld [vmem:[%s9403_s9 + $0x950] sm:$0xff] }
 0x69c   :  { %3840 = vmatpush1.msra.mxu0 %v5446_v29  ;;  %3873 = vmatprep.mubr.f32.mxu0 %v9478_v60  ;;  %v5604_v29 = vld [vmem:[%s9403_s9 + $0x948] sm:$0xff] }
 0x69d   :  { %5970 = vmatpush3.msra.mxu1 %v5448_v46  ;;  %5971 = vmatprep.mubr.msk.f32.mxu1 %vm6320_vm3, %v9478_v60  ;;  %v5606_v46 = vld [vmem:[%s9403_s9 + $0x958] sm:$0xff] }
 0x69e   :  { %5487 = vmatmul.mubr.msk.f32.vlgmr.msra.gmra.mxu0 %vm2077_vm14, %v3756_v32  ;;  %5972 = vmatmul.mubr.msk.f32.vlgmr.msra.gmra.mxu1 %vm2077_vm14, %v3756_v32  ;;  %v5601_v32 = vld [vmem:[%s9403_s9 + $0x930] sm:$0xff] }
 0x69f   :  { %5552 = vmatprep.subr.msk.mxu0 %vm2081_vm1, %v5550_v33  ;;  %5974 = vmatprep.subr.mxu1 %v9478_v60  ;;  %v5603_v33 = vld [vmem:[%s9403_s9 + $0x940] sm:$0xff] }
 0x6a0   :  { %5553 = vmatpush1.msk.msra.mxu0 %vm2081_vm1, %v5549_v50  ;;  %5975 = vmatpush3.msk.msra.mxu1 %vm2081_vm1, %v5551_v3  ;;  %v5599_v50 = vld [vmem:[%s9403_s9 + $0x920] sm:$0xff]  ;;  %v5598_v3 = vld [vmem:[%s9403_s9 + $0x918] sm:$0xff] }
 0x6a1   :  { %4209 = vmatprep.subr.mxu0 %v5547_v27  ;;  %5976 = vmatprep.subr.mxu1 %v9478_v60  ;;  %v5600_v27 = vld [vmem:[%s9403_s9 + $0x928] sm:$0xff] }
 0x6a2   :  { %4210 = vmatpush1.msra.mxu0 %v5546_v15  ;;  %5977 = vmatpush3.msra.mxu1 %v5548_v13  ;;  %v5596_v15 = vld [vmem:[%s9403_s9 + $0x908] sm:$0xff]  ;;  %v5595_v13 = vld [vmem:[%s9403_s9 + $0x900] sm:$0xff] }
 0x6a3   :  { %4211 = vmatprep.subr.mxu0 %v5544_v37  ;;  %5978 = vmatprep.subr.mxu1 %v9478_v60  ;;  %v5597_v37 = vld [vmem:[%s9403_s9 + $0x910] sm:$0xff] }
 0x6a4   :  { %4212 = vmatpush1.msra.mxu0 %v5543_v41  ;;  %5979 = vmatpush3.msra.mxu1 %v5545_v6  ;;  %v5593_v41 = vld [vmem:[%s9403_s9 + $0x8f0] sm:$0xff]  ;;  %v5592_v6 = vld [vmem:[%s9403_s9 + $0x8e8] sm:$0xff] }
 0x6a5   :  { %4213 = vmatprep.subr.mxu0 %v5541_v17  ;;  %5980 = vmatprep.subr.mxu1 %v9478_v60  ;;  %v5594_v17 = vld [vmem:[%s9403_s9 + $0x8f8] sm:$0xff] }
 0x6a6   :  { %4214 = vmatpush1.msra.mxu0 %v5540_v24  ;;  %5981 = vmatpush3.msra.mxu1 %v5542_v40  ;;  %v5590_v24 = vld [vmem:[%s9403_s9 + $0x8d8] sm:$0xff]  ;;  %v5589_v40 = vld [vmem:[%s9403_s9 + $0x8d0] sm:$0xff] }
 0x6a7   :  { %4215 = vmatprep.subr.mxu0 %v5538_v23  ;;  %5982 = vmatprep.subr.mxu1 %v9478_v60  ;;  %v5591_v23 = vld [vmem:[%s9403_s9 + $0x8e0] sm:$0xff] }
 0x6a8   :  { %4216 = vmatpush1.msra.mxu0 %v5537_v47  ;;  %5983 = vmatpush3.msra.mxu1 %v5539_v0  ;;  %v5587_v47 = vld [vmem:[%s9403_s9 + $0x8c0] sm:$0xff]  ;;  %v5586_v0 = vld [vmem:[%s9403_s9 + $0x8b8] sm:$0xff] }
 0x6a9   :  { %4217 = vmatprep.subr.mxu0 %v5535_v14  ;;  %5984 = vmatprep.subr.mxu1 %v9478_v60  ;;  %v5588_v14 = vld [vmem:[%s9403_s9 + $0x8c8] sm:$0xff] }
 0x6aa   :  { %4218 = vmatpush1.msra.mxu0 %v5534_v2  ;;  %5985 = vmatpush3.msra.mxu1 %v5536_v52  ;;  %v5584_v2 = vld [vmem:[%s9403_s9 + $0x8a8] sm:$0xff]  ;;  %v5583_v52 = vld [vmem:[%s9403_s9 + $0x8a0] sm:$0xff] }
 0x6ab   :  { %4219 = vmatprep.subr.mxu0 %v5532_v59  ;;  %5986 = vmatprep.subr.mxu1 %v9478_v60  ;;  %v5585_v59 = vld [vmem:[%s9403_s9 + $0x8b0] sm:$0xff] }
 0x6ac   :  { %4220 = vmatpush1.msra.mxu0 %v5531_v48  ;;  %5987 = vmatpush3.msra.mxu1 %v5533_v57  ;;  %v5581_v48 = vld [vmem:[%s9403_s9 + $0x890] sm:$0xff]  ;;  %v5580_v57 = vld [vmem:[%s9403_s9 + $0x888] sm:$0xff] }
 0x6ad   :  { %4221 = vmatprep.subr.mxu0 %v5529_v54  ;;  %5988 = vmatprep.subr.mxu1 %v9478_v60  ;;  %v5582_v54 = vld [vmem:[%s9403_s9 + $0x898] sm:$0xff] }
 0x6ae   :  { %4222 = vmatpush1.msra.mxu0 %v5528_v28  ;;  %5989 = vmatpush3.msra.mxu1 %v5530_v35 }
 0x6af   :  { %4223 = vmatprep.subr.mxu0 %v5526_v19  ;;  %5990 = vmatprep.subr.mxu1 %v9478_v60  ;;  %v9015_v53 = vpop.f32.mrf.mxu1 }
 0x6b0   :  { %4224 = vmatpush1.msra.mxu0 %v5525_v51  ;;  %5991 = vmatpush3.msra.mxu1 %v5527_v16  ;;  %v4797_v51 = vld [vmem:[%s9405_s11 + $0xf8] sm:$0xff] }
 0x6b1   :  { %4225 = vmatprep.subr.mxu0 %v5523_v11  ;;  %5992 = vmatprep.subr.mxu1 %v9478_v60  ;;  %v5828_v1 = vpop.f32.mrf.mxu1 }
 0x6b2   :  { %4226 = vmatpush1.msra.mxu0 %v5522_v25  ;;  %5993 = vmatpush3.msra.mxu1 %v5524_v44  ;;  %v4779_v1 = vld [vmem:[%s9405_s11 + $0x68] sm:$0xff] }
 0x6b3   :  { %4227 = vmatprep.subr.mxu0 %v5520_v42  ;;  %5994 = vmatprep.subr.mxu1 %v9478_v60  ;;  %v4781_v42 = vld [vmem:[%s9405_s11 + $0x78] sm:$0xff] }
 0x6b4   :  { %4228 = vmatpush1.msra.mxu0 %v5519_v22  ;;  %5995 = vmatpush3.msra.mxu1 %v5521_v58  ;;  %v4808_v22 = vld [vmem:[%s9405_s11 + $0x150] sm:$0xff]  ;;  %v4795_v58 = vld [vmem:[%s9405_s11 + $0xe8] sm:$0xff] }
 0x6b5   :  { %4229 = vmatprep.subr.mxu0 %v5517_v55  ;;  %5996 = vmatprep.subr.mxu1 %v9478_v60  ;;  %v4807_v55 = vld [vmem:[%s9405_s11 + $0x148] sm:$0xff] }
 0x6b6   :  { %4230 = vmatpush1.msra.mxu0 %v5516_v4  ;;  %5997 = vmatpush3.msra.mxu1 %v5518_v49  ;;  %v4794_v4 = vld [vmem:[%s9405_s11 + $0xe0] sm:$0xff] }
 0x6b7   :  { %4231 = vmatprep.subr.mxu0 %v5514_v36  ;;  %5998 = vmatprep.subr.mxu1 %v9478_v60  ;;  %v4778_v49 = vld [vmem:[%s9405_s11 + $0x60] sm:$0xff] }
 0x6b8   :  { %4232 = vmatpush1.msra.mxu0 %v5513_v8  ;;  %4265 = vmatprep.mubr.f32.mxu0 %v9478_v60  ;;  %v4793_v8 = vld [vmem:[%s9405_s11 + $0xd8] sm:$0xff] }
 0x6b9   :  { %5999 = vmatpush3.msra.mxu1 %v5515_v43  ;;  %6000 = vmatprep.mubr.msk.f32.mxu1 %vm6320_vm3, %v9478_v60 }
 0x6ba   :  { %5554 = vmatmul.mubr.msk.f32.vlgmr.msra.gmra.mxu0 %vm2077_vm14, %v4148_v5  ;;  %6001 = vmatmul.mubr.msk.f32.vlgmr.msra.gmra.mxu1 %vm2077_vm14, %v4148_v5  ;;  %v4805_v5 = vld [vmem:[%s9405_s11 + $0x138] sm:$0xff] }
 0x6bb   :  { %5619 = vmatprep.subr.msk.mxu0 %vm2081_vm1, %v5617_v61  ;;  %6003 = vmatprep.subr.mxu1 %v9478_v60 }
 0x6bc   :  { %5620 = vmatpush1.msk.msra.mxu0 %vm2081_vm1, %v5616_v9  ;;  %6004 = vmatpush3.msk.msra.mxu1 %vm2081_vm1, %v5618_v30  ;;  %v4792_v9 = vld [vmem:[%s9405_s11 + $0xd0] sm:$0xff] }
 0x6bd   :  { %4601 = vmatprep.subr.mxu0 %v5614_v12  ;;  %6005 = vmatprep.subr.mxu1 %v9478_v60  ;;  %v4776_v30 = vld [vmem:[%s9405_s11 + $0x50] sm:$0xff] }
 0x6be   :  { %4602 = vmatpush1.msra.mxu0 %v5613_v20  ;;  %6006 = vmatpush3.msra.mxu1 %v5615_v45  ;;  %v4804_v12 = vld [vmem:[%s9405_s11 + $0x130] sm:$0xff]  ;;  %v4791_v20 = vld [vmem:[%s9405_s11 + $0xc8] sm:$0xff] }
 0x6bf   :  { %4603 = vmatprep.subr.mxu0 %v5611_v63  ;;  %6007 = vmatprep.subr.mxu1 %v9478_v60  ;;  %v4775_v45 = vld [vmem:[%s9405_s11 + $0x48] sm:$0xff] }
 0x6c0   :  { %4604 = vmatpush1.msra.mxu0 %v5610_v10  ;;  %6008 = vmatpush3.msra.mxu1 %v5612_v31  ;;  %v4803_v63 = vld [vmem:[%s9405_s11 + $0x128] sm:$0xff]  ;;  %v4790_v10 = vld [vmem:[%s9405_s11 + $0xc0] sm:$0xff] }
 0x6c1   :  { %4605 = vmatprep.subr.mxu0 %v5608_v34  ;;  %6009 = vmatprep.subr.mxu1 %v9478_v60  ;;  %v4774_v31 = vld [vmem:[%s9405_s11 + $0x40] sm:$0xff] }
 0x6c2   :  { %4606 = vmatpush1.msra.mxu0 %v5607_v39  ;;  %6010 = vmatpush3.msra.mxu1 %v5609_v56  ;;  %v4802_v34 = vld [vmem:[%s9405_s11 + $0x120] sm:$0xff]  ;;  %v4789_v39 = vld [vmem:[%s9405_s11 + $0xb8] sm:$0xff] }
 0x6c3   :  { %4607 = vmatprep.subr.mxu0 %v5605_v38  ;;  %6011 = vmatprep.subr.mxu1 %v9478_v60  ;;  %v4773_v56 = vld [vmem:[%s9405_s11 + $0x38] sm:$0xff]  ;;  %v4788_v38 = vld [vmem:[%s9405_s11 + $0xb0] sm:$0xff] }
 0x6c4   :  { %4608 = vmatpush1.msra.mxu0 %v5604_v29  ;;  %6012 = vmatpush3.msra.mxu1 %v5606_v46  ;;  %v4772_v29 = vld [vmem:[%s9405_s11 + $0x30] sm:$0xff]  ;;  %v4787_v46 = vld [vmem:[%s9405_s11 + $0xa8] sm:$0xff] }
 0x6c5   :  { %4609 = vmatprep.subr.mxu0 %v5602_v62  ;;  %6013 = vmatprep.subr.mxu1 %v9478_v60 }
 0x6c6   :  { %4610 = vmatpush1.msra.mxu0 %v5601_v32  ;;  %6014 = vmatpush3.msra.mxu1 %v5603_v33 }
 0x6c7   :  { %4611 = vmatprep.subr.mxu0 %v5599_v50  ;;  %6015 = vmatprep.subr.mxu1 %v9478_v60 }
 0x6c8   :  { %4612 = vmatpush1.msra.mxu0 %v5598_v3  ;;  %6016 = vmatpush3.msra.mxu1 %v5600_v27 }
 0x6c9   :  { %4613 = vmatprep.subr.mxu0 %v5596_v15  ;;  %6017 = vmatprep.subr.mxu1 %v9478_v60  ;;  %v4771_v15 = vld [vmem:[%s9405_s11 + $0x28] sm:$0xff] }
 0x6ca   :  { %4614 = vmatpush1.msra.mxu0 %v5595_v13  ;;  %6018 = vmatpush3.msra.mxu1 %v5597_v37  ;;  %v4786_v13 = vld [vmem:[%s9405_s11 + $0xa0] sm:$0xff]  ;;  %v4801_v37 = vld [vmem:[%s9405_s11 + $0x118] sm:$0xff] }
 0x6cb   :  { %4615 = vmatprep.subr.mxu0 %v5593_v41  ;;  %6019 = vmatprep.subr.mxu1 %v9478_v60  ;;  %v4770_v41 = vld [vmem:[%s9405_s11 + $0x20] sm:$0xff] }
 0x6cc   :  { %4616 = vmatpush1.msra.mxu0 %v5592_v6  ;;  %6020 = vmatpush3.msra.mxu1 %v5594_v17  ;;  %v4785_v6 = vld [vmem:[%s9405_s11 + $0x98] sm:$0xff]  ;;  %v4800_v17 = vld [vmem:[%s9405_s11 + $0x110] sm:$0xff] }
 0x6cd   :  { %4617 = vmatprep.subr.mxu0 %v5590_v24  ;;  %6021 = vmatprep.subr.mxu1 %v9478_v60  ;;  %v4769_v24 = vld [vmem:[%s9405_s11 + $0x18] sm:$0xff] }
 0x6ce   :  { %4618 = vmatpush1.msra.mxu0 %v5589_v40  ;;  %6022 = vmatpush3.msra.mxu1 %v5591_v23  ;;  %v4799_v40 = vld [vmem:[%s9405_s11 + $0x108] sm:$0xff]  ;;  %v4784_v23 = vld [vmem:[%s9405_s11 + $0x90] sm:$0xff] }
 0x6cf   :  { %4619 = vmatprep.subr.mxu0 %v5587_v47  ;;  %6023 = vmatprep.subr.mxu1 %v9478_v60  ;;  %v4768_v47 = vld [vmem:[%s9405_s11 + $0x10] sm:$0xff] }
 0x6d0   :  { %4620 = vmatpush1.msra.mxu0 %v5586_v0  ;;  %6024 = vmatpush3.msra.mxu1 %v5588_v14  ;;  %v4798_v0 = vld [vmem:[%s9405_s11 + $0x100] sm:$0xff]  ;;  %v4783_v14 = vld [vmem:[%s9405_s11 + $0x88] sm:$0xff] }
 0x6d1   :  { %4621 = vmatprep.subr.mxu0 %v5584_v2  ;;  %6025 = vmatprep.subr.mxu1 %v9478_v60  ;;  %v4767_v2 = vld [vmem:[%s9405_s11 + $0x8] sm:$0xff] }
 0x6d2   :  { %4622 = vmatpush1.msra.mxu0 %v5583_v52  ;;  %6026 = vmatpush3.msra.mxu1 %v5585_v59  ;;  %v4782_v52 = vld [vmem:[%s9405_s11 + $0x80] sm:$0xff] }
 0x6d3   :  { %4623 = vmatprep.subr.mxu0 %v5581_v48  ;;  %6027 = vmatprep.subr.mxu1 %v9478_v60  ;;  %v4766_v59 = vld [vmem:[%s9405_s11] sm:$0xff] }
 0x6d4   :  { %4624 = vmatpush1.msra.mxu0 %v5580_v57  ;;  %4657 = vmatprep.mubr.f32.mxu0 %v9478_v60 }
 0x6d5   :  { %6028 = vmatpush3.msra.mxu1 %v5582_v54  ;;  %6029 = vmatprep.mubr.msk.f32.mxu1 %vm6320_vm3, %v9478_v60 }
 0x6d6   :  { %6032 = vmatprep.subr.mxu1 %v9478_v60  ;;  %5741 = vmatprep.subr.mxu0 %v4797_v51  ;;  %v2157_v51 = vpop.f32.mrf.mxu0 }
 0x6ee   :  { %v2381_v28 = vpop.f32.mrf.mxu1 }
 0x6ef   :  { %v2382_v35 = vadd.f32 %v2381_v28, %v9015_v53  ;;  %v4796_v53 = vld [vmem:[%s9405_s11 + $0xf0] sm:$0xff] }
 0x6f0   :  { %v5857_v19 = vpop.f32.mrf.mxu1 }
 0x6ff   :  { %v4534_v16 = vpop.permute.xlu0 %4533  ;;  %v4538_v25 = vpop.permute.xlu1 %4537 }
 0x700   :  { %v4536_v11 = vmax.f32 %v8824_v26, %v4534_v16  ;;  %v4780_v26 = vld [vmem:[%s9405_s11 + $0x70] sm:$0xff]  ;;  %v2159_v16 = vpop.f32.mrf.mxu0 }
 0x702   :  { %v4540_v44 = vmax.f32 %v4536_v11, %v4538_v25  ;;  %v2310_v11 = vpop.f32.mrf.mxu0 }
 0x704   :  { %5621 = vmatmul.mubr.msk.f32.vlgmr.msra.gmra.mxu0 %vm2077_vm14, %v4540_v44  ;;  %6030 = vmatmul.mubr.msk.f32.vlgmr.msra.gmra.mxu1 %vm2077_vm14, %v4540_v44  ;;  %v2312_v25 = vpop.f32.mrf.mxu0 }
 0x705   :  { %5742 = vmatpush3.msra.mxu0 %v4781_v42  ;;  %6033 = vmatpush3.msk.msra.mxu1 %vm4821_vm5, %v4809_v21 }
 0x706   :  { %5743 = vmatprep.subr.mxu0 %v4796_v53  ;;  %6034 = vmatprep.subr.mxu1 %v9478_v60 }
 0x707   :  { %5744 = vmatpush3.msra.mxu0 %v4780_v26  ;;  %6035 = vmatpush3.msra.mxu1 %v4808_v22 }
 0x708   :  { %5745 = vmatprep.subr.mxu0 %v4795_v58  ;;  %6036 = vmatprep.subr.mxu1 %v9478_v60  ;;  %v4739_v58 = vlaneseq }
 0x709   :  { %v2770_v36 = vpop.f32.mrf.mxu1  ;;  %5746 = vmatpush3.msra.mxu0 %v4779_v1  ;;  %6037 = vmatpush3.msra.mxu1 %v4807_v55  ;;  %v2699_v44 = vpop.f32.mrf.mxu0  ;;  %v2311_v55 = vadd.f32 %v2310_v11, %v2157_v51 }
 0x70a   :  { %v2776_v43 = vadd.f32 %v2770_v36, %v2382_v35  ;;  %5747 = vmatprep.subr.mxu0 %v4794_v4  ;;  %6038 = vmatprep.subr.mxu1 %v9478_v60  ;;  %v2313_v4 = vadd.f32 %v2312_v25, %v2159_v16  ;;  %v5624_v16 = vld [vmem:[%s9406_s12] ss:$0 sm:$0xff]  ;;  %s6274_s12 = scalar_lea.vmem %s5071_s21, 64 }
 0x70b   :  { %v5886_v61 = vpop.f32.mrf.mxu1  ;;  %5748 = vmatpush3.msra.mxu0 %v4778_v49  ;;  %6039 = vmatpush3.msra.mxu1 %v4806_v18  ;;  %v2701_v42 = vpop.f32.mrf.mxu0  ;;  %v2774_v49 = vadd.f32 %v2699_v44, %v2311_v55  ;;  %v4740_v18 = vshrl.u32 %v4739_v58, 7  ;;  %p6275_p12 = scmp.ne.s32.totalorder %s5071_s21, %s6274_s12  ;;  %p6280_p0 = scmp.lt.s32.totalorder %s6274_s12, %s6274_s12 }
 0x70c   :  { %5749 = vmatprep.subr.mxu0 %v4793_v8  ;;  %6040 = vmatprep.subr.mxu1 %v9478_v60  ;;  %v2775_v8 = vadd.f32 %v2701_v42, %v2313_v4 }
 0x70d   :  { %5750 = vmatpush3.msra.mxu0 %v4777_v7  ;;  %6041 = vmatpush3.msra.mxu1 %v4805_v5  ;;  %p6281_p1 = por %p6280_p0, %p6279_p13 }
 0x70e   :  { %5751 = vmatprep.subr.mxu0 %v4792_v9  ;;  %6042 = vmatprep.subr.mxu1 %v9478_v60  ;;  %v4741_v9 = vsub.s32 0, %v4740_v18 }
 0x70f   :  { %5752 = vmatpush3.msra.mxu0 %v4776_v30  ;;  %6043 = vmatpush3.msra.mxu1 %v4804_v12  ;;  %v4749_v30 = vsub.s32 2, %v4740_v18  ;;  %v4737_v12 = vld [vmem:[%s9404_s10] sm:$0x7]  ;;  %p6282_p2 = pnand %p6281_p1, %p6275_p12 }
 0x710   :  { %5753 = vmatprep.subr.mxu0 %v4791_v20  ;;  %6044 = vmatprep.subr.mxu1 %v9478_v60 }
 0x711   :  { %5754 = vmatpush3.msra.mxu0 %v4775_v45  ;;  %6045 = vmatpush3.msra.mxu1 %v4803_v63  ;;  %v4745_v63 = vsub.s32 1, %v4740_v18 }
 0x712   :  { %5755 = vmatprep.subr.mxu0 %v4790_v10  ;;  %6046 = vmatprep.subr.mxu1 %v9478_v60 }
 0x713   :  { %5756 = vmatpush3.msra.mxu0 %v4774_v31  ;;  %6047 = vmatpush3.msra.mxu1 %v4802_v34 }
 0x714   :  { %5757 = vmatprep.subr.mxu0 %v4789_v39  ;;  %6048 = vmatprep.subr.mxu1 %v9478_v60  ;;  %v4742_v39 = vrot.slane %v4737_v12, %v4741_v9 }
 0x715   :  { %5758 = vmatpush3.msra.mxu0 %v4773_v56  ;;  %6056 = vmatprep.mubr.msk.f32.mxu1 %vm6320_vm3, %v9478_v60  ;;  %v4750_v56 = vrot.slane %v4737_v12, %v4749_v30 }
 0x716   :  { %5759 = vmatprep.subr.mxu0 %v4788_v38  ;;  %6049 = vmatpush3.msra.mxu1 %v4801_v37 }
 0x717   :  { %5760 = vmatpush3.msra.mxu0 %v4772_v29  ;;  %6050 = vmatprep.subr.mxu1 %v9478_v60 }
 0x718   :  { %5761 = vmatprep.subr.mxu0 %v4787_v46  ;;  %6051 = vmatpush3.msra.mxu1 %v4800_v17  ;;  %v4977_v17 = vld [vmem:[%s9407_s13 + $0x48] sm:$0xff] }
 0x719   :  { %5762 = vmatpush3.msra.mxu0 %v4771_v15  ;;  %6052 = vmatprep.subr.mxu1 %v9478_v60 }
 0x71a   :  { %5763 = vmatprep.subr.mxu0 %v4786_v13  ;;  %6053 = vmatpush3.msra.mxu1 %v4799_v40 }
 0x71b   :  { %5764 = vmatpush3.msra.mxu0 %v4770_v41  ;;  %6054 = vmatprep.subr.mxu1 %v9478_v60 }
 0x71c   :  { %5765 = vmatprep.subr.mxu0 %v4785_v6  ;;  %6055 = vmatpush3.msra.mxu1 %v4798_v0 }
 0x71d   :  { %5766 = vmatpush3.msra.mxu0 %v4769_v24  ;;  %6059 = vmatprep.subr.mxu1 %v9478_v60 }
 0x71e   :  { %5767 = vmatprep.subr.mxu0 %v4784_v23  ;;  %v4976_v23 = vld [vmem:[%s9407_s13 + $0x40] sm:$0xff] }
 0x71f   :  { %5768 = vmatpush3.msra.mxu0 %v4768_v47 }
 0x720   :  { %5769 = vmatprep.subr.mxu0 %v4783_v14  ;;  %v4975_v14 = vld [vmem:[%s9407_s13 + $0x38] sm:$0xff] }
 0x721   :  { %5770 = vmatpush3.msra.mxu0 %v4767_v2  ;;  %v4974_v2 = vld [vmem:[%s9407_s13 + $0x30] sm:$0xff] }
 0x722   :  { %5771 = vmatprep.subr.mxu0 %v4782_v52  ;;  %v4973_v52 = vld [vmem:[%s9407_s13 + $0x28] sm:$0xff] }
 0x723   :  { %5772 = vmatpush3.msra.mxu0 %v4766_v59  ;;  %v4972_v59 = vld [vmem:[%s9407_s13 + $0x20] sm:$0xff] }
 0x725   :  { %v3162_v62 = vpop.f32.mrf.mxu1  ;;  %v3091_v21 = vpop.f32.mrf.mxu0 }
 0x726   :  { %v3168_v32 = vadd.f32 %v3162_v62, %v2776_v43  ;;  %v3166_v43 = vadd.f32 %v3091_v21, %v2774_v49 }
 0x727   :  { %v5915_v33 = vpop.f32.mrf.mxu1  ;;  %v3093_v53 = vpop.f32.mrf.mxu0 }
 0x728   :  { %v3167_v5 = vadd.f32 %v3093_v53, %v2775_v8  ;;  %v4746_v33 = vrot.slane %v4737_v12, %v4745_v63 }
 0x741   :  { %v3554_v50 = vpop.f32.mrf.mxu1  ;;  %v3483_v26 = vpop.f32.mrf.mxu0 }
 0x742   :  { %v3560_v3 = vadd.f32 %v3554_v50, %v3168_v32  ;;  %v3558_v61 = vadd.f32 %v3483_v26, %v3166_v43 }
 0x743   :  { %v5944_v27 = vpop.f32.mrf.mxu1  ;;  %v3485_v22 = vpop.f32.mrf.mxu0 }
 0x744   :  { %v3559_v20 = vadd.f32 %v3485_v22, %v3167_v5 }
 0x75e   :  { %v3946_v48 = vpop.f32.mrf.mxu1  ;;  %v3875_v1 = vpop.f32.mrf.mxu0 }
 0x75f   :  { %v3952_v57 = vadd.f32 %v3946_v48, %v3560_v3  ;;  %v3950_v45 = vadd.f32 %v3875_v1, %v3558_v61  ;;  %v4971_v48 = vld [vmem:[%s9407_s13 + $0x18] sm:$0xff] }
 0x760   :  { %v5973_v54 = vpop.f32.mrf.mxu1  ;;  %v3877_v36 = vpop.f32.mrf.mxu0 }
 0x761   :  { %v3951_v31 = vadd.f32 %v3877_v36, %v3559_v20  ;;  %v4969_v54 = vld [vmem:[%s9407_s13 + $0x8] sm:$0xff] }
 0x77a   :  { %v4338_v28 = vpop.f32.mrf.mxu1  ;;  %v4267_v7 = vpop.f32.mrf.mxu0 }
 0x77b   :  { %v4344_v35 = vadd.f32 %v4338_v28, %v3952_v57  ;;  %v4342_v34 = vadd.f32 %v4267_v7, %v3950_v45  ;;  %v4970_v57 = vld [vmem:[%s9407_s13 + $0x10] sm:$0xff]  ;;  %v4968_v28 = vld [vmem:[%s9407_s13] sm:$0xff] }
 0x77c   :  { %v6002_v19 = vpop.f32.mrf.mxu1  ;;  %v4269_v10 = vpop.f32.mrf.mxu0 }
 0x77d   :  { %v4343_v46 = vadd.f32 %v4269_v10, %v3951_v31 }
 0x7c4   :  { %v4659_v38 = vpop.f32.mrf.mxu0  ;;  %v4730_v29 = vpop.f32.mrf.mxu1 }
 0x7c5   :  { %v4734_v62 = vadd.f32 %v4659_v38, %v4342_v34  ;;  %v4736_v32 = vadd.f32 %v4730_v29, %v4344_v35 }
 0x7c6   :  { %v4661_v50 = vpop.f32.mrf.mxu0  ;;  %v6031_v3 = vpop.f32.mrf.mxu1 }
 0x7c7   :  { %v4754_v27 = vadd.f32 %v4742_v39, %v4734_v62  ;;  %v4756_v15 = vadd.f32 %v4750_v56, %v4736_v32  ;;  %v4735_v13 = vadd.f32 %v4661_v50, %v4343_v46 }
 0x7c9   :  { %vm4759_vm6 = vcmp.ge.f32.partialorder %v4756_v15, 0.0  ;;  %v4762_v37 = vmul.f32 0.01, %v4756_v15  ;;  %v4755_v41 = vadd.f32 %v4746_v33, %v4735_v13  ;;  %v4760_v6 = vmul.f32 0.01, %v4754_v27 }
 0x7ca   :  { %vm4757_vm9 = vcmp.ge.f32.partialorder %v4754_v27, 0.0 }
 0x7cb   :  { %v4765_v24 = vsel %vm4759_vm6, %v4756_v15, %v4762_v37  ;;  %vm4758_vm8 = vcmp.ge.f32.partialorder %v4755_v41, 0.0  ;;  %v4761_v40 = vmul.f32 0.01, %v4755_v41  ;;  %v4763_v0 = vsel %vm4757_vm9, %v4754_v27, %v4760_v6 }
 0x7cc   :  { %6057 = vmatmul.mubr.msk.f32.vlgmr.msra.gmra.mxu1 %vm4817_vm7, %v4765_v24 }
 0x7cd   :  { %v4764_v47 = vsel %vm4758_vm8, %v4755_v41, %v4761_v40  ;;  %6060 = vmatpush3.msra.mxu1 %v4977_v17  ;;  %6079 = vmatprep.mubr.msk.f32.mxu1 %vm6320_vm3, %v9478_v60 }
 0x7ce   :  { %4889 = vmatprep.mubr.f32.mxu0 %v4764_v47  ;;  %6061 = vmatprep.subr.mxu1 %v9478_v60 }
 0x7cf   :  { %4890 = vmatmul.mubr.f32.vlgmr.msra.gmra.mxu0 %v4763_v0  ;;  %6062 = vmatpush3.msra.mxu1 %v4976_v23 }
 0x7d0   :  { %6063 = vmatprep.subr.mxu1 %v9478_v60 }
 0x7d1   :  { %6064 = vmatpush3.msra.mxu1 %v4975_v14 }
 0x7d2   :  { %6065 = vmatprep.subr.mxu1 %v9478_v60 }
 0x7d3   :  { %6066 = vmatpush3.msra.mxu1 %v4974_v2 }
 0x7d4   :  { %6067 = vmatprep.subr.mxu1 %v9478_v60 }
 0x7d5   :  { %6068 = vmatpush3.msra.mxu1 %v4973_v52 }
 0x7d6   :  { %6069 = vmatprep.subr.mxu1 %v9478_v60 }
 0x7d7   :  { %6070 = vmatpush3.msra.mxu1 %v4972_v59 }
 0x7d8   :  { %6071 = vmatprep.subr.mxu1 %v9478_v60 }
 0x7d9   :  { %6072 = vmatpush3.msra.mxu1 %v4971_v48 }
 0x7da   :  { %6073 = vmatprep.subr.mxu1 %v9478_v60 }
 0x7db   :  { %6074 = vmatpush3.msra.mxu1 %v4970_v57 }
 0x7dc   :  { %6075 = vmatprep.subr.mxu1 %v9478_v60 }
 0x7dd   :  { %6076 = vmatpush3.msra.mxu1 %v4969_v54 }
 0x7de   :  { %6077 = vmatprep.subr.mxu1 %v9478_v60  ;;  %v5627_v60 = vld [vmem:[%s9408_s14] ss:$0 sm:$0xff] }
 0x7df   :  { %6078 = vmatpush3.msra.mxu1 %v4968_v28 }
 0x88c   :  { %v4961_v35 = vpop.f32.mrf.mxu1 }
 0x88e   :  { %v6058_v19 = vpop.f32.mrf.mxu1 }
 0x88f   :  { %v5773_v51 = vpop.f32.mrf.mxu0 }
 0x891   :  { %v5774_v11 = vpop.f32.mrf.mxu0 }
 0x892   :  { %v5775_v25 = vadd.f32 %v5774_v11, %v5773_v51 }
 0x894   :  { %v4892_v44 = vadd.f32 %v5775_v25, %v5624_v16 }
 0x896   :  { %v4962_v42 = vadd.f32 %v4961_v35, %v4892_v44 }
 0x898   :  { %v4966_v21 = vmul.f32 0.01, %v4962_v42  ;;  %vm4965_vm1 = vcmp.ge.f32.partialorder %v4962_v42, 0.0 }
 0x89a   :  { %v4967_v53 = vsel %vm4965_vm1, %v4962_v42, %v4966_v21 }
 0x89b   :  { %6080 = vmatmul.mubr.msk.f32.vlgmr.msra.gmra.mxu1 %vm4985_vm2, %v4967_v53 }
 0x95b   :  { %v5055_v26 = vpop.f32.mrf.mxu1 }
 0x95c   :  { %v5056_v22 = vadd.f32 %v5627_v60, %v5055_v26 }
 0x95d   :  { %v6081_v58 = vpop.f32.mrf.mxu1 }
 0x95e   :  { %v5060_v1 = vmul.f32 0.01, %v5056_v22  ;;  %vm5059_vm3 = vcmp.ge.f32.partialorder %v5056_v22, 0.0 }
 0x960   :  { %v5061_v55 = vsel %vm5059_vm3, %v5056_v22, %v5060_v1 }
 0x961   :  { %5063 = vst.msk [vmem:[#allocation18] sm:$0xf] %vm5062_vm4, %v5061_v55 }
 0x962   :  { %6285 = shalt.err (!%p6282_p2)
}
 0x963   :  { %5073 = dma.vmem_to_hbm [thread:$0]  %s5071_s21, 64, %s9409_s15, [#allocation5]  }
 0x964   :  { %6304 = dma.done.wait [#allocation5], 64  }
 0x965   :  { %6305 = vsyncadd [#allocation5], 4294967232 }
 0x966   :  { %5077 = vsyncpa [#allocation5], 1 }
 0x967   :  { %5078 = vsyncpa [#allocation6], 1 }
 0x968   :  { %5079 = vsyncpa [#allocation8], 1 }
 0x969   :  { %5080 = vsyncpa [#allocation11], 1 }
 0x96a   :  { %5081 = vsyncpa [#allocation14], 1 }
 0x96b   :  { %5082 = vsyncpa [#allocation17], 1 }

</bundles_post_ra>
